<compile_context>
chip_gen: v7x
topology: tpu7x:2x2x1
jax: 0.10.0
libtpu: 0.0.40
codegen_flags: <defaults>
</compile_context>

<pallas_src>
import jax
import jax.numpy as jnp
from jax import lax
from jax.experimental import pallas as pl
from jax.experimental.pallas import tpu as pltpu

EPS = 1e-5
BATCH_BLOCK = 8   # samples per grid step; must be a multiple of 8 (sublane tile)


# ----------------------------------------------------------------------------
# Kernel: whole network for one batch block (grid axis = batch blocks)
# ----------------------------------------------------------------------------
def fused_convnet_kernel(
        cols1_ref,                       # (16,16,B,9)  block-1 im2col patches
        w1_ref, s1_ref,                  # (9,16),   (1,16)
        w2_ref, s2_ref,                  # (9,16,32), (1,32)
        w3_ref, s3_ref,                  # (9,32,64), (1,64)
        w4_ref, s4_ref,                  # (9,64,128),(1,128)
        fcw_ref, fcb_ref,                # (128,10), (1,10)
        out_ref,                         # (B,10)
        pad2_ref, pad3_ref, pad4_ref):   # zero-halo activation scratch
    B = out_ref.shape[0]

    def pool_shift_relu(y, shift_ref):
        """y: (s, s, B, C) conv output (BN scale already folded into weights).
        2x2/stride-2 max pool over the leading (H, W) dims (free slices, VPU
        max), then folded BN shift + ReLU.
        relu(maxpool(y + shift)) == relu(maxpool(y) + shift) per channel."""
        s, c = y.shape[0], y.shape[-1]
        yr = y.reshape(s // 2, 2, s, B, c)
        yh = jnp.maximum(yr[:, 0], yr[:, 1])                  # (s/2, s, B, C)
        yc = yh.reshape(s // 2, s // 2, 2, B, c)
        p = jnp.maximum(yc[:, :, 0], yc[:, :, 1])             # (s/2, s/2, B, C)
        return jnp.maximum(p + shift_ref[...], 0.0)

    def store_padded(pad_ref, act):
        """Write a (s,s,B,C) activation into the interior of a (s+2,s+2,B,C)
        scratch; refresh only the 1-wide zero halo (interior fully rewritten)."""
        s, _, b, c = act.shape
        zrow = jnp.zeros((1, s + 2, b, c), jnp.float32)
        zcol = jnp.zeros((s + 2, 1, b, c), jnp.float32)
        pad_ref[0:1, :, :, :] = zrow
        pad_ref[s + 1:s + 2, :, :, :] = zrow
        pad_ref[:, 0:1, :, :] = zcol
        pad_ref[:, s + 1:s + 2, :, :] = zcol
        pad_ref[1:s + 1, 1:s + 1, :, :] = act

    def conv_block(pad_ref, w_ref, shift_ref, size, cin, cout):
        """Conv3x3(pad=1, BN scale folded) -> shift -> ReLU -> MaxPool2x2.
        Each tap slab pad_ref[dy:dy+size, dx:dx+size] is a leading-dim slice
        (no relayout); its reshape to (size*size*B, cin) is layout preserving
        because B == 8 == one sublane tile."""
        m = size * size * B
        acc = jnp.zeros((m, cout), jnp.float32)
        for t in range(9):
            dy, dx = divmod(t, 3)
            slab = pad_ref[dy:dy + size, dx:dx + size, :, :].reshape(m, cin)
            acc = acc + jnp.dot(slab, w_ref[t],
                                preferred_element_type=jnp.float32)
        return pool_shift_relu(acc.reshape(size, size, B, cout), shift_ref)

    # block 1: 16x16x1 -> 8x8x16  (im2col prepared in wrapper -> one K=9 matmul)
    slab1 = cols1_ref[...].reshape(16 * 16 * B, 9)
    y1 = jnp.dot(slab1, w1_ref[...], preferred_element_type=jnp.float32)
    a1 = pool_shift_relu(y1.reshape(16, 16, B, 16), s1_ref)       # (8,8,B,16)

    # block 2: 8x8x16 -> 4x4x32
    store_padded(pad2_ref, a1)
    a2 = conv_block(pad2_ref, w2_ref, s2_ref, 8, 16, 32)          # (4,4,B,32)

    # block 3: 4x4x32 -> 2x2x64
    store_padded(pad3_ref, a2)
    a3 = conv_block(pad3_ref, w3_ref, s3_ref, 4, 32, 64)          # (2,2,B,64)

    # block 4: 2x2x64 -> 1x1x128
    store_padded(pad4_ref, a3)
    a4 = conv_block(pad4_ref, w4_ref, s4_ref, 2, 64, 128)         # (1,1,B,128)

    # fc1: (B,128) @ (128,10) + bias
    feat = a4.reshape(B, 128)
    out_ref[...] = (jnp.dot(feat, fcw_ref[...],
                            preferred_element_type=jnp.float32)
                    + fcb_ref[...])


# ----------------------------------------------------------------------------
# Wrapper (JAX glue: BN folding, block-1 im2col, pallas_call)
# ----------------------------------------------------------------------------
def convolution_forward(x_nchw, params, batch_block=BATCH_BLOCK):
    """Forward pass of the PyTorch `Convolution` module (eval semantics)."""
    B = batch_block
    assert B % 8 == 0, "batch block must be a multiple of the sublane tile (8)"
    n = x_nchw.shape[0]
    n_pad = -(-n // B) * B

    x = x_nchw.astype(jnp.float32).reshape(n, 16, 16)             # Cin == 1
    if n_pad != n:
        x = jnp.concatenate(
            [x, jnp.zeros((n_pad - n, 16, 16), jnp.float32)], axis=0)

    # Block-1 im2col done in XLA (tiny, Cin=1):
    #   cols[i, j, b, t=(dy*3+dx)] = x_padded[b, i+dy, j+dx]
    xp = jnp.transpose(jnp.pad(x, ((0, 0), (1, 1), (1, 1))), (1, 2, 0))
    cols = jnp.stack([xp[dy:dy + 16, dx:dx + 16]
                      for dy in range(3) for dx in range(3)], axis=-1)

    blocks = params["blocks"]
    # Fold BN scale into the conv weight columns (exact).
    w1, sc1, sh1 = blocks[0]
    w1m = (w1 * sc1[None, None, None, :]).reshape(9, 16).astype(jnp.float32)
    s1 = sh1.reshape(1, 16).astype(jnp.float32)
    wmats, shifts = [], []
    for (w, sc, sh) in blocks[1:]:
        cin, cout = w.shape[2], w.shape[3]
        wmats.append((w * sc[None, None, None, :])
                     .reshape(9, cin, cout).astype(jnp.float32))
        shifts.append(sh.reshape(1, cout).astype(jnp.float32))
    fc_w = params["fc_w"].astype(jnp.float32)
    fc_b = params["fc_b"].astype(jnp.float32)

    z2 = lambda i: (0, 0)
    z3 = lambda i: (0, 0, 0)
    in_specs = [pl.BlockSpec((16, 16, B, 9), lambda i: (0, 0, i, 0)),
                pl.BlockSpec(w1m.shape, z2), pl.BlockSpec(s1.shape, z2)]
    inputs = [cols, w1m, s1]
    for b in range(3):
        in_specs += [pl.BlockSpec(wmats[b].shape, z3),
                     pl.BlockSpec(shifts[b].shape, z2)]
        inputs += [wmats[b], shifts[b]]
    in_specs += [pl.BlockSpec(fc_w.shape, z2), pl.BlockSpec(fc_b.shape, z2)]
    inputs += [fc_w, fc_b]

    out = pl.pallas_call(
        fused_convnet_kernel,
        out_shape=jax.ShapeDtypeStruct((n_pad, 10), jnp.float32),
        grid=(n_pad // B,),
        in_specs=in_specs,
        out_specs=pl.BlockSpec((B, 10), lambda i: (i, 0)),
        scratch_shapes=[
            pltpu.VMEM((10, 10, B, 16), jnp.float32),   # padded block-2 input
            pltpu.VMEM((6, 6, B, 32), jnp.float32),     # padded block-3 input
            pltpu.VMEM((4, 4, B, 64), jnp.float32),     # padded block-4 input
        ],
        compiler_params=pltpu.CompilerParams(
            dimension_semantics=("parallel",)),
    )(*inputs)
    return out[:n]


# ----------------------------------------------------------------------------
# Deterministic parameter init (synthetic; shapes follow the nn.Module)
# ----------------------------------------------------------------------------
def init_params(key):
    chans = [1, 16, 32, 64, 128]
    blocks = []
    for i in range(4):
        key, kw, kb = jax.random.split(key, 3)
        cin, cout = chans[i], chans[i + 1]
        w = jax.random.normal(kw, (3, 3, cin, cout), jnp.float32) * 0.1  # HWIO
        conv_b = jax.random.normal(kb, (cout,), jnp.float32) * 0.1
        gamma = jnp.ones((cout,), jnp.float32)
        beta = jnp.zeros((cout,), jnp.float32)
        run_mean = jnp.zeros((cout,), jnp.float32)
        run_var = jnp.ones((cout,), jnp.float32)
        scale = gamma / jnp.sqrt(run_var + EPS)
        shift = beta + scale * (conv_b - run_mean)
        blocks.append((w, scale, shift))
    key, kw, kb = jax.random.split(key, 3)
    fc_w = jax.random.normal(kw, (128, 10), jnp.float32) * 0.1
    fc_b = jax.random.normal(kb, (1, 10), jnp.float32) * 0.1
    return {"blocks": blocks, "fc_w": fc_w, "fc_b": fc_b}


# ----------------------------------------------------------------------------
# Pure-JAX reference (correctness check of the fused rewrite)
# ----------------------------------------------------------------------------
def reference_forward(x_nchw, params):
    x = jnp.transpose(x_nchw, (0, 2, 3, 1)).astype(jnp.float32)
    for (w, scale, shift) in params["blocks"]:
        y = lax.conv_general_dilated(
            x, w, (1, 1), ((1, 1), (1, 1)),
            dimension_numbers=("NHWC", "HWIO", "NHWC"))
        y = y * scale + shift
        y = jnp.maximum(y, 0.0)
        x = lax.reduce_window(y, -jnp.inf, lax.max,
                              (1, 2, 2, 1), (1, 2, 2, 1), "VALID")
    feat = x.reshape(x.shape[0], x.shape[-1])
    return feat @ params["fc_w"] + params["fc_b"]


if __name__ == "__main__":
    key = jax.random.PRNGKey(0)
    key, kx, kp = jax.random.split(key, 3)

    # PyTorch-convention input: NCHW = (batch=2, channels=1, 16, 16)
    x = jax.random.normal(kx, (2, 1, 16, 16), jnp.float32)
    params = init_params(kp)

    out = jax.jit(convolution_forward)(x, params)
    out = jax.block_until_ready(out)

    ref = jax.block_until_ready(reference_forward(x, params))
    assert out.shape == (2, 10), out.shape
    assert jnp.allclose(out, ref, atol=1e-4, rtol=1e-4), (
        float(jnp.max(jnp.abs(out - ref))))

    print("KERNEL_OK")
</pallas_src>

<mosaic_0001>
module attributes {stable_mosaic.version = 11 : i64} {
  func.func @fused_convnet_kernel(%arg0: i32, %arg1: memref<16x16x8x9xf32, #tpu.memory_space<vmem>>, %arg2: memref<9x16xf32, #tpu.memory_space<vmem>>, %arg3: memref<1x16xf32, #tpu.memory_space<vmem>>, %arg4: memref<9x16x32xf32, #tpu.memory_space<vmem>>, %arg5: memref<1x32xf32, #tpu.memory_space<vmem>>, %arg6: memref<9x32x64xf32, #tpu.memory_space<vmem>>, %arg7: memref<1x64xf32, #tpu.memory_space<vmem>>, %arg8: memref<9x64x128xf32, #tpu.memory_space<vmem>>, %arg9: memref<1x128xf32, #tpu.memory_space<vmem>>, %arg10: memref<128x10xf32, #tpu.memory_space<vmem>>, %arg11: memref<1x10xf32, #tpu.memory_space<vmem>>, %arg12: memref<8x10xf32, #tpu.memory_space<vmem>>, %arg13: memref<10x10x8x16xf32, #tpu.memory_space<vmem>>, %arg14: memref<6x6x8x32xf32, #tpu.memory_space<vmem>>, %arg15: memref<4x4x8x64xf32, #tpu.memory_space<vmem>>) attributes {dimension_semantics = [#tpu.dimension_semantics<parallel>], iteration_bounds = array<i64: 1>, scalar_prefetch = 0 : i64, scratch_operands = 3 : i64, tpu.core_type = #tpu.core_type<tc>, window_params = [{transform_indices = @transform_0, window_bounds = array<i64: 16, 16, 8, 9>}, {pipeline_mode = #tpu.pipeline_mode<synchronous>, transform_indices = @transform_1, window_bounds = array<i64: 9, 16>}, {pipeline_mode = #tpu.pipeline_mode<synchronous>, transform_indices = @transform_2, window_bounds = array<i64: 1, 16>}, {pipeline_mode = #tpu.pipeline_mode<synchronous>, transform_indices = @transform_3, window_bounds = array<i64: 9, 16, 32>}, {pipeline_mode = #tpu.pipeline_mode<synchronous>, transform_indices = @transform_4, window_bounds = array<i64: 1, 32>}, {pipeline_mode = #tpu.pipeline_mode<synchronous>, transform_indices = @transform_5, window_bounds = array<i64: 9, 32, 64>}, {pipeline_mode = #tpu.pipeline_mode<synchronous>, transform_indices = @transform_6, window_bounds = array<i64: 1, 64>}, {pipeline_mode = #tpu.pipeline_mode<synchronous>, transform_indices = @transform_7, window_bounds = array<i64: 9, 64, 128>}, {pipeline_mode = #tpu.pipeline_mode<synchronous>, transform_indices = @transform_8, window_bounds = array<i64: 1, 128>}, {pipeline_mode = #tpu.pipeline_mode<synchronous>, transform_indices = @transform_9, window_bounds = array<i64: 128, 10>}, {pipeline_mode = #tpu.pipeline_mode<synchronous>, transform_indices = @transform_10, window_bounds = array<i64: 1, 10>}, {transform_indices = @transform_11, window_bounds = array<i64: 8, 10>}]} {
    %c0 = arith.constant 0 : index
    %c0_0 = arith.constant 0 : index
    %c0_1 = arith.constant 0 : index
    %c0_2 = arith.constant 0 : index
    %0 = vector.load %arg1[%c0, %c0_0, %c0_1, %c0_2] : memref<16x16x8x9xf32, #tpu.memory_space<vmem>>, vector<16x16x8x9xf32>
    %1 = vector.shape_cast %0 : vector<16x16x8x9xf32> to vector<2048x9xf32>
    %c0_3 = arith.constant 0 : index
    %c0_4 = arith.constant 0 : index
    %2 = vector.load %arg2[%c0_3, %c0_4] : memref<9x16xf32, #tpu.memory_space<vmem>>, vector<9x16xf32>
    %cst = arith.constant dense<0.000000e+00> : vector<2048x16xf32>
    %3 = tpu.matmul %1, %2, %cst {dimension_numbers = #tpu.dot_dimension_numbers<[1], [0], [0], [1], [0, 0, 1, 1], [], []>} : vector<2048x9xf32>, vector<9x16xf32>, vector<2048x16xf32> -> vector<2048x16xf32>
    %4 = vector.shape_cast %3 : vector<2048x16xf32> to vector<16x16x8x16xf32>
    %5 = vector.shape_cast %4 : vector<16x16x8x16xf32> to vector<8x2x16x8x16xf32>
    %6 = vector.extract_strided_slice %5 {offsets = [0, 0, 0, 0, 0], sizes = [8, 1, 16, 8, 16], strides = [1, 1, 1, 1, 1]} : vector<8x2x16x8x16xf32> to vector<8x1x16x8x16xf32>
    %7 = vector.shape_cast %6 : vector<8x1x16x8x16xf32> to vector<8x16x8x16xf32>
    %8 = vector.extract_strided_slice %5 {offsets = [0, 1, 0, 0, 0], sizes = [8, 1, 16, 8, 16], strides = [1, 1, 1, 1, 1]} : vector<8x2x16x8x16xf32> to vector<8x1x16x8x16xf32>
    %9 = vector.shape_cast %8 : vector<8x1x16x8x16xf32> to vector<8x16x8x16xf32>
    %10 = arith.maximumf %7, %9 : vector<8x16x8x16xf32>
    %11 = vector.shape_cast %10 : vector<8x16x8x16xf32> to vector<8x8x2x8x16xf32>
    %12 = vector.extract_strided_slice %11 {offsets = [0, 0, 0, 0, 0], sizes = [8, 8, 1, 8, 16], strides = [1, 1, 1, 1, 1]} : vector<8x8x2x8x16xf32> to vector<8x8x1x8x16xf32>
    %13 = vector.shape_cast %12 : vector<8x8x1x8x16xf32> to vector<8x8x8x16xf32>
    %14 = vector.extract_strided_slice %11 {offsets = [0, 0, 1, 0, 0], sizes = [8, 8, 1, 8, 16], strides = [1, 1, 1, 1, 1]} : vector<8x8x2x8x16xf32> to vector<8x8x1x8x16xf32>
    %15 = vector.shape_cast %14 : vector<8x8x1x8x16xf32> to vector<8x8x8x16xf32>
    %16 = arith.maximumf %13, %15 : vector<8x8x8x16xf32>
    %c0_5 = arith.constant 0 : index
    %c0_6 = arith.constant 0 : index
    %17 = vector.load %arg3[%c0_5, %c0_6] : memref<1x16xf32, #tpu.memory_space<vmem>>, vector<1x16xf32>
    %18 = vector.shape_cast %17 : vector<1x16xf32> to vector<1x1x1x16xf32>
    %19 = vector.broadcast %18 : vector<1x1x1x16xf32> to vector<8x8x8x16xf32>
    %20 = arith.addf %16, %19 : vector<8x8x8x16xf32>
    %cst_7 = arith.constant 0.000000e+00 : f32
    %21 = vector.broadcast %cst_7 : f32 to vector<8x8x8x16xf32>
    %22 = arith.maximumf %20, %21 : vector<8x8x8x16xf32>
    %cst_8 = arith.constant 0.000000e+00 : f32
    %23 = vector.broadcast %cst_8 : f32 to vector<1x10x8x16xf32>
    %cst_9 = arith.constant 0.000000e+00 : f32
    %24 = vector.broadcast %cst_9 : f32 to vector<10x1x8x16xf32>
    %c0_10 = arith.constant 0 : index
    %c0_11 = arith.constant 0 : index
    %c0_12 = arith.constant 0 : index
    %c0_13 = arith.constant 0 : index
    %25 = vector.load %arg13[%c0_10, %c0_11, %c0_12, %c0_13] : memref<10x10x8x16xf32, #tpu.memory_space<vmem>>, vector<1x10x8x16xf32>
    tpu.vector_store %arg13[%c0_10, %c0_11, %c0_12, %c0_13], %23 {strides = array<i32>} : memref<10x10x8x16xf32, #tpu.memory_space<vmem>>, vector<1x10x8x16xf32>,
    %c9 = arith.constant 9 : index
    %c0_14 = arith.constant 0 : index
    %c0_15 = arith.constant 0 : index
    %c0_16 = arith.constant 0 : index
    %26 = vector.load %arg13[%c9, %c0_14, %c0_15, %c0_16] : memref<10x10x8x16xf32, #tpu.memory_space<vmem>>, vector<1x10x8x16xf32>
    tpu.vector_store %arg13[%c9, %c0_14, %c0_15, %c0_16], %23 {strides = array<i32>} : memref<10x10x8x16xf32, #tpu.memory_space<vmem>>, vector<1x10x8x16xf32>,
    %c0_17 = arith.constant 0 : index
    %c0_18 = arith.constant 0 : index
    %c0_19 = arith.constant 0 : index
    %c0_20 = arith.constant 0 : index
    %27 = vector.load %arg13[%c0_17, %c0_18, %c0_19, %c0_20] : memref<10x10x8x16xf32, #tpu.memory_space<vmem>>, vector<10x1x8x16xf32>
    tpu.vector_store %arg13[%c0_17, %c0_18, %c0_19, %c0_20], %24 {strides = array<i32>} : memref<10x10x8x16xf32, #tpu.memory_space<vmem>>, vector<10x1x8x16xf32>,
    %c0_21 = arith.constant 0 : index
    %c9_22 = arith.constant 9 : index
    %c0_23 = arith.constant 0 : index
    %c0_24 = arith.constant 0 : index
    %28 = vector.load %arg13[%c0_21, %c9_22, %c0_23, %c0_24] : memref<10x10x8x16xf32, #tpu.memory_space<vmem>>, vector<10x1x8x16xf32>
    tpu.vector_store %arg13[%c0_21, %c9_22, %c0_23, %c0_24], %24 {strides = array<i32>} : memref<10x10x8x16xf32, #tpu.memory_space<vmem>>, vector<10x1x8x16xf32>,
    %c1 = arith.constant 1 : index
    %c1_25 = arith.constant 1 : index
    %c0_26 = arith.constant 0 : index
    %c0_27 = arith.constant 0 : index
    %29 = vector.load %arg13[%c1, %c1_25, %c0_26, %c0_27] : memref<10x10x8x16xf32, #tpu.memory_space<vmem>>, vector<8x8x8x16xf32>
    tpu.vector_store %arg13[%c1, %c1_25, %c0_26, %c0_27], %22 {strides = array<i32>} : memref<10x10x8x16xf32, #tpu.memory_space<vmem>>, vector<8x8x8x16xf32>,
    %cst_28 = arith.constant 0.000000e+00 : f32
    %30 = vector.broadcast %cst_28 : f32 to vector<512x32xf32>
    %c0_29 = arith.constant 0 : index
    %c0_30 = arith.constant 0 : index
    %c0_31 = arith.constant 0 : index
    %c0_32 = arith.constant 0 : index
    %31 = vector.load %arg13[%c0_29, %c0_30, %c0_31, %c0_32] : memref<10x10x8x16xf32, #tpu.memory_space<vmem>>, vector<8x8x8x16xf32>
    %32 = vector.shape_cast %31 : vector<8x8x8x16xf32> to vector<512x16xf32>
    %c0_33 = arith.constant 0 : index
    %c0_34 = arith.constant 0 : index
    %c0_35 = arith.constant 0 : index
    %33 = vector.load %arg4[%c0_33, %c0_34, %c0_35] : memref<9x16x32xf32, #tpu.memory_space<vmem>>, vector<1x16x32xf32>
    %34 = vector.shape_cast %33 : vector<1x16x32xf32> to vector<16x32xf32>
    %cst_36 = arith.constant dense<0.000000e+00> : vector<512x32xf32>
    %35 = tpu.matmul %32, %34, %cst_36 {dimension_numbers = #tpu.dot_dimension_numbers<[1], [0], [0], [1], [0, 0, 1, 1], [], []>} : vector<512x16xf32>, vector<16x32xf32>, vector<512x32xf32> -> vector<512x32xf32>
    %36 = arith.addf %30, %35 : vector<512x32xf32>
    %c0_37 = arith.constant 0 : index
    %c1_38 = arith.constant 1 : index
    %c0_39 = arith.constant 0 : index
    %c0_40 = arith.constant 0 : index
    %37 = vector.load %arg13[%c0_37, %c1_38, %c0_39, %c0_40] : memref<10x10x8x16xf32, #tpu.memory_space<vmem>>, vector<8x8x8x16xf32>
    %38 = vector.shape_cast %37 : vector<8x8x8x16xf32> to vector<512x16xf32>
    %c1_41 = arith.constant 1 : index
    %c0_42 = arith.constant 0 : index
    %c0_43 = arith.constant 0 : index
    %39 = vector.load %arg4[%c1_41, %c0_42, %c0_43] : memref<9x16x32xf32, #tpu.memory_space<vmem>>, vector<1x16x32xf32>
    %40 = vector.shape_cast %39 : vector<1x16x32xf32> to vector<16x32xf32>
    %cst_44 = arith.constant dense<0.000000e+00> : vector<512x32xf32>
    %41 = tpu.matmul %38, %40, %cst_44 {dimension_numbers = #tpu.dot_dimension_numbers<[1], [0], [0], [1], [0, 0, 1, 1], [], []>} : vector<512x16xf32>, vector<16x32xf32>, vector<512x32xf32> -> vector<512x32xf32>
    %42 = arith.addf %36, %41 : vector<512x32xf32>
    %c0_45 = arith.constant 0 : index
    %c2 = arith.constant 2 : index
    %c0_46 = arith.constant 0 : index
    %c0_47 = arith.constant 0 : index
    %43 = vector.load %arg13[%c0_45, %c2, %c0_46, %c0_47] : memref<10x10x8x16xf32, #tpu.memory_space<vmem>>, vector<8x8x8x16xf32>
    %44 = vector.shape_cast %43 : vector<8x8x8x16xf32> to vector<512x16xf32>
    %c2_48 = arith.constant 2 : index
    %c0_49 = arith.constant 0 : index
    %c0_50 = arith.constant 0 : index
    %45 = vector.load %arg4[%c2_48, %c0_49, %c0_50] : memref<9x16x32xf32, #tpu.memory_space<vmem>>, vector<1x16x32xf32>
    %46 = vector.shape_cast %45 : vector<1x16x32xf32> to vector<16x32xf32>
    %cst_51 = arith.constant dense<0.000000e+00> : vector<512x32xf32>
    %47 = tpu.matmul %44, %46, %cst_51 {dimension_numbers = #tpu.dot_dimension_numbers<[1], [0], [0], [1], [0, 0, 1, 1], [], []>} : vector<512x16xf32>, vector<16x32xf32>, vector<512x32xf32> -> vector<512x32xf32>
    %48 = arith.addf %42, %47 : vector<512x32xf32>
    %c1_52 = arith.constant 1 : index
    %c0_53 = arith.constant 0 : index
    %c0_54 = arith.constant 0 : index
    %c0_55 = arith.constant 0 : index
    %49 = vector.load %arg13[%c1_52, %c0_53, %c0_54, %c0_55] : memref<10x10x8x16xf32, #tpu.memory_space<vmem>>, vector<8x8x8x16xf32>
    %50 = vector.shape_cast %49 : vector<8x8x8x16xf32> to vector<512x16xf32>
    %c3 = arith.constant 3 : index
    %c0_56 = arith.constant 0 : index
    %c0_57 = arith.constant 0 : index
    %51 = vector.load %arg4[%c3, %c0_56, %c0_57] : memref<9x16x32xf32, #tpu.memory_space<vmem>>, vector<1x16x32xf32>
    %52 = vector.shape_cast %51 : vector<1x16x32xf32> to vector<16x32xf32>
    %cst_58 = arith.constant dense<0.000000e+00> : vector<512x32xf32>
    %53 = tpu.matmul %50, %52, %cst_58 {dimension_numbers = #tpu.dot_dimension_numbers<[1], [0], [0], [1], [0, 0, 1, 1], [], []>} : vector<512x16xf32>, vector<16x32xf32>, vector<512x32xf32> -> vector<512x32xf32>
    %54 = arith.addf %48, %53 : vector<512x32xf32>
    %c1_59 = arith.constant 1 : index
    %c1_60 = arith.constant 1 : index
    %c0_61 = arith.constant 0 : index
    %c0_62 = arith.constant 0 : index
    %55 = vector.load %arg13[%c1_59, %c1_60, %c0_61, %c0_62] : memref<10x10x8x16xf32, #tpu.memory_space<vmem>>, vector<8x8x8x16xf32>
    %56 = vector.shape_cast %55 : vector<8x8x8x16xf32> to vector<512x16xf32>
    %c4 = arith.constant 4 : index
    %c0_63 = arith.constant 0 : index
    %c0_64 = arith.constant 0 : index
    %57 = vector.load %arg4[%c4, %c0_63, %c0_64] : memref<9x16x32xf32, #tpu.memory_space<vmem>>, vector<1x16x32xf32>
    %58 = vector.shape_cast %57 : vector<1x16x32xf32> to vector<16x32xf32>
    %cst_65 = arith.constant dense<0.000000e+00> : vector<512x32xf32>
    %59 = tpu.matmul %56, %58, %cst_65 {dimension_numbers = #tpu.dot_dimension_numbers<[1], [0], [0], [1], [0, 0, 1, 1], [], []>} : vector<512x16xf32>, vector<16x32xf32>, vector<512x32xf32> -> vector<512x32xf32>
    %60 = arith.addf %54, %59 : vector<512x32xf32>
    %c1_66 = arith.constant 1 : index
    %c2_67 = arith.constant 2 : index
    %c0_68 = arith.constant 0 : index
    %c0_69 = arith.constant 0 : index
    %61 = vector.load %arg13[%c1_66, %c2_67, %c0_68, %c0_69] : memref<10x10x8x16xf32, #tpu.memory_space<vmem>>, vector<8x8x8x16xf32>
    %62 = vector.shape_cast %61 : vector<8x8x8x16xf32> to vector<512x16xf32>
    %c5 = arith.constant 5 : index
    %c0_70 = arith.constant 0 : index
    %c0_71 = arith.constant 0 : index
    %63 = vector.load %arg4[%c5, %c0_70, %c0_71] : memref<9x16x32xf32, #tpu.memory_space<vmem>>, vector<1x16x32xf32>
    %64 = vector.shape_cast %63 : vector<1x16x32xf32> to vector<16x32xf32>
    %cst_72 = arith.constant dense<0.000000e+00> : vector<512x32xf32>
    %65 = tpu.matmul %62, %64, %cst_72 {dimension_numbers = #tpu.dot_dimension_numbers<[1], [0], [0], [1], [0, 0, 1, 1], [], []>} : vector<512x16xf32>, vector<16x32xf32>, vector<512x32xf32> -> vector<512x32xf32>
    %66 = arith.addf %60, %65 : vector<512x32xf32>
    %c2_73 = arith.constant 2 : index
    %c0_74 = arith.constant 0 : index
    %c0_75 = arith.constant 0 : index
    %c0_76 = arith.constant 0 : index
    %67 = vector.load %arg13[%c2_73, %c0_74, %c0_75, %c0_76] : memref<10x10x8x16xf32, #tpu.memory_space<vmem>>, vector<8x8x8x16xf32>
    %68 = vector.shape_cast %67 : vector<8x8x8x16xf32> to vector<512x16xf32>
    %c6 = arith.constant 6 : index
    %c0_77 = arith.constant 0 : index
    %c0_78 = arith.constant 0 : index
    %69 = vector.load %arg4[%c6, %c0_77, %c0_78] : memref<9x16x32xf32, #tpu.memory_space<vmem>>, vector<1x16x32xf32>
    %70 = vector.shape_cast %69 : vector<1x16x32xf32> to vector<16x32xf32>
    %cst_79 = arith.constant dense<0.000000e+00> : vector<512x32xf32>
    %71 = tpu.matmul %68, %70, %cst_79 {dimension_numbers = #tpu.dot_dimension_numbers<[1], [0], [0], [1], [0, 0, 1, 1], [], []>} : vector<512x16xf32>, vector<16x32xf32>, vector<512x32xf32> -> vector<512x32xf32>
    %72 = arith.addf %66, %71 : vector<512x32xf32>
    %c2_80 = arith.constant 2 : index
    %c1_81 = arith.constant 1 : index
    %c0_82 = arith.constant 0 : index
    %c0_83 = arith.constant 0 : index
    %73 = vector.load %arg13[%c2_80, %c1_81, %c0_82, %c0_83] : memref<10x10x8x16xf32, #tpu.memory_space<vmem>>, vector<8x8x8x16xf32>
    %74 = vector.shape_cast %73 : vector<8x8x8x16xf32> to vector<512x16xf32>
    %c7 = arith.constant 7 : index
    %c0_84 = arith.constant 0 : index
    %c0_85 = arith.constant 0 : index
    %75 = vector.load %arg4[%c7, %c0_84, %c0_85] : memref<9x16x32xf32, #tpu.memory_space<vmem>>, vector<1x16x32xf32>
    %76 = vector.shape_cast %75 : vector<1x16x32xf32> to vector<16x32xf32>
    %cst_86 = arith.constant dense<0.000000e+00> : vector<512x32xf32>
    %77 = tpu.matmul %74, %76, %cst_86 {dimension_numbers = #tpu.dot_dimension_numbers<[1], [0], [0], [1], [0, 0, 1, 1], [], []>} : vector<512x16xf32>, vector<16x32xf32>, vector<512x32xf32> -> vector<512x32xf32>
    %78 = arith.addf %72, %77 : vector<512x32xf32>
    %c2_87 = arith.constant 2 : index
    %c2_88 = arith.constant 2 : index
    %c0_89 = arith.constant 0 : index
    %c0_90 = arith.constant 0 : index
    %79 = vector.load %arg13[%c2_87, %c2_88, %c0_89, %c0_90] : memref<10x10x8x16xf32, #tpu.memory_space<vmem>>, vector<8x8x8x16xf32>
    %80 = vector.shape_cast %79 : vector<8x8x8x16xf32> to vector<512x16xf32>
    %c8 = arith.constant 8 : index
    %c0_91 = arith.constant 0 : index
    %c0_92 = arith.constant 0 : index
    %81 = vector.load %arg4[%c8, %c0_91, %c0_92] : memref<9x16x32xf32, #tpu.memory_space<vmem>>, vector<1x16x32xf32>
    %82 = vector.shape_cast %81 : vector<1x16x32xf32> to vector<16x32xf32>
    %cst_93 = arith.constant dense<0.000000e+00> : vector<512x32xf32>
    %83 = tpu.matmul %80, %82, %cst_93 {dimension_numbers = #tpu.dot_dimension_numbers<[1], [0], [0], [1], [0, 0, 1, 1], [], []>} : vector<512x16xf32>, vector<16x32xf32>, vector<512x32xf32> -> vector<512x32xf32>
    %84 = arith.addf %78, %83 : vector<512x32xf32>
    %85 = vector.shape_cast %84 : vector<512x32xf32> to vector<8x8x8x32xf32>
    %86 = vector.shape_cast %85 : vector<8x8x8x32xf32> to vector<4x2x8x8x32xf32>
    %87 = vector.extract_strided_slice %86 {offsets = [0, 0, 0, 0, 0], sizes = [4, 1, 8, 8, 32], strides = [1, 1, 1, 1, 1]} : vector<4x2x8x8x32xf32> to vector<4x1x8x8x32xf32>
    %88 = vector.shape_cast %87 : vector<4x1x8x8x32xf32> to vector<4x8x8x32xf32>
    %89 = vector.extract_strided_slice %86 {offsets = [0, 1, 0, 0, 0], sizes = [4, 1, 8, 8, 32], strides = [1, 1, 1, 1, 1]} : vector<4x2x8x8x32xf32> to vector<4x1x8x8x32xf32>
    %90 = vector.shape_cast %89 : vector<4x1x8x8x32xf32> to vector<4x8x8x32xf32>
    %91 = arith.maximumf %88, %90 : vector<4x8x8x32xf32>
    %92 = vector.shape_cast %91 : vector<4x8x8x32xf32> to vector<4x4x2x8x32xf32>
    %93 = vector.extract_strided_slice %92 {offsets = [0, 0, 0, 0, 0], sizes = [4, 4, 1, 8, 32], strides = [1, 1, 1, 1, 1]} : vector<4x4x2x8x32xf32> to vector<4x4x1x8x32xf32>
    %94 = vector.shape_cast %93 : vector<4x4x1x8x32xf32> to vector<4x4x8x32xf32>
    %95 = vector.extract_strided_slice %92 {offsets = [0, 0, 1, 0, 0], sizes = [4, 4, 1, 8, 32], strides = [1, 1, 1, 1, 1]} : vector<4x4x2x8x32xf32> to vector<4x4x1x8x32xf32>
    %96 = vector.shape_cast %95 : vector<4x4x1x8x32xf32> to vector<4x4x8x32xf32>
    %97 = arith.maximumf %94, %96 : vector<4x4x8x32xf32>
    %c0_94 = arith.constant 0 : index
    %c0_95 = arith.constant 0 : index
    %98 = vector.load %arg5[%c0_94, %c0_95] : memref<1x32xf32, #tpu.memory_space<vmem>>, vector<1x32xf32>
    %99 = vector.shape_cast %98 : vector<1x32xf32> to vector<1x1x1x32xf32>
    %100 = vector.broadcast %99 : vector<1x1x1x32xf32> to vector<4x4x8x32xf32>
    %101 = arith.addf %97, %100 : vector<4x4x8x32xf32>
    %cst_96 = arith.constant 0.000000e+00 : f32
    %102 = vector.broadcast %cst_96 : f32 to vector<4x4x8x32xf32>
    %103 = arith.maximumf %101, %102 : vector<4x4x8x32xf32>
    %cst_97 = arith.constant 0.000000e+00 : f32
    %104 = vector.broadcast %cst_97 : f32 to vector<1x6x8x32xf32>
    %cst_98 = arith.constant 0.000000e+00 : f32
    %105 = vector.broadcast %cst_98 : f32 to vector<6x1x8x32xf32>
    %c0_99 = arith.constant 0 : index
    %c0_100 = arith.constant 0 : index
    %c0_101 = arith.constant 0 : index
    %c0_102 = arith.constant 0 : index
    %106 = vector.load %arg14[%c0_99, %c0_100, %c0_101, %c0_102] : memref<6x6x8x32xf32, #tpu.memory_space<vmem>>, vector<1x6x8x32xf32>
    tpu.vector_store %arg14[%c0_99, %c0_100, %c0_101, %c0_102], %104 {strides = array<i32>} : memref<6x6x8x32xf32, #tpu.memory_space<vmem>>, vector<1x6x8x32xf32>,
    %c5_103 = arith.constant 5 : index
    %c0_104 = arith.constant 0 : index
    %c0_105 = arith.constant 0 : index
    %c0_106 = arith.constant 0 : index
    %107 = vector.load %arg14[%c5_103, %c0_104, %c0_105, %c0_106] : memref<6x6x8x32xf32, #tpu.memory_space<vmem>>, vector<1x6x8x32xf32>
    tpu.vector_store %arg14[%c5_103, %c0_104, %c0_105, %c0_106], %104 {strides = array<i32>} : memref<6x6x8x32xf32, #tpu.memory_space<vmem>>, vector<1x6x8x32xf32>,
    %c0_107 = arith.constant 0 : index
    %c0_108 = arith.constant 0 : index
    %c0_109 = arith.constant 0 : index
    %c0_110 = arith.constant 0 : index
    %108 = vector.load %arg14[%c0_107, %c0_108, %c0_109, %c0_110] : memref<6x6x8x32xf32, #tpu.memory_space<vmem>>, vector<6x1x8x32xf32>
    tpu.vector_store %arg14[%c0_107, %c0_108, %c0_109, %c0_110], %105 {strides = array<i32>} : memref<6x6x8x32xf32, #tpu.memory_space<vmem>>, vector<6x1x8x32xf32>,
    %c0_111 = arith.constant 0 : index
    %c5_112 = arith.constant 5 : index
    %c0_113 = arith.constant 0 : index
    %c0_114 = arith.constant 0 : index
    %109 = vector.load %arg14[%c0_111, %c5_112, %c0_113, %c0_114] : memref<6x6x8x32xf32, #tpu.memory_space<vmem>>, vector<6x1x8x32xf32>
    tpu.vector_store %arg14[%c0_111, %c5_112, %c0_113, %c0_114], %105 {strides = array<i32>} : memref<6x6x8x32xf32, #tpu.memory_space<vmem>>, vector<6x1x8x32xf32>,
    %c1_115 = arith.constant 1 : index
    %c1_116 = arith.constant 1 : index
    %c0_117 = arith.constant 0 : index
    %c0_118 = arith.constant 0 : index
    %110 = vector.load %arg14[%c1_115, %c1_116, %c0_117, %c0_118] : memref<6x6x8x32xf32, #tpu.memory_space<vmem>>, vector<4x4x8x32xf32>
    tpu.vector_store %arg14[%c1_115, %c1_116, %c0_117, %c0_118], %103 {strides = array<i32>} : memref<6x6x8x32xf32, #tpu.memory_space<vmem>>, vector<4x4x8x32xf32>,
    %cst_119 = arith.constant 0.000000e+00 : f32
    %111 = vector.broadcast %cst_119 : f32 to vector<128x64xf32>
    %c0_120 = arith.constant 0 : index
    %c0_121 = arith.constant 0 : index
    %c0_122 = arith.constant 0 : index
    %c0_123 = arith.constant 0 : index
    %112 = vector.load %arg14[%c0_120, %c0_121, %c0_122, %c0_123] : memref<6x6x8x32xf32, #tpu.memory_space<vmem>>, vector<4x4x8x32xf32>
    %113 = vector.shape_cast %112 : vector<4x4x8x32xf32> to vector<128x32xf32>
    %c0_124 = arith.constant 0 : index
    %c0_125 = arith.constant 0 : index
    %c0_126 = arith.constant 0 : index
    %114 = vector.load %arg6[%c0_124, %c0_125, %c0_126] : memref<9x32x64xf32, #tpu.memory_space<vmem>>, vector<1x32x64xf32>
    %115 = vector.shape_cast %114 : vector<1x32x64xf32> to vector<32x64xf32>
    %cst_127 = arith.constant dense<0.000000e+00> : vector<128x64xf32>
    %116 = tpu.matmul %113, %115, %cst_127 {dimension_numbers = #tpu.dot_dimension_numbers<[1], [0], [0], [1], [0, 0, 1, 1], [], []>} : vector<128x32xf32>, vector<32x64xf32>, vector<128x64xf32> -> vector<128x64xf32>
    %117 = arith.addf %111, %116 : vector<128x64xf32>
    %c0_128 = arith.constant 0 : index
    %c1_129 = arith.constant 1 : index
    %c0_130 = arith.constant 0 : index
    %c0_131 = arith.constant 0 : index
    %118 = vector.load %arg14[%c0_128, %c1_129, %c0_130, %c0_131] : memref<6x6x8x32xf32, #tpu.memory_space<vmem>>, vector<4x4x8x32xf32>
    %119 = vector.shape_cast %118 : vector<4x4x8x32xf32> to vector<128x32xf32>
    %c1_132 = arith.constant 1 : index
    %c0_133 = arith.constant 0 : index
    %c0_134 = arith.constant 0 : index
    %120 = vector.load %arg6[%c1_132, %c0_133, %c0_134] : memref<9x32x64xf32, #tpu.memory_space<vmem>>, vector<1x32x64xf32>
    %121 = vector.shape_cast %120 : vector<1x32x64xf32> to vector<32x64xf32>
    %cst_135 = arith.constant dense<0.000000e+00> : vector<128x64xf32>
    %122 = tpu.matmul %119, %121, %cst_135 {dimension_numbers = #tpu.dot_dimension_numbers<[1], [0], [0], [1], [0, 0, 1, 1], [], []>} : vector<128x32xf32>, vector<32x64xf32>, vector<128x64xf32> -> vector<128x64xf32>
    %123 = arith.addf %117, %122 : vector<128x64xf32>
    %c0_136 = arith.constant 0 : index
    %c2_137 = arith.constant 2 : index
    %c0_138 = arith.constant 0 : index
    %c0_139 = arith.constant 0 : index
    %124 = vector.load %arg14[%c0_136, %c2_137, %c0_138, %c0_139] : memref<6x6x8x32xf32, #tpu.memory_space<vmem>>, vector<4x4x8x32xf32>
    %125 = vector.shape_cast %124 : vector<4x4x8x32xf32> to vector<128x32xf32>
    %c2_140 = arith.constant 2 : index
    %c0_141 = arith.constant 0 : index
    %c0_142 = arith.constant 0 : index
    %126 = vector.load %arg6[%c2_140, %c0_141, %c0_142] : memref<9x32x64xf32, #tpu.memory_space<vmem>>, vector<1x32x64xf32>
    %127 = vector.shape_cast %126 : vector<1x32x64xf32> to vector<32x64xf32>
    %cst_143 = arith.constant dense<0.000000e+00> : vector<128x64xf32>
    %128 = tpu.matmul %125, %127, %cst_143 {dimension_numbers = #tpu.dot_dimension_numbers<[1], [0], [0], [1], [0, 0, 1, 1], [], []>} : vector<128x32xf32>, vector<32x64xf32>, vector<128x64xf32> -> vector<128x64xf32>
    %129 = arith.addf %123, %128 : vector<128x64xf32>
    %c1_144 = arith.constant 1 : index
    %c0_145 = arith.constant 0 : index
    %c0_146 = arith.constant 0 : index
    %c0_147 = arith.constant 0 : index
    %130 = vector.load %arg14[%c1_144, %c0_145, %c0_146, %c0_147] : memref<6x6x8x32xf32, #tpu.memory_space<vmem>>, vector<4x4x8x32xf32>
    %131 = vector.shape_cast %130 : vector<4x4x8x32xf32> to vector<128x32xf32>
    %c3_148 = arith.constant 3 : index
    %c0_149 = arith.constant 0 : index
    %c0_150 = arith.constant 0 : index
    %132 = vector.load %arg6[%c3_148, %c0_149, %c0_150] : memref<9x32x64xf32, #tpu.memory_space<vmem>>, vector<1x32x64xf32>
    %133 = vector.shape_cast %132 : vector<1x32x64xf32> to vector<32x64xf32>
    %cst_151 = arith.constant dense<0.000000e+00> : vector<128x64xf32>
    %134 = tpu.matmul %131, %133, %cst_151 {dimension_numbers = #tpu.dot_dimension_numbers<[1], [0], [0], [1], [0, 0, 1, 1], [], []>} : vector<128x32xf32>, vector<32x64xf32>, vector<128x64xf32> -> vector<128x64xf32>
    %135 = arith.addf %129, %134 : vector<128x64xf32>
    %c1_152 = arith.constant 1 : index
    %c1_153 = arith.constant 1 : index
    %c0_154 = arith.constant 0 : index
    %c0_155 = arith.constant 0 : index
    %136 = vector.load %arg14[%c1_152, %c1_153, %c0_154, %c0_155] : memref<6x6x8x32xf32, #tpu.memory_space<vmem>>, vector<4x4x8x32xf32>
    %137 = vector.shape_cast %136 : vector<4x4x8x32xf32> to vector<128x32xf32>
    %c4_156 = arith.constant 4 : index
    %c0_157 = arith.constant 0 : index
    %c0_158 = arith.constant 0 : index
    %138 = vector.load %arg6[%c4_156, %c0_157, %c0_158] : memref<9x32x64xf32, #tpu.memory_space<vmem>>, vector<1x32x64xf32>
    %139 = vector.shape_cast %138 : vector<1x32x64xf32> to vector<32x64xf32>
    %cst_159 = arith.constant dense<0.000000e+00> : vector<128x64xf32>
    %140 = tpu.matmul %137, %139, %cst_159 {dimension_numbers = #tpu.dot_dimension_numbers<[1], [0], [0], [1], [0, 0, 1, 1], [], []>} : vector<128x32xf32>, vector<32x64xf32>, vector<128x64xf32> -> vector<128x64xf32>
    %141 = arith.addf %135, %140 : vector<128x64xf32>
    %c1_160 = arith.constant 1 : index
    %c2_161 = arith.constant 2 : index
    %c0_162 = arith.constant 0 : index
    %c0_163 = arith.constant 0 : index
    %142 = vector.load %arg14[%c1_160, %c2_161, %c0_162, %c0_163] : memref<6x6x8x32xf32, #tpu.memory_space<vmem>>, vector<4x4x8x32xf32>
    %143 = vector.shape_cast %142 : vector<4x4x8x32xf32> to vector<128x32xf32>
    %c5_164 = arith.constant 5 : index
    %c0_165 = arith.constant 0 : index
    %c0_166 = arith.constant 0 : index
    %144 = vector.load %arg6[%c5_164, %c0_165, %c0_166] : memref<9x32x64xf32, #tpu.memory_space<vmem>>, vector<1x32x64xf32>
    %145 = vector.shape_cast %144 : vector<1x32x64xf32> to vector<32x64xf32>
    %cst_167 = arith.constant dense<0.000000e+00> : vector<128x64xf32>
    %146 = tpu.matmul %143, %145, %cst_167 {dimension_numbers = #tpu.dot_dimension_numbers<[1], [0], [0], [1], [0, 0, 1, 1], [], []>} : vector<128x32xf32>, vector<32x64xf32>, vector<128x64xf32> -> vector<128x64xf32>
    %147 = arith.addf %141, %146 : vector<128x64xf32>
    %c2_168 = arith.constant 2 : index
    %c0_169 = arith.constant 0 : index
    %c0_170 = arith.constant 0 : index
    %c0_171 = arith.constant 0 : index
    %148 = vector.load %arg14[%c2_168, %c0_169, %c0_170, %c0_171] : memref<6x6x8x32xf32, #tpu.memory_space<vmem>>, vector<4x4x8x32xf32>
    %149 = vector.shape_cast %148 : vector<4x4x8x32xf32> to vector<128x32xf32>
    %c6_172 = arith.constant 6 : index
    %c0_173 = arith.constant 0 : index
    %c0_174 = arith.constant 0 : index
    %150 = vector.load %arg6[%c6_172, %c0_173, %c0_174] : memref<9x32x64xf32, #tpu.memory_space<vmem>>, vector<1x32x64xf32>
    %151 = vector.shape_cast %150 : vector<1x32x64xf32> to vector<32x64xf32>
    %cst_175 = arith.constant dense<0.000000e+00> : vector<128x64xf32>
    %152 = tpu.matmul %149, %151, %cst_175 {dimension_numbers = #tpu.dot_dimension_numbers<[1], [0], [0], [1], [0, 0, 1, 1], [], []>} : vector<128x32xf32>, vector<32x64xf32>, vector<128x64xf32> -> vector<128x64xf32>
    %153 = arith.addf %147, %152 : vector<128x64xf32>
    %c2_176 = arith.constant 2 : index
    %c1_177 = arith.constant 1 : index
    %c0_178 = arith.constant 0 : index
    %c0_179 = arith.constant 0 : index
    %154 = vector.load %arg14[%c2_176, %c1_177, %c0_178, %c0_179] : memref<6x6x8x32xf32, #tpu.memory_space<vmem>>, vector<4x4x8x32xf32>
    %155 = vector.shape_cast %154 : vector<4x4x8x32xf32> to vector<128x32xf32>
    %c7_180 = arith.constant 7 : index
    %c0_181 = arith.constant 0 : index
    %c0_182 = arith.constant 0 : index
    %156 = vector.load %arg6[%c7_180, %c0_181, %c0_182] : memref<9x32x64xf32, #tpu.memory_space<vmem>>, vector<1x32x64xf32>
    %157 = vector.shape_cast %156 : vector<1x32x64xf32> to vector<32x64xf32>
    %cst_183 = arith.constant dense<0.000000e+00> : vector<128x64xf32>
    %158 = tpu.matmul %155, %157, %cst_183 {dimension_numbers = #tpu.dot_dimension_numbers<[1], [0], [0], [1], [0, 0, 1, 1], [], []>} : vector<128x32xf32>, vector<32x64xf32>, vector<128x64xf32> -> vector<128x64xf32>
    %159 = arith.addf %153, %158 : vector<128x64xf32>
    %c2_184 = arith.constant 2 : index
    %c2_185 = arith.constant 2 : index
    %c0_186 = arith.constant 0 : index
    %c0_187 = arith.constant 0 : index
    %160 = vector.load %arg14[%c2_184, %c2_185, %c0_186, %c0_187] : memref<6x6x8x32xf32, #tpu.memory_space<vmem>>, vector<4x4x8x32xf32>
    %161 = vector.shape_cast %160 : vector<4x4x8x32xf32> to vector<128x32xf32>
    %c8_188 = arith.constant 8 : index
    %c0_189 = arith.constant 0 : index
    %c0_190 = arith.constant 0 : index
    %162 = vector.load %arg6[%c8_188, %c0_189, %c0_190] : memref<9x32x64xf32, #tpu.memory_space<vmem>>, vector<1x32x64xf32>
    %163 = vector.shape_cast %162 : vector<1x32x64xf32> to vector<32x64xf32>
    %cst_191 = arith.constant dense<0.000000e+00> : vector<128x64xf32>
    %164 = tpu.matmul %161, %163, %cst_191 {dimension_numbers = #tpu.dot_dimension_numbers<[1], [0], [0], [1], [0, 0, 1, 1], [], []>} : vector<128x32xf32>, vector<32x64xf32>, vector<128x64xf32> -> vector<128x64xf32>
    %165 = arith.addf %159, %164 : vector<128x64xf32>
    %166 = vector.shape_cast %165 : vector<128x64xf32> to vector<4x4x8x64xf32>
    %167 = vector.shape_cast %166 : vector<4x4x8x64xf32> to vector<2x2x4x8x64xf32>
    %168 = vector.extract_strided_slice %167 {offsets = [0, 0, 0, 0, 0], sizes = [2, 1, 4, 8, 64], strides = [1, 1, 1, 1, 1]} : vector<2x2x4x8x64xf32> to vector<2x1x4x8x64xf32>
    %169 = vector.shape_cast %168 : vector<2x1x4x8x64xf32> to vector<2x4x8x64xf32>
    %170 = vector.extract_strided_slice %167 {offsets = [0, 1, 0, 0, 0], sizes = [2, 1, 4, 8, 64], strides = [1, 1, 1, 1, 1]} : vector<2x2x4x8x64xf32> to vector<2x1x4x8x64xf32>
    %171 = vector.shape_cast %170 : vector<2x1x4x8x64xf32> to vector<2x4x8x64xf32>
    %172 = arith.maximumf %169, %171 : vector<2x4x8x64xf32>
    %173 = vector.shape_cast %172 : vector<2x4x8x64xf32> to vector<2x2x2x8x64xf32>
    %174 = vector.extract_strided_slice %173 {offsets = [0, 0, 0, 0, 0], sizes = [2, 2, 1, 8, 64], strides = [1, 1, 1, 1, 1]} : vector<2x2x2x8x64xf32> to vector<2x2x1x8x64xf32>
    %175 = vector.shape_cast %174 : vector<2x2x1x8x64xf32> to vector<2x2x8x64xf32>
    %176 = vector.extract_strided_slice %173 {offsets = [0, 0, 1, 0, 0], sizes = [2, 2, 1, 8, 64], strides = [1, 1, 1, 1, 1]} : vector<2x2x2x8x64xf32> to vector<2x2x1x8x64xf32>
    %177 = vector.shape_cast %176 : vector<2x2x1x8x64xf32> to vector<2x2x8x64xf32>
    %178 = arith.maximumf %175, %177 : vector<2x2x8x64xf32>
    %c0_192 = arith.constant 0 : index
    %c0_193 = arith.constant 0 : index
    %179 = vector.load %arg7[%c0_192, %c0_193] : memref<1x64xf32, #tpu.memory_space<vmem>>, vector<1x64xf32>
    %180 = vector.shape_cast %179 : vector<1x64xf32> to vector<1x1x1x64xf32>
    %181 = vector.broadcast %180 : vector<1x1x1x64xf32> to vector<2x2x8x64xf32>
    %182 = arith.addf %178, %181 : vector<2x2x8x64xf32>
    %cst_194 = arith.constant 0.000000e+00 : f32
    %183 = vector.broadcast %cst_194 : f32 to vector<2x2x8x64xf32>
    %184 = arith.maximumf %182, %183 : vector<2x2x8x64xf32>
    %cst_195 = arith.constant 0.000000e+00 : f32
    %185 = vector.broadcast %cst_195 : f32 to vector<1x4x8x64xf32>
    %cst_196 = arith.constant 0.000000e+00 : f32
    %186 = vector.broadcast %cst_196 : f32 to vector<4x1x8x64xf32>
    %c0_197 = arith.constant 0 : index
    %c0_198 = arith.constant 0 : index
    %c0_199 = arith.constant 0 : index
    %c0_200 = arith.constant 0 : index
    %187 = vector.load %arg15[%c0_197, %c0_198, %c0_199, %c0_200] : memref<4x4x8x64xf32, #tpu.memory_space<vmem>>, vector<1x4x8x64xf32>
    tpu.vector_store %arg15[%c0_197, %c0_198, %c0_199, %c0_200], %185 {strides = array<i32>} : memref<4x4x8x64xf32, #tpu.memory_space<vmem>>, vector<1x4x8x64xf32>,
    %c3_201 = arith.constant 3 : index
    %c0_202 = arith.constant 0 : index
    %c0_203 = arith.constant 0 : index
    %c0_204 = arith.constant 0 : index
    %188 = vector.load %arg15[%c3_201, %c0_202, %c0_203, %c0_204] : memref<4x4x8x64xf32, #tpu.memory_space<vmem>>, vector<1x4x8x64xf32>
    tpu.vector_store %arg15[%c3_201, %c0_202, %c0_203, %c0_204], %185 {strides = array<i32>} : memref<4x4x8x64xf32, #tpu.memory_space<vmem>>, vector<1x4x8x64xf32>,
    %c0_205 = arith.constant 0 : index
    %c0_206 = arith.constant 0 : index
    %c0_207 = arith.constant 0 : index
    %c0_208 = arith.constant 0 : index
    %189 = vector.load %arg15[%c0_205, %c0_206, %c0_207, %c0_208] : memref<4x4x8x64xf32, #tpu.memory_space<vmem>>, vector<4x1x8x64xf32>
    tpu.vector_store %arg15[%c0_205, %c0_206, %c0_207, %c0_208], %186 {strides = array<i32>} : memref<4x4x8x64xf32, #tpu.memory_space<vmem>>, vector<4x1x8x64xf32>,
    %c0_209 = arith.constant 0 : index
    %c3_210 = arith.constant 3 : index
    %c0_211 = arith.constant 0 : index
    %c0_212 = arith.constant 0 : index
    %190 = vector.load %arg15[%c0_209, %c3_210, %c0_211, %c0_212] : memref<4x4x8x64xf32, #tpu.memory_space<vmem>>, vector<4x1x8x64xf32>
    tpu.vector_store %arg15[%c0_209, %c3_210, %c0_211, %c0_212], %186 {strides = array<i32>} : memref<4x4x8x64xf32, #tpu.memory_space<vmem>>, vector<4x1x8x64xf32>,
    %c1_213 = arith.constant 1 : index
    %c1_214 = arith.constant 1 : index
    %c0_215 = arith.constant 0 : index
    %c0_216 = arith.constant 0 : index
    %191 = vector.load %arg15[%c1_213, %c1_214, %c0_215, %c0_216] : memref<4x4x8x64xf32, #tpu.memory_space<vmem>>, vector<2x2x8x64xf32>
    tpu.vector_store %arg15[%c1_213, %c1_214, %c0_215, %c0_216], %184 {strides = array<i32>} : memref<4x4x8x64xf32, #tpu.memory_space<vmem>>, vector<2x2x8x64xf32>,
    %cst_217 = arith.constant 0.000000e+00 : f32
    %192 = vector.broadcast %cst_217 : f32 to vector<32x128xf32>
    %c0_218 = arith.constant 0 : index
    %c0_219 = arith.constant 0 : index
    %c0_220 = arith.constant 0 : index
    %c0_221 = arith.constant 0 : index
    %193 = vector.load %arg15[%c0_218, %c0_219, %c0_220, %c0_221] : memref<4x4x8x64xf32, #tpu.memory_space<vmem>>, vector<2x2x8x64xf32>
    %194 = vector.shape_cast %193 : vector<2x2x8x64xf32> to vector<32x64xf32>
    %c0_222 = arith.constant 0 : index
    %c0_223 = arith.constant 0 : index
    %c0_224 = arith.constant 0 : index
    %195 = vector.load %arg8[%c0_222, %c0_223, %c0_224] : memref<9x64x128xf32, #tpu.memory_space<vmem>>, vector<1x64x128xf32>
    %196 = vector.shape_cast %195 : vector<1x64x128xf32> to vector<64x128xf32>
    %cst_225 = arith.constant dense<0.000000e+00> : vector<32x128xf32>
    %197 = tpu.matmul %194, %196, %cst_225 {dimension_numbers = #tpu.dot_dimension_numbers<[1], [0], [0], [1], [0, 0, 1, 1], [], []>} : vector<32x64xf32>, vector<64x128xf32>, vector<32x128xf32> -> vector<32x128xf32>
    %198 = arith.addf %192, %197 : vector<32x128xf32>
    %c0_226 = arith.constant 0 : index
    %c1_227 = arith.constant 1 : index
    %c0_228 = arith.constant 0 : index
    %c0_229 = arith.constant 0 : index
    %199 = vector.load %arg15[%c0_226, %c1_227, %c0_228, %c0_229] : memref<4x4x8x64xf32, #tpu.memory_space<vmem>>, vector<2x2x8x64xf32>
    %200 = vector.shape_cast %199 : vector<2x2x8x64xf32> to vector<32x64xf32>
    %c1_230 = arith.constant 1 : index
    %c0_231 = arith.constant 0 : index
    %c0_232 = arith.constant 0 : index
    %201 = vector.load %arg8[%c1_230, %c0_231, %c0_232] : memref<9x64x128xf32, #tpu.memory_space<vmem>>, vector<1x64x128xf32>
    %202 = vector.shape_cast %201 : vector<1x64x128xf32> to vector<64x128xf32>
    %cst_233 = arith.constant dense<0.000000e+00> : vector<32x128xf32>
    %203 = tpu.matmul %200, %202, %cst_233 {dimension_numbers = #tpu.dot_dimension_numbers<[1], [0], [0], [1], [0, 0, 1, 1], [], []>} : vector<32x64xf32>, vector<64x128xf32>, vector<32x128xf32> -> vector<32x128xf32>
    %204 = arith.addf %198, %203 : vector<32x128xf32>
    %c0_234 = arith.constant 0 : index
    %c2_235 = arith.constant 2 : index
    %c0_236 = arith.constant 0 : index
    %c0_237 = arith.constant 0 : index
    %205 = vector.load %arg15[%c0_234, %c2_235, %c0_236, %c0_237] : memref<4x4x8x64xf32, #tpu.memory_space<vmem>>, vector<2x2x8x64xf32>
    %206 = vector.shape_cast %205 : vector<2x2x8x64xf32> to vector<32x64xf32>
    %c2_238 = arith.constant 2 : index
    %c0_239 = arith.constant 0 : index
    %c0_240 = arith.constant 0 : index
    %207 = vector.load %arg8[%c2_238, %c0_239, %c0_240] : memref<9x64x128xf32, #tpu.memory_space<vmem>>, vector<1x64x128xf32>
    %208 = vector.shape_cast %207 : vector<1x64x128xf32> to vector<64x128xf32>
    %cst_241 = arith.constant dense<0.000000e+00> : vector<32x128xf32>
    %209 = tpu.matmul %206, %208, %cst_241 {dimension_numbers = #tpu.dot_dimension_numbers<[1], [0], [0], [1], [0, 0, 1, 1], [], []>} : vector<32x64xf32>, vector<64x128xf32>, vector<32x128xf32> -> vector<32x128xf32>
    %210 = arith.addf %204, %209 : vector<32x128xf32>
    %c1_242 = arith.constant 1 : index
    %c0_243 = arith.constant 0 : index
    %c0_244 = arith.constant 0 : index
    %c0_245 = arith.constant 0 : index
    %211 = vector.load %arg15[%c1_242, %c0_243, %c0_244, %c0_245] : memref<4x4x8x64xf32, #tpu.memory_space<vmem>>, vector<2x2x8x64xf32>
    %212 = vector.shape_cast %211 : vector<2x2x8x64xf32> to vector<32x64xf32>
    %c3_246 = arith.constant 3 : index
    %c0_247 = arith.constant 0 : index
    %c0_248 = arith.constant 0 : index
    %213 = vector.load %arg8[%c3_246, %c0_247, %c0_248] : memref<9x64x128xf32, #tpu.memory_space<vmem>>, vector<1x64x128xf32>
    %214 = vector.shape_cast %213 : vector<1x64x128xf32> to vector<64x128xf32>
    %cst_249 = arith.constant dense<0.000000e+00> : vector<32x128xf32>
    %215 = tpu.matmul %212, %214, %cst_249 {dimension_numbers = #tpu.dot_dimension_numbers<[1], [0], [0], [1], [0, 0, 1, 1], [], []>} : vector<32x64xf32>, vector<64x128xf32>, vector<32x128xf32> -> vector<32x128xf32>
    %216 = arith.addf %210, %215 : vector<32x128xf32>
    %c1_250 = arith.constant 1 : index
    %c1_251 = arith.constant 1 : index
    %c0_252 = arith.constant 0 : index
    %c0_253 = arith.constant 0 : index
    %217 = vector.load %arg15[%c1_250, %c1_251, %c0_252, %c0_253] : memref<4x4x8x64xf32, #tpu.memory_space<vmem>>, vector<2x2x8x64xf32>
    %218 = vector.shape_cast %217 : vector<2x2x8x64xf32> to vector<32x64xf32>
    %c4_254 = arith.constant 4 : index
    %c0_255 = arith.constant 0 : index
    %c0_256 = arith.constant 0 : index
    %219 = vector.load %arg8[%c4_254, %c0_255, %c0_256] : memref<9x64x128xf32, #tpu.memory_space<vmem>>, vector<1x64x128xf32>
    %220 = vector.shape_cast %219 : vector<1x64x128xf32> to vector<64x128xf32>
    %cst_257 = arith.constant dense<0.000000e+00> : vector<32x128xf32>
    %221 = tpu.matmul %218, %220, %cst_257 {dimension_numbers = #tpu.dot_dimension_numbers<[1], [0], [0], [1], [0, 0, 1, 1], [], []>} : vector<32x64xf32>, vector<64x128xf32>, vector<32x128xf32> -> vector<32x128xf32>
    %222 = arith.addf %216, %221 : vector<32x128xf32>
    %c1_258 = arith.constant 1 : index
    %c2_259 = arith.constant 2 : index
    %c0_260 = arith.constant 0 : index
    %c0_261 = arith.constant 0 : index
    %223 = vector.load %arg15[%c1_258, %c2_259, %c0_260, %c0_261] : memref<4x4x8x64xf32, #tpu.memory_space<vmem>>, vector<2x2x8x64xf32>
    %224 = vector.shape_cast %223 : vector<2x2x8x64xf32> to vector<32x64xf32>
    %c5_262 = arith.constant 5 : index
    %c0_263 = arith.constant 0 : index
    %c0_264 = arith.constant 0 : index
    %225 = vector.load %arg8[%c5_262, %c0_263, %c0_264] : memref<9x64x128xf32, #tpu.memory_space<vmem>>, vector<1x64x128xf32>
    %226 = vector.shape_cast %225 : vector<1x64x128xf32> to vector<64x128xf32>
    %cst_265 = arith.constant dense<0.000000e+00> : vector<32x128xf32>
    %227 = tpu.matmul %224, %226, %cst_265 {dimension_numbers = #tpu.dot_dimension_numbers<[1], [0], [0], [1], [0, 0, 1, 1], [], []>} : vector<32x64xf32>, vector<64x128xf32>, vector<32x128xf32> -> vector<32x128xf32>
    %228 = arith.addf %222, %227 : vector<32x128xf32>
    %c2_266 = arith.constant 2 : index
    %c0_267 = arith.constant 0 : index
    %c0_268 = arith.constant 0 : index
    %c0_269 = arith.constant 0 : index
    %229 = vector.load %arg15[%c2_266, %c0_267, %c0_268, %c0_269] : memref<4x4x8x64xf32, #tpu.memory_space<vmem>>, vector<2x2x8x64xf32>
    %230 = vector.shape_cast %229 : vector<2x2x8x64xf32> to vector<32x64xf32>
    %c6_270 = arith.constant 6 : index
    %c0_271 = arith.constant 0 : index
    %c0_272 = arith.constant 0 : index
    %231 = vector.load %arg8[%c6_270, %c0_271, %c0_272] : memref<9x64x128xf32, #tpu.memory_space<vmem>>, vector<1x64x128xf32>
    %232 = vector.shape_cast %231 : vector<1x64x128xf32> to vector<64x128xf32>
    %cst_273 = arith.constant dense<0.000000e+00> : vector<32x128xf32>
    %233 = tpu.matmul %230, %232, %cst_273 {dimension_numbers = #tpu.dot_dimension_numbers<[1], [0], [0], [1], [0, 0, 1, 1], [], []>} : vector<32x64xf32>, vector<64x128xf32>, vector<32x128xf32> -> vector<32x128xf32>
    %234 = arith.addf %228, %233 : vector<32x128xf32>
    %c2_274 = arith.constant 2 : index
    %c1_275 = arith.constant 1 : index
    %c0_276 = arith.constant 0 : index
    %c0_277 = arith.constant 0 : index
    %235 = vector.load %arg15[%c2_274, %c1_275, %c0_276, %c0_277] : memref<4x4x8x64xf32, #tpu.memory_space<vmem>>, vector<2x2x8x64xf32>
    %236 = vector.shape_cast %235 : vector<2x2x8x64xf32> to vector<32x64xf32>
    %c7_278 = arith.constant 7 : index
    %c0_279 = arith.constant 0 : index
    %c0_280 = arith.constant 0 : index
    %237 = vector.load %arg8[%c7_278, %c0_279, %c0_280] : memref<9x64x128xf32, #tpu.memory_space<vmem>>, vector<1x64x128xf32>
    %238 = vector.shape_cast %237 : vector<1x64x128xf32> to vector<64x128xf32>
    %cst_281 = arith.constant dense<0.000000e+00> : vector<32x128xf32>
    %239 = tpu.matmul %236, %238, %cst_281 {dimension_numbers = #tpu.dot_dimension_numbers<[1], [0], [0], [1], [0, 0, 1, 1], [], []>} : vector<32x64xf32>, vector<64x128xf32>, vector<32x128xf32> -> vector<32x128xf32>
    %240 = arith.addf %234, %239 : vector<32x128xf32>
    %c2_282 = arith.constant 2 : index
    %c2_283 = arith.constant 2 : index
    %c0_284 = arith.constant 0 : index
    %c0_285 = arith.constant 0 : index
    %241 = vector.load %arg15[%c2_282, %c2_283, %c0_284, %c0_285] : memref<4x4x8x64xf32, #tpu.memory_space<vmem>>, vector<2x2x8x64xf32>
    %242 = vector.shape_cast %241 : vector<2x2x8x64xf32> to vector<32x64xf32>
    %c8_286 = arith.constant 8 : index
    %c0_287 = arith.constant 0 : index
    %c0_288 = arith.constant 0 : index
    %243 = vector.load %arg8[%c8_286, %c0_287, %c0_288] : memref<9x64x128xf32, #tpu.memory_space<vmem>>, vector<1x64x128xf32>
    %244 = vector.shape_cast %243 : vector<1x64x128xf32> to vector<64x128xf32>
    %cst_289 = arith.constant dense<0.000000e+00> : vector<32x128xf32>
    %245 = tpu.matmul %242, %244, %cst_289 {dimension_numbers = #tpu.dot_dimension_numbers<[1], [0], [0], [1], [0, 0, 1, 1], [], []>} : vector<32x64xf32>, vector<64x128xf32>, vector<32x128xf32> -> vector<32x128xf32>
    %246 = arith.addf %240, %245 : vector<32x128xf32>
    %247 = vector.shape_cast %246 : vector<32x128xf32> to vector<2x2x8x128xf32>
    %248 = vector.shape_cast %247 : vector<2x2x8x128xf32> to vector<1x2x2x8x128xf32>
    %249 = vector.extract_strided_slice %248 {offsets = [0, 0, 0, 0, 0], sizes = [1, 1, 2, 8, 128], strides = [1, 1, 1, 1, 1]} : vector<1x2x2x8x128xf32> to vector<1x1x2x8x128xf32>
    %250 = vector.shape_cast %249 : vector<1x1x2x8x128xf32> to vector<1x2x8x128xf32>
    %251 = vector.extract_strided_slice %248 {offsets = [0, 1, 0, 0, 0], sizes = [1, 1, 2, 8, 128], strides = [1, 1, 1, 1, 1]} : vector<1x2x2x8x128xf32> to vector<1x1x2x8x128xf32>
    %252 = vector.shape_cast %251 : vector<1x1x2x8x128xf32> to vector<1x2x8x128xf32>
    %253 = arith.maximumf %250, %252 : vector<1x2x8x128xf32>
    %254 = vector.shape_cast %253 : vector<1x2x8x128xf32> to vector<1x1x2x8x128xf32>
    %255 = vector.extract_strided_slice %254 {offsets = [0, 0, 0, 0, 0], sizes = [1, 1, 1, 8, 128], strides = [1, 1, 1, 1, 1]} : vector<1x1x2x8x128xf32> to vector<1x1x1x8x128xf32>
    %256 = vector.shape_cast %255 : vector<1x1x1x8x128xf32> to vector<1x1x8x128xf32>
    %257 = vector.extract_strided_slice %254 {offsets = [0, 0, 1, 0, 0], sizes = [1, 1, 1, 8, 128], strides = [1, 1, 1, 1, 1]} : vector<1x1x2x8x128xf32> to vector<1x1x1x8x128xf32>
    %258 = vector.shape_cast %257 : vector<1x1x1x8x128xf32> to vector<1x1x8x128xf32>
    %259 = arith.maximumf %256, %258 : vector<1x1x8x128xf32>
    %c0_290 = arith.constant 0 : index
    %c0_291 = arith.constant 0 : index
    %260 = vector.load %arg9[%c0_290, %c0_291] : memref<1x128xf32, #tpu.memory_space<vmem>>, vector<1x128xf32>
    %261 = vector.shape_cast %260 : vector<1x128xf32> to vector<1x1x1x128xf32>
    %262 = vector.broadcast %261 : vector<1x1x1x128xf32> to vector<1x1x8x128xf32>
    %263 = arith.addf %259, %262 : vector<1x1x8x128xf32>
    %cst_292 = arith.constant 0.000000e+00 : f32
    %264 = vector.broadcast %cst_292 : f32 to vector<1x1x8x128xf32>
    %265 = arith.maximumf %263, %264 : vector<1x1x8x128xf32>
    %266 = vector.shape_cast %265 : vector<1x1x8x128xf32> to vector<8x128xf32>
    %c0_293 = arith.constant 0 : index
    %c0_294 = arith.constant 0 : index
    %267 = vector.load %arg10[%c0_293, %c0_294] : memref<128x10xf32, #tpu.memory_space<vmem>>, vector<128x10xf32>
    %cst_295 = arith.constant dense<0.000000e+00> : vector<8x10xf32>
    %268 = tpu.matmul %266, %267, %cst_295 {dimension_numbers = #tpu.dot_dimension_numbers<[1], [0], [0], [1], [0, 0, 1, 1], [], []>} : vector<8x128xf32>, vector<128x10xf32>, vector<8x10xf32> -> vector<8x10xf32>
    %c0_296 = arith.constant 0 : index
    %c0_297 = arith.constant 0 : index
    %269 = vector.load %arg11[%c0_296, %c0_297] : memref<1x10xf32, #tpu.memory_space<vmem>>, vector<1x10xf32>
    %270 = vector.broadcast %269 : vector<1x10xf32> to vector<8x10xf32>
    %271 = arith.addf %268, %270 : vector<8x10xf32>
    %c0_298 = arith.constant 0 : index
    %c0_299 = arith.constant 0 : index
    %272 = vector.load %arg12[%c0_298, %c0_299] : memref<8x10xf32, #tpu.memory_space<vmem>>, vector<8x10xf32>
    tpu.vector_store %arg12[%c0_298, %c0_299], %271 {strides = array<i32>} : memref<8x10xf32, #tpu.memory_space<vmem>>, vector<8x10xf32>,
    return
  }
  func.func @transform_0(%arg0: i32) -> (i32, i32, i32, i32) {
    %c0_i32 = arith.constant 0 : i32
    %c0_i32_0 = arith.constant 0 : i32
    %c0_i32_1 = arith.constant 0 : i32
    %c0_i32_2 = arith.constant 0 : i32
    return %c0_i32, %c0_i32_0, %arg0, %c0_i32_1 : i32, i32, i32, i32
  }
  func.func @transform_1(%arg0: i32) -> (i32, i32) {
    %c0_i32 = arith.constant 0 : i32
    %c0_i32_0 = arith.constant 0 : i32
    %c0_i32_1 = arith.constant 0 : i32
    return %c0_i32, %c0_i32_0 : i32, i32
  }
  func.func @transform_2(%arg0: i32) -> (i32, i32) {
    %c0_i32 = arith.constant 0 : i32
    %c0_i32_0 = arith.constant 0 : i32
    %c0_i32_1 = arith.constant 0 : i32
    return %c0_i32, %c0_i32_0 : i32, i32
  }
  func.func @transform_3(%arg0: i32) -> (i32, i32, i32) {
    %c0_i32 = arith.constant 0 : i32
    %c0_i32_0 = arith.constant 0 : i32
    %c0_i32_1 = arith.constant 0 : i32
    %c0_i32_2 = arith.constant 0 : i32
    return %c0_i32, %c0_i32_0, %c0_i32_1 : i32, i32, i32
  }
  func.func @transform_4(%arg0: i32) -> (i32, i32) {
    %c0_i32 = arith.constant 0 : i32
    %c0_i32_0 = arith.constant 0 : i32
    %c0_i32_1 = arith.constant 0 : i32
    return %c0_i32, %c0_i32_0 : i32, i32
  }
  func.func @transform_5(%arg0: i32) -> (i32, i32, i32) {
    %c0_i32 = arith.constant 0 : i32
    %c0_i32_0 = arith.constant 0 : i32
    %c0_i32_1 = arith.constant 0 : i32
    %c0_i32_2 = arith.constant 0 : i32
    return %c0_i32, %c0_i32_0, %c0_i32_1 : i32, i32, i32
  }
  func.func @transform_6(%arg0: i32) -> (i32, i32) {
    %c0_i32 = arith.constant 0 : i32
    %c0_i32_0 = arith.constant 0 : i32
    %c0_i32_1 = arith.constant 0 : i32
    return %c0_i32, %c0_i32_0 : i32, i32
  }
  func.func @transform_7(%arg0: i32) -> (i32, i32, i32) {
    %c0_i32 = arith.constant 0 : i32
    %c0_i32_0 = arith.constant 0 : i32
    %c0_i32_1 = arith.constant 0 : i32
    %c0_i32_2 = arith.constant 0 : i32
    return %c0_i32, %c0_i32_0, %c0_i32_1 : i32, i32, i32
  }
  func.func @transform_8(%arg0: i32) -> (i32, i32) {
    %c0_i32 = arith.constant 0 : i32
    %c0_i32_0 = arith.constant 0 : i32
    %c0_i32_1 = arith.constant 0 : i32
    return %c0_i32, %c0_i32_0 : i32, i32
  }
  func.func @transform_9(%arg0: i32) -> (i32, i32) {
    %c0_i32 = arith.constant 0 : i32
    %c0_i32_0 = arith.constant 0 : i32
    %c0_i32_1 = arith.constant 0 : i32
    return %c0_i32, %c0_i32_0 : i32, i32
  }
  func.func @transform_10(%arg0: i32) -> (i32, i32) {
    %c0_i32 = arith.constant 0 : i32
    %c0_i32_0 = arith.constant 0 : i32
    %c0_i32_1 = arith.constant 0 : i32
    return %c0_i32, %c0_i32_0 : i32, i32
  }
  func.func @transform_11(%arg0: i32) -> (i32, i32) {
    %c0_i32 = arith.constant 0 : i32
    %c0_i32_0 = arith.constant 0 : i32
    return %arg0, %c0_i32 : i32, i32
  }
}

</mosaic_0001>

<bundles_post_ra>
// kernel: convolution_forward.1
= control target key start
LH: loop header
LB: loop body
LE: loop exit
PB: predicated region body
PF: predicated region fallthrough
CT: control target
= control target key end

     0   :  { %vm1065_vm0 = vcmask 1040384   ;;  %vm296_vm1 = vcmask 72704   ;;  %vm17518_vm2 = vmmov 1   ;;  %vm2741_vm4 = vcmask 130048   ;;  %s21752_s1 = inlined_call_operand.vmem [shape: f32[9,16], index: 1, kind: input, shape index: {}]   ;;  %s21753_s0 = inlined_call_operand.vmem [shape: f32[16,16,8,9], index: 0, kind: input, shape index: {}]   ;;  %s21754_s2 = inlined_call_operand.vmem [shape: f32[1,16], index: 2, kind: input, shape index: {}]   ;;  %s21755_s3 = inlined_call_operand.vmem [shape: f32[9,16,32], index: 3, kind: input, shape index: {}]   ;;  %s21756_s5 = inlined_call_operand.vmem [shape: f32[9,32,64], index: 5, kind: input, shape index: {}]   ;;  %s21757_s4 = inlined_call_operand.vmem [shape: f32[1,32], index: 4, kind: input, shape index: {}]   ;;  %s21758_s7 = inlined_call_operand.vmem [shape: f32[9,64,128], index: 7, kind: input, shape index: {}]   ;;  %s21759_s6 = inlined_call_operand.vmem [shape: f32[1,64], index: 6, kind: input, shape index: {}]   ;;  %s21760_s9 = inlined_call_operand.vmem [shape: f32[128,10], index: 9, kind: input, shape index: {}]   ;;  %s21761_s8 = inlined_call_operand.vmem [shape: f32[1,128], index: 8, kind: input, shape index: {}]   ;;  %s21762_s10 = inlined_call_operand.vmem [shape: f32[1,10], index: 10, kind: input, shape index: {}]   ;;  %s21763_s11 = inlined_call_operand.vmem [shape: f32[8,10], index: 11, kind: output, shape index: {}]  }
   0x1   :  { %v294_v0 = vld [vmem:[%s21752_s1] sm:$0xff]  ;;  %v295_v1 = vld [vmem:[%s21752_s1 + $0x8] sm:$0x1]  ;;  %vm16557_vm3 = vmpackc.low %vm1065_vm0, %vm17518_vm2  ;;  %vm9186_vm5 = vcmask 261120   ;;  %vm11301_vm6 = vcmask 523264   ;;  %vm17521_vm7 = vmmov 0  }
   0x2   :  { %v16556_v2 = vpack.c.bf16 %v295_v1, %v294_v0  ;;  %v38_v3 = vld [vmem:[%s21753_s0] sm:$0xff]  ;;  %v39_v4 = vld [vmem:[%s21753_s0 + $0x8] sm:$0xff]  ;;  %v40_v5 = vld [vmem:[%s21753_s0 + $0x10] sm:$0xff]  ;;  %vm12454_vm8 = vcmask 80896  }
   0x3   :  { %14751 = vmatprep.mubr.msk.f32.mxu0 %vm296_vm1, %v38_v3  ;;  %v41_v6 = vld [vmem:[%s21753_s0 + $0x18] sm:$0xff]  ;;  %v42_v7 = vld [vmem:[%s21753_s0 + $0x20] sm:$0xff]  ;;  %v43_v8 = vld [vmem:[%s21753_s0 + $0x28] sm:$0xff] }
   0x4   :  { %16558 = vmatprep.subr.msk.bf16.mxu0 %vm16557_vm3, %v16556_v2  ;;  %v44_v9 = vld [vmem:[%s21753_s0 + $0x30] sm:$0xff]  ;;  %v45_v10 = vld [vmem:[%s21753_s0 + $0x38] sm:$0xff]  ;;  %v46_v11 = vld [vmem:[%s21753_s0 + $0x40] sm:$0xff] }
   0x5   :  { %16561 = vmatpush3.bf16.msk.msra.mxu0 %vm16557_vm3, %v16556_v2  ;;  %v47_v12 = vld [vmem:[%s21753_s0 + $0x48] sm:$0xff]  ;;  %v48_v13 = vld [vmem:[%s21753_s0 + $0x50] sm:$0xff]  ;;  %v49_v14 = vld [vmem:[%s21753_s0 + $0x58] sm:$0xff] }
   0x6   :  { %v50_v15 = vld [vmem:[%s21753_s0 + $0x60] sm:$0xff]  ;;  %v51_v16 = vld [vmem:[%s21753_s0 + $0x68] sm:$0xff]  ;;  %v52_v17 = vld [vmem:[%s21753_s0 + $0x70] sm:$0xff] }
   0x7   :  { %v53_v18 = vld [vmem:[%s21753_s0 + $0x78] sm:$0xff]  ;;  %v54_v19 = vld [vmem:[%s21753_s0 + $0x80] sm:$0xff]  ;;  %v55_v20 = vld [vmem:[%s21753_s0 + $0x88] sm:$0xff] }
   0x8   :  { %14752 = vmatmul.mubr.msk.f32.vlgmr.msra.gmra.mrb[0].mxu0 %vm296_vm1, %v39_v4  ;;  %v56_v21 = vld [vmem:[%s21753_s0 + $0x90] sm:$0xff]  ;;  %v57_v22 = vld [vmem:[%s21753_s0 + $0x98] sm:$0xff]  ;;  %v58_v23 = vld [vmem:[%s21753_s0 + $0xa0] sm:$0xff] }
   0x9   :  { %14754 = vmatprep.mubr.msk.f32.mxu0 %vm296_vm1, %v40_v5  ;;  %v59_v24 = vld [vmem:[%s21753_s0 + $0xa8] sm:$0xff]  ;;  %v60_v25 = vld [vmem:[%s21753_s0 + $0xb0] sm:$0xff]  ;;  %v61_v26 = vld [vmem:[%s21753_s0 + $0xb8] sm:$0xff] }
   0xa   :  { %v62_v27 = vld [vmem:[%s21753_s0 + $0xc0] sm:$0xff]  ;;  %v63_v28 = vld [vmem:[%s21753_s0 + $0xc8] sm:$0xff]  ;;  %v64_v29 = vld [vmem:[%s21753_s0 + $0xd0] sm:$0xff] }
   0xb   :  { %v65_v30 = vld [vmem:[%s21753_s0 + $0xd8] sm:$0xff]  ;;  %v66_v31 = vld [vmem:[%s21753_s0 + $0xe0] sm:$0xff]  ;;  %v67_v32 = vld [vmem:[%s21753_s0 + $0xe8] sm:$0xff] }
   0xc   :  { %14755 = vmatmul.mubr.msk.f32.gmra.mrb[2].mxu0 %vm296_vm1, %v41_v6  ;;  %v68_v33 = vld [vmem:[%s21753_s0 + $0xf0] sm:$0xff]  ;;  %v69_v34 = vld [vmem:[%s21753_s0 + $0xf8] sm:$0xff]  ;;  %v70_v35 = vld [vmem:[%s21753_s0 + $0x100] sm:$0xff] }
   0xd   :  { %14757 = vmatprep.mubr.msk.f32.mxu0 %vm296_vm1, %v42_v7  ;;  %v71_v36 = vld [vmem:[%s21753_s0 + $0x108] sm:$0xff]  ;;  %v72_v37 = vld [vmem:[%s21753_s0 + $0x110] sm:$0xff]  ;;  %v73_v38 = vld [vmem:[%s21753_s0 + $0x118] sm:$0xff] }
   0xe   :  { %v74_v39 = vld [vmem:[%s21753_s0 + $0x120] sm:$0xff]  ;;  %v75_v40 = vld [vmem:[%s21753_s0 + $0x128] sm:$0xff]  ;;  %v76_v41 = vld [vmem:[%s21753_s0 + $0x130] sm:$0xff] }
   0xf   :  { %v77_v42 = vld [vmem:[%s21753_s0 + $0x138] sm:$0xff]  ;;  %v78_v43 = vld [vmem:[%s21753_s0 + $0x140] sm:$0xff]  ;;  %v79_v44 = vld [vmem:[%s21753_s0 + $0x148] sm:$0xff] }
  0x10   :  { %14758 = vmatmul.mubr.msk.f32.gmra.mrb[4].mxu0 %vm296_vm1, %v43_v8  ;;  %v80_v45 = vld [vmem:[%s21753_s0 + $0x150] sm:$0xff]  ;;  %v81_v46 = vld [vmem:[%s21753_s0 + $0x158] sm:$0xff]  ;;  %v82_v47 = vld [vmem:[%s21753_s0 + $0x160] sm:$0xff] }
  0x11   :  { %14760 = vmatprep.mubr.msk.f32.mxu0 %vm296_vm1, %v44_v9  ;;  %v83_v48 = vld [vmem:[%s21753_s0 + $0x168] sm:$0xff]  ;;  %v84_v49 = vld [vmem:[%s21753_s0 + $0x170] sm:$0xff]  ;;  %v85_v50 = vld [vmem:[%s21753_s0 + $0x178] sm:$0xff] }
  0x12   :  { %v86_v51 = vld [vmem:[%s21753_s0 + $0x180] sm:$0xff]  ;;  %v87_v52 = vld [vmem:[%s21753_s0 + $0x188] sm:$0xff]  ;;  %v88_v53 = vld [vmem:[%s21753_s0 + $0x190] sm:$0xff] }
  0x13   :  { %v89_v54 = vld [vmem:[%s21753_s0 + $0x198] sm:$0xff]  ;;  %v90_v55 = vld [vmem:[%s21753_s0 + $0x1a0] sm:$0xff]  ;;  %v91_v56 = vld [vmem:[%s21753_s0 + $0x1a8] sm:$0xff] }
  0x14   :  { %14761 = vmatmul.mubr.msk.f32.gmra.mrb[6].mxu0 %vm296_vm1, %v45_v10  ;;  %v92_v57 = vld [vmem:[%s21753_s0 + $0x1b0] sm:$0xff]  ;;  %v93_v58 = vld [vmem:[%s21753_s0 + $0x1b8] sm:$0xff]  ;;  %v94_v59 = vld [vmem:[%s21753_s0 + $0x1c0] sm:$0xff] }
  0x15   :  { %14763 = vmatprep.mubr.msk.f32.mxu0 %vm296_vm1, %v46_v11  ;;  %v95_v60 = vld [vmem:[%s21753_s0 + $0x1c8] sm:$0xff]  ;;  %v96_v61 = vld [vmem:[%s21753_s0 + $0x1d0] sm:$0xff]  ;;  %v97_v62 = vld [vmem:[%s21753_s0 + $0x1d8] sm:$0xff] }
  0x16   :  { %v98_v63 = vld [vmem:[%s21753_s0 + $0x1e0] sm:$0xff]  ;;  %v99_v0 = vld [vmem:[%s21753_s0 + $0x1e8] sm:$0xff]  ;;  %v100_v1 = vld [vmem:[%s21753_s0 + $0x1f0] sm:$0xff] }
  0x17   :  { %v101_v2 = vld [vmem:[%s21753_s0 + $0x1f8] sm:$0xff]  ;;  %v102_v3 = vld [vmem:[%s21753_s0 + $0x200] sm:$0xff]  ;;  %v103_v4 = vld [vmem:[%s21753_s0 + $0x208] sm:$0xff] }
  0x18   :  { %14764 = vmatmul.mubr.msk.f32.gmra.mrb[8].mxu0 %vm296_vm1, %v47_v12  ;;  %v104_v5 = vld [vmem:[%s21753_s0 + $0x210] sm:$0xff]  ;;  %v105_v6 = vld [vmem:[%s21753_s0 + $0x218] sm:$0xff]  ;;  %v106_v7 = vld [vmem:[%s21753_s0 + $0x220] sm:$0xff] }
  0x19   :  { %14766 = vmatprep.mubr.msk.f32.mxu0 %vm296_vm1, %v48_v13  ;;  %v107_v8 = vld [vmem:[%s21753_s0 + $0x228] sm:$0xff]  ;;  %v108_v9 = vld [vmem:[%s21753_s0 + $0x230] sm:$0xff]  ;;  %v109_v10 = vld [vmem:[%s21753_s0 + $0x238] sm:$0xff] }
  0x1a   :  { %v110_v11 = vld [vmem:[%s21753_s0 + $0x240] sm:$0xff]  ;;  %v111_v12 = vld [vmem:[%s21753_s0 + $0x248] sm:$0xff]  ;;  %v112_v13 = vld [vmem:[%s21753_s0 + $0x250] sm:$0xff] }
  0x1c   :  { %14767 = vmatmul.mubr.msk.f32.gmra.mrb[10].mxu0 %vm296_vm1, %v49_v14  ;;  %v113_v14 = vld [vmem:[%s21753_s0 + $0x258] sm:$0xff] }
  0x1d   :  { %14769 = vmatprep.mubr.msk.f32.mxu0 %vm296_vm1, %v50_v15  ;;  %v114_v15 = vld [vmem:[%s21753_s0 + $0x260] sm:$0xff] }
  0x20   :  { %14770 = vmatmul.mubr.msk.f32.gmra.mrb[12].mxu0 %vm296_vm1, %v51_v16  ;;  %v115_v16 = vld [vmem:[%s21753_s0 + $0x268] sm:$0xff] }
  0x21   :  { %14772 = vmatprep.mubr.msk.f32.mxu0 %vm296_vm1, %v52_v17  ;;  %v116_v17 = vld [vmem:[%s21753_s0 + $0x270] sm:$0xff] }
  0x24   :  { %14773 = vmatmul.mubr.msk.f32.gmra.mrb[14].mxu0 %vm296_vm1, %v53_v18  ;;  %v117_v18 = vld [vmem:[%s21753_s0 + $0x278] sm:$0xff] }
  0x25   :  { %14775 = vmatprep.mubr.msk.f32.mxu0 %vm296_vm1, %v54_v19  ;;  %v118_v19 = vld [vmem:[%s21753_s0 + $0x280] sm:$0xff] }
  0x28   :  { %14776 = vmatmul.mubr.msk.f32.gmra.mrb[16].mxu0 %vm296_vm1, %v55_v20  ;;  %v119_v20 = vld [vmem:[%s21753_s0 + $0x288] sm:$0xff] }
  0x29   :  { %14778 = vmatprep.mubr.msk.f32.mxu0 %vm296_vm1, %v56_v21  ;;  %v120_v21 = vld [vmem:[%s21753_s0 + $0x290] sm:$0xff] }
  0x2c   :  { %14779 = vmatmul.mubr.msk.f32.gmra.mrb[18].mxu0 %vm296_vm1, %v57_v22  ;;  %v121_v22 = vld [vmem:[%s21753_s0 + $0x298] sm:$0xff] }
  0x2d   :  { %14781 = vmatprep.mubr.msk.f32.mxu0 %vm296_vm1, %v58_v23  ;;  %v122_v23 = vld [vmem:[%s21753_s0 + $0x2a0] sm:$0xff] }
  0x30   :  { %14782 = vmatmul.mubr.msk.f32.gmra.mrb[20].mxu0 %vm296_vm1, %v59_v24  ;;  %v123_v24 = vld [vmem:[%s21753_s0 + $0x2a8] sm:$0xff] }
  0x31   :  { %14784 = vmatprep.mubr.msk.f32.mxu0 %vm296_vm1, %v60_v25  ;;  %v124_v25 = vld [vmem:[%s21753_s0 + $0x2b0] sm:$0xff] }
  0x34   :  { %14785 = vmatmul.mubr.msk.f32.gmra.mrb[22].mxu0 %vm296_vm1, %v61_v26  ;;  %v125_v26 = vld [vmem:[%s21753_s0 + $0x2b8] sm:$0xff] }
  0x35   :  { %14787 = vmatprep.mubr.msk.f32.mxu0 %vm296_vm1, %v62_v27  ;;  %v126_v27 = vld [vmem:[%s21753_s0 + $0x2c0] sm:$0xff] }
  0x38   :  { %14788 = vmatmul.mubr.msk.f32.gmra.mrb[24].mxu0 %vm296_vm1, %v63_v28  ;;  %v127_v28 = vld [vmem:[%s21753_s0 + $0x2c8] sm:$0xff] }
  0x39   :  { %14790 = vmatprep.mubr.msk.f32.mxu0 %vm296_vm1, %v64_v29  ;;  %v128_v29 = vld [vmem:[%s21753_s0 + $0x2d0] sm:$0xff] }
  0x3c   :  { %14791 = vmatmul.mubr.msk.f32.gmra.mrb[26].mxu0 %vm296_vm1, %v65_v30  ;;  %v129_v30 = vld [vmem:[%s21753_s0 + $0x2d8] sm:$0xff] }
  0x3d   :  { %14793 = vmatprep.mubr.msk.f32.mxu0 %vm296_vm1, %v66_v31  ;;  %v130_v31 = vld [vmem:[%s21753_s0 + $0x2e0] sm:$0xff] }
  0x40   :  { %14794 = vmatmul.mubr.msk.f32.gmra.mrb[28].mxu0 %vm296_vm1, %v67_v32  ;;  %v131_v32 = vld [vmem:[%s21753_s0 + $0x2e8] sm:$0xff] }
  0x41   :  { %14796 = vmatprep.mubr.msk.f32.mxu0 %vm296_vm1, %v68_v33  ;;  %v132_v33 = vld [vmem:[%s21753_s0 + $0x2f0] sm:$0xff] }
  0x44   :  { %14797 = vmatmul.mubr.msk.f32.gmra.mrb[30].mxu0 %vm296_vm1, %v69_v34  ;;  %v133_v34 = vld [vmem:[%s21753_s0 + $0x2f8] sm:$0xff] }
  0x45   :  { %14799 = vmatprep.mubr.msk.f32.mxu0 %vm296_vm1, %v70_v35  ;;  %v134_v35 = vld [vmem:[%s21753_s0 + $0x300] sm:$0xff] }
  0x48   :  { %14800 = vmatmul.mubr.msk.f32.gmra.mrb[32].mxu0 %vm296_vm1, %v71_v36  ;;  %v135_v36 = vld [vmem:[%s21753_s0 + $0x308] sm:$0xff] }
  0x49   :  { %14802 = vmatprep.mubr.msk.f32.mxu0 %vm296_vm1, %v72_v37  ;;  %v136_v37 = vld [vmem:[%s21753_s0 + $0x310] sm:$0xff] }
  0x4c   :  { %14803 = vmatmul.mubr.msk.f32.gmra.mrb[34].mxu0 %vm296_vm1, %v73_v38  ;;  %v137_v38 = vld [vmem:[%s21753_s0 + $0x318] sm:$0xff] }
  0x4d   :  { %14805 = vmatprep.mubr.msk.f32.mxu0 %vm296_vm1, %v74_v39  ;;  %v138_v39 = vld [vmem:[%s21753_s0 + $0x320] sm:$0xff] }
  0x50   :  { %14806 = vmatmul.mubr.msk.f32.gmra.mrb[36].mxu0 %vm296_vm1, %v75_v40  ;;  %v139_v40 = vld [vmem:[%s21753_s0 + $0x328] sm:$0xff] }
  0x51   :  { %14808 = vmatprep.mubr.msk.f32.mxu0 %vm296_vm1, %v76_v41  ;;  %v140_v41 = vld [vmem:[%s21753_s0 + $0x330] sm:$0xff] }
  0x54   :  { %14809 = vmatmul.mubr.msk.f32.gmra.mrb[38].mxu0 %vm296_vm1, %v77_v42  ;;  %v141_v42 = vld [vmem:[%s21753_s0 + $0x338] sm:$0xff] }
  0x55   :  { %14811 = vmatprep.mubr.msk.f32.mxu0 %vm296_vm1, %v78_v43  ;;  %v142_v43 = vld [vmem:[%s21753_s0 + $0x340] sm:$0xff] }
  0x58   :  { %14812 = vmatmul.mubr.msk.f32.gmra.mrb[40].mxu0 %vm296_vm1, %v79_v44  ;;  %v143_v44 = vld [vmem:[%s21753_s0 + $0x348] sm:$0xff] }
  0x59   :  { %14814 = vmatprep.mubr.msk.f32.mxu0 %vm296_vm1, %v80_v45  ;;  %v144_v45 = vld [vmem:[%s21753_s0 + $0x350] sm:$0xff] }
  0x5c   :  { %14815 = vmatmul.mubr.msk.f32.gmra.mrb[42].mxu0 %vm296_vm1, %v81_v46  ;;  %v145_v46 = vld [vmem:[%s21753_s0 + $0x358] sm:$0xff] }
  0x5d   :  { %14817 = vmatprep.mubr.msk.f32.mxu0 %vm296_vm1, %v82_v47  ;;  %v146_v47 = vld [vmem:[%s21753_s0 + $0x360] sm:$0xff] }
  0x60   :  { %14818 = vmatmul.mubr.msk.f32.gmra.mrb[44].mxu0 %vm296_vm1, %v83_v48 }
  0x61   :  { %14820 = vmatprep.mubr.msk.f32.mxu0 %vm296_vm1, %v84_v49 }
  0x64   :  { %14821 = vmatmul.mubr.msk.f32.gmra.mrb[46].mxu0 %vm296_vm1, %v85_v50  ;;  %v147_v50 = vld [vmem:[%s21753_s0 + $0x368] sm:$0xff] }
  0x65   :  { %14823 = vmatprep.mubr.msk.f32.mxu0 %vm296_vm1, %v86_v51  ;;  %v148_v51 = vld [vmem:[%s21753_s0 + $0x370] sm:$0xff] }
  0x68   :  { %14824 = vmatmul.mubr.msk.f32.gmra.mrb[48].mxu0 %vm296_vm1, %v87_v52 }
  0x69   :  { %14826 = vmatprep.mubr.msk.f32.mxu0 %vm296_vm1, %v88_v53 }
  0x6c   :  { %14827 = vmatmul.mubr.msk.f32.gmra.mrb[50].mxu0 %vm296_vm1, %v89_v54  ;;  %v149_v54 = vld [vmem:[%s21753_s0 + $0x378] sm:$0xff] }
  0x6d   :  { %14829 = vmatprep.mubr.msk.f32.mxu0 %vm296_vm1, %v90_v55  ;;  %v150_v55 = vld [vmem:[%s21753_s0 + $0x380] sm:$0xff] }
  0x70   :  { %14830 = vmatmul.mubr.msk.f32.gmra.mrb[52].mxu0 %vm296_vm1, %v91_v56 }
  0x71   :  { %14832 = vmatprep.mubr.msk.f32.mxu0 %vm296_vm1, %v92_v57 }
  0x74   :  { %14833 = vmatmul.mubr.msk.f32.gmra.mrb[54].mxu0 %vm296_vm1, %v93_v58  ;;  %v151_v58 = vld [vmem:[%s21753_s0 + $0x388] sm:$0xff] }
  0x75   :  { %14835 = vmatprep.mubr.msk.f32.mxu0 %vm296_vm1, %v94_v59  ;;  %v152_v59 = vld [vmem:[%s21753_s0 + $0x390] sm:$0xff] }
  0x78   :  { %14836 = vmatmul.mubr.msk.f32.gmra.mrb[56].mxu0 %vm296_vm1, %v95_v60 }
  0x79   :  { %14838 = vmatprep.mubr.msk.f32.mxu0 %vm296_vm1, %v96_v61 }
  0x7c   :  { %14839 = vmatmul.mubr.msk.f32.gmra.mrb[58].mxu0 %vm296_vm1, %v97_v62  ;;  %v153_v62 = vld [vmem:[%s21753_s0 + $0x398] sm:$0xff] }
  0x7d   :  { %14841 = vmatprep.mubr.msk.f32.mxu0 %vm296_vm1, %v98_v63  ;;  %v154_v63 = vld [vmem:[%s21753_s0 + $0x3a0] sm:$0xff] }
  0x80   :  { %14842 = vmatmul.mubr.msk.f32.gmra.mrb[60].mxu0 %vm296_vm1, %v99_v0 }
  0x81   :  { %14844 = vmatprep.mubr.msk.f32.mxu0 %vm296_vm1, %v100_v1 }
  0x84   :  { %14845 = vmatmul.mubr.msk.f32.gmra.mrb[62].mxu0 %vm296_vm1, %v101_v2  ;;  %v155_v2 = vld [vmem:[%s21753_s0 + $0x3a8] sm:$0xff] }
  0x85   :  { %14847 = vmatprep.mubr.msk.f32.mxu0 %vm296_vm1, %v102_v3  ;;  %v156_v3 = vld [vmem:[%s21753_s0 + $0x3b0] sm:$0xff] }
  0x88   :  { %14848 = vmatmul.mubr.msk.f32.gmra.mrb[64].mxu0 %vm296_vm1, %v103_v4 }
  0x89   :  { %14850 = vmatprep.mubr.msk.f32.mxu0 %vm296_vm1, %v104_v5 }
  0x8c   :  { %14851 = vmatmul.mubr.msk.f32.gmra.mrb[66].mxu0 %vm296_vm1, %v105_v6  ;;  %v157_v6 = vld [vmem:[%s21753_s0 + $0x3b8] sm:$0xff] }
  0x8d   :  { %14853 = vmatprep.mubr.msk.f32.mxu0 %vm296_vm1, %v106_v7  ;;  %v158_v7 = vld [vmem:[%s21753_s0 + $0x3c0] sm:$0xff] }
  0x90   :  { %14854 = vmatmul.mubr.msk.f32.gmra.mrb[68].mxu0 %vm296_vm1, %v107_v8 }
  0x91   :  { %14856 = vmatprep.mubr.msk.f32.mxu0 %vm296_vm1, %v108_v9 }
  0x94   :  { %14857 = vmatmul.mubr.msk.f32.gmra.mrb[70].mxu0 %vm296_vm1, %v109_v10  ;;  %v159_v10 = vld [vmem:[%s21753_s0 + $0x3c8] sm:$0xff] }
  0x95   :  { %14859 = vmatprep.mubr.msk.f32.mxu0 %vm296_vm1, %v110_v11  ;;  %v160_v11 = vld [vmem:[%s21753_s0 + $0x3d0] sm:$0xff] }
  0x98   :  { %14860 = vmatmul.mubr.msk.f32.gmra.mrb[72].mxu0 %vm296_vm1, %v111_v12 }
  0x99   :  { %14862 = vmatprep.mubr.msk.f32.mxu0 %vm296_vm1, %v112_v13 }
  0x9c   :  { %14863 = vmatmul.mubr.msk.f32.gmra.mrb[74].mxu0 %vm296_vm1, %v113_v14  ;;  %v161_v14 = vld [vmem:[%s21753_s0 + $0x3d8] sm:$0xff] }
  0x9d   :  { %14865 = vmatprep.mubr.msk.f32.mxu0 %vm296_vm1, %v114_v15  ;;  %v162_v15 = vld [vmem:[%s21753_s0 + $0x3e0] sm:$0xff] }
  0xa0   :  { %14866 = vmatmul.mubr.msk.f32.gmra.mrb[76].mxu0 %vm296_vm1, %v115_v16 }
  0xa1   :  { %14868 = vmatprep.mubr.msk.f32.mxu0 %vm296_vm1, %v116_v17 }
  0xa4   :  { %14869 = vmatmul.mubr.msk.f32.gmra.mrb[78].mxu0 %vm296_vm1, %v117_v18 }
  0xa5   :  { %14871 = vmatprep.mubr.msk.f32.mxu0 %vm296_vm1, %v118_v19 }
  0xa8   :  { %14872 = vmatmul.mubr.msk.f32.gmra.mrb[80].mxu0 %vm296_vm1, %v119_v20  ;;  %v163_v20 = vld [vmem:[%s21753_s0 + $0x3e8] sm:$0xff] }
  0xa9   :  { %14874 = vmatprep.mubr.msk.f32.mxu0 %vm296_vm1, %v120_v21  ;;  %v18122_v21 = vld [vmem:[%s21754_s2] ss:$0 sm:$0xff] }
  0xac   :  { %14875 = vmatmul.mubr.msk.f32.gmra.mrb[82].mxu0 %vm296_vm1, %v121_v22  ;;  %v164_v22 = vld [vmem:[%s21753_s0 + $0x3f0] sm:$0xff] }
  0xad   :  { %14877 = vmatprep.mubr.msk.f32.mxu0 %vm296_vm1, %v122_v23 }
  0xb0   :  { %14878 = vmatmul.mubr.msk.f32.gmra.mrb[84].mxu0 %vm296_vm1, %v123_v24 }
  0xb1   :  { %14880 = vmatprep.mubr.msk.f32.mxu0 %vm296_vm1, %v124_v25 }
  0xb4   :  { %14881 = vmatmul.mubr.msk.f32.gmra.mrb[86].mxu0 %vm296_vm1, %v125_v26 }
  0xb5   :  { %14883 = vmatprep.mubr.msk.f32.mxu0 %vm296_vm1, %v126_v27 }
  0xb8   :  { %14884 = vmatmul.mubr.msk.f32.gmra.mrb[88].mxu0 %vm296_vm1, %v127_v28 }
  0xb9   :  { %14886 = vmatprep.mubr.msk.f32.mxu0 %vm296_vm1, %v128_v29  ;;  %v165_v29 = vld [vmem:[%s21753_s0 + $0x3f8] sm:$0xff] }
  0xbc   :  { %14887 = vmatmul.mubr.msk.f32.gmra.mrb[90].mxu0 %vm296_vm1, %v129_v30  ;;  %v166_v30 = vld [vmem:[%s21753_s0 + $0x400] sm:$0xff] }
  0xbd   :  { %14889 = vmatprep.mubr.msk.f32.mxu0 %vm296_vm1, %v130_v31 }
  0xc0   :  { %14890 = vmatmul.mubr.msk.f32.gmra.mrb[92].mxu0 %vm296_vm1, %v131_v32 }
  0xc1   :  { %14892 = vmatprep.mubr.msk.f32.mxu0 %vm296_vm1, %v132_v33 }
  0xc4   :  { %14893 = vmatmul.mubr.msk.f32.gmra.mrb[94].mxu0 %vm296_vm1, %v133_v34 }
  0xc5   :  { %14895 = vmatprep.mubr.msk.f32.mxu0 %vm296_vm1, %v134_v35 }
  0xc8   :  { %14896 = vmatmul.mubr.msk.f32.gmra.mrb[96].mxu0 %vm296_vm1, %v135_v36 }
  0xc9   :  { %14898 = vmatprep.mubr.msk.f32.mxu0 %vm296_vm1, %v136_v37 }
  0xcc   :  { %14899 = vmatmul.mubr.msk.f32.gmra.mrb[98].mxu0 %vm296_vm1, %v137_v38  ;;  %v167_v38 = vld [vmem:[%s21753_s0 + $0x408] sm:$0xff] }
  0xcd   :  { %14901 = vmatprep.mubr.msk.f32.mxu0 %vm296_vm1, %v138_v39  ;;  %v168_v39 = vld [vmem:[%s21753_s0 + $0x410] sm:$0xff] }
  0xd0   :  { %14902 = vmatmul.mubr.msk.f32.gmra.mrb[100].mxu0 %vm296_vm1, %v139_v40 }
  0xd1   :  { %14904 = vmatprep.mubr.msk.f32.mxu0 %vm296_vm1, %v140_v41 }
  0xd4   :  { %14905 = vmatmul.mubr.msk.f32.gmra.mrb[102].mxu0 %vm296_vm1, %v141_v42 }
  0xd5   :  { %14907 = vmatprep.mubr.msk.f32.mxu0 %vm296_vm1, %v142_v43 }
  0xd8   :  { %14908 = vmatmul.mubr.msk.f32.gmra.mrb[104].mxu0 %vm296_vm1, %v143_v44 }
  0xd9   :  { %14910 = vmatprep.mubr.msk.f32.mxu0 %vm296_vm1, %v144_v45 }
  0xdb   :  { %v14753_v48 = vpop.f32.mrb[0].mxu0 }
  0xdc   :  { %v1135_v49 = vpop.f32.mrb[1].mxu0  ;;  %14911 = vmatmul.mubr.msk.f32.gmra.mrb[106].mxu0 %vm296_vm1, %v145_v46 }
  0xdd   :  { %14913 = vmatprep.mubr.msk.f32.mxu0 %vm296_vm1, %v146_v47  ;;  %v169_v47 = vld [vmem:[%s21753_s0 + $0x418] sm:$0xff] }
  0xdf   :  { %v18030_v52 = vpop.f32.mrb[2].mxu0 }
  0xe0   :  { %v18032_v53 = vpop.f32.mrb[3].mxu0  ;;  %14914 = vmatmul.mubr.msk.f32.gmra.mrb[108].mxu0 %vm296_vm1, %v147_v50 }
  0xe1   :  { %14916 = vmatprep.mubr.msk.f32.mxu0 %vm296_vm1, %v148_v51 }
  0xe3   :  { %v18042_v56 = vpop.f32.mrb[4].mxu0 }
  0xe4   :  { %v18044_v57 = vpop.f32.mrb[5].mxu0  ;;  %14917 = vmatmul.mubr.msk.f32.gmra.mrb[110].mxu0 %vm296_vm1, %v149_v54 }
  0xe5   :  { %14919 = vmatprep.mubr.msk.f32.mxu0 %vm296_vm1, %v150_v55 }
  0xe7   :  { %v18054_v60 = vpop.f32.mrb[6].mxu0 }
  0xe8   :  { %v18056_v61 = vpop.f32.mrb[7].mxu0  ;;  %14920 = vmatmul.mubr.msk.f32.gmra.mrb[112].mxu0 %vm296_vm1, %v151_v58 }
  0xe9   :  { %14922 = vmatprep.mubr.msk.f32.mxu0 %vm296_vm1, %v152_v59 }
  0xeb   :  { %v18066_v0 = vpop.f32.mrb[8].mxu0 }
  0xec   :  { %v18068_v1 = vpop.f32.mrb[9].mxu0  ;;  %14923 = vmatmul.mubr.msk.f32.gmra.mrb[114].mxu0 %vm296_vm1, %v153_v62 }
  0xed   :  { %14925 = vmatprep.mubr.msk.f32.mxu0 %vm296_vm1, %v154_v63 }
  0xef   :  { %v18078_v4 = vpop.f32.mrb[10].mxu0 }
  0xf0   :  { %v18080_v5 = vpop.f32.mrb[11].mxu0  ;;  %14926 = vmatmul.mubr.msk.f32.gmra.mrb[116].mxu0 %vm296_vm1, %v155_v2  ;;  %v174_v2 = vld [vmem:[%s21753_s0 + $0x440] sm:$0xff] }
  0xf1   :  { %14928 = vmatprep.mubr.msk.f32.mxu0 %vm296_vm1, %v156_v3 }
  0xf3   :  { %v18090_v8 = vpop.f32.mrb[12].mxu0 }
  0xf4   :  { %v18092_v9 = vpop.f32.mrb[13].mxu0  ;;  %14929 = vmatmul.mubr.msk.f32.gmra.mrb[118].mxu0 %vm296_vm1, %v157_v6 }
  0xf5   :  { %14931 = vmatprep.mubr.msk.f32.mxu0 %vm296_vm1, %v158_v7 }
  0xf7   :  { %v18102_v12 = vpop.f32.mrb[14].mxu0 }
  0xf8   :  { %v18104_v13 = vpop.f32.mrb[15].mxu0  ;;  %14932 = vmatmul.mubr.msk.f32.gmra.mrb[120].mxu0 %vm296_vm1, %v159_v10 }
  0xf9   :  { %14934 = vmatprep.mubr.msk.f32.mxu0 %vm296_vm1, %v160_v11 }
  0xfb   :  { %v14777_v16 = vpop.f32.mrb[16].mxu0 }
  0xfc   :  { %v2415_v17 = vmax.f32 %v14753_v48, %v14777_v16  ;;  %v1215_v18 = vpop.f32.mrb[17].mxu0  ;;  %14935 = vmatmul.mubr.msk.f32.gmra.mrb[122].mxu0 %vm296_vm1, %v161_v14  ;;  %v170_v48 = vld [vmem:[%s21753_s0 + $0x420] sm:$0xff]  ;;  %v175_v14 = vld [vmem:[%s21753_s0 + $0x448] sm:$0xff] }
  0xfd   :  { %v2414_v19 = vmax.f32 %v1135_v49, %v1215_v18  ;;  %14937 = vmatprep.mubr.msk.f32.mxu0 %vm296_vm1, %v162_v15  ;;  %v176_v15 = vld [vmem:[%s21753_s0 + $0x450] sm:$0xff] }
  0xff   :  { %v2542_v23 = vmax.f32 %v2414_v19, %v2415_v17  ;;  %v14780_v24 = vpop.f32.mrb[18].mxu0 }
 0x100   :  { %v2417_v25 = vmax.f32 %v18030_v52, %v14780_v24  ;;  %v1225_v26 = vpop.f32.mrb[19].mxu0  ;;  %14938 = vmatmul.mubr.msk.f32.gmra.mrb[124].mxu0 %vm296_vm1, %v163_v20 }
 0x101   :  { %v2613_v27 = vadd.f32 %v18122_v21, %v2542_v23  ;;  %v2416_v28 = vmax.f32 %v18032_v53, %v1225_v26  ;;  %14940 = vmatprep.mubr.msk.f32.mxu0 %vm296_vm1, %v164_v22  ;;  %v177_v22 = vld [vmem:[%s21753_s0 + $0x458] sm:$0xff]  ;;  %v178_v23 = vld [vmem:[%s21753_s0 + $0x460] sm:$0xff] }
 0x103   :  { %v2677_v31 = vmax.f32 %v2613_v27, 0.0  ;;  %v2543_v32 = vmax.f32 %v2416_v28, %v2417_v25  ;;  %v14783_v33 = vpop.f32.mrb[20].mxu0  ;;  %v179_v27 = vld [vmem:[%s21753_s0 + $0x468] sm:$0xff]  ;;  %v180_v28 = vld [vmem:[%s21753_s0 + $0x470] sm:$0xff] }
 0x104   :  { %v2419_v34 = vmax.f32 %v18042_v56, %v14783_v33  ;;  %v1235_v35 = vpop.f32.mrb[21].mxu0  ;;  %14941 = vmatmul.mubr.msk.f32.gmra.mrb[126].mxu0 %vm296_vm1, %v165_v29  ;;  %v171_v56 = vld [vmem:[%s21753_s0 + $0x428] sm:$0xff]  ;;  %v182_v33 = vld [vmem:[%s21753_s0 + $0x480] sm:$0xff] }
 0x105   :  { %2785 = vst.msk [vmem:[#allocation2 + $0x58] sm:$0xff] %vm2741_vm4, %v2677_v31  ;;  %v2614_v36 = vadd.f32 %v18122_v21, %v2543_v32  ;;  %v2418_v37 = vmax.f32 %v18044_v57, %v1235_v35  ;;  %14943 = vmatprep.mubr.msk.f32.mxu0 %vm296_vm1, %v166_v30  ;;  %v172_v57 = vld [vmem:[%s21753_s0 + $0x430] sm:$0xff]  ;;  %v181_v32 = vld [vmem:[%s21753_s0 + $0x478] sm:$0xff] }
 0x107   :  { %v2678_v40 = vmax.f32 %v2614_v36, 0.0  ;;  %v2544_v41 = vmax.f32 %v2418_v37, %v2419_v34  ;;  %v14786_v42 = vpop.f32.mrb[22].mxu0  ;;  %v183_v36 = vld [vmem:[%s21753_s0 + $0x488] sm:$0xff]  ;;  %v184_v37 = vld [vmem:[%s21753_s0 + $0x490] sm:$0xff] }
 0x108   :  { %v2421_v43 = vmax.f32 %v18054_v60, %v14786_v42  ;;  %v1245_v44 = vpop.f32.mrb[23].mxu0  ;;  %14944 = vmatmul.mubr.msk.f32.gmra.mrb[128].mxu0 %vm296_vm1, %v167_v38 }
 0x109   :  { %2786 = vst.msk [vmem:[#allocation2 + $0x60] sm:$0xff] %vm2741_vm4, %v2678_v40  ;;  %v2615_v45 = vadd.f32 %v18122_v21, %v2544_v41  ;;  %v2420_v46 = vmax.f32 %v18056_v61, %v1245_v44  ;;  %14946 = vmatprep.mubr.msk.f32.mxu0 %vm296_vm1, %v168_v39  ;;  %v185_v40 = vld [vmem:[%s21753_s0 + $0x498] sm:$0xff]  ;;  %v186_v41 = vld [vmem:[%s21753_s0 + $0x4a0] sm:$0xff]  ;;  %v187_v44 = vld [vmem:[%s21753_s0 + $0x4a8] sm:$0xff] }
 0x10b   :  { %v2679_v49 = vmax.f32 %v2615_v45, 0.0  ;;  %v2545_v50 = vmax.f32 %v2420_v46, %v2421_v43  ;;  %v14789_v51 = vpop.f32.mrb[24].mxu0  ;;  %v188_v45 = vld [vmem:[%s21753_s0 + $0x4b0] sm:$0xff] }
 0x10c   :  { %v2423_v52 = vmax.f32 %v18066_v0, %v14789_v51  ;;  %v1255_v53 = vpop.f32.mrb[25].mxu0  ;;  %14947 = vmatmul.mubr.msk.f32.gmra.mrb[130].mxu0 %vm296_vm1, %v169_v47 }
 0x10d   :  { %2787 = vst.msk [vmem:[#allocation2 + $0x68] sm:$0xff] %vm2741_vm4, %v2679_v49  ;;  %v2616_v54 = vadd.f32 %v18122_v21, %v2545_v50  ;;  %v2422_v55 = vmax.f32 %v18068_v1, %v1255_v53  ;;  %14949 = vmatprep.mubr.msk.f32.mxu0 %vm296_vm1, %v170_v48  ;;  %v173_v1 = vld [vmem:[%s21753_s0 + $0x438] sm:$0xff]  ;;  %v190_v49 = vld [vmem:[%s21753_s0 + $0x4c0] sm:$0xff]  ;;  %v192_v53 = vld [vmem:[%s21753_s0 + $0x4d0] sm:$0xff] }
 0x10e   :  { %v189_v48 = vld [vmem:[%s21753_s0 + $0x4b8] sm:$0xff] }
 0x10f   :  { %v2680_v58 = vmax.f32 %v2616_v54, 0.0  ;;  %v2546_v59 = vmax.f32 %v2422_v55, %v2423_v52  ;;  %v14792_v60 = vpop.f32.mrb[26].mxu0  ;;  %v191_v52 = vld [vmem:[%s21753_s0 + $0x4c8] sm:$0xff] }
 0x110   :  { %v2425_v61 = vmax.f32 %v18078_v4, %v14792_v60  ;;  %v1265_v62 = vpop.f32.mrb[27].mxu0  ;;  %14950 = vmatmul.mubr.msk.f32.gmra.mrb[132].mxu0 %vm296_vm1, %v171_v56  ;;  %v193_v56 = vld [vmem:[%s21753_s0 + $0x4d8] sm:$0xff] }
 0x111   :  { %2788 = vst.msk [vmem:[#allocation2 + $0x70] sm:$0xff] %vm2741_vm4, %v2680_v58  ;;  %v2617_v63 = vadd.f32 %v18122_v21, %v2546_v59  ;;  %v2424_v0 = vmax.f32 %v18080_v5, %v1265_v62  ;;  %14952 = vmatprep.mubr.msk.f32.mxu0 %vm296_vm1, %v172_v57  ;;  %v194_v57 = vld [vmem:[%s21753_s0 + $0x4e0] sm:$0xff]  ;;  %v195_v62 = vld [vmem:[%s21753_s0 + $0x4e8] sm:$0xff] }
 0x113   :  { %v2681_v3 = vmax.f32 %v2617_v63, 0.0  ;;  %v2547_v4 = vmax.f32 %v2424_v0, %v2425_v61  ;;  %v14795_v6 = vpop.f32.mrb[28].mxu0  ;;  %v196_v63 = vld [vmem:[%s21753_s0 + $0x4f0] sm:$0xff] }
 0x114   :  { %v2427_v7 = vmax.f32 %v18090_v8, %v14795_v6  ;;  %v1275_v10 = vpop.f32.mrb[29].mxu0  ;;  %14953 = vmatmul.mubr.msk.f32.gmra.mrb[134].mxu0 %vm296_vm1, %v173_v1  ;;  %v197_v6 = vld [vmem:[%s21753_s0 + $0x4f8] sm:$0xff] }
 0x115   :  { %2789 = vst.msk [vmem:[#allocation2 + $0x78] sm:$0xff] %vm2741_vm4, %v2681_v3  ;;  %v2618_v5 = vadd.f32 %v18122_v21, %v2547_v4  ;;  %v2426_v11 = vmax.f32 %v18092_v9, %v1275_v10  ;;  %14955 = vmatprep.mubr.msk.f32.mxu0 %vm296_vm1, %v174_v2  ;;  %v198_v10 = vld [vmem:[%s21753_s0 + $0x500] sm:$0xff] }
 0x117   :  { %v2682_v8 = vmax.f32 %v2618_v5, 0.0  ;;  %v2548_v16 = vmax.f32 %v2426_v11, %v2427_v7  ;;  %v14798_v17 = vpop.f32.mrb[30].mxu0 }
 0x118   :  { %v2429_v18 = vmax.f32 %v18102_v12, %v14798_v17  ;;  %v1285_v19 = vpop.f32.mrb[31].mxu0  ;;  %14956 = vmatmul.mubr.msk.f32.gmra.mrb[136].mxu0 %vm296_vm1, %v175_v14 }
 0x119   :  { %2790 = vst.msk [vmem:[#allocation2 + $0x80] sm:$0xff] %vm2741_vm4, %v2682_v8  ;;  %v2619_v9 = vadd.f32 %v18122_v21, %v2548_v16  ;;  %v2428_v20 = vmax.f32 %v18104_v13, %v1285_v19  ;;  %14958 = vmatprep.mubr.msk.f32.mxu0 %vm296_vm1, %v176_v15  ;;  %v200_v19 = vld [vmem:[%s21753_s0 + $0x510] sm:$0xff] }
 0x11b   :  { %v2683_v12 = vmax.f32 %v2619_v9, 0.0  ;;  %v2549_v24 = vmax.f32 %v2428_v20, %v2429_v18  ;;  %v14801_v25 = vpop.f32.mrb[32].mxu0  ;;  %v199_v18 = vld [vmem:[%s21753_s0 + $0x508] sm:$0xff] }
 0x11c   :  { %v1295_v26 = vpop.f32.mrb[33].mxu0  ;;  %14959 = vmatmul.mubr.msk.f32.gmra.mrb[138].mxu0 %vm296_vm1, %v177_v22 }
 0x11d   :  { %2791 = vst.msk [vmem:[#allocation2 + $0x88] sm:$0xff] %vm2741_vm4, %v2683_v12  ;;  %v2620_v13 = vadd.f32 %v18122_v21, %v2549_v24  ;;  %14961 = vmatprep.mubr.msk.f32.mxu0 %vm296_vm1, %v178_v23 }
 0x11f   :  { %v2684_v29 = vmax.f32 %v2620_v13, 0.0  ;;  %v14804_v30 = vpop.f32.mrb[34].mxu0  ;;  %v202_v13 = vld [vmem:[%s21753_s0 + $0x520] sm:$0xff] }
 0x120   :  { %v1305_v31 = vpop.f32.mrb[35].mxu0  ;;  %14962 = vmatmul.mubr.msk.f32.gmra.mrb[140].mxu0 %vm296_vm1, %v179_v27 }
 0x121   :  { %2792 = vst.msk [vmem:[#allocation2 + $0x90] sm:$0xff] %vm2741_vm4, %v2684_v29  ;;  %14964 = vmatprep.mubr.msk.f32.mxu0 %vm296_vm1, %v180_v28 }
 0x123   :  { %v18229_v34 = vpop.f32.mrb[36].mxu0 }
 0x124   :  { %v18231_v35 = vpop.f32.mrb[37].mxu0  ;;  %14965 = vmatmul.mubr.msk.f32.gmra.mrb[142].mxu0 %vm296_vm1, %v181_v32 }
 0x125   :  { %14967 = vmatprep.mubr.msk.f32.mxu0 %vm296_vm1, %v182_v33 }
 0x127   :  { %v18241_v38 = vpop.f32.mrb[38].mxu0 }
 0x128   :  { %v18243_v39 = vpop.f32.mrb[39].mxu0  ;;  %14968 = vmatmul.mubr.msk.f32.gmra.mrb[144].mxu0 %vm296_vm1, %v183_v36 }
 0x129   :  { %14970 = vmatprep.mubr.msk.f32.mxu0 %vm296_vm1, %v184_v37 }
 0x12b   :  { %v18253_v42 = vpop.f32.mrb[40].mxu0 }
 0x12c   :  { %v18255_v43 = vpop.f32.mrb[41].mxu0  ;;  %14971 = vmatmul.mubr.msk.f32.gmra.mrb[146].mxu0 %vm296_vm1, %v185_v40 }
 0x12d   :  { %14973 = vmatprep.mubr.msk.f32.mxu0 %vm296_vm1, %v186_v41 }
 0x12f   :  { %v18265_v46 = vpop.f32.mrb[42].mxu0 }
 0x130   :  { %v18267_v47 = vpop.f32.mrb[43].mxu0  ;;  %14974 = vmatmul.mubr.msk.f32.gmra.mrb[148].mxu0 %vm296_vm1, %v187_v44  ;;  %v206_v44 = vld [vmem:[%s21753_s0 + $0x540] sm:$0xff] }
 0x131   :  { %14976 = vmatprep.mubr.msk.f32.mxu0 %vm296_vm1, %v188_v45 }
 0x133   :  { %v18277_v50 = vpop.f32.mrb[44].mxu0 }
 0x134   :  { %v18279_v51 = vpop.f32.mrb[45].mxu0  ;;  %14977 = vmatmul.mubr.msk.f32.gmra.mrb[150].mxu0 %vm296_vm1, %v189_v48 }
 0x135   :  { %14979 = vmatprep.mubr.msk.f32.mxu0 %vm296_vm1, %v190_v49 }
 0x137   :  { %v18289_v54 = vpop.f32.mrb[46].mxu0 }
 0x138   :  { %v18291_v55 = vpop.f32.mrb[47].mxu0  ;;  %14980 = vmatmul.mubr.msk.f32.gmra.mrb[152].mxu0 %vm296_vm1, %v191_v52 }
 0x139   :  { %14982 = vmatprep.mubr.msk.f32.mxu0 %vm296_vm1, %v192_v53 }
 0x13b   :  { %v14825_v58 = vpop.f32.mrb[48].mxu0 }
 0x13c   :  { %v2431_v59 = vmax.f32 %v14801_v25, %v14825_v58  ;;  %v1375_v60 = vpop.f32.mrb[49].mxu0  ;;  %14983 = vmatmul.mubr.msk.f32.gmra.mrb[154].mxu0 %vm296_vm1, %v193_v56  ;;  %v201_v25 = vld [vmem:[%s21753_s0 + $0x518] sm:$0xff]  ;;  %v207_v56 = vld [vmem:[%s21753_s0 + $0x548] sm:$0xff] }
 0x13d   :  { %v2430_v61 = vmax.f32 %v1295_v26, %v1375_v60  ;;  %14985 = vmatprep.mubr.msk.f32.mxu0 %vm296_vm1, %v194_v57  ;;  %v208_v57 = vld [vmem:[%s21753_s0 + $0x550] sm:$0xff] }
 0x13f   :  { %v2550_v0 = vmax.f32 %v2430_v61, %v2431_v59  ;;  %v14828_v1 = vpop.f32.mrb[50].mxu0 }
 0x140   :  { %v2433_v2 = vmax.f32 %v14804_v30, %v14828_v1  ;;  %v1385_v3 = vpop.f32.mrb[51].mxu0  ;;  %14986 = vmatmul.mubr.msk.f32.gmra.mrb[156].mxu0 %vm296_vm1, %v195_v62  ;;  %v209_v62 = vld [vmem:[%s21753_s0 + $0x558] sm:$0xff] }
 0x141   :  { %v2432_v4 = vmax.f32 %v1305_v31, %v1385_v3  ;;  %14988 = vmatprep.mubr.msk.f32.mxu0 %vm296_vm1, %v196_v63  ;;  %v2621_v7 = vadd.f32 %v18122_v21, %v2550_v0  ;;  %v210_v0 = vld [vmem:[%s21753_s0 + $0x560] sm:$0xff] }
 0x143   :  { %v2551_v5 = vmax.f32 %v2432_v4, %v2433_v2  ;;  %v14831_v11 = vpop.f32.mrb[52].mxu0  ;;  %v2685_v14 = vmax.f32 %v2621_v7, 0.0  ;;  %v211_v4 = vld [vmem:[%s21753_s0 + $0x568] sm:$0xff] }
 0x144   :  { %v2435_v15 = vmax.f32 %v18229_v34, %v14831_v11  ;;  %v1395_v8 = vpop.f32.mrb[53].mxu0  ;;  %14989 = vmatmul.mubr.msk.f32.gmra.mrb[158].mxu0 %vm296_vm1, %v197_v6  ;;  %v203_v34 = vld [vmem:[%s21753_s0 + $0x528] sm:$0xff]  ;;  %v212_v6 = vld [vmem:[%s21753_s0 + $0x570] sm:$0xff]  ;;  %v213_v11 = vld [vmem:[%s21753_s0 + $0x578] sm:$0xff] }
 0x145   :  { %v2622_v16 = vadd.f32 %v18122_v21, %v2551_v5  ;;  %v2434_v17 = vmax.f32 %v18231_v35, %v1395_v8  ;;  %14991 = vmatprep.mubr.msk.f32.mxu0 %vm296_vm1, %v198_v10  ;;  %2793 = vst.msk [vmem:[#allocation2 + $0xa8] sm:$0xff] %vm2741_vm4, %v2685_v14  ;;  %v204_v35 = vld [vmem:[%s21753_s0 + $0x530] sm:$0xff]  ;;  %v214_v14 = vld [vmem:[%s21753_s0 + $0x580] sm:$0xff] }
 0x147   :  { %v2686_v9 = vmax.f32 %v2622_v16, 0.0  ;;  %v2552_v20 = vmax.f32 %v2434_v17, %v2435_v15  ;;  %v14834_v22 = vpop.f32.mrb[54].mxu0  ;;  %v215_v16 = vld [vmem:[%s21753_s0 + $0x588] sm:$0xff]  ;;  %v216_v17 = vld [vmem:[%s21753_s0 + $0x590] sm:$0xff] }
 0x148   :  { %v2437_v23 = vmax.f32 %v18241_v38, %v14834_v22  ;;  %v1405_v12 = vpop.f32.mrb[55].mxu0  ;;  %14992 = vmatmul.mubr.msk.f32.gmra.mrb[160].mxu0 %vm296_vm1, %v199_v18 }
 0x149   :  { %2794 = vst.msk [vmem:[#allocation2 + $0xb0] sm:$0xff] %vm2741_vm4, %v2686_v9  ;;  %v2436_v24 = vmax.f32 %v18243_v39, %v1405_v12  ;;  %14994 = vmatprep.mubr.msk.f32.mxu0 %vm296_vm1, %v200_v19  ;;  %v2623_v26 = vadd.f32 %v18122_v21, %v2552_v20  ;;  %v217_v9 = vld [vmem:[%s21753_s0 + $0x598] sm:$0xff]  ;;  %v218_v20 = vld [vmem:[%s21753_s0 + $0x5a0] sm:$0xff]  ;;  %v219_v12 = vld [vmem:[%s21753_s0 + $0x5a8] sm:$0xff] }
 0x14b   :  { %v2553_v27 = vmax.f32 %v2436_v24, %v2437_v23  ;;  %v14837_v28 = vpop.f32.mrb[56].mxu0  ;;  %v2687_v29 = vmax.f32 %v2623_v26, 0.0  ;;  %v220_v24 = vld [vmem:[%s21753_s0 + $0x5b0] sm:$0xff] }
 0x14c   :  { %v2439_v30 = vmax.f32 %v18253_v42, %v14837_v28  ;;  %v1415_v31 = vpop.f32.mrb[57].mxu0  ;;  %14995 = vmatmul.mubr.msk.f32.gmra.mrb[162].mxu0 %vm296_vm1, %v201_v25  ;;  %v205_v42 = vld [vmem:[%s21753_s0 + $0x538] sm:$0xff] }
 0x14d   :  { %v2624_v32 = vadd.f32 %v18122_v21, %v2553_v27  ;;  %v2438_v33 = vmax.f32 %v18255_v43, %v1415_v31  ;;  %14997 = vmatprep.mubr.msk.f32.mxu0 %vm296_vm1, %v202_v13  ;;  %2795 = vst.msk [vmem:[#allocation2 + $0xb8] sm:$0xff] %vm2741_vm4, %v2687_v29  ;;  %v221_v13 = vld [vmem:[%s21753_s0 + $0x5b8] sm:$0xff]  ;;  %v222_v27 = vld [vmem:[%s21753_s0 + $0x5c0] sm:$0xff]  ;;  %v224_v31 = vld [vmem:[%s21753_s0 + $0x5d0] sm:$0xff] }
 0x14f   :  { %v2688_v36 = vmax.f32 %v2624_v32, 0.0  ;;  %v2554_v37 = vmax.f32 %v2438_v33, %v2439_v30  ;;  %v14840_v38 = vpop.f32.mrb[58].mxu0  ;;  %v223_v30 = vld [vmem:[%s21753_s0 + $0x5c8] sm:$0xff] }
 0x150   :  { %v2441_v39 = vmax.f32 %v18265_v46, %v14840_v38  ;;  %v1425_v40 = vpop.f32.mrb[59].mxu0  ;;  %14998 = vmatmul.mubr.msk.f32.gmra.mrb[164].mxu0 %vm296_vm1, %v203_v34  ;;  %v225_v34 = vld [vmem:[%s21753_s0 + $0x5d8] sm:$0xff] }
 0x151   :  { %2796 = vst.msk [vmem:[#allocation2 + $0xc0] sm:$0xff] %vm2741_vm4, %v2688_v36  ;;  %v2440_v41 = vmax.f32 %v18267_v47, %v1425_v40  ;;  %15000 = vmatprep.mubr.msk.f32.mxu0 %vm296_vm1, %v204_v35  ;;  %v2625_v43 = vadd.f32 %v18122_v21, %v2554_v37  ;;  %v226_v35 = vld [vmem:[%s21753_s0 + $0x5e0] sm:$0xff]  ;;  %v227_v40 = vld [vmem:[%s21753_s0 + $0x5e8] sm:$0xff] }
 0x153   :  { %v2555_v45 = vmax.f32 %v2440_v41, %v2441_v39  ;;  %v14843_v46 = vpop.f32.mrb[60].mxu0  ;;  %v2689_v48 = vmax.f32 %v2625_v43, 0.0  ;;  %v228_v41 = vld [vmem:[%s21753_s0 + $0x5f0] sm:$0xff] }
 0x154   :  { %v2443_v49 = vmax.f32 %v18277_v50, %v14843_v46  ;;  %v1435_v52 = vpop.f32.mrb[61].mxu0  ;;  %15001 = vmatmul.mubr.msk.f32.gmra.mrb[166].mxu0 %vm296_vm1, %v205_v42 }
 0x155   :  { %v2626_v47 = vadd.f32 %v18122_v21, %v2555_v45  ;;  %v2442_v53 = vmax.f32 %v18279_v51, %v1435_v52  ;;  %15003 = vmatprep.mubr.msk.f32.mxu0 %vm296_vm1, %v206_v44  ;;  %2797 = vst.msk [vmem:[#allocation2 + $0xc8] sm:$0xff] %vm2741_vm4, %v2689_v48  ;;  %v21764_v44 = vmov 0.0   ;;  %v229_v52 = vld [vmem:[%s21753_s0 + $0x5f8] sm:$0xff] }
 0x156   :  { %2743 = vst.msk [vmem:[#allocation2 + $0x8] sm:$0xff] %vm2741_vm4, %v21764_v44  ;;  %2742 = vst.msk [vmem:[#allocation2] sm:$0xff] %vm2741_vm4, %v21764_v44 }
 0x157   :  { %v2690_v50 = vmax.f32 %v2626_v47, 0.0  ;;  %v2556_v58 = vmax.f32 %v2442_v53, %v2443_v49  ;;  %v14846_v59 = vpop.f32.mrb[62].mxu0  ;;  %2744 = vst.msk [vmem:[#allocation2 + $0x10] sm:$0xff] %vm2741_vm4, %v21764_v44  ;;  %2745 = vst.msk [vmem:[#allocation2 + $0x18] sm:$0xff] %vm2741_vm4, %v21764_v44  ;;  %v12718_v47 = vld [vmem:[%s21755_s3 + $0x10] sm:$0xff]  ;;  %v12719_v53 = vld [vmem:[%s21755_s3 + $0x18] sm:$0xff] }
 0x158   :  { %v2445_v60 = vmax.f32 %v18289_v54, %v14846_v59  ;;  %v1445_v61 = vpop.f32.mrb[63].mxu0  ;;  %15004 = vmatmul.mubr.msk.f32.gmra.mrb[168].mxu0 %vm296_vm1, %v207_v56  ;;  %2746 = vst.msk [vmem:[#allocation2 + $0x20] sm:$0xff] %vm2741_vm4, %v21764_v44  ;;  %2747 = vst.msk [vmem:[#allocation2 + $0x28] sm:$0xff] %vm2741_vm4, %v21764_v44  ;;  %v230_v56 = vld [vmem:[%s21753_s0 + $0x600] sm:$0xff] }
 0x159   :  { %2798 = vst.msk [vmem:[#allocation2 + $0xd0] sm:$0xff] %vm2741_vm4, %v2690_v50  ;;  %v2444_v51 = vmax.f32 %v18291_v55, %v1445_v61  ;;  %15006 = vmatprep.mubr.msk.f32.mxu0 %vm296_vm1, %v208_v57  ;;  %v2627_v63 = vadd.f32 %v18122_v21, %v2556_v58  ;;  %2748 = vst.msk [vmem:[#allocation2 + $0x30] sm:$0xff] %vm2741_vm4, %v21764_v44  ;;  %v16562_v57 = vpack.c.bf16 %v12719_v53, %v12718_v47  ;;  %v243_v53 = vld [vmem:[%s21753_s0 + $0x668] sm:$0xff] }
 0x15a   :  { %2749 = vst.msk [vmem:[#allocation2 + $0x38] sm:$0xff] %vm2741_vm4, %v21764_v44  ;;  %2750 = vst.msk [vmem:[#allocation2 + $0x40] sm:$0xff] %vm2741_vm4, %v21764_v44 }
 0x15b   :  { %v2557_v54 = vmax.f32 %v2444_v51, %v2445_v60  ;;  %v14849_v1 = vpop.f32.mrb[64].mxu0  ;;  %v2691_v2 = vmax.f32 %v2627_v63, 0.0  ;;  %2751 = vst.msk [vmem:[#allocation2 + $0x48] sm:$0xff] %vm2741_vm4, %v21764_v44  ;;  %2753 = vst.msk [vmem:[#allocation2 + $0x2d0] sm:$0xff] %vm2741_vm4, %v21764_v44  ;;  %16563 = vmatprep.subr.bf16.mxu0 %v16562_v57  ;;  %v231_v63 = vld [vmem:[%s21753_s0 + $0x608] sm:$0xff]  ;;  %16838 = vmatprep.subr.bf16.mxu1 %v16562_v57 }
 0x15c   :  { %v1455_v3 = vpop.f32.mrb[65].mxu0  ;;  %15007 = vmatmul.mubr.msk.f32.gmra.mrb[170].mxu0 %vm296_vm1, %v209_v62  ;;  %2754 = vst.msk [vmem:[#allocation2 + $0x2d8] sm:$0xff] %vm2741_vm4, %v21764_v44  ;;  %2755 = vst.msk [vmem:[#allocation2 + $0x2e0] sm:$0xff] %vm2741_vm4, %v21764_v44  ;;  %16839 = vmatpush3.bf16.msra.mxu1 %v16562_v57 }
 0x15d   :  { %v2628_v55 = vadd.f32 %v18122_v21, %v2557_v54  ;;  %15009 = vmatprep.mubr.msk.f32.mxu0 %vm296_vm1, %v210_v0  ;;  %2799 = vst.msk [vmem:[#allocation2 + $0xd8] sm:$0xff] %vm2741_vm4, %v2691_v2  ;;  %2756 = vst.msk [vmem:[#allocation2 + $0x2e8] sm:$0xff] %vm2741_vm4, %v21764_v44  ;;  %16565 = vmatpush3.bf16.msra.mxu0 %v16562_v57  ;;  %v232_v0 = vld [vmem:[%s21753_s0 + $0x610] sm:$0xff] }
 0x15e   :  { %2757 = vst.msk [vmem:[#allocation2 + $0x2f0] sm:$0xff] %vm2741_vm4, %v21764_v44  ;;  %2758 = vst.msk [vmem:[#allocation2 + $0x2f8] sm:$0xff] %vm2741_vm4, %v21764_v44 }
 0x15f   :  { %v2692_v7 = vmax.f32 %v2628_v55, 0.0  ;;  %v18400_v10 = vpop.f32.mrb[66].mxu0  ;;  %2759 = vst.msk [vmem:[#allocation2 + $0x300] sm:$0xff] %vm2741_vm4, %v21764_v44  ;;  %2760 = vst.msk [vmem:[#allocation2 + $0x308] sm:$0xff] %vm2741_vm4, %v21764_v44 }
 0x160   :  { %v18402_v5 = vpop.f32.mrb[67].mxu0  ;;  %15010 = vmatmul.mubr.msk.f32.gmra.mrb[172].mxu0 %vm296_vm1, %v211_v4  ;;  %2761 = vst.msk [vmem:[#allocation2 + $0x310] sm:$0xff] %vm2741_vm4, %v21764_v44  ;;  %2762 = vst.msk [vmem:[#allocation2 + $0x318] sm:$0xff] %vm2741_vm4, %v21764_v44 }
 0x161   :  { %2800 = vst.msk [vmem:[#allocation2 + $0xe0] sm:$0xff] %vm2741_vm4, %v2692_v7  ;;  %15012 = vmatprep.mubr.msk.f32.mxu0 %vm296_vm1, %v212_v6  ;;  %2764 = vst.msk [vmem:[#allocation2 + $0x50] sm:$0xff] %vm2741_vm4, %v21764_v44  ;;  %v233_v7 = vld [vmem:[%s21753_s0 + $0x618] sm:$0xff] }
 0x162   :  { %2765 = vst.msk [vmem:[#allocation2 + $0xa0] sm:$0xff] %vm2741_vm4, %v21764_v44  ;;  %2766 = vst.msk [vmem:[#allocation2 + $0xf0] sm:$0xff] %vm2741_vm4, %v21764_v44 }
 0x163   :  { %v18413_v15 = vpop.f32.mrb[68].mxu0  ;;  %2767 = vst.msk [vmem:[#allocation2 + $0x140] sm:$0xff] %vm2741_vm4, %v21764_v44  ;;  %2768 = vst.msk [vmem:[#allocation2 + $0x190] sm:$0xff] %vm2741_vm4, %v21764_v44 }
 0x164   :  { %v18415_v8 = vpop.f32.mrb[69].mxu0  ;;  %15013 = vmatmul.mubr.msk.f32.gmra.mrb[174].mxu0 %vm296_vm1, %v213_v11  ;;  %2769 = vst.msk [vmem:[#allocation2 + $0x1e0] sm:$0xff] %vm2741_vm4, %v21764_v44  ;;  %2770 = vst.msk [vmem:[#allocation2 + $0x230] sm:$0xff] %vm2741_vm4, %v21764_v44 }
 0x165   :  { %15015 = vmatprep.mubr.msk.f32.mxu0 %vm296_vm1, %v214_v14  ;;  %2771 = vst.msk [vmem:[#allocation2 + $0x280] sm:$0xff] %vm2741_vm4, %v21764_v44  ;;  %2775 = vst.msk [vmem:[#allocation2 + $0x98] sm:$0xff] %vm2741_vm4, %v21764_v44 }
 0x166   :  { %2776 = vst.msk [vmem:[#allocation2 + $0xe8] sm:$0xff] %vm2741_vm4, %v21764_v44  ;;  %2777 = vst.msk [vmem:[#allocation2 + $0x138] sm:$0xff] %vm2741_vm4, %v21764_v44 }
 0x167   :  { %v18425_v18 = vpop.f32.mrb[70].mxu0  ;;  %2778 = vst.msk [vmem:[#allocation2 + $0x188] sm:$0xff] %vm2741_vm4, %v21764_v44  ;;  %2779 = vst.msk [vmem:[#allocation2 + $0x1d8] sm:$0xff] %vm2741_vm4, %v21764_v44 }
 0x168   :  { %v18427_v19 = vpop.f32.mrb[71].mxu0  ;;  %15016 = vmatmul.mubr.msk.f32.gmra.mrb[176].mxu0 %vm296_vm1, %v215_v16  ;;  %2780 = vst.msk [vmem:[#allocation2 + $0x228] sm:$0xff] %vm2741_vm4, %v21764_v44  ;;  %2781 = vst.msk [vmem:[#allocation2 + $0x278] sm:$0xff] %vm2741_vm4, %v21764_v44 }
 0x169   :  { %15018 = vmatprep.mubr.msk.f32.mxu0 %vm296_vm1, %v216_v17  ;;  %2782 = vst.msk [vmem:[#allocation2 + $0x2c8] sm:$0xff] %vm2741_vm4, %v21764_v44  ;;  %2763 = vst.msk [vmem:[#allocation2] sm:$0xff] %vm2741_vm4, %v21764_v44 }
 0x16a   :  { %2772 = vst.msk [vmem:[#allocation2 + $0x2d0] sm:$0xff] %vm2741_vm4, %v21764_v44  ;;  %2774 = vst.msk [vmem:[#allocation2 + $0x48] sm:$0xff] %vm2741_vm4, %v21764_v44 }
 0x16b   :  { %v18437_v22 = vpop.f32.mrb[72].mxu0  ;;  %2783 = vst.msk [vmem:[#allocation2 + $0x318] sm:$0xff] %vm2741_vm4, %v21764_v44 }
 0x16c   :  { %v18439_v23 = vpop.f32.mrb[73].mxu0  ;;  %15019 = vmatmul.mubr.msk.f32.gmra.mrb[178].mxu0 %vm296_vm1, %v217_v9 }
 0x16d   :  { %15021 = vmatprep.mubr.msk.f32.mxu0 %vm296_vm1, %v218_v20 }
 0x16f   :  { %v18449_v25 = vpop.f32.mrb[74].mxu0 }
 0x170   :  { %v18451_v26 = vpop.f32.mrb[75].mxu0  ;;  %15022 = vmatmul.mubr.msk.f32.gmra.mrb[180].mxu0 %vm296_vm1, %v219_v12 }
 0x171   :  { %15024 = vmatprep.mubr.msk.f32.mxu0 %vm296_vm1, %v220_v24 }
 0x173   :  { %v18461_v28 = vpop.f32.mrb[76].mxu0 }
 0x174   :  { %v18463_v29 = vpop.f32.mrb[77].mxu0  ;;  %15025 = vmatmul.mubr.msk.f32.gmra.mrb[182].mxu0 %vm296_vm1, %v221_v13 }
 0x175   :  { %15027 = vmatprep.mubr.msk.f32.mxu0 %vm296_vm1, %v222_v27  ;;  %v237_v27 = vld [vmem:[%s21753_s0 + $0x638] sm:$0xff] }
 0x177   :  { %v18473_v32 = vpop.f32.mrb[78].mxu0 }
 0x178   :  { %v18475_v33 = vpop.f32.mrb[79].mxu0  ;;  %15028 = vmatmul.mubr.msk.f32.gmra.mrb[184].mxu0 %vm296_vm1, %v223_v30  ;;  %v238_v30 = vld [vmem:[%s21753_s0 + $0x640] sm:$0xff] }
 0x179   :  { %15030 = vmatprep.mubr.msk.f32.mxu0 %vm296_vm1, %v224_v31 }
 0x17b   :  { %v14873_v36 = vpop.f32.mrb[80].mxu0 }
 0x17c   :  { %v2447_v37 = vmax.f32 %v14849_v1, %v14873_v36  ;;  %v1535_v38 = vpop.f32.mrb[81].mxu0  ;;  %15031 = vmatmul.mubr.msk.f32.gmra.mrb[186].mxu0 %vm296_vm1, %v225_v34 }
 0x17d   :  { %v2446_v39 = vmax.f32 %v1455_v3, %v1535_v38  ;;  %15033 = vmatprep.mubr.msk.f32.mxu0 %vm296_vm1, %v226_v35  ;;  %v239_v38 = vld [vmem:[%s21753_s0 + $0x648] sm:$0xff] }
 0x17f   :  { %v2558_v42 = vmax.f32 %v2446_v39, %v2447_v37  ;;  %v14876_v43 = vpop.f32.mrb[82].mxu0  ;;  %v240_v39 = vld [vmem:[%s21753_s0 + $0x650] sm:$0xff] }
 0x180   :  { %v2449_v45 = vmax.f32 %v18400_v10, %v14876_v43  ;;  %v1545_v46 = vpop.f32.mrb[83].mxu0  ;;  %15034 = vmatmul.mubr.msk.f32.gmra.mrb[188].mxu0 %vm296_vm1, %v227_v40  ;;  %v234_v10 = vld [vmem:[%s21753_s0 + $0x620] sm:$0xff] }
 0x181   :  { %v2629_v48 = vadd.f32 %v18122_v21, %v2558_v42  ;;  %v2448_v49 = vmax.f32 %v18402_v5, %v1545_v46  ;;  %15036 = vmatprep.mubr.msk.f32.mxu0 %vm296_vm1, %v228_v41  ;;  %v241_v46 = vld [vmem:[%s21753_s0 + $0x658] sm:$0xff] }
 0x183   :  { %v2693_v50 = vmax.f32 %v2629_v48, 0.0  ;;  %v2559_v58 = vmax.f32 %v2448_v49, %v2449_v45  ;;  %v14879_v59 = vpop.f32.mrb[84].mxu0  ;;  %v242_v48 = vld [vmem:[%s21753_s0 + $0x660] sm:$0xff] }
 0x184   :  { %v2451_v60 = vmax.f32 %v18413_v15, %v14879_v59  ;;  %v1555_v61 = vpop.f32.mrb[85].mxu0  ;;  %15037 = vmatmul.mubr.msk.f32.gmra.mrb[190].mxu0 %vm296_vm1, %v229_v52  ;;  %v245_v59 = vld [vmem:[%s21753_s0 + $0x678] sm:$0xff] }
 0x185   :  { %2801 = vst.msk [vmem:[#allocation2 + $0xf8] sm:$0xff] %vm2741_vm4, %v2693_v50  ;;  %v2630_v51 = vadd.f32 %v18122_v21, %v2559_v58  ;;  %v2450_v62 = vmax.f32 %v18415_v8, %v1555_v61  ;;  %15039 = vmatprep.mubr.msk.f32.mxu0 %vm296_vm1, %v230_v56  ;;  %v244_v56 = vld [vmem:[%s21753_s0 + $0x670] sm:$0xff] }
 0x187   :  { %v2694_v54 = vmax.f32 %v2630_v51, 0.0  ;;  %v2560_v1 = vmax.f32 %v2450_v62, %v2451_v60  ;;  %v14882_v2 = vpop.f32.mrb[86].mxu0  ;;  %v246_v60 = vld [vmem:[%s21753_s0 + $0x680] sm:$0xff]  ;;  %v247_v62 = vld [vmem:[%s21753_s0 + $0x688] sm:$0xff] }
 0x188   :  { %v2453_v3 = vmax.f32 %v18425_v18, %v14882_v2  ;;  %v1565_v55 = vpop.f32.mrb[87].mxu0  ;;  %15040 = vmatmul.mubr.msk.f32.gmra.mrb[192].mxu0 %vm296_vm1, %v231_v63  ;;  %v235_v18 = vld [vmem:[%s21753_s0 + $0x628] sm:$0xff]  ;;  %v248_v63 = vld [vmem:[%s21753_s0 + $0x690] sm:$0xff]  ;;  %v250_v2 = vld [vmem:[%s21753_s0 + $0x6a0] sm:$0xff] }
 0x189   :  { %2802 = vst.msk [vmem:[#allocation2 + $0x100] sm:$0xff] %vm2741_vm4, %v2694_v54  ;;  %v2631_v4 = vadd.f32 %v18122_v21, %v2560_v1  ;;  %v2452_v6 = vmax.f32 %v18427_v19, %v1565_v55  ;;  %15042 = vmatprep.mubr.msk.f32.mxu0 %vm296_vm1, %v232_v0  ;;  %v236_v19 = vld [vmem:[%s21753_s0 + $0x630] sm:$0xff]  ;;  %v249_v1 = vld [vmem:[%s21753_s0 + $0x698] sm:$0xff] }
 0x18b   :  { %v2695_v5 = vmax.f32 %v2631_v4, 0.0  ;;  %v2561_v11 = vmax.f32 %v2452_v6, %v2453_v3  ;;  %v14885_v14 = vpop.f32.mrb[88].mxu0  ;;  %v251_v4 = vld [vmem:[%s21753_s0 + $0x6a8] sm:$0xff]  ;;  %v252_v6 = vld [vmem:[%s21753_s0 + $0x6b0] sm:$0xff] }
 0x18c   :  { %v2455_v15 = vmax.f32 %v18437_v22, %v14885_v14  ;;  %v1575_v8 = vpop.f32.mrb[89].mxu0  ;;  %15043 = vmatmul.mubr.msk.f32.gmra.mrb[194].mxu0 %vm296_vm1, %v233_v7 }
 0x18d   :  { %2803 = vst.msk [vmem:[#allocation2 + $0x108] sm:$0xff] %vm2741_vm4, %v2695_v5  ;;  %v2632_v16 = vadd.f32 %v18122_v21, %v2561_v11  ;;  %v2454_v17 = vmax.f32 %v18439_v23, %v1575_v8  ;;  %15045 = vmatprep.mubr.msk.f32.mxu0 %vm296_vm1, %v234_v10  ;;  %v253_v5 = vld [vmem:[%s21753_s0 + $0x6b8] sm:$0xff]  ;;  %v254_v11 = vld [vmem:[%s21753_s0 + $0x6c0] sm:$0xff]  ;;  %v255_v8 = vld [vmem:[%s21753_s0 + $0x6c8] sm:$0xff] }
 0x18f   :  { %v2696_v9 = vmax.f32 %v2632_v16, 0.0  ;;  %v2562_v20 = vmax.f32 %v2454_v17, %v2455_v15  ;;  %v14888_v22 = vpop.f32.mrb[90].mxu0  ;;  %v256_v16 = vld [vmem:[%s21753_s0 + $0x6d0] sm:$0xff] }
 0x190   :  { %v2457_v12 = vmax.f32 %v18449_v25, %v14888_v22  ;;  %v1585_v24 = vpop.f32.mrb[91].mxu0  ;;  %15046 = vmatmul.mubr.msk.f32.gmra.mrb[196].mxu0 %vm296_vm1, %v235_v18 }
 0x191   :  { %2804 = vst.msk [vmem:[#allocation2 + $0x110] sm:$0xff] %vm2741_vm4, %v2696_v9  ;;  %v2633_v23 = vadd.f32 %v18122_v21, %v2562_v20  ;;  %v2456_v13 = vmax.f32 %v18451_v26, %v1585_v24  ;;  %15048 = vmatprep.mubr.msk.f32.mxu0 %vm296_vm1, %v236_v19  ;;  %v257_v19 = vld [vmem:[%s21753_s0 + $0x6d8] sm:$0xff]  ;;  %v258_v9 = vld [vmem:[%s21753_s0 + $0x6e0] sm:$0xff] }
 0x193   :  { %v2697_v25 = vmax.f32 %v2633_v23, 0.0  ;;  %v2563_v31 = vmax.f32 %v2456_v13, %v2457_v12  ;;  %v14891_v34 = vpop.f32.mrb[92].mxu0  ;;  %v259_v23 = vld [vmem:[%s21753_s0 + $0x6e8] sm:$0xff]  ;;  %v260_v13 = vld [vmem:[%s21753_s0 + $0x6f0] sm:$0xff] }
 0x194   :  { %v2459_v35 = vmax.f32 %v18461_v28, %v14891_v34  ;;  %v1595_v36 = vpop.f32.mrb[93].mxu0  ;;  %15049 = vmatmul.mubr.msk.f32.gmra.mrb[198].mxu0 %vm296_vm1, %v237_v27 }
 0x195   :  { %2805 = vst.msk [vmem:[#allocation2 + $0x118] sm:$0xff] %vm2741_vm4, %v2697_v25  ;;  %v2634_v26 = vadd.f32 %v18122_v21, %v2563_v31  ;;  %v2458_v37 = vmax.f32 %v18463_v29, %v1595_v36  ;;  %15051 = vmatprep.mubr.msk.f32.mxu0 %vm296_vm1, %v238_v30  ;;  %v261_v36 = vld [vmem:[%s21753_s0 + $0x6f8] sm:$0xff] }
 0x197   :  { %v2698_v28 = vmax.f32 %v2634_v26, 0.0  ;;  %v2564_v40 = vmax.f32 %v2458_v37, %v2459_v35  ;;  %v14894_v41 = vpop.f32.mrb[94].mxu0  ;;  %v262_v26 = vld [vmem:[%s21753_s0 + $0x700] sm:$0xff] }
 0x198   :  { %v2461_v42 = vmax.f32 %v18473_v32, %v14894_v41  ;;  %v1605_v43 = vpop.f32.mrb[95].mxu0  ;;  %15052 = vmatmul.mubr.msk.f32.gmra.mrb[200].mxu0 %vm296_vm1, %v239_v38 }
 0x199   :  { %2806 = vst.msk [vmem:[#allocation2 + $0x120] sm:$0xff] %vm2741_vm4, %v2698_v28  ;;  %v2635_v29 = vadd.f32 %v18122_v21, %v2564_v40  ;;  %v2460_v45 = vmax.f32 %v18475_v33, %v1605_v43  ;;  %15054 = vmatprep.mubr.msk.f32.mxu0 %vm296_vm1, %v240_v39  ;;  %v263_v43 = vld [vmem:[%s21753_s0 + $0x708] sm:$0xff] }
 0x19b   :  { %v2699_v32 = vmax.f32 %v2635_v29, 0.0  ;;  %v2565_v49 = vmax.f32 %v2460_v45, %v2461_v42  ;;  %v14897_v52 = vpop.f32.mrb[96].mxu0  ;;  %v264_v29 = vld [vmem:[%s21753_s0 + $0x710] sm:$0xff] }
 0x19c   :  { %v1615_v47 = vpop.f32.mrb[97].mxu0  ;;  %15055 = vmatmul.mubr.msk.f32.gmra.mrb[202].mxu0 %vm296_vm1, %v241_v46 }
 0x19d   :  { %2807 = vst.msk [vmem:[#allocation2 + $0x128] sm:$0xff] %vm2741_vm4, %v2699_v32  ;;  %v2636_v33 = vadd.f32 %v18122_v21, %v2565_v49  ;;  %15057 = vmatprep.mubr.msk.f32.mxu0 %vm296_vm1, %v242_v48 }
 0x19f   :  { %v2700_v57 = vmax.f32 %v2636_v33, 0.0  ;;  %v18672_v50 = vpop.f32.mrb[98].mxu0  ;;  %v265_v33 = vld [vmem:[%s21753_s0 + $0x718] sm:$0xff] }
 0x1a0   :  { %v1625_v58 = vpop.f32.mrb[99].mxu0  ;;  %15058 = vmatmul.mubr.msk.f32.gmra.mrb[204].mxu0 %vm296_vm1, %v243_v53  ;;  %v266_v53 = vld [vmem:[%s21753_s0 + $0x720] sm:$0xff] }
 0x1a1   :  { %2808 = vst.msk [vmem:[#allocation2 + $0x130] sm:$0xff] %vm2741_vm4, %v2700_v57  ;;  %15060 = vmatprep.mubr.msk.f32.mxu0 %vm296_vm1, %v244_v56 }
 0x1a3   :  { %v18683_v61 = vpop.f32.mrb[100].mxu0 }
 0x1a4   :  { %v18685_v51 = vpop.f32.mrb[101].mxu0  ;;  %15061 = vmatmul.mubr.msk.f32.gmra.mrb[206].mxu0 %vm296_vm1, %v245_v59 }
 0x1a5   :  { %15063 = vmatprep.mubr.msk.f32.mxu0 %vm296_vm1, %v246_v60 }
 0x1a7   :  { %v18695_v0 = vpop.f32.mrb[102].mxu0 }
 0x1a8   :  { %v18697_v54 = vpop.f32.mrb[103].mxu0  ;;  %15064 = vmatmul.mubr.msk.f32.gmra.mrb[208].mxu0 %vm296_vm1, %v247_v62  ;;  %v268_v62 = vld [vmem:[%s21753_s0 + $0x730] sm:$0xff] }
 0x1a9   :  { %15066 = vmatprep.mubr.msk.f32.mxu0 %vm296_vm1, %v248_v63 }
 0x1ab   :  { %v18707_v3 = vpop.f32.mrb[104].mxu0 }
 0x1ac   :  { %v18709_v55 = vpop.f32.mrb[105].mxu0  ;;  %15067 = vmatmul.mubr.msk.f32.gmra.mrb[210].mxu0 %vm296_vm1, %v249_v1 }
 0x1ad   :  { %15069 = vmatprep.mubr.msk.f32.mxu0 %vm296_vm1, %v250_v2 }
 0x1af   :  { %v18719_v7 = vpop.f32.mrb[106].mxu0 }
 0x1b0   :  { %v18721_v10 = vpop.f32.mrb[107].mxu0  ;;  %15070 = vmatmul.mubr.msk.f32.gmra.mrb[212].mxu0 %vm296_vm1, %v251_v4  ;;  %v269_v4 = vld [vmem:[%s21753_s0 + $0x738] sm:$0xff] }
 0x1b1   :  { %15072 = vmatprep.mubr.msk.f32.mxu0 %vm296_vm1, %v252_v6  ;;  %v270_v6 = vld [vmem:[%s21753_s0 + $0x740] sm:$0xff] }
 0x1b3   :  { %v18731_v14 = vpop.f32.mrb[108].mxu0 }
 0x1b4   :  { %v18733_v15 = vpop.f32.mrb[109].mxu0  ;;  %15073 = vmatmul.mubr.msk.f32.gmra.mrb[214].mxu0 %vm296_vm1, %v253_v5 }
 0x1b5   :  { %15075 = vmatprep.mubr.msk.f32.mxu0 %vm296_vm1, %v254_v11 }
 0x1b7   :  { %v18743_v17 = vpop.f32.mrb[110].mxu0 }
 0x1b8   :  { %v18745_v18 = vpop.f32.mrb[111].mxu0  ;;  %15076 = vmatmul.mubr.msk.f32.gmra.mrb[216].mxu0 %vm296_vm1, %v255_v8 }
 0x1b9   :  { %15078 = vmatprep.mubr.msk.f32.mxu0 %vm296_vm1, %v256_v16 }
 0x1bb   :  { %v14921_v20 = vpop.f32.mrb[112].mxu0 }
 0x1bc   :  { %v2463_v22 = vmax.f32 %v14897_v52, %v14921_v20  ;;  %v1695_v12 = vpop.f32.mrb[113].mxu0  ;;  %15079 = vmatmul.mubr.msk.f32.gmra.mrb[218].mxu0 %vm296_vm1, %v257_v19  ;;  %v272_v20 = vld [vmem:[%s21753_s0 + $0x750] sm:$0xff] }
 0x1bd   :  { %v2462_v24 = vmax.f32 %v1615_v47, %v1695_v12  ;;  %15081 = vmatprep.mubr.msk.f32.mxu0 %vm296_vm1, %v258_v9  ;;  %v271_v9 = vld [vmem:[%s21753_s0 + $0x748] sm:$0xff] }
 0x1bf   :  { %v2566_v27 = vmax.f32 %v2462_v24, %v2463_v22  ;;  %v14924_v30 = vpop.f32.mrb[114].mxu0 }
 0x1c0   :  { %v2465_v25 = vmax.f32 %v18672_v50, %v14924_v30  ;;  %v1705_v31 = vpop.f32.mrb[115].mxu0  ;;  %15082 = vmatmul.mubr.msk.f32.gmra.mrb[220].mxu0 %vm296_vm1, %v259_v23  ;;  %v274_v30 = vld [vmem:[%s21753_s0 + $0x760] sm:$0xff] }
 0x1c1   :  { %v2637_v34 = vadd.f32 %v18122_v21, %v2566_v27  ;;  %v2464_v35 = vmax.f32 %v1625_v58, %v1705_v31  ;;  %15084 = vmatprep.mubr.msk.f32.mxu0 %vm296_vm1, %v260_v13  ;;  %v273_v27 = vld [vmem:[%s21753_s0 + $0x758] sm:$0xff] }
 0x1c3   :  { %v2701_v37 = vmax.f32 %v2637_v34, 0.0  ;;  %v2567_v38 = vmax.f32 %v2464_v35, %v2465_v25  ;;  %v14927_v39 = vpop.f32.mrb[116].mxu0  ;;  %v275_v35 = vld [vmem:[%s21753_s0 + $0x768] sm:$0xff] }
 0x1c4   :  { %v2467_v28 = vmax.f32 %v18683_v61, %v14927_v39  ;;  %v1715_v40 = vpop.f32.mrb[117].mxu0  ;;  %15085 = vmatmul.mubr.msk.f32.gmra.mrb[222].mxu0 %vm296_vm1, %v261_v36  ;;  %v276_v36 = vld [vmem:[%s21753_s0 + $0x770] sm:$0xff]  ;;  %v277_v39 = vld [vmem:[%s21753_s0 + $0x778] sm:$0xff] }
 0x1c5   :  { %2809 = vst.msk [vmem:[#allocation2 + $0x148] sm:$0xff] %vm2741_vm4, %v2701_v37  ;;  %v2638_v41 = vadd.f32 %v18122_v21, %v2567_v38  ;;  %v2466_v42 = vmax.f32 %v18685_v51, %v1715_v40  ;;  %15087 = vmatprep.mubr.msk.f32.mxu0 %vm296_vm1, %v262_v26  ;;  %v18791_v21 = vld [vmem:[%s21754_s2] ss:$0 sm:$0xff]  ;;  %v267_v51 = vld [vmem:[%s21753_s0 + $0x728] sm:$0xff] }
 0x1c7   :  { %v2702_v45 = vmax.f32 %v2638_v41, 0.0  ;;  %v2568_v46 = vmax.f32 %v2466_v42, %v2467_v28  ;;  %v14930_v48 = vpop.f32.mrb[118].mxu0  ;;  %v278_v28 = vld [vmem:[%s21753_s0 + $0x780] sm:$0xff]  ;;  %v279_v42 = vld [vmem:[%s21753_s0 + $0x788] sm:$0xff] }
 0x1c8   :  { %v2469_v32 = vmax.f32 %v18695_v0, %v14930_v48  ;;  %v1725_v49 = vpop.f32.mrb[119].mxu0  ;;  %15088 = vmatmul.mubr.msk.f32.gmra.mrb[224].mxu0 %vm296_vm1, %v263_v43  ;;  %v280_v43 = vld [vmem:[%s21753_s0 + $0x790] sm:$0xff]  ;;  %v282_v48 = vld [vmem:[%s21753_s0 + $0x7a0] sm:$0xff] }
 0x1c9   :  { %2810 = vst.msk [vmem:[#allocation2 + $0x150] sm:$0xff] %vm2741_vm4, %v2702_v45  ;;  %v2639_v52 = vadd.f32 %v18791_v21, %v2568_v46  ;;  %v2468_v47 = vmax.f32 %v18697_v54, %v1725_v49  ;;  %15090 = vmatprep.mubr.msk.f32.mxu0 %vm296_vm1, %v264_v29  ;;  %v281_v46 = vld [vmem:[%s21753_s0 + $0x798] sm:$0xff] }
 0x1cb   :  { %v2703_v56 = vmax.f32 %v2639_v52, 0.0  ;;  %v2569_v57 = vmax.f32 %v2468_v47, %v2469_v32  ;;  %v14933_v50 = vpop.f32.mrb[120].mxu0  ;;  %v283_v52 = vld [vmem:[%s21753_s0 + $0x7a8] sm:$0xff]  ;;  %v284_v47 = vld [vmem:[%s21753_s0 + $0x7b0] sm:$0xff] }
 0x1cc   :  { %v2471_v58 = vmax.f32 %v18707_v3, %v14933_v50  ;;  %v1735_v59 = vpop.f32.mrb[121].mxu0  ;;  %15091 = vmatmul.mubr.msk.f32.gmra.mrb[226].mxu0 %vm296_vm1, %v265_v33 }
 0x1cd   :  { %2811 = vst.msk [vmem:[#allocation2 + $0x158] sm:$0xff] %vm2741_vm4, %v2703_v56  ;;  %v2640_v60 = vadd.f32 %v18791_v21, %v2569_v57  ;;  %v2470_v61 = vmax.f32 %v18709_v55, %v1735_v59  ;;  %15093 = vmatprep.mubr.msk.f32.mxu0 %vm296_vm1, %v266_v53  ;;  %v285_v56 = vld [vmem:[%s21753_s0 + $0x7b8] sm:$0xff]  ;;  %v286_v57 = vld [vmem:[%s21753_s0 + $0x7c0] sm:$0xff]  ;;  %v287_v59 = vld [vmem:[%s21753_s0 + $0x7c8] sm:$0xff] }
 0x1cf   :  { %v2704_v63 = vmax.f32 %v2640_v60, 0.0  ;;  %v2570_v0 = vmax.f32 %v2470_v61, %v2471_v58  ;;  %v14936_v54 = vpop.f32.mrb[122].mxu0  ;;  %v288_v60 = vld [vmem:[%s21753_s0 + $0x7d0] sm:$0xff] }
 0x1d0   :  { %v2473_v1 = vmax.f32 %v18719_v7, %v14936_v54  ;;  %v1745_v2 = vpop.f32.mrb[123].mxu0  ;;  %15094 = vmatmul.mubr.msk.f32.gmra.mrb[228].mxu0 %vm296_vm1, %v267_v51 }
 0x1d1   :  { %2812 = vst.msk [vmem:[#allocation2 + $0x160] sm:$0xff] %vm2741_vm4, %v2704_v63  ;;  %v2641_v3 = vadd.f32 %v18791_v21, %v2570_v0  ;;  %v2472_v55 = vmax.f32 %v18721_v10, %v1745_v2  ;;  %15096 = vmatprep.mubr.msk.f32.mxu0 %vm296_vm1, %v268_v62  ;;  %v289_v62 = vld [vmem:[%s21753_s0 + $0x7d8] sm:$0xff]  ;;  %v290_v63 = vld [vmem:[%s21753_s0 + $0x7e0] sm:$0xff] }
 0x1d3   :  { %v2705_v7 = vmax.f32 %v2641_v3, 0.0  ;;  %v2571_v5 = vmax.f32 %v2472_v55, %v2473_v1  ;;  %v14939_v11 = vpop.f32.mrb[124].mxu0  ;;  %v291_v3 = vld [vmem:[%s21753_s0 + $0x7e8] sm:$0xff]  ;;  %v292_v55 = vld [vmem:[%s21753_s0 + $0x7f0] sm:$0xff] }
 0x1d4   :  { %v2475_v8 = vmax.f32 %v18731_v14, %v14939_v11  ;;  %v1755_v16 = vpop.f32.mrb[125].mxu0  ;;  %15097 = vmatmul.mubr.msk.f32.gmra.mrb[230].mxu0 %vm296_vm1, %v269_v4 }
 0x1d5   :  { %2813 = vst.msk [vmem:[#allocation2 + $0x168] sm:$0xff] %vm2741_vm4, %v2705_v7  ;;  %v2642_v10 = vadd.f32 %v18791_v21, %v2571_v5  ;;  %v2474_v19 = vmax.f32 %v18733_v15, %v1755_v16  ;;  %15099 = vmatprep.mubr.msk.f32.mxu0 %vm296_vm1, %v270_v6  ;;  %v293_v16 = vld [vmem:[%s21753_s0 + $0x7f8] sm:$0xff] }
 0x1d7   :  { %v2706_v14 = vmax.f32 %v2642_v10, 0.0  ;;  %v2572_v22 = vmax.f32 %v2474_v19, %v2475_v8  ;;  %v14942_v12 = vpop.f32.mrb[126].mxu0  ;;  %v18958_v10 = vld [vmem:[#allocation2 + $0x8] sm:$0xff] }
 0x1d8   :  { %v2477_v24 = vmax.f32 %v18743_v17, %v14942_v12  ;;  %v1765_v23 = vpop.f32.mrb[127].mxu0  ;;  %15100 = vmatmul.mubr.msk.f32.gmra.mrb[232].mxu0 %vm296_vm1, %v271_v9 }
 0x1d9   :  { %2814 = vst.msk [vmem:[#allocation2 + $0x170] sm:$0xff] %vm2741_vm4, %v2706_v14  ;;  %v2643_v15 = vadd.f32 %v18791_v21, %v2572_v22  ;;  %v2476_v13 = vmax.f32 %v18745_v18, %v1765_v23  ;;  %15102 = vmatprep.mubr.msk.f32.mxu0 %vm296_vm1, %v272_v20  ;;  %v18967_v23 = vld [vmem:[#allocation2 + $0x10] sm:$0xff] }
 0x1db   :  { %v2707_v17 = vmax.f32 %v2643_v15, 0.0  ;;  %v2573_v25 = vmax.f32 %v2476_v13, %v2477_v24  ;;  %v14945_v31 = vpop.f32.mrb[128].mxu0  ;;  %v18969_v15 = vld [vmem:[#allocation2 + $0x18] sm:$0xff] }
 0x1dc   :  { %v1775_v34 = vpop.f32.mrb[129].mxu0  ;;  %15103 = vmatmul.mubr.msk.f32.gmra.mrb[234].mxu0 %vm296_vm1, %v273_v27 }
 0x1dd   :  { %2815 = vst.msk [vmem:[#allocation2 + $0x178] sm:$0xff] %vm2741_vm4, %v2707_v17  ;;  %v2644_v18 = vadd.f32 %v18791_v21, %v2573_v25  ;;  %15105 = vmatprep.mubr.msk.f32.mxu0 %vm296_vm1, %v274_v30 }
 0x1df   :  { %v2708_v26 = vmax.f32 %v2644_v18, 0.0  ;;  %v18860_v37 = vpop.f32.mrb[130].mxu0  ;;  %v18979_v18 = vld [vmem:[#allocation2 + $0x20] sm:$0xff] }
 0x1e0   :  { %v1785_v38 = vpop.f32.mrb[131].mxu0  ;;  %15106 = vmatmul.mubr.msk.f32.gmra.mrb[236].mxu0 %vm296_vm1, %v275_v35  ;;  %v18981_v35 = vld [vmem:[#allocation2 + $0x28] sm:$0xff] }
 0x1e1   :  { %2816 = vst.msk [vmem:[#allocation2 + $0x180] sm:$0xff] %vm2741_vm4, %v2708_v26  ;;  %15108 = vmatprep.mubr.msk.f32.mxu0 %vm296_vm1, %v276_v36 }
 0x1e3   :  { %v18871_v40 = vpop.f32.mrb[132].mxu0 }
 0x1e4   :  { %v18873_v41 = vpop.f32.mrb[133].mxu0  ;;  %15109 = vmatmul.mubr.msk.f32.gmra.mrb[238].mxu0 %vm296_vm1, %v277_v39 }
 0x1e5   :  { %15111 = vmatprep.mubr.msk.f32.mxu0 %vm296_vm1, %v278_v28 }
 0x1e7   :  { %v18883_v29 = vpop.f32.mrb[134].mxu0 }
 0x1e8   :  { %v18885_v45 = vpop.f32.mrb[135].mxu0  ;;  %15112 = vmatmul.mubr.msk.f32.gmra.mrb[240].mxu0 %vm296_vm1, %v279_v42  ;;  %v18993_v42 = vld [vmem:[#allocation2 + $0x38] sm:$0xff] }
 0x1e9   :  { %15114 = vmatprep.mubr.msk.f32.mxu0 %vm296_vm1, %v280_v43 }
 0x1eb   :  { %v18895_v32 = vpop.f32.mrb[136].mxu0 }
 0x1ec   :  { %v18897_v49 = vpop.f32.mrb[137].mxu0  ;;  %15115 = vmatmul.mubr.msk.f32.gmra.mrb[242].mxu0 %vm296_vm1, %v281_v46 }
 0x1ed   :  { %15117 = vmatprep.mubr.msk.f32.mxu0 %vm296_vm1, %v282_v48 }
 0x1ef   :  { %v18907_v33 = vpop.f32.mrb[138].mxu0 }
 0x1f0   :  { %v18909_v53 = vpop.f32.mrb[139].mxu0  ;;  %15118 = vmatmul.mubr.msk.f32.gmra.mrb[244].mxu0 %vm296_vm1, %v283_v52  ;;  %v2923_v52 = vld [vmem:[#allocation2 + $0x40] sm:$0xff] }
 0x1f1   :  { %15120 = vmatprep.mubr.msk.f32.mxu0 %vm296_vm1, %v284_v47  ;;  %v2913_v47 = vld [vmem:[%s21755_s3] sm:$0xff] }
 0x1f3   :  { %v18919_v50 = vpop.f32.mrb[140].mxu0 }
 0x1f4   :  { %v18921_v58 = vpop.f32.mrb[141].mxu0  ;;  %15121 = vmatmul.mubr.msk.f32.gmra.mrb[246].mxu0 %vm296_vm1, %v285_v56 }
 0x1f5   :  { %15123 = vmatprep.mubr.msk.f32.mxu0 %vm296_vm1, %v286_v57 }
 0x1f7   :  { %v18931_v61 = vpop.f32.mrb[142].mxu0 }
 0x1f8   :  { %v18933_v51 = vpop.f32.mrb[143].mxu0  ;;  %15124 = vmatmul.mubr.msk.f32.gmra.mrb[248].mxu0 %vm296_vm1, %v287_v59 }
 0x1f9   :  { %15126 = vmatprep.mubr.msk.f32.mxu0 %vm296_vm1, %v288_v60 }
 0x1fb   :  { %v14969_v0 = vpop.f32.mrb[144].mxu0 }
 0x1fc   :  { %v2479_v54 = vmax.f32 %v14945_v31, %v14969_v0  ;;  %v1855_v1 = vpop.f32.mrb[145].mxu0  ;;  %15127 = vmatmul.mubr.msk.f32.gmra.mrb[250].mxu0 %vm296_vm1, %v289_v62 }
 0x1fd   :  { %v2478_v2 = vmax.f32 %v1775_v34, %v1855_v1  ;;  %15129 = vmatprep.mubr.msk.f32.mxu0 %vm296_vm1, %v290_v63 }
 0x1ff   :  { %v2574_v4 = vmax.f32 %v2478_v2, %v2479_v54  ;;  %v14972_v6 = vpop.f32.mrb[146].mxu0 }
 0x200   :  { %v2481_v7 = vmax.f32 %v18860_v37, %v14972_v6  ;;  %v1865_v5 = vpop.f32.mrb[147].mxu0  ;;  %15130 = vmatmul.mubr.msk.f32.gmra.mrb[252].mxu0 %vm296_vm1, %v291_v3  ;;  %v19023_v6 = vld [vmem:[#allocation2 + $0x68] sm:$0xff] }
 0x201   :  { %v2645_v11 = vadd.f32 %v18791_v21, %v2574_v4  ;;  %v2480_v8 = vmax.f32 %v1785_v38, %v1865_v5  ;;  %15132 = vmatprep.mubr.msk.f32.mxu0 %vm296_vm1, %v292_v55  ;;  %v19018_v55 = vld [vmem:[#allocation2 + $0x60] sm:$0xff] }
 0x203   :  { %v2709_v19 = vmax.f32 %v2645_v11, 0.0  ;;  %v2575_v9 = vmax.f32 %v2480_v8, %v2481_v7  ;;  %v14975_v20 = vpop.f32.mrb[148].mxu0 }
 0x204   :  { %v2483_v14 = vmax.f32 %v18871_v40, %v14975_v20  ;;  %v1875_v22 = vpop.f32.mrb[149].mxu0  ;;  %15133 = vmatmul.mubr.msk.f32.gmra.mrb[254].mxu0 %vm296_vm1, %v293_v16 }
 0x205   :  { %2817 = vst.msk [vmem:[#allocation2 + $0x198] sm:$0xff] %vm2741_vm4, %v2709_v19  ;;  %v2646_v12 = vadd.f32 %v18791_v21, %v2575_v9  ;;  %v2482_v24 = vmax.f32 %v18873_v41, %v1875_v22  ;;  %15139 = vmatprep.mubr.msk.f32.mxu0 %vm2741_vm4, %v18958_v10  ;;  %v18991_v41 = vld [vmem:[#allocation2 + $0x30] sm:$0xff]  ;;  %v19038_v19 = vld [vmem:[#allocation2 + $0x78] sm:$0xff] }
 0x207   :  { %v2710_v13 = vmax.f32 %v2646_v12, 0.0  ;;  %v2576_v27 = vmax.f32 %v2482_v24, %v2483_v14  ;;  %v14978_v30 = vpop.f32.mrb[150].mxu0  ;;  %v19046_v14 = vld [vmem:[#allocation2 + $0x80] sm:$0xff]  ;;  %v19052_v12 = vld [vmem:[#allocation2 + $0x88] sm:$0xff] }
 0x208   :  { %v2485_v17 = vmax.f32 %v18883_v29, %v14978_v30  ;;  %v1885_v25 = vpop.f32.mrb[151].mxu0  ;;  %15140 = vmatmul.mubr.msk.f32.vlgmr.msra.gmra.mrb[0].mxu0 %vm2741_vm4, %v18967_v23  ;;  %v19062_v30 = vld [vmem:[#allocation2 + $0xa8] sm:$0xff] }
 0x209   :  { %2818 = vst.msk [vmem:[#allocation2 + $0x1a0] sm:$0xff] %vm2741_vm4, %v2710_v13  ;;  %v2647_v31 = vadd.f32 %v18791_v21, %v2576_v27  ;;  %v2484_v34 = vmax.f32 %v18885_v45, %v1885_v25  ;;  %15142 = vmatprep.mubr.msk.f32.mxu0 %vm2741_vm4, %v18969_v15  ;;  %v2931_v13 = vld [vmem:[#allocation2 + $0x90] sm:$0xff] }
 0x20b   :  { %v2711_v36 = vmax.f32 %v2647_v31, 0.0  ;;  %v2577_v26 = vmax.f32 %v2484_v34, %v2485_v17  ;;  %v14981_v37 = vpop.f32.mrb[152].mxu0  ;;  %v19072_v31 = vld [vmem:[#allocation2 + $0xb0] sm:$0xff] }
 0x20c   :  { %v2487_v38 = vmax.f32 %v18895_v32, %v14981_v37  ;;  %v1895_v39 = vpop.f32.mrb[153].mxu0  ;;  %15143 = vmatmul.mubr.msk.f32.gmra.mrb[2].mxu0 %vm2741_vm4, %v18979_v18  ;;  %v12848_v37 = vld [vmem:[%s21755_s3 + $0x20] sm:$0xff] }
 0x20d   :  { %2819 = vst.msk [vmem:[#allocation2 + $0x1a8] sm:$0xff] %vm2741_vm4, %v2711_v36  ;;  %v2648_v28 = vadd.f32 %v18791_v21, %v2577_v26  ;;  %v2486_v40 = vmax.f32 %v18897_v49, %v1895_v39  ;;  %15145 = vmatprep.mubr.msk.f32.mxu0 %vm2741_vm4, %v18981_v35  ;;  %v19078_v36 = vld [vmem:[#allocation2 + $0xb8] sm:$0xff] }
 0x20f   :  { %v2712_v43 = vmax.f32 %v2648_v28, 0.0  ;;  %v2578_v29 = vmax.f32 %v2486_v40, %v2487_v38  ;;  %v14984_v45 = vpop.f32.mrb[154].mxu0  ;;  %v12849_v38 = vld [vmem:[%s21755_s3 + $0x28] sm:$0xff]  ;;  %v19091_v28 = vld [vmem:[#allocation2 + $0xc0] sm:$0xff] }
 0x210   :  { %v2489_v46 = vmax.f32 %v18907_v33, %v14984_v45  ;;  %v1905_v48 = vpop.f32.mrb[155].mxu0  ;;  %15146 = vmatmul.mubr.msk.f32.gmra.mrb[4].mxu0 %vm2741_vm4, %v18991_v41  ;;  %v2914_v33 = vld [vmem:[%s21755_s3 + $0x8] sm:$0xff]  ;;  %v19093_v40 = vpack.c.bf16 %v12849_v38, %v12848_v37 }
 0x211   :  { %2820 = vst.msk [vmem:[#allocation2 + $0x1b0] sm:$0xff] %vm2741_vm4, %v2712_v43  ;;  %v2649_v32 = vadd.f32 %v18791_v21, %v2578_v29  ;;  %v2488_v49 = vmax.f32 %v18909_v53, %v1905_v48  ;;  %15148 = vmatprep.mubr.msk.f32.mxu0 %vm2741_vm4, %v18993_v42  ;;  %v16566_v56 = vpack.c.bf16 %v2914_v33, %v2913_v47  ;;  %v19011_v53 = vld [vmem:[#allocation2 + $0x58] sm:$0xff]  ;;  %v19099_v29 = vld [vmem:[#allocation2 + $0xc8] sm:$0xff] }
 0x212   :  { %v19121_v33 = vld [vmem:[#allocation2 + $0xf8] sm:$0xff]  ;;  %v19163_v37 = vld [vmem:[#allocation2 + $0x148] sm:$0xff] }
 0x213   :  { %v2713_v57 = vmax.f32 %v2649_v32, 0.0  ;;  %v2579_v59 = vmax.f32 %v2488_v49, %v2489_v46  ;;  %v14987_v60 = vpop.f32.mrb[156].mxu0  ;;  %16567 = vmatprep.subr.bf16.mxu1 %v16566_v56  ;;  %v19106_v46 = vld [vmem:[#allocation2 + $0xd0] sm:$0xff]  ;;  %v19112_v32 = vld [vmem:[#allocation2 + $0xd8] sm:$0xff] }
 0x214   :  { %v2491_v62 = vmax.f32 %v18919_v50, %v14987_v60  ;;  %v1915_v63 = vpop.f32.mrb[157].mxu0  ;;  %15149 = vmatmul.mubr.msk.f32.gmra.mrb[6].mxu0 %vm2741_vm4, %v2923_v52  ;;  %v2939_v52 = vld [vmem:[#allocation2 + $0xe0] sm:$0xff]  ;;  %v19133_v60 = vld [vmem:[#allocation2 + $0x108] sm:$0xff] }
 0x215   :  { %2821 = vst.msk [vmem:[#allocation2 + $0x1b8] sm:$0xff] %vm2741_vm4, %v2713_v57  ;;  %v2650_v0 = vadd.f32 %v18791_v21, %v2579_v59  ;;  %v2490_v54 = vmax.f32 %v18921_v58, %v1915_v63  ;;  %15151 = vmatprep.mubr.msk.f32.mxu0 %vm2741_vm4, %v19011_v53  ;;  %v19127_v57 = vld [vmem:[#allocation2 + $0x100] sm:$0xff]  ;;  %v19137_v63 = vld [vmem:[#allocation2 + $0x110] sm:$0xff] }
 0x217   :  { %v2714_v1 = vmax.f32 %v2650_v0, 0.0  ;;  %v2580_v2 = vmax.f32 %v2490_v54, %v2491_v62  ;;  %v14990_v3 = vpop.f32.mrb[158].mxu0 }
 0x218   :  { %v2493_v50 = vmax.f32 %v18931_v61, %v14990_v3  ;;  %v1925_v4 = vpop.f32.mrb[159].mxu0  ;;  %15152 = vmatmul.mubr.msk.f32.gmra.mrb[8].mxu0 %vm2741_vm4, %v19018_v55  ;;  %v19032_v61 = vld [vmem:[#allocation2 + $0x70] sm:$0xff] }
 0x219   :  { %2822 = vst.msk [vmem:[#allocation2 + $0x1c0] sm:$0xff] %vm2741_vm4, %v2714_v1  ;;  %v2651_v58 = vadd.f32 %v18791_v21, %v2580_v2  ;;  %v2492_v7 = vmax.f32 %v18933_v51, %v1925_v4  ;;  %15154 = vmatprep.mubr.msk.f32.mxu0 %vm2741_vm4, %v19023_v6  ;;  %v19142_v1 = vld [vmem:[#allocation2 + $0x118] sm:$0xff]  ;;  %v19147_v4 = vld [vmem:[#allocation2 + $0x120] sm:$0xff] }
 0x21b   :  { %v2715_v5 = vmax.f32 %v2651_v58, 0.0  ;;  %v2581_v11 = vmax.f32 %v2492_v7, %v2493_v50  ;;  %v19030_v8 = vpop.f32.mrb[160].mxu0 }
 0x21c   :  { %v19034_v16 = vpop.f32.mrb[161].mxu0  ;;  %15155 = vmatmul.mubr.msk.f32.gmra.mrb[10].mxu0 %vm2741_vm4, %v19032_v61 }
 0x21d   :  { %2823 = vst.msk [vmem:[#allocation2 + $0x1c8] sm:$0xff] %vm2741_vm4, %v2715_v5  ;;  %v2652_v51 = vadd.f32 %v18791_v21, %v2581_v11  ;;  %15157 = vmatprep.mubr.msk.f32.mxu0 %vm2741_vm4, %v19038_v19  ;;  %v19152_v5 = vld [vmem:[#allocation2 + $0x128] sm:$0xff] }
 0x21f   :  { %v2716_v9 = vmax.f32 %v2652_v51, 0.0  ;;  %v19044_v20 = vpop.f32.mrb[162].mxu0 }
 0x220   :  { %v19048_v22 = vpop.f32.mrb[163].mxu0  ;;  %15158 = vmatmul.mubr.msk.f32.gmra.mrb[12].mxu0 %vm2741_vm4, %v19046_v14 }
 0x221   :  { %2824 = vst.msk [vmem:[#allocation2 + $0x1d0] sm:$0xff] %vm2741_vm4, %v2716_v9  ;;  %15160 = vmatprep.mubr.msk.f32.mxu0 %vm2741_vm4, %v19052_v12 }
 0x223   :  { %v19057_v24 = vpop.f32.mrb[164].mxu0 }
 0x224   :  { %v19059_v27 = vpop.f32.mrb[165].mxu0  ;;  %15161 = vmatmul.mubr.msk.f32.gmra.mrb[14].mxu0 %vm2741_vm4, %v2931_v13  ;;  %v19064_v17 = vld [vmem:[#allocation2 + $0x1c8] sm:$0xff]  ;;  %v19158_v13 = vld [vmem:[#allocation2 + $0x130] sm:$0xff] }
 0x225   :  { %21819 = vst [vmem:[#allocation5_spill] sm:$0xff] %v19064_v17  ;;  %15163 = vmatprep.mubr.msk.f32.mxu0 %vm2741_vm4, %v19062_v30  ;;  %15208 = vmatprep.mubr.msk.f32.mxu1 %vm2741_vm4, %v19064_v17  ;;  %21820 = vst [vmem:[#allocation6_spill] sm:$0xff] %v19158_v13 }
 0x227   :  { %v19070_v25 = vpop.f32.mrb[166].mxu0 }
 0x228   :  { %v19074_v34 = vpop.f32.mrb[167].mxu0  ;;  %15164 = vmatmul.mubr.msk.f32.gmra.mrb[16].mxu0 %vm2741_vm4, %v19072_v31  ;;  %v2963_v26 = vld [vmem:[#allocation2 + $0x1d0] sm:$0xff] }
 0x229   :  { %15166 = vmatprep.mubr.msk.f32.mxu0 %vm2741_vm4, %v19078_v36  ;;  %15209 = vmatmul.mubr.msk.f32.vlgmr.msra.gmra.mrb[0].mxu1 %vm2741_vm4, %v2963_v26 }
 0x22a   :  { %16569 = vmatpush3.bf16.msra.mxu1 %v16566_v56 }
 0x22b   :  { %v19089_v39 = vpop.f32.mrb[168].mxu0  ;;  %16571 = vmatprep.subr.bf16.mxu1 %v19093_v40 }
 0x22c   :  { %v19095_v43 = vpop.f32.mrb[169].mxu0  ;;  %15167 = vmatmul.mubr.msk.f32.gmra.mrb[18].mxu0 %vm2741_vm4, %v19091_v28 }
 0x22d   :  { %15169 = vmatprep.mubr.msk.f32.mxu0 %vm2741_vm4, %v19099_v29 }
 0x22f   :  { %v19104_v45 = vpop.f32.mrb[170].mxu0 }
 0x230   :  { %v19108_v48 = vpop.f32.mrb[171].mxu0  ;;  %15170 = vmatmul.mubr.msk.f32.gmra.mrb[20].mxu0 %vm2741_vm4, %v19106_v46 }
 0x231   :  { %15172 = vmatprep.mubr.msk.f32.mxu0 %vm2741_vm4, %v19112_v32 }
 0x233   :  { %v19116_v49 = vpop.f32.mrb[172].mxu0 }
 0x234   :  { %v19118_v47 = vpop.f32.mrb[173].mxu0  ;;  %15173 = vmatmul.mubr.msk.f32.gmra.mrb[22].mxu0 %vm2741_vm4, %v2939_v52 }
 0x235   :  { %15175 = vmatprep.mubr.msk.f32.mxu0 %vm2741_vm4, %v19121_v33 }
 0x237   :  { %v19125_v56 = vpop.f32.mrb[174].mxu0 }
 0x238   :  { %v19129_v59 = vpop.f32.mrb[175].mxu0  ;;  %15176 = vmatmul.mubr.msk.f32.gmra.mrb[24].mxu0 %vm2741_vm4, %v19127_v57 }
 0x239   :  { %15178 = vmatprep.mubr.msk.f32.mxu0 %vm2741_vm4, %v19133_v60 }
 0x23b   :  { %v15017_v62 = vpop.f32.mrb[176].mxu0 }
 0x23c   :  { %v2495_v0 = vmax.f32 %v19030_v8, %v15017_v62  ;;  %v2015_v54 = vpop.f32.mrb[177].mxu0  ;;  %15179 = vmatmul.mubr.msk.f32.gmra.mrb[26].mxu0 %vm2741_vm4, %v19137_v63 }
 0x23d   :  { %v2494_v2 = vmax.f32 %v19034_v16, %v2015_v54  ;;  %15181 = vmatprep.mubr.msk.f32.mxu0 %vm2741_vm4, %v19142_v1  ;;  %v19170_v54 = vld [vmem:[#allocation2 + $0x150] sm:$0xff] }
 0x23e   :  { %21821 = vst [vmem:[#allocation7_spill] sm:$0xff] %v19170_v54 }
 0x23f   :  { %v2582_v3 = vmax.f32 %v2494_v2, %v2495_v0  ;;  %v15020_v50 = vpop.f32.mrb[178].mxu0 }
 0x240   :  { %v2497_v58 = vmax.f32 %v19044_v20, %v15020_v50  ;;  %v2025_v7 = vpop.f32.mrb[179].mxu0  ;;  %15182 = vmatmul.mubr.msk.f32.gmra.mrb[28].mxu0 %vm2741_vm4, %v19147_v4 }
 0x241   :  { %v2653_v11 = vadd.f32 %v18791_v21, %v2582_v3  ;;  %v2496_v8 = vmax.f32 %v19048_v22, %v2025_v7  ;;  %15184 = vmatprep.mubr.msk.f32.mxu0 %vm2741_vm4, %v19152_v5  ;;  %v19175_v3 = vld [vmem:[#allocation2 + $0x158] sm:$0xff] }
 0x242   :  { %21822 = vst [vmem:[#allocation8_spill] sm:$0xff] %v19175_v3 }
 0x243   :  { %v2717_v16 = vmax.f32 %v2653_v11, 0.0  ;;  %v2583_v51 = vmax.f32 %v2496_v8, %v2497_v58  ;;  %v15023_v9 = vpop.f32.mrb[180].mxu0  ;;  %v19182_v8 = vld [vmem:[#allocation2 + $0x160] sm:$0xff] }
 0x244   :  { %v2499_v20 = vmax.f32 %v19057_v24, %v15023_v9  ;;  %v2035_v26 = vpop.f32.mrb[181].mxu0  ;;  %15185 = vmatmul.mubr.msk.f32.gmra.mrb[30].mxu0 %vm2741_vm4, %v19158_v13  ;;  %21823 = vst [vmem:[#allocation9_spill] sm:$0xff] %v19182_v8 }
 0x245   :  { %2825 = vst.msk [vmem:[#allocation2 + $0x1e8] sm:$0xff] %vm2741_vm4, %v2717_v16  ;;  %v2654_v22 = vadd.f32 %v18791_v21, %v2583_v51  ;;  %v2498_v38 = vmax.f32 %v19059_v27, %v2035_v26  ;;  %15187 = vmatprep.mubr.msk.f32.mxu0 %vm2741_vm4, %v19163_v37  ;;  %v19187_v51 = vld [vmem:[#allocation2 + $0x168] sm:$0xff] }
 0x246   :  { %21824 = vst [vmem:[#allocation10_spill] sm:$0xff] %v19187_v51 }
 0x247   :  { %v2718_v52 = vmax.f32 %v2654_v22, 0.0  ;;  %v2584_v62 = vmax.f32 %v2498_v38, %v2499_v20  ;;  %v15026_v0 = vpop.f32.mrb[182].mxu0  ;;  %v19198_v38 = vld [vmem:[#allocation2 + $0x170] sm:$0xff] }
 0x248   :  { %v2501_v24 = vmax.f32 %v19070_v25, %v15026_v0  ;;  %v2045_v2 = vpop.f32.mrb[183].mxu0  ;;  %15188 = vmatmul.mubr.msk.f32.gmra.mrb[32].mxu0 %vm2741_vm4, %v19170_v54  ;;  %21826 = vst [vmem:[#allocation12_spill] sm:$0xff] %v19198_v38  ;;  %v19203_v0 = vld [vmem:[#allocation2 + $0x178] sm:$0xff] }
 0x249   :  { %2826 = vst.msk [vmem:[#allocation2 + $0x1f0] sm:$0xff] %vm2741_vm4, %v2718_v52  ;;  %v2655_v27 = vadd.f32 %v18791_v21, %v2584_v62  ;;  %v2500_v50 = vmax.f32 %v19074_v34, %v2045_v2  ;;  %15190 = vmatprep.mubr.msk.f32.mxu0 %vm2741_vm4, %v19175_v3  ;;  %21827 = vst [vmem:[#allocation13_spill] sm:$0xff] %v19203_v0 }
 0x24b   :  { %v2719_v58 = vmax.f32 %v2655_v27, 0.0  ;;  %v2585_v7 = vmax.f32 %v2500_v50, %v2501_v24  ;;  %v15029_v11 = vpop.f32.mrb[184].mxu0 }
 0x24c   :  { %v2503_v25 = vmax.f32 %v19089_v39, %v15029_v11  ;;  %v2055_v16 = vpop.f32.mrb[185].mxu0  ;;  %15191 = vmatmul.mubr.msk.f32.gmra.mrb[34].mxu0 %vm2741_vm4, %v19182_v8  ;;  %v19189_v9 = vld [vmem:[#allocation2 + $0x1e8] sm:$0xff] }
 0x24d   :  { %21825 = vst [vmem:[#allocation11_spill] sm:$0xff] %v19189_v9  ;;  %2827 = vst.msk [vmem:[#allocation2 + $0x1f8] sm:$0xff] %vm2741_vm4, %v2719_v58  ;;  %v2656_v34 = vadd.f32 %v18791_v21, %v2585_v7  ;;  %v2502_v20 = vmax.f32 %v19095_v43, %v2055_v16  ;;  %15193 = vmatprep.mubr.msk.f32.mxu0 %vm2741_vm4, %v19187_v51  ;;  %15211 = vmatprep.mubr.msk.f32.mxu1 %vm2741_vm4, %v19189_v9  ;;  %v19214_v58 = vld [vmem:[#allocation2 + $0x180] sm:$0xff] }
 0x24e   :  { %21829 = vst [vmem:[#allocation15_spill] sm:$0xff] %v19214_v58 }
 0x24f   :  { %v2720_v39 = vmax.f32 %v2656_v34, 0.0  ;;  %v2586_v26 = vmax.f32 %v2502_v20, %v2503_v25  ;;  %v15032_v22 = vpop.f32.mrb[186].mxu0  ;;  %v19219_v25 = vld [vmem:[#allocation2 + $0x198] sm:$0xff] }
 0x250   :  { %v2505_v52 = vmax.f32 %v19104_v45, %v15032_v22  ;;  %v2065_v62 = vpop.f32.mrb[187].mxu0  ;;  %15194 = vmatmul.mubr.msk.f32.gmra.mrb[36].mxu0 %vm2741_vm4, %v19198_v38  ;;  %v19205_v43 = vld [vmem:[#allocation2 + $0x1f0] sm:$0xff]  ;;  %21830 = vst [vmem:[#allocation16_spill] sm:$0xff] %v19219_v25 }
 0x251   :  { %21828 = vst [vmem:[#allocation14_spill] sm:$0xff] %v19205_v43  ;;  %2828 = vst.msk [vmem:[#allocation2 + $0x200] sm:$0xff] %vm2741_vm4, %v2720_v39  ;;  %v2657_v24 = vadd.f32 %v18791_v21, %v2586_v26  ;;  %v2504_v2 = vmax.f32 %v19108_v48, %v2065_v62  ;;  %15196 = vmatprep.mubr.msk.f32.mxu0 %vm2741_vm4, %v19203_v0  ;;  %15212 = vmatmul.mubr.msk.f32.gmra.mrb[2].mxu1 %vm2741_vm4, %v19205_v43  ;;  %v19230_v26 = vld [vmem:[#allocation2 + $0x1a0] sm:$0xff]  ;;  %v19235_v62 = vld [vmem:[#allocation2 + $0x1a8] sm:$0xff] }
 0x252   :  { %21832 = vst [vmem:[#allocation18_spill] sm:$0xff] %v19230_v26  ;;  %21833 = vst [vmem:[#allocation19_spill] sm:$0xff] %v19235_v62 }
 0x253   :  { %v2721_v45 = vmax.f32 %v2657_v24, 0.0  ;;  %v2587_v27 = vmax.f32 %v2504_v2, %v2505_v52  ;;  %v15035_v50 = vpop.f32.mrb[188].mxu0 }
 0x254   :  { %v2507_v7 = vmax.f32 %v19116_v49, %v15035_v50  ;;  %v2075_v11 = vpop.f32.mrb[189].mxu0  ;;  %15197 = vmatmul.mubr.msk.f32.gmra.mrb[38].mxu0 %vm2741_vm4, %v19214_v58  ;;  %v19221_v48 = vld [vmem:[#allocation2 + $0x1f8] sm:$0xff]  ;;  %v19246_v50 = vld [vmem:[#allocation2 + $0x1b0] sm:$0xff] }
 0x255   :  { %21831 = vst [vmem:[#allocation17_spill] sm:$0xff] %v19221_v48  ;;  %2829 = vst.msk [vmem:[#allocation2 + $0x208] sm:$0xff] %vm2741_vm4, %v2721_v45  ;;  %v2658_v16 = vadd.f32 %v18791_v21, %v2587_v27  ;;  %v2506_v34 = vmax.f32 %v19118_v47, %v2075_v11  ;;  %15199 = vmatprep.mubr.msk.f32.mxu0 %vm2741_vm4, %v19219_v25  ;;  %15214 = vmatprep.mubr.msk.f32.mxu1 %vm2741_vm4, %v19221_v48  ;;  %v19250_v11 = vld [vmem:[#allocation2 + $0x1b8] sm:$0xff] }
 0x256   :  { %21835 = vst [vmem:[#allocation21_spill] sm:$0xff] %v19246_v50  ;;  %21836 = vst [vmem:[#allocation22_spill] sm:$0xff] %v19250_v11 }
 0x257   :  { %v2722_v49 = vmax.f32 %v2658_v16, 0.0  ;;  %v2588_v20 = vmax.f32 %v2506_v34, %v2507_v7  ;;  %v15038_v39 = vpop.f32.mrb[190].mxu0 }
 0x258   :  { %v2509_v22 = vmax.f32 %v19125_v56, %v15038_v39  ;;  %v2085_v52 = vpop.f32.mrb[191].mxu0  ;;  %15200 = vmatmul.mubr.msk.f32.gmra.mrb[40].mxu0 %vm2741_vm4, %v19230_v26  ;;  %v19237_v47 = vld [vmem:[#allocation2 + $0x200] sm:$0xff] }
 0x259   :  { %21834 = vst [vmem:[#allocation20_spill] sm:$0xff] %v19237_v47  ;;  %2830 = vst.msk [vmem:[#allocation2 + $0x210] sm:$0xff] %vm2741_vm4, %v2722_v49  ;;  %v2659_v24 = vadd.f32 %v18791_v21, %v2588_v20  ;;  %v2508_v2 = vmax.f32 %v19129_v59, %v2085_v52  ;;  %15202 = vmatprep.mubr.msk.f32.mxu0 %vm2741_vm4, %v19235_v62  ;;  %15215 = vmatmul.mubr.msk.f32.gmra.mrb[4].mxu1 %vm2741_vm4, %v19237_v47  ;;  %v19260_v20 = vld [vmem:[#allocation2 + $0x1c0] sm:$0xff] }
 0x25a   :  { %21838 = vst [vmem:[#allocation24_spill] sm:$0xff] %v19260_v20 }
 0x25b   :  { %v2723_v56 = vmax.f32 %v2659_v24, 0.0  ;;  %v2589_v45 = vmax.f32 %v2508_v2, %v2509_v22  ;;  %v15041_v27 = vpop.f32.mrb[192].mxu0 }
 0x25c   :  { %v2095_v7 = vpop.f32.mrb[193].mxu0  ;;  %15203 = vmatmul.mubr.msk.f32.gmra.mrb[42].mxu0 %vm2741_vm4, %v19246_v50  ;;  %v19252_v16 = vld [vmem:[#allocation2 + $0x208] sm:$0xff] }
 0x25d   :  { %21837 = vst [vmem:[#allocation23_spill] sm:$0xff] %v19252_v16  ;;  %2831 = vst.msk [vmem:[#allocation2 + $0x218] sm:$0xff] %vm2741_vm4, %v2723_v56  ;;  %v2660_v59 = vadd.f32 %v18791_v21, %v2589_v45  ;;  %15205 = vmatprep.mubr.msk.f32.mxu0 %vm2741_vm4, %v19250_v11  ;;  %15217 = vmatprep.mubr.msk.f32.mxu1 %vm2741_vm4, %v19252_v16 }
 0x25f   :  { %v2724_v34 = vmax.f32 %v2660_v59, 0.0  ;;  %v15044_v49 = vpop.f32.mrb[194].mxu0 }
 0x260   :  { %v2105_v39 = vpop.f32.mrb[195].mxu0  ;;  %15206 = vmatmul.mubr.msk.f32.gmra.mrb[44].mxu0 %vm2741_vm4, %v19260_v20  ;;  %v19264_v22 = vld [vmem:[#allocation2 + $0x210] sm:$0xff] }
 0x261   :  { %21839 = vst [vmem:[#allocation25_spill] sm:$0xff] %v19264_v22  ;;  %2832 = vst.msk [vmem:[#allocation2 + $0x220] sm:$0xff] %vm2741_vm4, %v2724_v34  ;;  %15218 = vmatmul.mubr.msk.f32.gmra.mrb[6].mxu1 %vm2741_vm4, %v19264_v22 }
 0x263   :  { %v15047_v52 = vpop.f32.mrb[196].mxu0 }
 0x264   :  { %v2115_v24 = vpop.f32.mrb[197].mxu0  ;;  %v19269_v2 = vld [vmem:[#allocation2 + $0x218] sm:$0xff] }
 0x265   :  { %21840 = vst [vmem:[#allocation26_spill] sm:$0xff] %v19269_v2  ;;  %15220 = vmatprep.mubr.msk.f32.mxu1 %vm2741_vm4, %v19269_v2 }
 0x267   :  { %v15050_v56 = vpop.f32.mrb[198].mxu0 }
 0x268   :  { %v2125_v45 = vpop.f32.mrb[199].mxu0  ;;  %v19273_v59 = vld [vmem:[#allocation2 + $0x220] sm:$0xff] }
 0x269   :  { %21841 = vst [vmem:[#allocation27_spill] sm:$0xff] %v19273_v59  ;;  %15221 = vmatmul.mubr.msk.f32.gmra.mrb[8].mxu1 %vm2741_vm4, %v19273_v59 }
 0x26b   :  { %v15053_v44 = vpop.f32.mrb[200].mxu0 }
 0x26c   :  { %v2135_v58 = vpop.f32.mrb[201].mxu0 }
 0x26f   :  { %v15056_v34 = vpop.f32.mrb[202].mxu0 }
 0x270   :  { %v2145_v13 = vpop.f32.mrb[203].mxu0 }
 0x273   :  { %v15059_v16 = vpop.f32.mrb[204].mxu0 }
 0x274   :  { %v2155_v22 = vpop.f32.mrb[205].mxu0 }
 0x277   :  { %v19277_v47 = vpop.f32.mrb[206].mxu0 }
 0x278   :  { %v19279_v48 = vpop.f32.mrb[207].mxu0 }
 0x27b   :  { %v15065_v43 = vpop.f32.mrb[208].mxu0 }
 0x27c   :  { %v2511_v9 = vmax.f32 %v15041_v27, %v15065_v43  ;;  %v2175_v2 = vpop.f32.mrb[209].mxu0 }
 0x27d   :  { %v2510_v17 = vmax.f32 %v2095_v7, %v2175_v2 }
 0x27f   :  { %v2590_v20 = vmax.f32 %v2510_v17, %v2511_v9  ;;  %v15068_v11 = vpop.f32.mrb[210].mxu0 }
 0x280   :  { %v2513_v50 = vmax.f32 %v15044_v49, %v15068_v11  ;;  %v2185_v62 = vpop.f32.mrb[211].mxu0 }
 0x281   :  { %v2661_v59 = vadd.f32 %v18791_v21, %v2590_v20  ;;  %v2512_v26 = vmax.f32 %v2105_v39, %v2185_v62 }
 0x283   :  { %v2725_v25 = vmax.f32 %v2661_v59, 0.0  ;;  %v2591_v0 = vmax.f32 %v2512_v26, %v2513_v50  ;;  %v15071_v38 = vpop.f32.mrb[212].mxu0 }
 0x284   :  { %v2515_v51 = vmax.f32 %v15047_v52, %v15071_v38  ;;  %v2195_v8 = vpop.f32.mrb[213].mxu0 }
 0x285   :  { %2833 = vst.msk [vmem:[#allocation2 + $0x238] sm:$0xff] %vm2741_vm4, %v2725_v25  ;;  %v2662_v3 = vadd.f32 %v18791_v21, %v2591_v0  ;;  %v2514_v54 = vmax.f32 %v2115_v24, %v2195_v8 }
 0x287   :  { %v2726_v43 = vmax.f32 %v2662_v3, 0.0  ;;  %v2592_v27 = vmax.f32 %v2514_v54, %v2515_v51  ;;  %v15074_v7 = vpop.f32.mrb[214].mxu0 }
 0x288   :  { %v2517_v17 = vmax.f32 %v15050_v56, %v15074_v7  ;;  %v2205_v9 = vpop.f32.mrb[215].mxu0 }
 0x289   :  { %2834 = vst.msk [vmem:[#allocation2 + $0x240] sm:$0xff] %vm2741_vm4, %v2726_v43  ;;  %v2663_v11 = vadd.f32 %v18791_v21, %v2592_v27  ;;  %v2516_v62 = vmax.f32 %v2125_v45, %v2205_v9 }
 0x28b   :  { %v2727_v49 = vmax.f32 %v2663_v11, 0.0  ;;  %v2593_v26 = vmax.f32 %v2516_v62, %v2517_v17  ;;  %v15077_v50 = vpop.f32.mrb[216].mxu0 }
 0x28c   :  { %v2519_v38 = vmax.f32 %v15053_v44, %v15077_v50  ;;  %v2215_v20 = vpop.f32.mrb[217].mxu0  ;;  %v19286_v39 = vld [vmem:[#allocation2 + $0x238] sm:$0xff] }
 0x28d   :  { %2835 = vst.msk [vmem:[#allocation2 + $0x248] sm:$0xff] %vm2741_vm4, %v2727_v49  ;;  %v2664_v3 = vadd.f32 %v18791_v21, %v2593_v26  ;;  %v2518_v54 = vmax.f32 %v2135_v58, %v2215_v20  ;;  %15223 = vmatprep.mubr.msk.f32.mxu1 %vm2741_vm4, %v19286_v39 }
 0x28f   :  { %v2728_v8 = vmax.f32 %v2664_v3, 0.0  ;;  %v2594_v51 = vmax.f32 %v2518_v54, %v2519_v38  ;;  %v15080_v0 = vpop.f32.mrb[218].mxu0 }
 0x290   :  { %v2521_v25 = vmax.f32 %v15056_v34, %v15080_v0  ;;  %v2225_v52 = vpop.f32.mrb[219].mxu0  ;;  %v19292_v24 = vld [vmem:[#allocation2 + $0x240] sm:$0xff] }
 0x291   :  { %2836 = vst.msk [vmem:[#allocation2 + $0x250] sm:$0xff] %vm2741_vm4, %v2728_v8  ;;  %v2665_v44 = vadd.f32 %v18791_v21, %v2594_v51  ;;  %v2520_v2 = vmax.f32 %v2145_v13, %v2225_v52  ;;  %15224 = vmatmul.mubr.msk.f32.gmra.mrb[10].mxu1 %vm2741_vm4, %v19292_v24 }
 0x293   :  { %v2729_v56 = vmax.f32 %v2665_v44, 0.0  ;;  %v2595_v58 = vmax.f32 %v2520_v2, %v2521_v25  ;;  %v15083_v45 = vpop.f32.mrb[220].mxu0 }
 0x294   :  { %v2523_v59 = vmax.f32 %v15059_v16, %v15083_v45  ;;  %v2235_v43 = vpop.f32.mrb[221].mxu0  ;;  %v19298_v27 = vld [vmem:[#allocation2 + $0x248] sm:$0xff] }
 0x295   :  { %2837 = vst.msk [vmem:[#allocation2 + $0x258] sm:$0xff] %vm2741_vm4, %v2729_v56  ;;  %v2666_v34 = vadd.f32 %v18791_v21, %v2595_v58  ;;  %v2522_v7 = vmax.f32 %v2155_v22, %v2235_v43  ;;  %15226 = vmatprep.mubr.msk.f32.mxu1 %vm2741_vm4, %v19298_v27  ;;  %v12915_v43 = vld [vmem:[%s21755_s3 + $0x38] sm:$0xff] }
 0x297   :  { %v2730_v17 = vmax.f32 %v2666_v34, 0.0  ;;  %v2596_v13 = vmax.f32 %v2522_v7, %v2523_v59  ;;  %v15086_v9 = vpop.f32.mrb[222].mxu0  ;;  %v12914_v59 = vld [vmem:[%s21755_s3 + $0x30] sm:$0xff] }
 0x298   :  { %v2525_v11 = vmax.f32 %v19277_v47, %v15086_v9  ;;  %v2245_v62 = vpop.f32.mrb[223].mxu0  ;;  %v19305_v49 = vld [vmem:[#allocation2 + $0x250] sm:$0xff]  ;;  %v19348_v34 = vpack.c.bf16 %v12915_v43, %v12914_v59 }
 0x299   :  { %2838 = vst.msk [vmem:[#allocation2 + $0x260] sm:$0xff] %vm2741_vm4, %v2730_v17  ;;  %v2667_v16 = vadd.f32 %v18791_v21, %v2596_v13  ;;  %v2524_v26 = vmax.f32 %v19279_v48, %v2245_v62  ;;  %15227 = vmatmul.mubr.msk.f32.gmra.mrb[12].mxu1 %vm2741_vm4, %v19305_v49 }
 0x29b   :  { %v2731_v22 = vmax.f32 %v2667_v16, 0.0  ;;  %v2597_v50 = vmax.f32 %v2524_v26, %v2525_v11  ;;  %v15089_v38 = vpop.f32.mrb[224].mxu0 }
 0x29c   :  { %v19312_v20 = vld [vmem:[#allocation2 + $0x258] sm:$0xff]  ;;  %v2255_v3 = vpop.f32.mrb[225].mxu0 }
 0x29d   :  { %2839 = vst.msk [vmem:[#allocation2 + $0x268] sm:$0xff] %vm2741_vm4, %v2731_v22  ;;  %v2668_v47 = vadd.f32 %v18791_v21, %v2597_v50  ;;  %15229 = vmatprep.mubr.msk.f32.mxu1 %vm2741_vm4, %v19312_v20  ;;  %v2849_v21 = vld [vmem:[#allocation2] sm:$0xff] }
 0x29f   :  { %v2732_v54 = vmax.f32 %v2668_v47, 0.0  ;;  %v15092_v8 = vpop.f32.mrb[226].mxu0 }
 0x2a0   :  { %v19318_v51 = vld [vmem:[#allocation2 + $0x260] sm:$0xff]  ;;  %v2265_v48 = vpop.f32.mrb[227].mxu0 }
 0x2a1   :  { %2840 = vst.msk [vmem:[#allocation2 + $0x270] sm:$0xff] %vm2741_vm4, %v2732_v54  ;;  %15230 = vmatmul.mubr.msk.f32.gmra.mrb[14].mxu1 %vm2741_vm4, %v19318_v51 }
 0x2a3   :  { %v15095_v0 = vpop.f32.mrb[228].mxu0 }
 0x2a4   :  { %v19323_v25 = vld [vmem:[#allocation2 + $0x268] sm:$0xff]  ;;  %v2275_v52 = vpop.f32.mrb[229].mxu0 }
 0x2a5   :  { %15232 = vmatprep.mubr.msk.f32.mxu1 %vm2741_vm4, %v19323_v25 }
 0x2a7   :  { %v19327_v44 = vpop.f32.mrb[230].mxu0 }
 0x2a8   :  { %v19329_v2 = vld [vmem:[#allocation2 + $0x270] sm:$0xff]  ;;  %v19331_v56 = vpop.f32.mrb[231].mxu0 }
 0x2a9   :  { %15233 = vmatmul.mubr.msk.f32.gmra.mrb[16].mxu1 %vm2741_vm4, %v19329_v2 }
 0x2aa   :  { %15239 = vmatprep.mubr.msk.f32.mxu1 %vm2741_vm4, %v2849_v21 }
 0x2ab   :  { %v19336_v58 = vpop.f32.mrb[232].mxu0 }
 0x2ac   :  { %v19338_v45 = vpop.f32.mrb[233].mxu0 }
 0x2ad   :  { %15240 = vmatmul.mubr.msk.f32.vlgmr.msra.gmra.mrb[18].mxu1 %vm2741_vm4, %v18958_v10 }
 0x2ae   :  { %16573 = vmatpush3.bf16.msra.mxu1 %v19093_v40  ;;  %15242 = vmatprep.mubr.msk.f32.mxu1 %vm2741_vm4, %v18967_v23  ;;  %v19370_v23 = vld [vmem:[#allocation2 + $0x50] sm:$0xff] }
 0x2af   :  { %v19353_v7 = vpop.f32.mrb[234].mxu0  ;;  %16575 = vmatprep.subr.bf16.mxu1 %v19348_v34 }
 0x2b0   :  { %v19356_v17 = vpop.f32.mrb[235].mxu0 }
 0x2b1   :  { %15243 = vmatmul.mubr.msk.f32.gmra.mrb[20].mxu1 %vm2741_vm4, %v18969_v15 }
 0x2b2   :  { %15245 = vmatprep.mubr.msk.f32.mxu1 %vm2741_vm4, %v18979_v18 }
 0x2b3   :  { %v19362_v10 = vpop.f32.mrb[236].mxu0 }
 0x2b4   :  { %v19364_v13 = vpop.f32.mrb[237].mxu0 }
 0x2b5   :  { %15246 = vmatmul.mubr.msk.f32.gmra.mrb[22].mxu1 %vm2741_vm4, %v18981_v35 }
 0x2b6   :  { %15248 = vmatprep.mubr.msk.f32.mxu1 %vm2741_vm4, %v18991_v41 }
 0x2b7   :  { %v19372_v40 = vpop.f32.mrb[238].mxu0 }
 0x2b8   :  { %v19374_v9 = vpop.f32.mrb[239].mxu0 }
 0x2b9   :  { %15249 = vmatmul.mubr.msk.f32.gmra.mrb[24].mxu1 %vm2741_vm4, %v18993_v42  ;;  %v19389_v42 = vld [vmem:[%s21754_s2] ss:$0 sm:$0xff] }
 0x2ba   :  { %15251 = vmatprep.mubr.msk.f32.mxu1 %vm2741_vm4, %v19370_v23 }
 0x2bb   :  { %v15113_v15 = vpop.f32.mrb[240].mxu0 }
 0x2bc   :  { %v2527_v18 = vmax.f32 %v15089_v38, %v15113_v15  ;;  %v2335_v11 = vpop.f32.mrb[241].mxu0 }
 0x2bd   :  { %15252 = vmatmul.mubr.msk.f32.gmra.mrb[26].mxu1 %vm2741_vm4, %v19011_v53  ;;  %v2526_v35 = vmax.f32 %v2255_v3, %v2335_v11 }
 0x2be   :  { %15254 = vmatprep.mubr.msk.f32.mxu1 %vm2741_vm4, %v19018_v55 }
 0x2bf   :  { %v2598_v41 = vmax.f32 %v2526_v35, %v2527_v18  ;;  %v15116_v62 = vpop.f32.mrb[242].mxu0 }
 0x2c0   :  { %v2529_v16 = vmax.f32 %v15092_v8, %v15116_v62  ;;  %v2345_v26 = vpop.f32.mrb[243].mxu0  ;;  %v19400_v8 = vld [vmem:[#allocation2 + $0xa0] sm:$0xff] }
 0x2c1   :  { %15255 = vmatmul.mubr.msk.f32.gmra.mrb[28].mxu1 %vm2741_vm4, %v19023_v6  ;;  %v2669_v22 = vadd.f32 %v19389_v42, %v2598_v41  ;;  %v2528_v50 = vmax.f32 %v2265_v48, %v2345_v26 }
 0x2c2   :  { %15257 = vmatprep.mubr.msk.f32.mxu1 %vm2741_vm4, %v19032_v61 }
 0x2c3   :  { %v2733_v53 = vmax.f32 %v2669_v22, 0.0  ;;  %v2599_v55 = vmax.f32 %v2528_v50, %v2529_v16  ;;  %v15119_v38 = vpop.f32.mrb[244].mxu0 }
 0x2c4   :  { %v2531_v3 = vmax.f32 %v15095_v0, %v15119_v38  ;;  %v2355_v47 = vpop.f32.mrb[245].mxu0 }
 0x2c5   :  { %15258 = vmatmul.mubr.msk.f32.gmra.mrb[30].mxu1 %vm2741_vm4, %v19038_v19  ;;  %2841 = vst.msk [vmem:[#allocation2 + $0x288] sm:$0xff] %vm2741_vm4, %v2733_v53  ;;  %v2670_v6 = vadd.f32 %v19389_v42, %v2599_v55  ;;  %v2530_v54 = vmax.f32 %v2275_v52, %v2355_v47 }
 0x2c6   :  { %15260 = vmatprep.mubr.msk.f32.mxu1 %vm2741_vm4, %v19046_v14 }
 0x2c7   :  { %v2734_v48 = vmax.f32 %v2670_v6, 0.0  ;;  %v2600_v61 = vmax.f32 %v2530_v54, %v2531_v3  ;;  %v15122_v21 = vpop.f32.mrb[246].mxu0 }
 0x2c8   :  { %v2533_v59 = vmax.f32 %v19327_v44, %v15122_v21  ;;  %v2365_v0 = vpop.f32.mrb[247].mxu0 }
 0x2c9   :  { %15261 = vmatmul.mubr.msk.f32.gmra.mrb[32].mxu1 %vm2741_vm4, %v19052_v12  ;;  %2842 = vst.msk [vmem:[#allocation2 + $0x290] sm:$0xff] %vm2741_vm4, %v2734_v48  ;;  %v2671_v19 = vadd.f32 %v19389_v42, %v2600_v61  ;;  %v2532_v52 = vmax.f32 %v19331_v56, %v2365_v0 }
 0x2ca   :  { %15263 = vmatprep.mubr.msk.f32.mxu1 %vm2741_vm4, %v19400_v8 }
 0x2cb   :  { %v2735_v14 = vmax.f32 %v2671_v19, 0.0  ;;  %v2601_v43 = vmax.f32 %v2532_v52, %v2533_v59  ;;  %v15125_v15 = vpop.f32.mrb[248].mxu0  ;;  %v21855_v59 = vld [vmem:[#allocation8_spill] sm:$0xff]  ;;  %v21859_v52 = vld [vmem:[#allocation10_spill] sm:$0xff] }
 0x2cc   :  { %v2535_v18 = vmax.f32 %v19336_v58, %v15125_v15  ;;  %v2375_v11 = vpop.f32.mrb[249].mxu0 }
 0x2cd   :  { %15264 = vmatmul.mubr.msk.f32.gmra.mrb[34].mxu1 %vm2741_vm4, %v19062_v30  ;;  %2843 = vst.msk [vmem:[#allocation2 + $0x298] sm:$0xff] %vm2741_vm4, %v2735_v14  ;;  %v2672_v12 = vadd.f32 %v19389_v42, %v2601_v43  ;;  %v2534_v44 = vmax.f32 %v19338_v45, %v2375_v11  ;;  %v19507_v43 = vld [vmem:[#allocation2 + $0x190] sm:$0xff] }
 0x2ce   :  { %15266 = vmatprep.mubr.msk.f32.mxu1 %vm2741_vm4, %v19072_v31 }
 0x2cf   :  { %v2736_v56 = vmax.f32 %v2672_v12, 0.0  ;;  %v2602_v35 = vmax.f32 %v2534_v44, %v2535_v18  ;;  %v15128_v41 = vpop.f32.mrb[250].mxu0  ;;  %v21863_v18 = vld [vmem:[#allocation13_spill] sm:$0xff]  ;;  %v21866_v44 = vld [vmem:[#allocation16_spill] sm:$0xff] }
 0x2d0   :  { %v2537_v62 = vmax.f32 %v19353_v7, %v15128_v41  ;;  %v2385_v16 = vpop.f32.mrb[251].mxu0 }
 0x2d1   :  { %15267 = vmatmul.mubr.msk.f32.gmra.mrb[36].mxu1 %vm2741_vm4, %v19078_v36  ;;  %2844 = vst.msk [vmem:[#allocation2 + $0x2a0] sm:$0xff] %vm2741_vm4, %v2736_v56  ;;  %v2673_v30 = vadd.f32 %v19389_v42, %v2602_v35  ;;  %v2536_v58 = vmax.f32 %v19356_v17, %v2385_v16  ;;  %v19434_v17 = vld [vmem:[#allocation2 + $0xf0] sm:$0xff]  ;;  %v21867_v56 = vld [vmem:[#allocation18_spill] sm:$0xff]  ;;  %v21871_v16 = vld [vmem:[#allocation21_spill] sm:$0xff] }
 0x2d2   :  { %15269 = vmatprep.mubr.msk.f32.mxu1 %vm2741_vm4, %v19091_v28 }
 0x2d3   :  { %v2737_v45 = vmax.f32 %v2673_v30, 0.0  ;;  %v2603_v31 = vmax.f32 %v2536_v58, %v2537_v62  ;;  %v15131_v26 = vpop.f32.mrb[252].mxu0  ;;  %v21870_v62 = vld [vmem:[#allocation19_spill] sm:$0xff] }
 0x2d4   :  { %v2539_v22 = vmax.f32 %v19362_v10, %v15131_v26  ;;  %v2395_v50 = vpop.f32.mrb[253].mxu0 }
 0x2d5   :  { %15270 = vmatmul.mubr.msk.f32.gmra.mrb[38].mxu1 %vm2741_vm4, %v19099_v29  ;;  %2845 = vst.msk [vmem:[#allocation2 + $0x2a8] sm:$0xff] %vm2741_vm4, %v2737_v45  ;;  %v2674_v36 = vadd.f32 %v19389_v42, %v2603_v31  ;;  %v2538_v7 = vmax.f32 %v19364_v13, %v2395_v50  ;;  %v21874_v45 = vld [vmem:[#allocation22_spill] sm:$0xff]  ;;  %v21875_v31 = vld [vmem:[#allocation24_spill] sm:$0xff] }
 0x2d6   :  { %15272 = vmatprep.mubr.msk.f32.mxu1 %vm2741_vm4, %v19106_v46 }
 0x2d7   :  { %v2738_v28 = vmax.f32 %v2674_v36, 0.0  ;;  %v2604_v53 = vmax.f32 %v2538_v7, %v2539_v22  ;;  %v15134_v55 = vpop.f32.mrb[254].mxu0  ;;  %v19541_v22 = vld [vmem:[#allocation2 + $0x1e0] sm:$0xff] }
 0x2d8   :  { %v2541_v10 = vmax.f32 %v19372_v40, %v15134_v55  ;;  %v2405_v38 = vpop.f32.mrb[255].mxu0  ;;  %v21878_v36 = vld [vmem:[#allocation5_spill] sm:$0xff]  ;;  %v21882_v55 = vld [vmem:[#allocation14_spill] sm:$0xff] }
 0x2d9   :  { %15273 = vmatmul.mubr.msk.f32.gmra.mrb[40].mxu1 %vm2741_vm4, %v19112_v32  ;;  %2846 = vst.msk [vmem:[#allocation2 + $0x2b0] sm:$0xff] %vm2741_vm4, %v2738_v28  ;;  %v2675_v29 = vadd.f32 %v19389_v42, %v2604_v53  ;;  %v2540_v13 = vmax.f32 %v19374_v9, %v2405_v38  ;;  %v21881_v53 = vld [vmem:[#allocation11_spill] sm:$0xff] }
 0x2da   :  { %15275 = vmatprep.mubr.msk.f32.mxu1 %vm2741_vm4, %v19434_v17 }
 0x2db   :  { %v2739_v46 = vmax.f32 %v2675_v29, 0.0  ;;  %v2605_v3 = vmax.f32 %v2540_v13, %v2541_v10  ;;  %v19444_v47 = vpop.f32.mrb[0].mxu0  ;;  %v21885_v29 = vld [vmem:[#allocation17_spill] sm:$0xff]  ;;  %v21886_v13 = vld [vmem:[#allocation20_spill] sm:$0xff] }
 0x2dc   :  { %21842 = vst [vmem:[#allocation28_spill] sm:$0xff] %v19444_v47  ;;  %v19446_v6 = vpop.f32.mrb[1].mxu0 }
 0x2dd   :  { %21843 = vst [vmem:[#allocation29_spill] sm:$0xff] %v19446_v6  ;;  %15276 = vmatmul.mubr.msk.f32.gmra.mrb[42].mxu1 %vm2741_vm4, %v19121_v33  ;;  %2847 = vst.msk [vmem:[#allocation2 + $0x2b8] sm:$0xff] %vm2741_vm4, %v2739_v46  ;;  %v2676_v32 = vadd.f32 %v19389_v42, %v2605_v3  ;;  %v19473_v42 = vld [vmem:[#allocation2 + $0x140] sm:$0xff] }
 0x2de   :  { %15278 = vmatprep.mubr.msk.f32.mxu1 %vm2741_vm4, %v19127_v57 }
 0x2df   :  { %v2740_v40 = vmax.f32 %v2676_v32, 0.0  ;;  %v19454_v9 = vpop.f32.mrb[2].mxu0  ;;  %v21889_v32 = vld [vmem:[#allocation23_spill] sm:$0xff] }
 0x2e0   :  { %21844 = vst [vmem:[#allocation30_spill] sm:$0xff] %v19454_v9  ;;  %v19456_v54 = vpop.f32.mrb[3].mxu0  ;;  %v19991_v9 = vld [vmem:[#allocation2 + $0x288] sm:$0xff]  ;;  %v20011_v6 = vld [vmem:[#allocation2 + $0x2b0] sm:$0xff] }
 0x2e1   :  { %21845 = vst [vmem:[#allocation31_spill] sm:$0xff] %v19456_v54  ;;  %15279 = vmatmul.mubr.msk.f32.gmra.mrb[44].mxu1 %vm2741_vm4, %v19133_v60  ;;  %2848 = vst.msk [vmem:[#allocation2 + $0x2c0] sm:$0xff] %vm2741_vm4, %v2740_v40  ;;  %v21890_v40 = vld [vmem:[#allocation25_spill] sm:$0xff]  ;;  %v19975_v54 = vld [vmem:[#allocation2 + $0x248] sm:$0xff] }
 0x2e2   :  { %15281 = vmatprep.mubr.msk.f32.mxu1 %vm2741_vm4, %v19137_v63  ;;  %21920 = vst [vmem:[#allocation60_spill] sm:$0xff] %v19991_v9  ;;  %21921 = vst [vmem:[#allocation61_spill] sm:$0xff] %v20011_v6 }
 0x2e3   :  { %v19463_v33 = vpop.f32.mrb[4].mxu0 }
 0x2e4   :  { %21846 = vst [vmem:[#allocation32_spill] sm:$0xff] %v19463_v33  ;;  %v19465_v48 = vpop.f32.mrb[5].mxu0  ;;  %v19971_v33 = vld [vmem:[#allocation2 + $0x240] sm:$0xff]  ;;  %v20015_v47 = vld [vmem:[#allocation2 + $0x2b8] sm:$0xff] }
 0x2e5   :  { %21847 = vst [vmem:[#allocation33_spill] sm:$0xff] %v19465_v48  ;;  %15282 = vmatmul.mubr.msk.f32.gmra.mrb[46].mxu1 %vm2741_vm4, %v19142_v1  ;;  %v21852_v1 = vld [vmem:[#allocation7_spill] sm:$0xff]  ;;  %v19967_v48 = vld [vmem:[#allocation2 + $0x238] sm:$0xff] }
 0x2e6   :  { %15284 = vmatprep.mubr.msk.f32.mxu1 %vm2741_vm4, %v19147_v4  ;;  %21918 = vst [vmem:[#allocation58_spill] sm:$0xff] %v19967_v48 }
 0x2e7   :  { %v19471_v57 = vpop.f32.mrb[6].mxu0 }
 0x2e8   :  { %21848 = vst [vmem:[#allocation34_spill] sm:$0xff] %v19471_v57  ;;  %v19475_v60 = vpop.f32.mrb[7].mxu0  ;;  %v19961_v57 = vld [vmem:[#allocation2 + $0x218] sm:$0xff] }
 0x2e9   :  { %21849 = vst [vmem:[#allocation35_spill] sm:$0xff] %v19475_v60  ;;  %15285 = vmatmul.mubr.msk.f32.gmra.mrb[48].mxu1 %vm2741_vm4, %v19152_v5  ;;  %v21856_v5 = vld [vmem:[#allocation9_spill] sm:$0xff]  ;;  %v19751_v60 = vld [vmem:[#allocation2 + $0x188] sm:$0xff] }
 0x2ea   :  { %15287 = vmatprep.mubr.msk.f32.mxu1 %vm2741_vm4, %v19473_v42 }
 0x2eb   :  { %v19481_v63 = vpop.f32.mrb[8].mxu0 }
 0x2ec   :  { %21850 = vst [vmem:[#allocation36_spill] sm:$0xff] %v19481_v63  ;;  %v19483_v61 = vpop.f32.mrb[9].mxu0  ;;  %v19733_v63 = vld [vmem:[#allocation2 + $0x138] sm:$0xff] }
 0x2ed   :  { %21851 = vst [vmem:[#allocation37_spill] sm:$0xff] %v19483_v61  ;;  %15288 = vmatmul.mubr.msk.f32.gmra.mrb[50].mxu1 %vm2741_vm4, %v19163_v37  ;;  %v21860_v37 = vld [vmem:[#allocation12_spill] sm:$0xff]  ;;  %v21908_v61 = vld [vmem:[#allocation6_spill] sm:$0xff] }
 0x2ee   :  { %15290 = vmatprep.mubr.msk.f32.mxu1 %vm2741_vm4, %v21852_v1 }
 0x2ef   :  { %v19489_v4 = vpop.f32.mrb[10].mxu0 }
 0x2f0   :  { %21853 = vst [vmem:[#allocation7_spill] sm:$0xff] %v19489_v4  ;;  %v19491_v21 = vpop.f32.mrb[11].mxu0  ;;  %v19727_v4 = vld [vmem:[#allocation2 + $0x128] sm:$0xff] }
 0x2f1   :  { %21854 = vst [vmem:[#allocation38_spill] sm:$0xff] %v19491_v21  ;;  %15291 = vmatmul.mubr.msk.f32.gmra.mrb[52].mxu1 %vm2741_vm4, %v21855_v59  ;;  %v19723_v21 = vld [vmem:[#allocation2 + $0x120] sm:$0xff] }
 0x2f2   :  { %15293 = vmatprep.mubr.msk.f32.mxu1 %vm2741_vm4, %v21856_v5 }
 0x2f3   :  { %v19497_v0 = vpop.f32.mrb[12].mxu0 }
 0x2f4   :  { %21857 = vst [vmem:[#allocation8_spill] sm:$0xff] %v19497_v0  ;;  %v19499_v19 = vpop.f32.mrb[13].mxu0  ;;  %v19719_v0 = vld [vmem:[#allocation2 + $0x118] sm:$0xff] }
 0x2f5   :  { %21858 = vst [vmem:[#allocation9_spill] sm:$0xff] %v19499_v19  ;;  %15294 = vmatmul.mubr.msk.f32.gmra.mrb[54].mxu1 %vm2741_vm4, %v21859_v52  ;;  %v19715_v19 = vld [vmem:[#allocation2 + $0x110] sm:$0xff] }
 0x2f6   :  { %15296 = vmatprep.mubr.msk.f32.mxu1 %vm2741_vm4, %v21860_v37 }
 0x2f7   :  { %v19505_v14 = vpop.f32.mrb[14].mxu0 }
 0x2f8   :  { %21861 = vst [vmem:[#allocation10_spill] sm:$0xff] %v19505_v14  ;;  %v19509_v15 = vpop.f32.mrb[15].mxu0  ;;  %v19711_v14 = vld [vmem:[#allocation2 + $0x108] sm:$0xff] }
 0x2f9   :  { %21862 = vst [vmem:[#allocation12_spill] sm:$0xff] %v19509_v15  ;;  %15297 = vmatmul.mubr.msk.f32.gmra.mrb[56].mxu1 %vm2741_vm4, %v21863_v18  ;;  %v19707_v15 = vld [vmem:[#allocation2 + $0x100] sm:$0xff] }
 0x2fa   :  { %15299 = vmatprep.mubr.msk.f32.mxu1 %vm2741_vm4, %v19507_v43 }
 0x2fb   :  { %v19515_v11 = vpop.f32.mrb[16].mxu0 }
 0x2fc   :  { %21864 = vst [vmem:[#allocation13_spill] sm:$0xff] %v19515_v11  ;;  %v19517_v12 = vpop.f32.mrb[17].mxu0  ;;  %v19703_v11 = vld [vmem:[#allocation2 + $0xe8] sm:$0xff] }
 0x2fd   :  { %21865 = vst [vmem:[#allocation39_spill] sm:$0xff] %v19517_v12  ;;  %15300 = vmatmul.mubr.msk.f32.gmra.mrb[58].mxu1 %vm2741_vm4, %v21866_v44  ;;  %v19699_v12 = vld [vmem:[#allocation2 + $0xe0] sm:$0xff] }
 0x2fe   :  { %15302 = vmatprep.mubr.msk.f32.mxu1 %vm2741_vm4, %v21867_v56 }
 0x2ff   :  { %v19523_v35 = vpop.f32.mrb[18].mxu0 }
 0x300   :  { %21868 = vst [vmem:[#allocation16_spill] sm:$0xff] %v19523_v35  ;;  %v19525_v41 = vpop.f32.mrb[19].mxu0  ;;  %v19695_v35 = vld [vmem:[#allocation2 + $0xd8] sm:$0xff] }
 0x301   :  { %21869 = vst [vmem:[#allocation18_spill] sm:$0xff] %v19525_v41  ;;  %15303 = vmatmul.mubr.msk.f32.gmra.mrb[60].mxu1 %vm2741_vm4, %v21870_v62  ;;  %v19691_v41 = vld [vmem:[#allocation2 + $0xd0] sm:$0xff] }
 0x302   :  { %15305 = vmatprep.mubr.msk.f32.mxu1 %vm2741_vm4, %v21871_v16 }
 0x303   :  { %v19531_v30 = vpop.f32.mrb[20].mxu0 }
 0x304   :  { %21872 = vst [vmem:[#allocation19_spill] sm:$0xff] %v19531_v30  ;;  %v19533_v58 = vpop.f32.mrb[21].mxu0  ;;  %v19687_v30 = vld [vmem:[#allocation2 + $0xc8] sm:$0xff] }
 0x305   :  { %21873 = vst [vmem:[#allocation21_spill] sm:$0xff] %v19533_v58  ;;  %15306 = vmatmul.mubr.msk.f32.gmra.mrb[62].mxu1 %vm2741_vm4, %v21874_v45 }
 0x306   :  { %15308 = vmatprep.mubr.msk.f32.mxu1 %vm2741_vm4, %v21875_v31 }
 0x307   :  { %v19539_v26 = vpop.f32.mrb[22].mxu0 }
 0x308   :  { %21876 = vst [vmem:[#allocation22_spill] sm:$0xff] %v19539_v26  ;;  %v19543_v50 = vpop.f32.mrb[23].mxu0  ;;  %v4142_v26 = vld [vmem:[#allocation2 + $0x30] sm:$0xff] }
 0x309   :  { %21877 = vst [vmem:[#allocation24_spill] sm:$0xff] %v19543_v50  ;;  %15309 = vmatmul.mubr.msk.f32.gmra.mrb[0].mxu1 %vm2741_vm4, %v21878_v36  ;;  %v19575_v36 = vld [vmem:[#allocation2 + $0x230] sm:$0xff] }
 0x30a   :  { %15311 = vmatprep.mubr.msk.f32.mxu1 %vm2741_vm4, %v19541_v22 }
 0x30b   :  { %v19549_v7 = vpop.f32.mrb[24].mxu0 }
 0x30c   :  { %21879 = vst [vmem:[#allocation5_spill] sm:$0xff] %v19549_v7  ;;  %v19551_v28 = vpop.f32.mrb[25].mxu0 }
 0x30d   :  { %21880 = vst [vmem:[#allocation40_spill] sm:$0xff] %v19551_v28  ;;  %15312 = vmatmul.mubr.msk.f32.gmra.mrb[2].mxu1 %vm2741_vm4, %v21881_v53 }
 0x30e   :  { %15314 = vmatprep.mubr.msk.f32.mxu1 %vm2741_vm4, %v21882_v55 }
 0x30f   :  { %v19557_v10 = vpop.f32.mrb[26].mxu0 }
 0x310   :  { %21883 = vst [vmem:[#allocation11_spill] sm:$0xff] %v19557_v10  ;;  %v19559_v38 = vpop.f32.mrb[27].mxu0 }
 0x311   :  { %21884 = vst [vmem:[#allocation14_spill] sm:$0xff] %v19559_v38  ;;  %15315 = vmatmul.mubr.msk.f32.gmra.mrb[4].mxu1 %vm2741_vm4, %v21885_v29  ;;  %v21893_v38 = vld [vmem:[#allocation26_spill] sm:$0xff] }
 0x312   :  { %15317 = vmatprep.mubr.msk.f32.mxu1 %vm2741_vm4, %v21886_v13 }
 0x313   :  { %v19565_v46 = vpop.f32.mrb[28].mxu0 }
 0x314   :  { %21887 = vst [vmem:[#allocation17_spill] sm:$0xff] %v19565_v46  ;;  %v19567_v3 = vpop.f32.mrb[29].mxu0 }
 0x315   :  { %21888 = vst [vmem:[#allocation20_spill] sm:$0xff] %v19567_v3  ;;  %15318 = vmatmul.mubr.msk.f32.gmra.mrb[6].mxu1 %vm2741_vm4, %v21889_v32 }
 0x316   :  { %15320 = vmatprep.mubr.msk.f32.mxu1 %vm2741_vm4, %v21890_v40 }
 0x317   :  { %v19573_v44 = vpop.f32.mrb[30].mxu0 }
 0x318   :  { %21891 = vst [vmem:[#allocation23_spill] sm:$0xff] %v19573_v44  ;;  %v19577_v53 = vpop.f32.mrb[31].mxu0 }
 0x319   :  { %21892 = vst [vmem:[#allocation25_spill] sm:$0xff] %v19577_v53  ;;  %15321 = vmatmul.mubr.msk.f32.gmra.mrb[8].mxu1 %vm2741_vm4, %v21893_v38 }
 0x31a   :  { %15323 = vmatprep.mubr.msk.f32.mxu1 %vm2741_vm4, %v19575_v36 }
 0x31b   :  { %v19583_v46 = vpop.f32.mrb[32].mxu0 }
 0x31c   :  { %21894 = vst [vmem:[#allocation26_spill] sm:$0xff] %v19583_v46  ;;  %v19585_v3 = vpop.f32.mrb[33].mxu0 }
 0x31d   :  { %21895 = vst [vmem:[#allocation41_spill] sm:$0xff] %v19585_v3  ;;  %15324 = vmatmul.mubr.msk.f32.gmra.mrb[10].mxu1 %vm2741_vm4, %v19286_v39  ;;  %v4139_v3 = vld [vmem:[#allocation2 + $0x18] sm:$0xff] }
 0x31e   :  { %15326 = vmatprep.mubr.msk.f32.mxu1 %vm2741_vm4, %v19292_v24 }
 0x31f   :  { %v19591_v44 = vpop.f32.mrb[34].mxu0 }
 0x320   :  { %21896 = vst [vmem:[#allocation42_spill] sm:$0xff] %v19591_v44  ;;  %v19593_v10 = vpop.f32.mrb[35].mxu0  ;;  %v4138_v44 = vld [vmem:[#allocation2 + $0x10] sm:$0xff] }
 0x321   :  { %21897 = vst [vmem:[#allocation43_spill] sm:$0xff] %v19593_v10  ;;  %15327 = vmatmul.mubr.msk.f32.gmra.mrb[12].mxu1 %vm2741_vm4, %v19298_v27 }
 0x322   :  { %15329 = vmatprep.mubr.msk.f32.mxu1 %vm2741_vm4, %v19305_v49 }
 0x323   :  { %v19599_v53 = vpop.f32.mrb[36].mxu0 }
 0x324   :  { %21898 = vst [vmem:[#allocation44_spill] sm:$0xff] %v19599_v53  ;;  %v19601_v46 = vpop.f32.mrb[37].mxu0  ;;  %v12981_v53 = vld [vmem:[%s21755_s3 + $0x48] sm:$0xff] }
 0x325   :  { %21899 = vst [vmem:[#allocation45_spill] sm:$0xff] %v19601_v46  ;;  %15330 = vmatmul.mubr.msk.f32.gmra.mrb[14].mxu1 %vm2741_vm4, %v19312_v20  ;;  %v12980_v46 = vld [vmem:[%s21755_s3 + $0x40] sm:$0xff] }
 0x326   :  { %15332 = vmatprep.mubr.msk.f32.mxu1 %vm2741_vm4, %v19318_v51  ;;  %v19622_v7 = vpack.c.bf16 %v12981_v53, %v12980_v46  ;;  %v4143_v46 = vld [vmem:[#allocation2 + $0x38] sm:$0xff] }
 0x327   :  { %v19607_v39 = vpop.f32.mrb[38].mxu0 }
 0x328   :  { %21900 = vst [vmem:[#allocation46_spill] sm:$0xff] %v19607_v39  ;;  %v19609_v10 = vpop.f32.mrb[39].mxu0  ;;  %v4140_v39 = vld [vmem:[#allocation2 + $0x20] sm:$0xff] }
 0x329   :  { %21901 = vst [vmem:[#allocation47_spill] sm:$0xff] %v19609_v10  ;;  %15333 = vmatmul.mubr.msk.f32.gmra.mrb[16].mxu1 %vm2741_vm4, %v19323_v25 }
 0x32a   :  { %15339 = vmatprep.mubr.msk.f32.mxu1 %vm2741_vm4, %v4138_v44  ;;  %v4141_v44 = vld [vmem:[#allocation2 + $0x28] sm:$0xff] }
 0x32b   :  { %v19620_v28 = vpop.f32.mrb[40].mxu0 }
 0x32c   :  { %21902 = vst [vmem:[#allocation48_spill] sm:$0xff] %v19620_v28  ;;  %v19624_v10 = vpop.f32.mrb[41].mxu0  ;;  %v19683_v28 = vld [vmem:[#allocation2 + $0xc0] sm:$0xff] }
 0x32d   :  { %21903 = vst [vmem:[#allocation49_spill] sm:$0xff] %v19624_v10  ;;  %15340 = vmatmul.mubr.msk.f32.vlgmr.msra.gmra.mrb[18].mxu1 %vm2741_vm4, %v4139_v3  ;;  %v4144_v3 = vld [vmem:[#allocation2 + $0x40] sm:$0xff] }
 0x32e   :  { %16577 = vmatpush3.bf16.msra.mxu1 %v19348_v34  ;;  %15342 = vmatprep.mubr.msk.f32.mxu1 %vm2741_vm4, %v4140_v39  ;;  %v4145_v34 = vld [vmem:[#allocation2 + $0x48] sm:$0xff]  ;;  %v19643_v39 = vld [vmem:[#allocation2 + $0x60] sm:$0xff] }
 0x32f   :  { %v19629_v50 = vpop.f32.mrb[42].mxu0  ;;  %16579 = vmatprep.subr.bf16.mxu1 %v19622_v7 }
 0x330   :  { %21904 = vst [vmem:[#allocation50_spill] sm:$0xff] %v19629_v50  ;;  %v19632_v58 = vpop.f32.mrb[43].mxu0  ;;  %v19679_v50 = vld [vmem:[#allocation2 + $0xb8] sm:$0xff] }
 0x331   :  { %21905 = vst [vmem:[#allocation51_spill] sm:$0xff] %v19632_v58  ;;  %15343 = vmatmul.mubr.msk.f32.gmra.mrb[20].mxu1 %vm2741_vm4, %v4141_v44  ;;  %v19647_v44 = vld [vmem:[#allocation2 + $0x68] sm:$0xff]  ;;  %v19675_v58 = vld [vmem:[#allocation2 + $0xb0] sm:$0xff] }
 0x332   :  { %15345 = vmatprep.mubr.msk.f32.mxu1 %vm2741_vm4, %v4142_v26  ;;  %v19651_v26 = vld [vmem:[#allocation2 + $0x70] sm:$0xff] }
 0x333   :  { %v19636_v53 = vpop.f32.mrb[44].mxu0 }
 0x334   :  { %21906 = vst [vmem:[#allocation52_spill] sm:$0xff] %v19636_v53  ;;  %v19638_v10 = vpop.f32.mrb[45].mxu0  ;;  %v19671_v53 = vld [vmem:[#allocation2 + $0x98] sm:$0xff] }
 0x335   :  { %21907 = vst [vmem:[#allocation53_spill] sm:$0xff] %v19638_v10  ;;  %15346 = vmatmul.mubr.msk.f32.gmra.mrb[22].mxu1 %vm2741_vm4, %v4143_v46  ;;  %v19655_v46 = vld [vmem:[#allocation2 + $0x78] sm:$0xff]  ;;  %v19667_v10 = vld [vmem:[#allocation2 + $0x90] sm:$0xff] }
 0x336   :  { %15348 = vmatprep.mubr.msk.f32.mxu1 %vm2741_vm4, %v4144_v3  ;;  %v19659_v3 = vld [vmem:[#allocation2 + $0x80] sm:$0xff] }
 0x339   :  { %15349 = vmatmul.mubr.msk.f32.gmra.mrb[24].mxu1 %vm2741_vm4, %v4145_v34  ;;  %v19663_v34 = vld [vmem:[#allocation2 + $0x88] sm:$0xff] }
 0x33a   :  { %15351 = vmatprep.mubr.msk.f32.mxu1 %vm2741_vm4, %v19643_v39 }
 0x33d   :  { %15352 = vmatmul.mubr.msk.f32.gmra.mrb[26].mxu1 %vm2741_vm4, %v19647_v44 }
 0x33e   :  { %15354 = vmatprep.mubr.msk.f32.mxu1 %vm2741_vm4, %v19651_v26 }
 0x341   :  { %15355 = vmatmul.mubr.msk.f32.gmra.mrb[28].mxu1 %vm2741_vm4, %v19655_v46 }
 0x342   :  { %15357 = vmatprep.mubr.msk.f32.mxu1 %vm2741_vm4, %v19659_v3 }
 0x345   :  { %15358 = vmatmul.mubr.msk.f32.gmra.mrb[30].mxu1 %vm2741_vm4, %v19663_v34 }
 0x346   :  { %15360 = vmatprep.mubr.msk.f32.mxu1 %vm2741_vm4, %v19667_v10 }
 0x349   :  { %15361 = vmatmul.mubr.msk.f32.gmra.mrb[32].mxu1 %vm2741_vm4, %v19671_v53 }
 0x34a   :  { %15363 = vmatprep.mubr.msk.f32.mxu1 %vm2741_vm4, %v19675_v58 }
 0x34d   :  { %15364 = vmatmul.mubr.msk.f32.gmra.mrb[34].mxu1 %vm2741_vm4, %v19679_v50 }
 0x34e   :  { %15366 = vmatprep.mubr.msk.f32.mxu1 %vm2741_vm4, %v19683_v28 }
 0x351   :  { %15367 = vmatmul.mubr.msk.f32.gmra.mrb[36].mxu1 %vm2741_vm4, %v19687_v30 }
 0x352   :  { %15369 = vmatprep.mubr.msk.f32.mxu1 %vm2741_vm4, %v19691_v41 }
 0x355   :  { %15370 = vmatmul.mubr.msk.f32.gmra.mrb[38].mxu1 %vm2741_vm4, %v19695_v35 }
 0x356   :  { %15372 = vmatprep.mubr.msk.f32.mxu1 %vm2741_vm4, %v19699_v12 }
 0x359   :  { %15373 = vmatmul.mubr.msk.f32.gmra.mrb[40].mxu1 %vm2741_vm4, %v19703_v11 }
 0x35a   :  { %15375 = vmatprep.mubr.msk.f32.mxu1 %vm2741_vm4, %v19707_v15 }
 0x35d   :  { %15376 = vmatmul.mubr.msk.f32.gmra.mrb[42].mxu1 %vm2741_vm4, %v19711_v14 }
 0x35e   :  { %15378 = vmatprep.mubr.msk.f32.mxu1 %vm2741_vm4, %v19715_v19 }
 0x361   :  { %15379 = vmatmul.mubr.msk.f32.gmra.mrb[44].mxu1 %vm2741_vm4, %v19719_v0 }
 0x362   :  { %15381 = vmatprep.mubr.msk.f32.mxu1 %vm2741_vm4, %v19723_v21 }
 0x365   :  { %15382 = vmatmul.mubr.msk.f32.gmra.mrb[46].mxu1 %vm2741_vm4, %v19727_v4 }
 0x366   :  { %15384 = vmatprep.mubr.msk.f32.mxu1 %vm2741_vm4, %v21908_v61  ;;  %v21909_v61 = vld [vmem:[#allocation15_spill] sm:$0xff] }
 0x369   :  { %15385 = vmatmul.mubr.msk.f32.gmra.mrb[48].mxu1 %vm2741_vm4, %v19733_v63 }
 0x36a   :  { %15387 = vmatprep.mubr.msk.f32.mxu1 %vm2741_vm4, %v21852_v1  ;;  %v19765_v1 = vld [vmem:[#allocation2 + $0x1c8] sm:$0xff] }
 0x36d   :  { %15388 = vmatmul.mubr.msk.f32.gmra.mrb[50].mxu1 %vm2741_vm4, %v21855_v59  ;;  %v19769_v59 = vld [vmem:[#allocation2 + $0x1d0] sm:$0xff] }
 0x36e   :  { %15390 = vmatprep.mubr.msk.f32.mxu1 %vm2741_vm4, %v21856_v5  ;;  %v19773_v5 = vld [vmem:[#allocation2 + $0x1d8] sm:$0xff] }
 0x371   :  { %15391 = vmatmul.mubr.msk.f32.gmra.mrb[52].mxu1 %vm2741_vm4, %v21859_v52  ;;  %v21910_v52 = vld [vmem:[#allocation27_spill] sm:$0xff] }
 0x372   :  { %15393 = vmatprep.mubr.msk.f32.mxu1 %vm2741_vm4, %v21860_v37  ;;  %v19791_v37 = vld [vmem:[#allocation2 + $0x228] sm:$0xff] }
 0x373   :  { %21911 = vst [vmem:[#allocation6_spill] sm:$0xff] %v19791_v37 }
 0x375   :  { %15394 = vmatmul.mubr.msk.f32.gmra.mrb[54].mxu1 %vm2741_vm4, %v21863_v18  ;;  %v19809_v18 = vld [vmem:[#allocation2 + $0x278] sm:$0xff] }
 0x376   :  { %15396 = vmatprep.mubr.msk.f32.mxu1 %vm2741_vm4, %v21909_v61  ;;  %21912 = vst [vmem:[#allocation15_spill] sm:$0xff] %v19809_v18  ;;  %v19941_v61 = vld [vmem:[#allocation2 + $0x1f0] sm:$0xff] }
 0x379   :  { %15397 = vmatmul.mubr.msk.f32.gmra.mrb[56].mxu1 %vm2741_vm4, %v19751_v60 }
 0x37a   :  { %15399 = vmatprep.mubr.msk.f32.mxu1 %vm2741_vm4, %v21867_v56 }
 0x37d   :  { %15400 = vmatmul.mubr.msk.f32.gmra.mrb[58].mxu1 %vm2741_vm4, %v21870_v62  ;;  %v19823_v62 = vld [vmem:[#allocation2 + $0x58] sm:$0xff] }
 0x37e   :  { %15402 = vmatprep.mubr.msk.f32.mxu1 %vm2741_vm4, %v21871_v16  ;;  %v19887_v16 = vld [vmem:[#allocation2 + $0x158] sm:$0xff] }
 0x381   :  { %15403 = vmatmul.mubr.msk.f32.gmra.mrb[60].mxu1 %vm2741_vm4, %v21874_v45  ;;  %v19891_v45 = vld [vmem:[#allocation2 + $0x160] sm:$0xff] }
 0x382   :  { %15405 = vmatprep.mubr.msk.f32.mxu1 %vm2741_vm4, %v21875_v31  ;;  %v19899_v31 = vld [vmem:[#allocation2 + $0x170] sm:$0xff] }
 0x385   :  { %15406 = vmatmul.mubr.msk.f32.gmra.mrb[62].mxu1 %vm2741_vm4, %v19765_v1 }
 0x386   :  { %15408 = vmatprep.mubr.msk.f32.mxu1 %vm2741_vm4, %v19769_v59 }
 0x389   :  { %15409 = vmatmul.mubr.msk.f32.gmra.mrb[0].mxu1 %vm2741_vm4, %v19773_v5 }
 0x38a   :  { %15411 = vmatprep.mubr.msk.f32.mxu1 %vm2741_vm4, %v21882_v55  ;;  %v19909_v55 = vld [vmem:[#allocation2 + $0x198] sm:$0xff] }
 0x38b   :  { %21916 = vst [vmem:[#allocation56_spill] sm:$0xff] %v19909_v55 }
 0x38d   :  { %15412 = vmatmul.mubr.msk.f32.gmra.mrb[2].mxu1 %vm2741_vm4, %v21885_v29  ;;  %v19917_v29 = vld [vmem:[#allocation2 + $0x1a8] sm:$0xff] }
 0x38e   :  { %15414 = vmatprep.mubr.msk.f32.mxu1 %vm2741_vm4, %v21886_v13  ;;  %v19921_v13 = vld [vmem:[#allocation2 + $0x1b0] sm:$0xff] }
 0x391   :  { %15415 = vmatmul.mubr.msk.f32.gmra.mrb[4].mxu1 %vm2741_vm4, %v21889_v32  ;;  %v19929_v32 = vld [vmem:[#allocation2 + $0x1c0] sm:$0xff] }
 0x392   :  { %15417 = vmatprep.mubr.msk.f32.mxu1 %vm2741_vm4, %v21890_v40  ;;  %v19937_v40 = vld [vmem:[#allocation2 + $0x1e8] sm:$0xff] }
 0x393   :  { %21917 = vst [vmem:[#allocation57_spill] sm:$0xff] %v19937_v40 }
 0x395   :  { %15418 = vmatmul.mubr.msk.f32.gmra.mrb[6].mxu1 %vm2741_vm4, %v21893_v38  ;;  %v19913_v38 = vld [vmem:[#allocation2 + $0x1a0] sm:$0xff] }
 0x396   :  { %15420 = vmatprep.mubr.msk.f32.mxu1 %vm2741_vm4, %v21910_v52  ;;  %v19945_v52 = vld [vmem:[#allocation2 + $0x1f8] sm:$0xff] }
 0x399   :  { %15421 = vmatmul.mubr.msk.f32.gmra.mrb[8].mxu1 %vm2741_vm4, %v19791_v37 }
 0x39a   :  { %15423 = vmatprep.mubr.msk.f32.mxu1 %vm2741_vm4, %v19292_v24  ;;  %v13046_v24 = vld [vmem:[%s21755_s3 + $0x50] sm:$0xff] }
 0x39d   :  { %15424 = vmatmul.mubr.msk.f32.gmra.mrb[10].mxu1 %vm2741_vm4, %v19298_v27  ;;  %v13047_v27 = vld [vmem:[%s21755_s3 + $0x58] sm:$0xff] }
 0x39e   :  { %15426 = vmatprep.mubr.msk.f32.mxu1 %vm2741_vm4, %v19305_v49  ;;  %v19821_v56 = vpack.c.bf16 %v13047_v27, %v13046_v24  ;;  %v19949_v24 = vld [vmem:[#allocation2 + $0x200] sm:$0xff]  ;;  %v19957_v27 = vld [vmem:[#allocation2 + $0x210] sm:$0xff] }
 0x3a1   :  { %15427 = vmatmul.mubr.msk.f32.gmra.mrb[12].mxu1 %vm2741_vm4, %v19312_v20 }
 0x3a2   :  { %15429 = vmatprep.mubr.msk.f32.mxu1 %vm2741_vm4, %v19318_v51 }
 0x3a5   :  { %15430 = vmatmul.mubr.msk.f32.gmra.mrb[14].mxu1 %vm2741_vm4, %v19323_v25 }
 0x3a6   :  { %15432 = vmatprep.mubr.msk.f32.mxu1 %vm2741_vm4, %v19329_v2  ;;  %v19843_v2 = vld [vmem:[#allocation2 + $0xa8] sm:$0xff] }
 0x3a7   :  { %21913 = vst [vmem:[#allocation27_spill] sm:$0xff] %v19843_v2 }
 0x3a9   :  { %15433 = vmatmul.mubr.msk.f32.gmra.mrb[16].mxu1 %vm2741_vm4, %v19809_v18  ;;  %v13113_v18 = vld [vmem:[%s21755_s3 + $0x68] sm:$0xff] }
 0x3aa   :  { %15439 = vmatprep.mubr.msk.f32.mxu1 %vm2741_vm4, %v19370_v23  ;;  %v19861_v23 = vld [vmem:[#allocation2 + $0xf8] sm:$0xff] }
 0x3ab   :  { %21914 = vst [vmem:[#allocation54_spill] sm:$0xff] %v19861_v23 }
 0x3ad   :  { %15440 = vmatmul.mubr.msk.f32.vlgmr.msra.gmra.mrb[18].mxu1 %vm2741_vm4, %v19823_v62 }
 0x3ae   :  { %16581 = vmatpush3.bf16.msra.mxu1 %v19622_v7  ;;  %15442 = vmatprep.mubr.msk.f32.mxu1 %vm2741_vm4, %v19643_v39  ;;  %v19903_v7 = vld [vmem:[#allocation2 + $0x178] sm:$0xff] }
 0x3af   :  { %16583 = vmatprep.subr.bf16.mxu1 %v19821_v56 }
 0x3b1   :  { %15443 = vmatmul.mubr.msk.f32.gmra.mrb[20].mxu1 %vm2741_vm4, %v19647_v44 }
 0x3b2   :  { %15445 = vmatprep.mubr.msk.f32.mxu1 %vm2741_vm4, %v19651_v26 }
 0x3b5   :  { %15446 = vmatmul.mubr.msk.f32.gmra.mrb[22].mxu1 %vm2741_vm4, %v19655_v46 }
 0x3b6   :  { %15448 = vmatprep.mubr.msk.f32.mxu1 %vm2741_vm4, %v19659_v3 }
 0x3b9   :  { %15449 = vmatmul.mubr.msk.f32.gmra.mrb[24].mxu1 %vm2741_vm4, %v19663_v34 }
 0x3ba   :  { %15451 = vmatprep.mubr.msk.f32.mxu1 %vm2741_vm4, %v19400_v8  ;;  %v19879_v8 = vld [vmem:[#allocation2 + $0x148] sm:$0xff] }
 0x3bb   :  { %21915 = vst [vmem:[#allocation55_spill] sm:$0xff] %v19879_v8 }
 0x3bd   :  { %15452 = vmatmul.mubr.msk.f32.gmra.mrb[26].mxu1 %vm2741_vm4, %v19843_v2 }
 0x3be   :  { %15454 = vmatprep.mubr.msk.f32.mxu1 %vm2741_vm4, %v19675_v58 }
 0x3c1   :  { %15455 = vmatmul.mubr.msk.f32.gmra.mrb[28].mxu1 %vm2741_vm4, %v19679_v50 }
 0x3c2   :  { %15457 = vmatprep.mubr.msk.f32.mxu1 %vm2741_vm4, %v19683_v28 }
 0x3c5   :  { %15458 = vmatmul.mubr.msk.f32.gmra.mrb[30].mxu1 %vm2741_vm4, %v19687_v30 }
 0x3c6   :  { %15460 = vmatprep.mubr.msk.f32.mxu1 %vm2741_vm4, %v19691_v41 }
 0x3c9   :  { %15461 = vmatmul.mubr.msk.f32.gmra.mrb[32].mxu1 %vm2741_vm4, %v19695_v35 }
 0x3ca   :  { %15463 = vmatprep.mubr.msk.f32.mxu1 %vm2741_vm4, %v19434_v17  ;;  %v19883_v17 = vld [vmem:[#allocation2 + $0x150] sm:$0xff] }
 0x3cd   :  { %15464 = vmatmul.mubr.msk.f32.gmra.mrb[34].mxu1 %vm2741_vm4, %v19861_v23 }
 0x3ce   :  { %15466 = vmatprep.mubr.msk.f32.mxu1 %vm2741_vm4, %v19707_v15 }
 0x3d1   :  { %15467 = vmatmul.mubr.msk.f32.gmra.mrb[36].mxu1 %vm2741_vm4, %v19711_v14 }
 0x3d2   :  { %15469 = vmatprep.mubr.msk.f32.mxu1 %vm2741_vm4, %v19715_v19 }
 0x3d5   :  { %15470 = vmatmul.mubr.msk.f32.gmra.mrb[38].mxu1 %vm2741_vm4, %v19719_v0 }
 0x3d6   :  { %15472 = vmatprep.mubr.msk.f32.mxu1 %vm2741_vm4, %v19723_v21 }
 0x3d9   :  { %15473 = vmatmul.mubr.msk.f32.gmra.mrb[40].mxu1 %vm2741_vm4, %v19727_v4 }
 0x3da   :  { %15475 = vmatprep.mubr.msk.f32.mxu1 %vm2741_vm4, %v19473_v42  ;;  %v19895_v42 = vld [vmem:[#allocation2 + $0x168] sm:$0xff] }
 0x3dd   :  { %15476 = vmatmul.mubr.msk.f32.gmra.mrb[42].mxu1 %vm2741_vm4, %v19879_v8 }
 0x3de   :  { %15478 = vmatprep.mubr.msk.f32.mxu1 %vm2741_vm4, %v19883_v17 }
 0x3e1   :  { %15479 = vmatmul.mubr.msk.f32.gmra.mrb[44].mxu1 %vm2741_vm4, %v19887_v16 }
 0x3e2   :  { %15481 = vmatprep.mubr.msk.f32.mxu1 %vm2741_vm4, %v19891_v45 }
 0x3e5   :  { %15482 = vmatmul.mubr.msk.f32.gmra.mrb[46].mxu1 %vm2741_vm4, %v19895_v42 }
 0x3e6   :  { %15484 = vmatprep.mubr.msk.f32.mxu1 %vm2741_vm4, %v19899_v31 }
 0x3e9   :  { %15485 = vmatmul.mubr.msk.f32.gmra.mrb[48].mxu1 %vm2741_vm4, %v19903_v7 }
 0x3ea   :  { %15487 = vmatprep.mubr.msk.f32.mxu1 %vm2741_vm4, %v19507_v43  ;;  %v19925_v43 = vld [vmem:[#allocation2 + $0x1b8] sm:$0xff] }
 0x3ed   :  { %15488 = vmatmul.mubr.msk.f32.gmra.mrb[50].mxu1 %vm2741_vm4, %v19909_v55 }
 0x3ee   :  { %15490 = vmatprep.mubr.msk.f32.mxu1 %vm2741_vm4, %v19913_v38 }
 0x3f1   :  { %15491 = vmatmul.mubr.msk.f32.gmra.mrb[52].mxu1 %vm2741_vm4, %v19917_v29 }
 0x3f2   :  { %15493 = vmatprep.mubr.msk.f32.mxu1 %vm2741_vm4, %v19921_v13 }
 0x3f5   :  { %15494 = vmatmul.mubr.msk.f32.gmra.mrb[54].mxu1 %vm2741_vm4, %v19925_v43 }
 0x3f6   :  { %15496 = vmatprep.mubr.msk.f32.mxu1 %vm2741_vm4, %v19929_v32 }
 0x3f9   :  { %15497 = vmatmul.mubr.msk.f32.gmra.mrb[56].mxu1 %vm2741_vm4, %v19765_v1 }
 0x3fa   :  { %15499 = vmatprep.mubr.msk.f32.mxu1 %vm2741_vm4, %v19541_v22  ;;  %v19953_v22 = vld [vmem:[#allocation2 + $0x208] sm:$0xff] }
 0x3fd   :  { %15500 = vmatmul.mubr.msk.f32.gmra.mrb[58].mxu1 %vm2741_vm4, %v19937_v40 }
 0x3fe   :  { %15502 = vmatprep.mubr.msk.f32.mxu1 %vm2741_vm4, %v19941_v61 }
 0x401   :  { %15503 = vmatmul.mubr.msk.f32.gmra.mrb[60].mxu1 %vm2741_vm4, %v19945_v52 }
 0x402   :  { %15505 = vmatprep.mubr.msk.f32.mxu1 %vm2741_vm4, %v19949_v24 }
 0x405   :  { %15506 = vmatmul.mubr.msk.f32.gmra.mrb[62].mxu1 %vm2741_vm4, %v19953_v22 }
 0x406   :  { %15508 = vmatprep.mubr.msk.f32.mxu1 %vm2741_vm4, %v19957_v27 }
 0x409   :  { %15509 = vmatmul.mubr.msk.f32.gmra.mrb[0].mxu1 %vm2741_vm4, %v19961_v57 }
 0x40a   :  { %15511 = vmatprep.mubr.msk.f32.mxu1 %vm2741_vm4, %v19575_v36  ;;  %v19985_v36 = vld [vmem:[#allocation2 + $0x280] sm:$0xff] }
 0x40b   :  { %21919 = vst [vmem:[#allocation59_spill] sm:$0xff] %v19985_v36 }
 0x40d   :  { %15512 = vmatmul.mubr.msk.f32.gmra.mrb[2].mxu1 %vm2741_vm4, %v19967_v48 }
 0x40e   :  { %15514 = vmatprep.mubr.msk.f32.mxu1 %vm2741_vm4, %v19971_v33 }
 0x411   :  { %15515 = vmatmul.mubr.msk.f32.gmra.mrb[4].mxu1 %vm2741_vm4, %v19975_v54 }
 0x412   :  { %15517 = vmatprep.mubr.msk.f32.mxu1 %vm2741_vm4, %v19305_v49  ;;  %v19995_v49 = vld [vmem:[#allocation2 + $0x290] sm:$0xff] }
 0x415   :  { %15518 = vmatmul.mubr.msk.f32.gmra.mrb[6].mxu1 %vm2741_vm4, %v19312_v20  ;;  %v19999_v20 = vld [vmem:[#allocation2 + $0x298] sm:$0xff] }
 0x416   :  { %15520 = vmatprep.mubr.msk.f32.mxu1 %vm2741_vm4, %v19318_v51  ;;  %v20003_v51 = vld [vmem:[#allocation2 + $0x2a0] sm:$0xff] }
 0x419   :  { %15521 = vmatmul.mubr.msk.f32.gmra.mrb[8].mxu1 %vm2741_vm4, %v19323_v25  ;;  %v20007_v25 = vld [vmem:[#allocation2 + $0x2a8] sm:$0xff] }
 0x41a   :  { %15523 = vmatprep.mubr.msk.f32.mxu1 %vm2741_vm4, %v19985_v36  ;;  %v13112_v36 = vld [vmem:[%s21755_s3 + $0x60] sm:$0xff] }
 0x41b   :  { %v20027_v37 = vpack.c.bf16 %v13113_v18, %v13112_v36  ;;  %v20075_v18 = vld [vmem:[#allocation2 + $0x130] sm:$0xff] }
 0x41c   :  { %v20137_v36 = vld [vmem:[#allocation2 + $0x250] sm:$0xff] }
 0x41d   :  { %15524 = vmatmul.mubr.msk.f32.gmra.mrb[10].mxu1 %vm2741_vm4, %v19991_v9 }
 0x41e   :  { %15526 = vmatprep.mubr.msk.f32.mxu1 %vm2741_vm4, %v19995_v49 }
 0x421   :  { %15527 = vmatmul.mubr.msk.f32.gmra.mrb[12].mxu1 %vm2741_vm4, %v19999_v20 }
 0x422   :  { %15529 = vmatprep.mubr.msk.f32.mxu1 %vm2741_vm4, %v20003_v51 }
 0x425   :  { %15530 = vmatmul.mubr.msk.f32.gmra.mrb[14].mxu1 %vm2741_vm4, %v20007_v25 }
 0x426   :  { %15532 = vmatprep.mubr.msk.f32.mxu1 %vm2741_vm4, %v20011_v6 }
 0x429   :  { %15533 = vmatmul.mubr.msk.f32.gmra.mrb[16].mxu1 %vm2741_vm4, %v20015_v47 }
 0x42a   :  { %15539 = vmatprep.mubr.msk.f32.mxu1 %vm2741_vm4, %v19823_v62  ;;  %v20127_v62 = vld [vmem:[#allocation2 + $0x220] sm:$0xff] }
 0x42d   :  { %15540 = vmatmul.mubr.msk.f32.vlgmr.msra.gmra.mrb[18].mxu1 %vm2741_vm4, %v19643_v39 }
 0x42e   :  { %16585 = vmatpush3.bf16.msra.mxu1 %v19821_v56  ;;  %15542 = vmatprep.mubr.msk.f32.mxu1 %vm2741_vm4, %v19647_v44  ;;  %v20093_v56 = vld [vmem:[#allocation2 + $0x180] sm:$0xff] }
 0x42f   :  { %16587 = vmatprep.subr.bf16.mxu1 %v20027_v37 }
 0x431   :  { %15543 = vmatmul.mubr.msk.f32.gmra.mrb[20].mxu1 %vm2741_vm4, %v19651_v26 }
 0x432   :  { %15545 = vmatprep.mubr.msk.f32.mxu1 %vm2741_vm4, %v19655_v46 }
 0x435   :  { %15546 = vmatmul.mubr.msk.f32.gmra.mrb[22].mxu1 %vm2741_vm4, %v19659_v3 }
 0x436   :  { %15548 = vmatprep.mubr.msk.f32.mxu1 %vm2741_vm4, %v19663_v34 }
 0x439   :  { %15549 = vmatmul.mubr.msk.f32.gmra.mrb[24].mxu1 %vm2741_vm4, %v19667_v10 }
 0x43a   :  { %15551 = vmatprep.mubr.msk.f32.mxu1 %vm2741_vm4, %v19843_v2  ;;  %v13179_v2 = vld [vmem:[%s21755_s3 + $0x78] sm:$0xff] }
 0x43d   :  { %15552 = vmatmul.mubr.msk.f32.gmra.mrb[26].mxu1 %vm2741_vm4, %v19675_v58 }
 0x43e   :  { %15554 = vmatprep.mubr.msk.f32.mxu1 %vm2741_vm4, %v19679_v50 }
 0x441   :  { %15555 = vmatmul.mubr.msk.f32.gmra.mrb[28].mxu1 %vm2741_vm4, %v19683_v28 }
 0x442   :  { %15557 = vmatprep.mubr.msk.f32.mxu1 %vm2741_vm4, %v19687_v30 }
 0x445   :  { %15558 = vmatmul.mubr.msk.f32.gmra.mrb[30].mxu1 %vm2741_vm4, %v19691_v41 }
 0x446   :  { %15560 = vmatprep.mubr.msk.f32.mxu1 %vm2741_vm4, %v19695_v35 }
 0x449   :  { %15561 = vmatmul.mubr.msk.f32.gmra.mrb[32].mxu1 %vm2741_vm4, %v19699_v12 }
 0x44a   :  { %15563 = vmatprep.mubr.msk.f32.mxu1 %vm2741_vm4, %v19861_v23  ;;  %v20171_v23 = vld [vmem:[#allocation2 + $0x2c0] sm:$0xff] }
 0x44d   :  { %15564 = vmatmul.mubr.msk.f32.gmra.mrb[34].mxu1 %vm2741_vm4, %v19707_v15 }
 0x44e   :  { %15566 = vmatprep.mubr.msk.f32.mxu1 %vm2741_vm4, %v19711_v14 }
 0x451   :  { %15567 = vmatmul.mubr.msk.f32.gmra.mrb[36].mxu1 %vm2741_vm4, %v19715_v19 }
 0x452   :  { %15569 = vmatprep.mubr.msk.f32.mxu1 %vm2741_vm4, %v19719_v0 }
 0x455   :  { %15570 = vmatmul.mubr.msk.f32.gmra.mrb[38].mxu1 %vm2741_vm4, %v19723_v21 }
 0x456   :  { %15572 = vmatprep.mubr.msk.f32.mxu1 %vm2741_vm4, %v19727_v4 }
 0x459   :  { %15573 = vmatmul.mubr.msk.f32.gmra.mrb[40].mxu1 %vm2741_vm4, %v20075_v18 }
 0x45a   :  { %15575 = vmatprep.mubr.msk.f32.mxu1 %vm2741_vm4, %v19879_v8  ;;  %v20153_v8 = vld [vmem:[#allocation2 + $0x270] sm:$0xff] }
 0x45d   :  { %15576 = vmatmul.mubr.msk.f32.gmra.mrb[42].mxu1 %vm2741_vm4, %v19883_v17 }
 0x45e   :  { %15578 = vmatprep.mubr.msk.f32.mxu1 %vm2741_vm4, %v19887_v16 }
 0x461   :  { %15579 = vmatmul.mubr.msk.f32.gmra.mrb[44].mxu1 %vm2741_vm4, %v19891_v45 }
 0x462   :  { %15581 = vmatprep.mubr.msk.f32.mxu1 %vm2741_vm4, %v19895_v42 }
 0x465   :  { %15582 = vmatmul.mubr.msk.f32.gmra.mrb[46].mxu1 %vm2741_vm4, %v19899_v31 }
 0x466   :  { %15584 = vmatprep.mubr.msk.f32.mxu1 %vm2741_vm4, %v19903_v7 }
 0x469   :  { %15585 = vmatmul.mubr.msk.f32.gmra.mrb[48].mxu1 %vm2741_vm4, %v20093_v56 }
 0x46a   :  { %15587 = vmatprep.mubr.msk.f32.mxu1 %vm2741_vm4, %v19909_v55  ;;  %v20145_v55 = vld [vmem:[#allocation2 + $0x260] sm:$0xff] }
 0x46d   :  { %15588 = vmatmul.mubr.msk.f32.gmra.mrb[50].mxu1 %vm2741_vm4, %v19913_v38 }
 0x46e   :  { %15590 = vmatprep.mubr.msk.f32.mxu1 %vm2741_vm4, %v19917_v29 }
 0x471   :  { %15591 = vmatmul.mubr.msk.f32.gmra.mrb[52].mxu1 %vm2741_vm4, %v19921_v13 }
 0x472   :  { %15593 = vmatprep.mubr.msk.f32.mxu1 %vm2741_vm4, %v19925_v43 }
 0x475   :  { %15594 = vmatmul.mubr.msk.f32.gmra.mrb[54].mxu1 %vm2741_vm4, %v19929_v32 }
 0x476   :  { %15596 = vmatprep.mubr.msk.f32.mxu1 %vm2741_vm4, %v19765_v1 }
 0x479   :  { %15597 = vmatmul.mubr.msk.f32.gmra.mrb[56].mxu1 %vm2741_vm4, %v19769_v59 }
 0x47a   :  { %15599 = vmatprep.mubr.msk.f32.mxu1 %vm2741_vm4, %v19937_v40  ;;  %v20141_v40 = vld [vmem:[#allocation2 + $0x258] sm:$0xff] }
 0x47d   :  { %15600 = vmatmul.mubr.msk.f32.gmra.mrb[58].mxu1 %vm2741_vm4, %v19941_v61 }
 0x47e   :  { %15602 = vmatprep.mubr.msk.f32.mxu1 %vm2741_vm4, %v19945_v52 }
 0x481   :  { %15603 = vmatmul.mubr.msk.f32.gmra.mrb[60].mxu1 %vm2741_vm4, %v19949_v24 }
 0x482   :  { %15605 = vmatprep.mubr.msk.f32.mxu1 %vm2741_vm4, %v19953_v22 }
 0x485   :  { %15606 = vmatmul.mubr.msk.f32.gmra.mrb[62].mxu1 %vm2741_vm4, %v19957_v27 }
 0x486   :  { %15608 = vmatprep.mubr.msk.f32.mxu1 %vm2741_vm4, %v19961_v57 }
 0x489   :  { %15609 = vmatmul.mubr.msk.f32.gmra.mrb[0].mxu1 %vm2741_vm4, %v20127_v62 }
 0x48a   :  { %15611 = vmatprep.mubr.msk.f32.mxu1 %vm2741_vm4, %v19967_v48  ;;  %v20149_v48 = vld [vmem:[#allocation2 + $0x268] sm:$0xff] }
 0x48d   :  { %15612 = vmatmul.mubr.msk.f32.gmra.mrb[2].mxu1 %vm2741_vm4, %v19971_v33 }
 0x48e   :  { %15614 = vmatprep.mubr.msk.f32.mxu1 %vm2741_vm4, %v19975_v54 }
 0x491   :  { %15615 = vmatmul.mubr.msk.f32.gmra.mrb[4].mxu1 %vm2741_vm4, %v20137_v36 }
 0x492   :  { %15617 = vmatprep.mubr.msk.f32.mxu1 %vm2741_vm4, %v20141_v40 }
 0x495   :  { %15618 = vmatmul.mubr.msk.f32.gmra.mrb[6].mxu1 %vm2741_vm4, %v20145_v55 }
 0x496   :  { %15620 = vmatprep.mubr.msk.f32.mxu1 %vm2741_vm4, %v20149_v48 }
 0x499   :  { %15621 = vmatmul.mubr.msk.f32.gmra.mrb[8].mxu1 %vm2741_vm4, %v20153_v8 }
 0x49a   :  { %15623 = vmatprep.mubr.msk.f32.mxu1 %vm2741_vm4, %v19991_v9  ;;  %v13178_v9 = vld [vmem:[%s21755_s3 + $0x70] sm:$0xff] }
 0x49d   :  { %15624 = vmatmul.mubr.msk.f32.gmra.mrb[10].mxu1 %vm2741_vm4, %v19995_v49 }
 0x49e   :  { %15626 = vmatprep.mubr.msk.f32.mxu1 %vm2741_vm4, %v19999_v20 }
 0x4a1   :  { %15627 = vmatmul.mubr.msk.f32.gmra.mrb[12].mxu1 %vm2741_vm4, %v20003_v51 }
 0x4a2   :  { %15629 = vmatprep.mubr.msk.f32.mxu1 %vm2741_vm4, %v20007_v25 }
 0x4a5   :  { %15630 = vmatmul.mubr.msk.f32.gmra.mrb[14].mxu1 %vm2741_vm4, %v20011_v6  ;;  %v20183_v6 = vpack.c.bf16 %v13179_v2, %v13178_v9  ;;  %v21922_v9 = vld [vmem:[#allocation6_spill] sm:$0xff]  ;;  %v20483_v2 = vld [vmem:[#allocation2 + $0xd8] sm:$0xff] }
 0x4a6   :  { %15632 = vmatprep.mubr.msk.f32.mxu1 %vm2741_vm4, %v20015_v47 }
 0x4a9   :  { %15633 = vmatmul.mubr.msk.f32.gmra.mrb[16].mxu1 %vm2741_vm4, %v20171_v23 }
 0x4aa   :  { %15639 = vmatprep.mubr.msk.f32.mxu1 %vm2741_vm4, %v19643_v39 }
 0x4ad   :  { %15640 = vmatmul.mubr.msk.f32.vlgmr.msra.gmra.mrb[18].mxu1 %vm2741_vm4, %v19647_v44  ;;  %v21925_v44 = vld [vmem:[#allocation27_spill] sm:$0xff] }
 0x4ae   :  { %16589 = vmatpush3.bf16.msra.mxu1 %v20027_v37  ;;  %15642 = vmatprep.mubr.msk.f32.mxu1 %vm2741_vm4, %v19651_v26  ;;  %v6981_v26 = vld [vmem:[#allocation2 + $0xf0] sm:$0xff] }
 0x4af   :  { %16591 = vmatprep.subr.bf16.mxu1 %v20183_v6  ;;  %v20479_v37 = vld [vmem:[#allocation2 + $0xd0] sm:$0xff] }
 0x4b1   :  { %15643 = vmatmul.mubr.msk.f32.gmra.mrb[20].mxu1 %vm2741_vm4, %v19655_v46  ;;  %v20450_v46 = vld [vmem:[#allocation2 + $0x300] sm:$0xff] }
 0x4b2   :  { %15645 = vmatprep.mubr.msk.f32.mxu1 %vm2741_vm4, %v19659_v3  ;;  %v20456_v3 = vld [vmem:[#allocation2 + $0x308] sm:$0xff] }
 0x4b5   :  { %15646 = vmatmul.mubr.msk.f32.gmra.mrb[22].mxu1 %vm2741_vm4, %v19663_v34  ;;  %v20462_v34 = vld [vmem:[#allocation2 + $0xb0] sm:$0xff] }
 0x4b6   :  { %15648 = vmatprep.mubr.msk.f32.mxu1 %vm2741_vm4, %v19667_v10  ;;  %v13244_v10 = vld [vmem:[%s21755_s3 + $0x80] sm:$0xff] }
 0x4b9   :  { %15649 = vmatmul.mubr.msk.f32.gmra.mrb[24].mxu1 %vm2741_vm4, %v19671_v53  ;;  %v13245_v53 = vld [vmem:[%s21755_s3 + $0x88] sm:$0xff] }
 0x4ba   :  { %15651 = vmatprep.mubr.msk.f32.mxu1 %vm2741_vm4, %v19675_v58  ;;  %v20322_v39 = vpack.c.bf16 %v13245_v53, %v13244_v10  ;;  %v20575_v10 = vld [vmem:[#allocation2 + $0x1f0] sm:$0xff]  ;;  %v20579_v53 = vld [vmem:[#allocation2 + $0x1f8] sm:$0xff] }
 0x4bd   :  { %15652 = vmatmul.mubr.msk.f32.gmra.mrb[26].mxu1 %vm2741_vm4, %v19679_v50 }
 0x4be   :  { %15654 = vmatprep.mubr.msk.f32.mxu1 %vm2741_vm4, %v19683_v28 }
 0x4c1   :  { %15655 = vmatmul.mubr.msk.f32.gmra.mrb[28].mxu1 %vm2741_vm4, %v19687_v30 }
 0x4c2   :  { %15657 = vmatprep.mubr.msk.f32.mxu1 %vm2741_vm4, %v19691_v41 }
 0x4c5   :  { %15658 = vmatmul.mubr.msk.f32.gmra.mrb[30].mxu1 %vm2741_vm4, %v19695_v35 }
 0x4c6   :  { %15660 = vmatprep.mubr.msk.f32.mxu1 %vm2741_vm4, %v19699_v12  ;;  %v6973_v12 = vld [vmem:[#allocation2 + $0xa0] sm:$0xff] }
 0x4c9   :  { %15661 = vmatmul.mubr.msk.f32.gmra.mrb[32].mxu1 %vm2741_vm4, %v19703_v11  ;;  %v20311_v11 = vld [vmem:[#allocation2 + $0x2c8] sm:$0xff] }
 0x4ca   :  { %15663 = vmatprep.mubr.msk.f32.mxu1 %vm2741_vm4, %v19707_v15 }
 0x4cd   :  { %15664 = vmatmul.mubr.msk.f32.gmra.mrb[34].mxu1 %vm2741_vm4, %v19711_v14 }
 0x4ce   :  { %15666 = vmatprep.mubr.msk.f32.mxu1 %vm2741_vm4, %v19715_v19 }
 0x4d1   :  { %15667 = vmatmul.mubr.msk.f32.gmra.mrb[36].mxu1 %vm2741_vm4, %v19719_v0 }
 0x4d2   :  { %15669 = vmatprep.mubr.msk.f32.mxu1 %vm2741_vm4, %v19723_v21 }
 0x4d5   :  { %15670 = vmatmul.mubr.msk.f32.gmra.mrb[38].mxu1 %vm2741_vm4, %v19727_v4 }
 0x4d6   :  { %15672 = vmatprep.mubr.msk.f32.mxu1 %vm2741_vm4, %v20075_v18 }
 0x4d9   :  { %15673 = vmatmul.mubr.msk.f32.gmra.mrb[40].mxu1 %vm2741_vm4, %v19733_v63  ;;  %v21924_v63 = vld [vmem:[#allocation61_spill] sm:$0xff] }
 0x4da   :  { %15675 = vmatprep.mubr.msk.f32.mxu1 %vm2741_vm4, %v19883_v17 }
 0x4dd   :  { %15676 = vmatmul.mubr.msk.f32.gmra.mrb[42].mxu1 %vm2741_vm4, %v19887_v16 }
 0x4de   :  { %15678 = vmatprep.mubr.msk.f32.mxu1 %vm2741_vm4, %v19891_v45 }
 0x4e1   :  { %15679 = vmatmul.mubr.msk.f32.gmra.mrb[44].mxu1 %vm2741_vm4, %v19895_v42 }
 0x4e2   :  { %15681 = vmatprep.mubr.msk.f32.mxu1 %vm2741_vm4, %v19899_v31 }
 0x4e5   :  { %15682 = vmatmul.mubr.msk.f32.gmra.mrb[46].mxu1 %vm2741_vm4, %v19903_v7 }
 0x4e6   :  { %15684 = vmatprep.mubr.msk.f32.mxu1 %vm2741_vm4, %v20093_v56 }
 0x4e9   :  { %15685 = vmatmul.mubr.msk.f32.gmra.mrb[48].mxu1 %vm2741_vm4, %v19751_v60  ;;  %v21923_v60 = vld [vmem:[#allocation15_spill] sm:$0xff] }
 0x4ea   :  { %15687 = vmatprep.mubr.msk.f32.mxu1 %vm2741_vm4, %v19913_v38 }
 0x4ed   :  { %15688 = vmatmul.mubr.msk.f32.gmra.mrb[50].mxu1 %vm2741_vm4, %v19917_v29 }
 0x4ee   :  { %15690 = vmatprep.mubr.msk.f32.mxu1 %vm2741_vm4, %v19921_v13 }
 0x4f1   :  { %15691 = vmatmul.mubr.msk.f32.gmra.mrb[52].mxu1 %vm2741_vm4, %v19925_v43 }
 0x4f2   :  { %15693 = vmatprep.mubr.msk.f32.mxu1 %vm2741_vm4, %v19929_v32 }
 0x4f5   :  { %15694 = vmatmul.mubr.msk.f32.gmra.mrb[54].mxu1 %vm2741_vm4, %v19765_v1 }
 0x4f6   :  { %15696 = vmatprep.mubr.msk.f32.mxu1 %vm2741_vm4, %v19769_v59  ;;  %v20471_v59 = vld [vmem:[#allocation2 + $0xc0] sm:$0xff] }
 0x4f9   :  { %15697 = vmatmul.mubr.msk.f32.gmra.mrb[56].mxu1 %vm2741_vm4, %v19773_v5  ;;  %v20475_v5 = vld [vmem:[#allocation2 + $0xc8] sm:$0xff] }
 0x4fa   :  { %15699 = vmatprep.mubr.msk.f32.mxu1 %vm2741_vm4, %v19941_v61 }
 0x4fd   :  { %15700 = vmatmul.mubr.msk.f32.gmra.mrb[58].mxu1 %vm2741_vm4, %v19945_v52 }
 0x4fe   :  { %15702 = vmatprep.mubr.msk.f32.mxu1 %vm2741_vm4, %v19949_v24 }
 0x501   :  { %15703 = vmatmul.mubr.msk.f32.gmra.mrb[60].mxu1 %vm2741_vm4, %v19953_v22 }
 0x502   :  { %15705 = vmatprep.mubr.msk.f32.mxu1 %vm2741_vm4, %v19957_v27 }
 0x505   :  { %15706 = vmatmul.mubr.msk.f32.gmra.mrb[62].mxu1 %vm2741_vm4, %v19961_v57 }
 0x506   :  { %15708 = vmatprep.mubr.msk.f32.mxu1 %vm2741_vm4, %v20127_v62 }
 0x509   :  { %15709 = vmatmul.mubr.msk.f32.gmra.mrb[0].mxu1 %vm2741_vm4, %v21922_v9  ;;  %v20562_v9 = vld [vmem:[#allocation2 + $0x1c0] sm:$0xff] }
 0x50a   :  { %15711 = vmatprep.mubr.msk.f32.mxu1 %vm2741_vm4, %v19971_v33 }
 0x50d   :  { %15712 = vmatmul.mubr.msk.f32.gmra.mrb[2].mxu1 %vm2741_vm4, %v19975_v54 }
 0x50e   :  { %15714 = vmatprep.mubr.msk.f32.mxu1 %vm2741_vm4, %v20137_v36 }
 0x511   :  { %15715 = vmatmul.mubr.msk.f32.gmra.mrb[4].mxu1 %vm2741_vm4, %v20141_v40 }
 0x512   :  { %15717 = vmatprep.mubr.msk.f32.mxu1 %vm2741_vm4, %v20145_v55 }
 0x515   :  { %15718 = vmatmul.mubr.msk.f32.gmra.mrb[6].mxu1 %vm2741_vm4, %v20149_v48 }
 0x516   :  { %15720 = vmatprep.mubr.msk.f32.mxu1 %vm2741_vm4, %v20153_v8 }
 0x519   :  { %15721 = vmatmul.mubr.msk.f32.gmra.mrb[8].mxu1 %vm2741_vm4, %v21923_v60  ;;  %v20566_v60 = vld [vmem:[#allocation2 + $0x1c8] sm:$0xff] }
 0x51a   :  { %15723 = vmatprep.mubr.msk.f32.mxu1 %vm2741_vm4, %v19995_v49 }
 0x51d   :  { %15724 = vmatmul.mubr.msk.f32.gmra.mrb[10].mxu1 %vm2741_vm4, %v19999_v20 }
 0x51e   :  { %15726 = vmatprep.mubr.msk.f32.mxu1 %vm2741_vm4, %v20003_v51 }
 0x521   :  { %15727 = vmatmul.mubr.msk.f32.gmra.mrb[12].mxu1 %vm2741_vm4, %v20007_v25 }
 0x522   :  { %15729 = vmatprep.mubr.msk.f32.mxu1 %vm2741_vm4, %v21924_v63 }
 0x525   :  { %15730 = vmatmul.mubr.msk.f32.gmra.mrb[14].mxu1 %vm2741_vm4, %v20015_v47 }
 0x526   :  { %15732 = vmatprep.mubr.msk.f32.mxu1 %vm2741_vm4, %v20171_v23 }
 0x529   :  { %15733 = vmatmul.mubr.msk.f32.gmra.mrb[16].mxu1 %vm2741_vm4, %v20311_v11 }
 0x52a   :  { %15739 = vmatprep.mubr.msk.f32.mxu1 %vm2741_vm4, %v6973_v12  ;;  %v7714_v12 = vld [vmem:[#allocation2 + $0x1e8] sm:$0xff] }
 0x52d   :  { %15740 = vmatmul.mubr.msk.f32.vlgmr.msra.gmra.mrb[18].mxu1 %vm2741_vm4, %v21925_v44 }
 0x52e   :  { %16593 = vmatpush3.bf16.msra.mxu1 %v20183_v6  ;;  %15742 = vmatprep.mubr.msk.f32.mxu1 %vm2741_vm4, %v19675_v58  ;;  %v21926_v6 = vld [vmem:[#allocation54_spill] sm:$0xff]  ;;  %v20434_v58 = vld [vmem:[#allocation2 + $0x2e0] sm:$0xff] }
 0x52f   :  { %16595 = vmatprep.subr.bf16.mxu1 %v20322_v39 }
 0x531   :  { %15743 = vmatmul.mubr.msk.f32.gmra.mrb[20].mxu1 %vm2741_vm4, %v19679_v50  ;;  %v20440_v50 = vld [vmem:[#allocation2 + $0x2e8] sm:$0xff] }
 0x532   :  { %15745 = vmatprep.mubr.msk.f32.mxu1 %vm2741_vm4, %v19683_v28  ;;  %v20442_v28 = vld [vmem:[#allocation2 + $0x2f0] sm:$0xff] }
 0x535   :  { %15746 = vmatmul.mubr.msk.f32.gmra.mrb[22].mxu1 %vm2741_vm4, %v19687_v30  ;;  %v21932_v30 = vld [vmem:[#allocation60_spill] sm:$0xff] }
 0x536   :  { %15748 = vmatprep.mubr.msk.f32.mxu1 %vm2741_vm4, %v19691_v41  ;;  %v21927_v41 = vld [vmem:[#allocation55_spill] sm:$0xff] }
 0x539   :  { %15749 = vmatmul.mubr.msk.f32.gmra.mrb[24].mxu1 %vm2741_vm4, %v19695_v35  ;;  %v6989_v35 = vld [vmem:[#allocation2 + $0x140] sm:$0xff] }
 0x53a   :  { %15751 = vmatprep.mubr.msk.f32.mxu1 %vm2741_vm4, %v6981_v26  ;;  %v20591_v26 = vld [vmem:[#allocation2 + $0x210] sm:$0xff] }
 0x53d   :  { %15752 = vmatmul.mubr.msk.f32.gmra.mrb[26].mxu1 %vm2741_vm4, %v21926_v6  ;;  %v20595_v6 = vld [vmem:[#allocation2 + $0x218] sm:$0xff] }
 0x53e   :  { %15754 = vmatprep.mubr.msk.f32.mxu1 %vm2741_vm4, %v19707_v15  ;;  %v21930_v15 = vld [vmem:[#allocation58_spill] sm:$0xff] }
 0x541   :  { %15755 = vmatmul.mubr.msk.f32.gmra.mrb[28].mxu1 %vm2741_vm4, %v19711_v14  ;;  %v7013_v14 = vld [vmem:[#allocation2 + $0x230] sm:$0xff] }
 0x542   :  { %15757 = vmatprep.mubr.msk.f32.mxu1 %vm2741_vm4, %v19715_v19  ;;  %v21929_v19 = vld [vmem:[#allocation57_spill] sm:$0xff] }
 0x545   :  { %15758 = vmatmul.mubr.msk.f32.gmra.mrb[30].mxu1 %vm2741_vm4, %v19719_v0  ;;  %v7005_v0 = vld [vmem:[#allocation2 + $0x1e0] sm:$0xff] }
 0x546   :  { %15760 = vmatprep.mubr.msk.f32.mxu1 %vm2741_vm4, %v19723_v21  ;;  %v21928_v21 = vld [vmem:[#allocation56_spill] sm:$0xff] }
 0x549   :  { %15761 = vmatmul.mubr.msk.f32.gmra.mrb[32].mxu1 %vm2741_vm4, %v19727_v4  ;;  %v6997_v4 = vld [vmem:[#allocation2 + $0x190] sm:$0xff] }
 0x54a   :  { %15763 = vmatprep.mubr.msk.f32.mxu1 %vm2741_vm4, %v6989_v35  ;;  %v7722_v35 = vld [vmem:[#allocation2 + $0x238] sm:$0xff] }
 0x54d   :  { %15764 = vmatmul.mubr.msk.f32.gmra.mrb[34].mxu1 %vm2741_vm4, %v21927_v41  ;;  %v20602_v41 = vld [vmem:[#allocation2 + $0x240] sm:$0xff] }
 0x54e   :  { %15766 = vmatprep.mubr.msk.f32.mxu1 %vm2741_vm4, %v19883_v17  ;;  %v20487_v17 = vld [vmem:[#allocation2 + $0xe0] sm:$0xff] }
 0x551   :  { %15767 = vmatmul.mubr.msk.f32.gmra.mrb[36].mxu1 %vm2741_vm4, %v19887_v16  ;;  %v7690_v16 = vld [vmem:[#allocation2 + $0xf8] sm:$0xff] }
 0x552   :  { %15769 = vmatprep.mubr.msk.f32.mxu1 %vm2741_vm4, %v19891_v45  ;;  %v20492_v45 = vld [vmem:[#allocation2 + $0x100] sm:$0xff] }
 0x555   :  { %15770 = vmatmul.mubr.msk.f32.gmra.mrb[38].mxu1 %vm2741_vm4, %v19895_v42  ;;  %v20496_v42 = vld [vmem:[#allocation2 + $0x108] sm:$0xff] }
 0x556   :  { %15772 = vmatprep.mubr.msk.f32.mxu1 %vm2741_vm4, %v19899_v31  ;;  %v20500_v31 = vld [vmem:[#allocation2 + $0x110] sm:$0xff] }
 0x559   :  { %15773 = vmatmul.mubr.msk.f32.gmra.mrb[40].mxu1 %vm2741_vm4, %v19903_v7  ;;  %v20504_v7 = vld [vmem:[#allocation2 + $0x118] sm:$0xff] }
 0x55a   :  { %15775 = vmatprep.mubr.msk.f32.mxu1 %vm2741_vm4, %v6997_v4  ;;  %v20606_v4 = vld [vmem:[#allocation2 + $0x248] sm:$0xff] }
 0x55d   :  { %15776 = vmatmul.mubr.msk.f32.gmra.mrb[42].mxu1 %vm2741_vm4, %v21928_v21  ;;  %v7730_v21 = vld [vmem:[#allocation2 + $0x288] sm:$0xff] }
 0x55e   :  { %15778 = vmatprep.mubr.msk.f32.mxu1 %vm2741_vm4, %v19913_v38  ;;  %v20508_v38 = vld [vmem:[#allocation2 + $0x120] sm:$0xff] }
 0x561   :  { %15779 = vmatmul.mubr.msk.f32.gmra.mrb[44].mxu1 %vm2741_vm4, %v19917_v29  ;;  %v20512_v29 = vld [vmem:[#allocation2 + $0x128] sm:$0xff] }
 0x562   :  { %15781 = vmatprep.mubr.msk.f32.mxu1 %vm2741_vm4, %v19921_v13  ;;  %v7698_v13 = vld [vmem:[#allocation2 + $0x148] sm:$0xff] }
 0x565   :  { %15782 = vmatmul.mubr.msk.f32.gmra.mrb[46].mxu1 %vm2741_vm4, %v19925_v43  ;;  %v20519_v43 = vld [vmem:[#allocation2 + $0x150] sm:$0xff] }
 0x566   :  { %15784 = vmatprep.mubr.msk.f32.mxu1 %vm2741_vm4, %v19929_v32  ;;  %v20523_v32 = vld [vmem:[#allocation2 + $0x158] sm:$0xff] }
 0x569   :  { %15785 = vmatmul.mubr.msk.f32.gmra.mrb[48].mxu1 %vm2741_vm4, %v19765_v1  ;;  %v20466_v1 = vld [vmem:[#allocation2 + $0xb8] sm:$0xff] }
 0x56a   :  { %15787 = vmatprep.mubr.msk.f32.mxu1 %vm2741_vm4, %v7005_v0  ;;  %v20621_v0 = vld [vmem:[#allocation2 + $0x290] sm:$0xff] }
 0x56d   :  { %15788 = vmatmul.mubr.msk.f32.gmra.mrb[50].mxu1 %vm2741_vm4, %v21929_v19  ;;  %v20625_v19 = vld [vmem:[#allocation2 + $0x298] sm:$0xff] }
 0x56e   :  { %15790 = vmatprep.mubr.msk.f32.mxu1 %vm2741_vm4, %v19941_v61  ;;  %v20527_v61 = vld [vmem:[#allocation2 + $0x160] sm:$0xff] }
 0x571   :  { %15791 = vmatmul.mubr.msk.f32.gmra.mrb[52].mxu1 %vm2741_vm4, %v19945_v52  ;;  %v20531_v52 = vld [vmem:[#allocation2 + $0x168] sm:$0xff] }
 0x572   :  { %15793 = vmatprep.mubr.msk.f32.mxu1 %vm2741_vm4, %v19949_v24  ;;  %v20535_v24 = vld [vmem:[#allocation2 + $0x170] sm:$0xff] }
 0x575   :  { %15794 = vmatmul.mubr.msk.f32.gmra.mrb[54].mxu1 %vm2741_vm4, %v19953_v22  ;;  %v20539_v22 = vld [vmem:[#allocation2 + $0x178] sm:$0xff] }
 0x576   :  { %15796 = vmatprep.mubr.msk.f32.mxu1 %vm2741_vm4, %v19957_v27  ;;  %v7706_v27 = vld [vmem:[#allocation2 + $0x198] sm:$0xff] }
 0x579   :  { %15797 = vmatmul.mubr.msk.f32.gmra.mrb[56].mxu1 %vm2741_vm4, %v19961_v57  ;;  %v21931_v57 = vld [vmem:[#allocation59_spill] sm:$0xff] }
 0x57a   :  { %15799 = vmatprep.mubr.msk.f32.mxu1 %vm2741_vm4, %v7013_v14  ;;  %v20629_v14 = vld [vmem:[#allocation2 + $0x2a0] sm:$0xff] }
 0x57d   :  { %15800 = vmatmul.mubr.msk.f32.gmra.mrb[58].mxu1 %vm2741_vm4, %v21930_v15  ;;  %v20633_v15 = vld [vmem:[#allocation2 + $0x2a8] sm:$0xff] }
 0x57e   :  { %15802 = vmatprep.mubr.msk.f32.mxu1 %vm2741_vm4, %v19971_v33  ;;  %v20432_v33 = vld [vmem:[#allocation2 + $0x2d8] sm:$0xff] }
 0x581   :  { %15803 = vmatmul.mubr.msk.f32.gmra.mrb[60].mxu1 %vm2741_vm4, %v19975_v54  ;;  %v7029_v54 = vld [vmem:[#allocation2 + $0x2d0] sm:$0xff] }
 0x582   :  { %15805 = vmatprep.mubr.msk.f32.mxu1 %vm2741_vm4, %v20137_v36 }
 0x585   :  { %15806 = vmatmul.mubr.msk.f32.gmra.mrb[62].mxu1 %vm2741_vm4, %v20141_v40 }
 0x586   :  { %15808 = vmatprep.mubr.msk.f32.mxu1 %vm2741_vm4, %v20145_v55 }
 0x589   :  { %15809 = vmatmul.mubr.msk.f32.gmra.mrb[0].mxu1 %vm2741_vm4, %v20149_v48 }
 0x58a   :  { %15811 = vmatprep.mubr.msk.f32.mxu1 %vm2741_vm4, %v21931_v57  ;;  %v20637_v57 = vld [vmem:[#allocation2 + $0x2b0] sm:$0xff] }
 0x58d   :  { %15812 = vmatmul.mubr.msk.f32.gmra.mrb[2].mxu1 %vm2741_vm4, %v21932_v30  ;;  %v20641_v30 = vld [vmem:[#allocation2 + $0x2b8] sm:$0xff] }
 0x58e   :  { %15814 = vmatprep.mubr.msk.f32.mxu1 %vm2741_vm4, %v19995_v49  ;;  %v20546_v49 = vld [vmem:[#allocation2 + $0x1a0] sm:$0xff] }
 0x591   :  { %15815 = vmatmul.mubr.msk.f32.gmra.mrb[4].mxu1 %vm2741_vm4, %v19999_v20  ;;  %v20550_v20 = vld [vmem:[#allocation2 + $0x1a8] sm:$0xff] }
 0x592   :  { %15817 = vmatprep.mubr.msk.f32.mxu1 %vm2741_vm4, %v20003_v51  ;;  %v20554_v51 = vld [vmem:[#allocation2 + $0x1b0] sm:$0xff] }
 0x595   :  { %15818 = vmatmul.mubr.msk.f32.gmra.mrb[6].mxu1 %vm2741_vm4, %v20007_v25  ;;  %v20558_v25 = vld [vmem:[#allocation2 + $0x1b8] sm:$0xff] }
 0x596   :  { %15820 = vmatprep.mubr.msk.f32.mxu1 %vm2741_vm4, %v21924_v63  ;;  %v20570_v63 = vld [vmem:[#allocation2 + $0x1d0] sm:$0xff] }
 0x599   :  { %15821 = vmatmul.mubr.msk.f32.gmra.mrb[8].mxu1 %vm2741_vm4, %v20015_v47  ;;  %v20448_v47 = vld [vmem:[#allocation2 + $0x2f8] sm:$0xff] }
 0x59a   :  { %15823 = vmatprep.mubr.msk.f32.mxu1 %vm2741_vm4, %v7029_v54  ;;  %v20661_v54 = vld [vmem:[#allocation2 + $0x310] sm:$0xff] }
 0x59d   :  { %15824 = vmatmul.mubr.msk.f32.gmra.mrb[10].mxu1 %vm2741_vm4, %v20432_v33 }
 0x59e   :  { %15826 = vmatprep.mubr.msk.f32.mxu1 %vm2741_vm4, %v20434_v58 }
 0x5a1   :  { %15827 = vmatmul.mubr.msk.f32.gmra.mrb[12].mxu1 %vm2741_vm4, %v20440_v50 }
 0x5a2   :  { %15829 = vmatprep.mubr.msk.f32.mxu1 %vm2741_vm4, %v20442_v28 }
 0x5a5   :  { %15830 = vmatmul.mubr.msk.f32.gmra.mrb[14].mxu1 %vm2741_vm4, %v20448_v47 }
 0x5a6   :  { %15832 = vmatprep.mubr.msk.f32.mxu1 %vm2741_vm4, %v20450_v46 }
 0x5a9   :  { %15833 = vmatmul.mubr.msk.f32.gmra.mrb[16].mxu1 %vm2741_vm4, %v20456_v3 }
 0x5aa   :  { %15839 = vmatprep.mubr.msk.f32.mxu1 %vm2741_vm4, %v21925_v44  ;;  %v20587_v44 = vld [vmem:[#allocation2 + $0x208] sm:$0xff] }
 0x5ad   :  { %15840 = vmatmul.mubr.msk.f32.vlgmr.msra.gmra.mrb[18].mxu1 %vm2741_vm4, %v20462_v34 }
 0x5ae   :  { %16597 = vmatpush3.bf16.msra.mxu1 %v20322_v39  ;;  %15842 = vmatprep.mubr.msk.f32.mxu1 %vm2741_vm4, %v20466_v1  ;;  %v20583_v39 = vld [vmem:[#allocation2 + $0x200] sm:$0xff] }
 0x5b1   :  { %15843 = vmatmul.mubr.msk.f32.gmra.mrb[20].mxu1 %vm2741_vm4, %v20471_v59 }
 0x5b2   :  { %15845 = vmatprep.mubr.msk.f32.mxu1 %vm2741_vm4, %v20475_v5 }
 0x5b5   :  { %15846 = vmatmul.mubr.msk.f32.gmra.mrb[22].mxu1 %vm2741_vm4, %v20479_v37 }
 0x5b6   :  { %15848 = vmatprep.mubr.msk.f32.mxu1 %vm2741_vm4, %v20483_v2 }
 0x5b9   :  { %15849 = vmatmul.mubr.msk.f32.gmra.mrb[24].mxu1 %vm2741_vm4, %v20487_v17 }
 0x5ba   :  { %15851 = vmatprep.mubr.msk.f32.mxu1 %vm2741_vm4, %v7690_v16  ;;  %v13312_v16 = vld [vmem:[%s21756_s5 + $0x28] sm:$0xff] }
 0x5bd   :  { %15852 = vmatmul.mubr.msk.f32.gmra.mrb[26].mxu1 %vm2741_vm4, %v20492_v45 }
 0x5be   :  { %15854 = vmatprep.mubr.msk.f32.mxu1 %vm2741_vm4, %v20496_v42 }
 0x5c1   :  { %15855 = vmatmul.mubr.msk.f32.gmra.mrb[28].mxu1 %vm2741_vm4, %v20500_v31 }
 0x5c2   :  { %15857 = vmatprep.mubr.msk.f32.mxu1 %vm2741_vm4, %v20504_v7 }
 0x5c5   :  { %15858 = vmatmul.mubr.msk.f32.gmra.mrb[30].mxu1 %vm2741_vm4, %v20508_v38 }
 0x5c6   :  { %15860 = vmatprep.mubr.msk.f32.mxu1 %vm2741_vm4, %v20512_v29 }
 0x5c9   :  { %15861 = vmatmul.mubr.msk.f32.gmra.mrb[32].mxu1 %vm2741_vm4, %v20075_v18 }
 0x5ca   :  { %15863 = vmatprep.mubr.msk.f32.mxu1 %vm2741_vm4, %v7698_v13 }
 0x5cd   :  { %15864 = vmatmul.mubr.msk.f32.gmra.mrb[34].mxu1 %vm2741_vm4, %v20519_v43 }
 0x5ce   :  { %15866 = vmatprep.mubr.msk.f32.mxu1 %vm2741_vm4, %v20523_v32 }
 0x5d1   :  { %15867 = vmatmul.mubr.msk.f32.gmra.mrb[36].mxu1 %vm2741_vm4, %v20527_v61 }
 0x5d2   :  { %15869 = vmatprep.mubr.msk.f32.mxu1 %vm2741_vm4, %v20531_v52 }
 0x5d5   :  { %15870 = vmatmul.mubr.msk.f32.gmra.mrb[38].mxu1 %vm2741_vm4, %v20535_v24 }
 0x5d6   :  { %15872 = vmatprep.mubr.msk.f32.mxu1 %vm2741_vm4, %v20539_v22 }
 0x5d9   :  { %15873 = vmatmul.mubr.msk.f32.gmra.mrb[40].mxu1 %vm2741_vm4, %v20093_v56 }
 0x5da   :  { %15875 = vmatprep.mubr.msk.f32.mxu1 %vm2741_vm4, %v7706_v27 }
 0x5dd   :  { %15876 = vmatmul.mubr.msk.f32.gmra.mrb[42].mxu1 %vm2741_vm4, %v20546_v49 }
 0x5de   :  { %15878 = vmatprep.mubr.msk.f32.mxu1 %vm2741_vm4, %v20550_v20 }
 0x5e1   :  { %15879 = vmatmul.mubr.msk.f32.gmra.mrb[44].mxu1 %vm2741_vm4, %v20554_v51 }
 0x5e2   :  { %15881 = vmatprep.mubr.msk.f32.mxu1 %vm2741_vm4, %v20558_v25 }
 0x5e5   :  { %15882 = vmatmul.mubr.msk.f32.gmra.mrb[46].mxu1 %vm2741_vm4, %v20562_v9 }
 0x5e6   :  { %15884 = vmatprep.mubr.msk.f32.mxu1 %vm2741_vm4, %v20566_v60 }
 0x5e9   :  { %15885 = vmatmul.mubr.msk.f32.gmra.mrb[48].mxu1 %vm2741_vm4, %v20570_v63 }
 0x5ea   :  { %15887 = vmatprep.mubr.msk.f32.mxu1 %vm2741_vm4, %v7714_v12  ;;  %v21940_v12 = vld [vmem:[#allocation34_spill] sm:$0xff] }
 0x5ed   :  { %15888 = vmatmul.mubr.msk.f32.gmra.mrb[50].mxu1 %vm2741_vm4, %v20575_v10 }
 0x5ee   :  { %15890 = vmatprep.mubr.msk.f32.mxu1 %vm2741_vm4, %v20579_v53 }
 0x5f1   :  { %15891 = vmatmul.mubr.msk.f32.gmra.mrb[52].mxu1 %vm2741_vm4, %v20583_v39 }
 0x5f2   :  { %15893 = vmatprep.mubr.msk.f32.mxu1 %vm2741_vm4, %v20587_v44 }
 0x5f5   :  { %15894 = vmatmul.mubr.msk.f32.gmra.mrb[54].mxu1 %vm2741_vm4, %v20591_v26 }
 0x5f6   :  { %15896 = vmatprep.mubr.msk.f32.mxu1 %vm2741_vm4, %v20595_v6 }
 0x5f9   :  { %15897 = vmatmul.mubr.msk.f32.gmra.mrb[56].mxu1 %vm2741_vm4, %v20127_v62 }
 0x5fa   :  { %15899 = vmatprep.mubr.msk.f32.mxu1 %vm2741_vm4, %v7722_v35 }
 0x5fd   :  { %15900 = vmatmul.mubr.msk.f32.gmra.mrb[58].mxu1 %vm2741_vm4, %v20602_v41 }
 0x5fe   :  { %15902 = vmatprep.mubr.msk.f32.mxu1 %vm2741_vm4, %v20606_v4 }
 0x601   :  { %15903 = vmatmul.mubr.msk.f32.gmra.mrb[60].mxu1 %vm2741_vm4, %v20137_v36 }
 0x602   :  { %15905 = vmatprep.mubr.msk.f32.mxu1 %vm2741_vm4, %v20141_v40 }
 0x605   :  { %15906 = vmatmul.mubr.msk.f32.gmra.mrb[62].mxu1 %vm2741_vm4, %v20145_v55 }
 0x606   :  { %15908 = vmatprep.mubr.msk.f32.mxu1 %vm2741_vm4, %v20149_v48 }
 0x609   :  { %15909 = vmatmul.mubr.msk.f32.gmra.mrb[0].mxu1 %vm2741_vm4, %v20153_v8 }
 0x60a   :  { %15911 = vmatprep.mubr.msk.f32.mxu1 %vm2741_vm4, %v7730_v21 }
 0x60d   :  { %15912 = vmatmul.mubr.msk.f32.gmra.mrb[2].mxu1 %vm2741_vm4, %v20621_v0 }
 0x60e   :  { %15914 = vmatprep.mubr.msk.f32.mxu1 %vm2741_vm4, %v20625_v19 }
 0x611   :  { %15915 = vmatmul.mubr.msk.f32.gmra.mrb[4].mxu1 %vm2741_vm4, %v20629_v14 }
 0x612   :  { %15917 = vmatprep.mubr.msk.f32.mxu1 %vm2741_vm4, %v20633_v15 }
 0x615   :  { %15918 = vmatmul.mubr.msk.f32.gmra.mrb[6].mxu1 %vm2741_vm4, %v20637_v57 }
 0x616   :  { %15920 = vmatprep.mubr.msk.f32.mxu1 %vm2741_vm4, %v20641_v30 }
 0x619   :  { %15921 = vmatmul.mubr.msk.f32.gmra.mrb[8].mxu1 %vm2741_vm4, %v20171_v23 }
 0x61a   :  { %15923 = vmatprep.mubr.msk.f32.mxu1 %vm2741_vm4, %v20432_v33  ;;  %v13311_v33 = vld [vmem:[%s21756_s5 + $0x20] sm:$0xff] }
 0x61b   :  { %v16598_v13 = vpack.c.bf16 %v13312_v16, %v13311_v33  ;;  %v21945_v16 = vld [vmem:[#allocation38_spill] sm:$0xff] }
 0x61d   :  { %15924 = vmatmul.mubr.msk.f32.gmra.mrb[10].mxu1 %vm2741_vm4, %v20434_v58  ;;  %16599 = vmatprep.subr.bf16.mxu0 %v16598_v13 }
 0x61e   :  { %15926 = vmatprep.mubr.msk.f32.mxu1 %vm2741_vm4, %v20440_v50  ;;  %16601 = vmatpush3.bf16.msra.mxu0 %v16598_v13 }
 0x621   :  { %15927 = vmatmul.mubr.msk.f32.gmra.mrb[12].mxu1 %vm2741_vm4, %v20442_v28 }
 0x622   :  { %15929 = vmatprep.mubr.msk.f32.mxu1 %vm2741_vm4, %v20448_v47 }
 0x625   :  { %15930 = vmatmul.mubr.msk.f32.gmra.mrb[14].mxu1 %vm2741_vm4, %v20450_v46 }
 0x626   :  { %15932 = vmatprep.mubr.msk.f32.mxu1 %vm2741_vm4, %v20456_v3 }
 0x629   :  { %15933 = vmatmul.mubr.msk.f32.gmra.mrb[16].mxu1 %vm2741_vm4, %v20661_v54 }
 0x62a   :  { %15939 = vmatprep.mubr.msk.f32.mxu1 %vm2741_vm4, %v20462_v34  ;;  %v8398_v34 = vld [vmem:[#allocation2 + $0xe8] sm:$0xff] }
 0x62d   :  { %15940 = vmatmul.mubr.msk.f32.vlgmr.msra.gmra.mrb[18].mxu1 %vm2741_vm4, %v20466_v1  ;;  %v8406_v1 = vld [vmem:[#allocation2 + $0x138] sm:$0xff] }
 0x62e   :  { %15942 = vmatprep.mubr.msk.f32.mxu1 %vm2741_vm4, %v20471_v59  ;;  %v8430_v59 = vld [vmem:[#allocation2 + $0x228] sm:$0xff] }
 0x631   :  { %15943 = vmatmul.mubr.msk.f32.gmra.mrb[20].mxu1 %vm2741_vm4, %v20475_v5  ;;  %v9249_v5 = vld [vmem:[%s21756_s5 + $0x18] sm:$0xff] }
 0x632   :  { %15945 = vmatprep.mubr.msk.f32.mxu1 %vm2741_vm4, %v20479_v37 }
 0x635   :  { %15946 = vmatmul.mubr.msk.f32.gmra.mrb[22].mxu1 %vm2741_vm4, %v20483_v2  ;;  %v13347_v2 = vld [vmem:[%s21756_s5 + $0x40] sm:$0xff] }
 0x636   :  { %15948 = vmatprep.mubr.msk.f32.mxu1 %vm2741_vm4, %v20487_v17  ;;  %v13348_v17 = vld [vmem:[%s21756_s5 + $0x48] sm:$0xff] }
 0x639   :  { %15949 = vmatmul.mubr.msk.f32.gmra.mrb[24].mxu1 %vm2741_vm4, %v8398_v34 }
 0x63a   :  { %15951 = vmatprep.mubr.msk.f32.mxu1 %vm2741_vm4, %v20492_v45  ;;  %v20880_v45 = vpack.c.bf16 %v13348_v17, %v13347_v2 }
 0x63d   :  { %15952 = vmatmul.mubr.msk.f32.gmra.mrb[26].mxu1 %vm2741_vm4, %v20496_v42 }
 0x63e   :  { %15954 = vmatprep.mubr.msk.f32.mxu1 %vm2741_vm4, %v20500_v31  ;;  %v21934_v31 = vld [vmem:[#allocation28_spill] sm:$0xff] }
 0x641   :  { %15955 = vmatmul.mubr.msk.f32.gmra.mrb[28].mxu1 %vm2741_vm4, %v20504_v7 }
 0x642   :  { %15957 = vmatprep.mubr.msk.f32.mxu1 %vm2741_vm4, %v20508_v38 }
 0x645   :  { %15958 = vmatmul.mubr.msk.f32.gmra.mrb[30].mxu1 %vm2741_vm4, %v20512_v29  ;;  %v21935_v29 = vld [vmem:[#allocation29_spill] sm:$0xff] }
 0x646   :  { %15960 = vmatprep.mubr.msk.f32.mxu1 %vm2741_vm4, %v20075_v18  ;;  %v8414_v18 = vld [vmem:[#allocation2 + $0x188] sm:$0xff] }
 0x649   :  { %15961 = vmatmul.mubr.msk.f32.gmra.mrb[32].mxu1 %vm2741_vm4, %v8406_v1 }
 0x64a   :  { %15963 = vmatprep.mubr.msk.f32.mxu1 %vm2741_vm4, %v20519_v43 }
 0x64d   :  { %15964 = vmatmul.mubr.msk.f32.gmra.mrb[34].mxu1 %vm2741_vm4, %v20523_v32 }
 0x64e   :  { %15966 = vmatprep.mubr.msk.f32.mxu1 %vm2741_vm4, %v20527_v61  ;;  %v21936_v61 = vld [vmem:[#allocation30_spill] sm:$0xff] }
 0x651   :  { %15967 = vmatmul.mubr.msk.f32.gmra.mrb[36].mxu1 %vm2741_vm4, %v20531_v52 }
 0x652   :  { %15969 = vmatprep.mubr.msk.f32.mxu1 %vm2741_vm4, %v20535_v24 }
 0x655   :  { %15970 = vmatmul.mubr.msk.f32.gmra.mrb[38].mxu1 %vm2741_vm4, %v20539_v22  ;;  %v21937_v22 = vld [vmem:[#allocation31_spill] sm:$0xff] }
 0x656   :  { %15972 = vmatprep.mubr.msk.f32.mxu1 %vm2741_vm4, %v20093_v56  ;;  %v8422_v56 = vld [vmem:[#allocation2 + $0x1d8] sm:$0xff] }
 0x659   :  { %15973 = vmatmul.mubr.msk.f32.gmra.mrb[40].mxu1 %vm2741_vm4, %v8414_v18 }
 0x65a   :  { %15975 = vmatprep.mubr.msk.f32.mxu1 %vm2741_vm4, %v20546_v49 }
 0x65d   :  { %15976 = vmatmul.mubr.msk.f32.gmra.mrb[42].mxu1 %vm2741_vm4, %v20550_v20  ;;  %v21938_v20 = vld [vmem:[#allocation32_spill] sm:$0xff] }
 0x65e   :  { %15978 = vmatprep.mubr.msk.f32.mxu1 %vm2741_vm4, %v20554_v51 }
 0x661   :  { %15979 = vmatmul.mubr.msk.f32.gmra.mrb[44].mxu1 %vm2741_vm4, %v20558_v25 }
 0x662   :  { %15981 = vmatprep.mubr.msk.f32.mxu1 %vm2741_vm4, %v20562_v9  ;;  %v21939_v9 = vld [vmem:[#allocation33_spill] sm:$0xff] }
 0x665   :  { %15982 = vmatmul.mubr.msk.f32.gmra.mrb[46].mxu1 %vm2741_vm4, %v20566_v60 }
 0x666   :  { %15984 = vmatprep.mubr.msk.f32.mxu1 %vm2741_vm4, %v20570_v63 }
 0x669   :  { %15985 = vmatmul.mubr.msk.f32.gmra.mrb[48].mxu1 %vm2741_vm4, %v8422_v56 }
 0x66a   :  { %15987 = vmatprep.mubr.msk.f32.mxu1 %vm2741_vm4, %v20575_v10 }
 0x66d   :  { %15988 = vmatmul.mubr.msk.f32.gmra.mrb[50].mxu1 %vm2741_vm4, %v20579_v53 }
 0x66e   :  { %15990 = vmatprep.mubr.msk.f32.mxu1 %vm2741_vm4, %v20583_v39  ;;  %v21941_v39 = vld [vmem:[#allocation35_spill] sm:$0xff] }
 0x671   :  { %15991 = vmatmul.mubr.msk.f32.gmra.mrb[52].mxu1 %vm2741_vm4, %v20587_v44 }
 0x672   :  { %15993 = vmatprep.mubr.msk.f32.mxu1 %vm2741_vm4, %v20591_v26 }
 0x675   :  { %15994 = vmatmul.mubr.msk.f32.gmra.mrb[54].mxu1 %vm2741_vm4, %v20595_v6  ;;  %v21942_v6 = vld [vmem:[#allocation36_spill] sm:$0xff] }
 0x676   :  { %15996 = vmatprep.mubr.msk.f32.mxu1 %vm2741_vm4, %v20127_v62  ;;  %v8438_v62 = vld [vmem:[#allocation2 + $0x278] sm:$0xff] }
 0x679   :  { %15997 = vmatmul.mubr.msk.f32.gmra.mrb[56].mxu1 %vm2741_vm4, %v8430_v59  ;;  %v21946_v59 = vld [vmem:[#allocation8_spill] sm:$0xff] }
 0x67a   :  { %15999 = vmatprep.mubr.msk.f32.mxu1 %vm2741_vm4, %v20602_v41 }
 0x67d   :  { %16000 = vmatmul.mubr.msk.f32.gmra.mrb[58].mxu1 %vm2741_vm4, %v20606_v4  ;;  %v21943_v4 = vld [vmem:[#allocation37_spill] sm:$0xff] }
 0x67e   :  { %16002 = vmatprep.mubr.msk.f32.mxu1 %vm2741_vm4, %v20137_v36 }
 0x681   :  { %16003 = vmatmul.mubr.msk.f32.gmra.mrb[60].mxu1 %vm2741_vm4, %v20141_v40 }
 0x682   :  { %16005 = vmatprep.mubr.msk.f32.mxu1 %vm2741_vm4, %v20145_v55 }
 0x685   :  { %16006 = vmatmul.mubr.msk.f32.gmra.mrb[62].mxu1 %vm2741_vm4, %v20149_v48  ;;  %v21933_v48 = vmov 0.0  }
 0x686   :  { %16008 = vmatprep.mubr.msk.f32.mxu1 %vm2741_vm4, %v20153_v8  ;;  %9187 = vst.msk [vmem:[#allocation3] sm:$0xff] %vm9186_vm5, %v21933_v48  ;;  %9188 = vst.msk [vmem:[#allocation3 + $0x8] sm:$0xff] %vm9186_vm5, %v21933_v48  ;;  %v13314_v8 = vld [vmem:[%s21756_s5 + $0x38] sm:$0xff] }
 0x687   :  { %9189 = vst.msk [vmem:[#allocation3 + $0x10] sm:$0xff] %vm9186_vm5, %v21933_v48  ;;  %9190 = vst.msk [vmem:[#allocation3 + $0x18] sm:$0xff] %vm9186_vm5, %v21933_v48 }
 0x688   :  { %9191 = vst.msk [vmem:[#allocation3 + $0x20] sm:$0xff] %vm9186_vm5, %v21933_v48  ;;  %9192 = vst.msk [vmem:[#allocation3 + $0x28] sm:$0xff] %vm9186_vm5, %v21933_v48 }
 0x689   :  { %16009 = vmatmul.mubr.msk.f32.gmra.mrb[0].mxu1 %vm2741_vm4, %v8438_v62  ;;  %9194 = vst.msk [vmem:[#allocation3 + $0xf0] sm:$0xff] %vm9186_vm5, %v21933_v48  ;;  %9195 = vst.msk [vmem:[#allocation3 + $0xf8] sm:$0xff] %vm9186_vm5, %v21933_v48 }
 0x68a   :  { %16011 = vmatprep.mubr.msk.f32.mxu1 %vm2741_vm4, %v20621_v0  ;;  %9196 = vst.msk [vmem:[#allocation3 + $0x100] sm:$0xff] %vm9186_vm5, %v21933_v48  ;;  %9197 = vst.msk [vmem:[#allocation3 + $0x108] sm:$0xff] %vm9186_vm5, %v21933_v48 }
 0x68b   :  { %9198 = vst.msk [vmem:[#allocation3 + $0x110] sm:$0xff] %vm9186_vm5, %v21933_v48  ;;  %9199 = vst.msk [vmem:[#allocation3 + $0x118] sm:$0xff] %vm9186_vm5, %v21933_v48 }
 0x68c   :  { %9201 = vst.msk [vmem:[#allocation3 + $0x30] sm:$0xff] %vm9186_vm5, %v21933_v48  ;;  %9202 = vst.msk [vmem:[#allocation3 + $0x60] sm:$0xff] %vm9186_vm5, %v21933_v48 }
 0x68d   :  { %16012 = vmatmul.mubr.msk.f32.gmra.mrb[2].mxu1 %vm2741_vm4, %v20625_v19  ;;  %9203 = vst.msk [vmem:[#allocation3 + $0x90] sm:$0xff] %vm9186_vm5, %v21933_v48  ;;  %9204 = vst.msk [vmem:[#allocation3 + $0xc0] sm:$0xff] %vm9186_vm5, %v21933_v48  ;;  %v20835_v40 = vld [vmem:[#allocation3 + $0x8] sm:$0xff] }
 0x68e   :  { %16014 = vmatprep.mubr.msk.f32.mxu1 %vm2741_vm4, %v20629_v14  ;;  %9208 = vst.msk [vmem:[#allocation3 + $0x58] sm:$0xff] %vm9186_vm5, %v21933_v48  ;;  %9209 = vst.msk [vmem:[#allocation3 + $0x88] sm:$0xff] %vm9186_vm5, %v21933_v48  ;;  %16043 = vmatprep.mubr.msk.f32.mxu0 %vm9186_vm5, %v20835_v40  ;;  %v20841_v36 = vld [vmem:[#allocation3 + $0x10] sm:$0xff] }
 0x68f   :  { %9210 = vst.msk [vmem:[#allocation3 + $0xb8] sm:$0xff] %vm9186_vm5, %v21933_v48  ;;  %9211 = vst.msk [vmem:[#allocation3 + $0xe8] sm:$0xff] %vm9186_vm5, %v21933_v48 }
 0x690   :  { %9200 = vst.msk [vmem:[#allocation3] sm:$0xff] %vm9186_vm5, %v21933_v48  ;;  %9205 = vst.msk [vmem:[#allocation3 + $0xf0] sm:$0xff] %vm9186_vm5, %v21933_v48 }
 0x691   :  { %16015 = vmatmul.mubr.msk.f32.gmra.mrb[4].mxu1 %vm2741_vm4, %v20633_v15  ;;  %9207 = vst.msk [vmem:[#allocation3 + $0x28] sm:$0xff] %vm9186_vm5, %v21933_v48  ;;  %9212 = vst.msk [vmem:[#allocation3 + $0x118] sm:$0xff] %vm9186_vm5, %v21933_v48  ;;  %v20896_v15 = vld [vmem:[%s21757_s4] ss:$0 sm:$0xff] }
 0x692   :  { %16017 = vmatprep.mubr.msk.f32.mxu1 %vm2741_vm4, %v20637_v57  ;;  %v21944_v57 = vld [vmem:[#allocation7_spill] sm:$0xff]  ;;  %11302 = vst.msk [vmem:[#allocation4] sm:$0xff] %vm11301_vm6, %v21933_v48  ;;  %11303 = vst.msk [vmem:[#allocation4 + $0x8] sm:$0xff] %vm11301_vm6, %v21933_v48 }
 0x693   :  { %11304 = vst.msk [vmem:[#allocation4 + $0x10] sm:$0xff] %vm11301_vm6, %v21933_v48  ;;  %11305 = vst.msk [vmem:[#allocation4 + $0x18] sm:$0xff] %vm11301_vm6, %v21933_v48 }
 0x694   :  { %11307 = vst.msk [vmem:[#allocation4 + $0x60] sm:$0xff] %vm11301_vm6, %v21933_v48  ;;  %11308 = vst.msk [vmem:[#allocation4 + $0x68] sm:$0xff] %vm11301_vm6, %v21933_v48 }
 0x695   :  { %16018 = vmatmul.mubr.msk.f32.gmra.mrb[6].mxu1 %vm2741_vm4, %v20641_v30  ;;  %11309 = vst.msk [vmem:[#allocation4 + $0x70] sm:$0xff] %vm11301_vm6, %v21933_v48  ;;  %11310 = vst.msk [vmem:[#allocation4 + $0x78] sm:$0xff] %vm11301_vm6, %v21933_v48 }
 0x696   :  { %16020 = vmatprep.mubr.msk.f32.mxu1 %vm2741_vm4, %v20171_v23  ;;  %v13313_v23 = vld [vmem:[%s21756_s5 + $0x30] sm:$0xff]  ;;  %11312 = vst.msk [vmem:[#allocation4 + $0x20] sm:$0xff] %vm11301_vm6, %v21933_v48  ;;  %11313 = vst.msk [vmem:[#allocation4 + $0x40] sm:$0xff] %vm11301_vm6, %v21933_v48 }
 0x697   :  { %v16602_v55 = vpack.c.bf16 %v13314_v8, %v13313_v23  ;;  %11317 = vst.msk [vmem:[#allocation4 + $0x38] sm:$0xff] %vm11301_vm6, %v21933_v48  ;;  %11318 = vst.msk [vmem:[#allocation4 + $0x58] sm:$0xff] %vm11301_vm6, %v21933_v48 }
 0x698   :  { %11311 = vst.msk [vmem:[#allocation4] sm:$0xff] %vm11301_vm6, %v21933_v48  ;;  %11314 = vst.msk [vmem:[#allocation4 + $0x60] sm:$0xff] %vm11301_vm6, %v21933_v48 }
 0x699   :  { %16021 = vmatmul.mubr.msk.f32.gmra.mrb[8].mxu1 %vm2741_vm4, %v20311_v11  ;;  %16603 = vmatprep.subr.bf16.mxu0 %v16602_v55  ;;  %v20847_v11 = vld [vmem:[#allocation3 + $0x18] sm:$0xff]  ;;  %11316 = vst.msk [vmem:[#allocation4 + $0x18] sm:$0xff] %vm11301_vm6, %v21933_v48  ;;  %11319 = vst.msk [vmem:[#allocation4 + $0x78] sm:$0xff] %vm11301_vm6, %v21933_v48 }
 0x69a   :  { %16023 = vmatprep.mubr.msk.f32.mxu1 %vm2741_vm4, %v20434_v58  ;;  %16605 = vmatpush3.bf16.msra.mxu0 %v16602_v55  ;;  %v20853_v58 = vld [vmem:[#allocation3 + $0x20] sm:$0xff] }
 0x69d   :  { %16024 = vmatmul.mubr.msk.f32.gmra.mrb[10].mxu1 %vm2741_vm4, %v20440_v50  ;;  %16044 = vmatmul.mubr.msk.f32.vlgmr.msra.gmra.mrb[46].mxu0 %vm9186_vm5, %v20841_v36  ;;  %v8454_v50 = vld [vmem:[#allocation2 + $0x318] sm:$0xff] }
 0x69e   :  { %16026 = vmatprep.mubr.msk.f32.mxu1 %vm2741_vm4, %v20442_v28  ;;  %16046 = vmatprep.mubr.msk.f32.mxu0 %vm9186_vm5, %v20847_v11  ;;  %v9246_v28 = vld [vmem:[%s21756_s5] sm:$0xff] }
 0x6a1   :  { %16027 = vmatmul.mubr.msk.f32.gmra.mrb[12].mxu1 %vm2741_vm4, %v20448_v47  ;;  %16047 = vmatmul.mubr.msk.f32.gmra.mrb[48].mxu0 %vm9186_vm5, %v20853_v58  ;;  %v9247_v47 = vld [vmem:[%s21756_s5 + $0x8] sm:$0xff] }
 0x6a2   :  { %16029 = vmatprep.mubr.msk.f32.mxu1 %vm2741_vm4, %v20450_v46  ;;  %v16606_v46 = vpack.c.bf16 %v9247_v47, %v9246_v28 }
 0x6a4   :  { %16607 = vmatprep.subr.bf16.mxu0 %v16606_v46 }
 0x6a5   :  { %16030 = vmatmul.mubr.msk.f32.gmra.mrb[14].mxu1 %vm2741_vm4, %v20456_v3  ;;  %16609 = vmatpush3.bf16.msra.mxu0 %v16606_v46  ;;  %v9248_v3 = vld [vmem:[%s21756_s5 + $0x10] sm:$0xff] }
 0x6a6   :  { %16032 = vmatprep.mubr.msk.f32.mxu1 %vm2741_vm4, %v20661_v54  ;;  %v16610_v37 = vpack.c.bf16 %v9249_v5, %v9248_v3 }
 0x6a8   :  { %16611 = vmatprep.subr.bf16.mxu0 %v16610_v37 }
 0x6a9   :  { %16033 = vmatmul.mubr.msk.f32.gmra.mrb[16].mxu1 %vm2741_vm4, %v8454_v50  ;;  %16613 = vmatpush3.bf16.msra.mxu0 %v16610_v37  ;;  %v21947_v50 = vld [vmem:[#allocation9_spill] sm:$0xff]  ;;  %v21948_v37 = vld [vmem:[#allocation10_spill] sm:$0xff] }
 0x6aa   :  { %16615 = vmatprep.subr.bf16.mxu0 %v20880_v45 }
 0x700   :  { %v15941_v42 = vpop.f32.mrb[18].mxu1 }
 0x701   :  { %v16840_v7 = vadd.f32 %v15941_v42, %v21934_v31  ;;  %v8716_v38 = vpop.f32.mrb[19].mxu1 }
 0x702   :  { %v16841_v43 = vadd.f32 %v8716_v38, %v21935_v29 }
 0x704   :  { %v15944_v32 = vpop.f32.mrb[20].mxu1 }
 0x705   :  { %v16842_v52 = vadd.f32 %v15944_v32, %v21936_v61  ;;  %v8726_v24 = vpop.f32.mrb[21].mxu1 }
 0x706   :  { %v16843_v27 = vadd.f32 %v8726_v24, %v21937_v22 }
 0x708   :  { %v15947_v49 = vpop.f32.mrb[22].mxu1 }
 0x709   :  { %v16844_v51 = vadd.f32 %v15947_v49, %v21938_v20  ;;  %v8736_v25 = vpop.f32.mrb[23].mxu1  ;;  %v21951_v20 = vld [vmem:[#allocation39_spill] sm:$0xff] }
 0x70a   :  { %v16845_v60 = vadd.f32 %v8736_v25, %v21939_v9 }
 0x70c   :  { %v15950_v63 = vpop.f32.mrb[24].mxu1 }
 0x70d   :  { %v16846_v10 = vadd.f32 %v15950_v63, %v21940_v12  ;;  %v8746_v53 = vpop.f32.mrb[25].mxu1  ;;  %v21952_v63 = vld [vmem:[#allocation16_spill] sm:$0xff] }
 0x70e   :  { %v16847_v44 = vadd.f32 %v8746_v53, %v21941_v39  ;;  %v21953_v39 = vld [vmem:[#allocation18_spill] sm:$0xff] }
 0x710   :  { %v15953_v26 = vpop.f32.mrb[26].mxu1 }
 0x711   :  { %v16848_v35 = vadd.f32 %v15953_v26, %v21942_v6  ;;  %v8756_v41 = vpop.f32.mrb[27].mxu1 }
 0x712   :  { %v16849_v21 = vadd.f32 %v8756_v41, %v21943_v4 }
 0x713   :  { %v9100_v0 = vmax.f32 %v16840_v7, %v16848_v35  ;;  %v21949_v7 = vld [vmem:[#allocation12_spill] sm:$0xff]  ;;  %v21954_v35 = vld [vmem:[#allocation19_spill] sm:$0xff] }
 0x714   :  { %v9099_v19 = vmax.f32 %v16841_v43, %v16849_v21  ;;  %v15956_v14 = vpop.f32.mrb[28].mxu1  ;;  %v21955_v21 = vld [vmem:[#allocation21_spill] sm:$0xff] }
 0x715   :  { %v16850_v30 = vadd.f32 %v15956_v14, %v21944_v57  ;;  %v8766_v54 = vpop.f32.mrb[29].mxu1  ;;  %v21956_v57 = vld [vmem:[#allocation22_spill] sm:$0xff] }
 0x716   :  { %v9131_v33 = vmax.f32 %v9099_v19, %v9100_v0  ;;  %v16851_v13 = vadd.f32 %v8766_v54, %v21945_v16 }
 0x717   :  { %v9102_v34 = vmax.f32 %v16842_v52, %v16850_v30  ;;  %v21950_v52 = vld [vmem:[#allocation13_spill] sm:$0xff] }
 0x718   :  { %v9154_v1 = vadd.f32 %v20896_v15, %v9131_v33  ;;  %v9101_v18 = vmax.f32 %v16843_v27, %v16851_v13  ;;  %v15959_v56 = vpop.f32.mrb[30].mxu1  ;;  %v21957_v33 = vld [vmem:[#allocation24_spill] sm:$0xff] }
 0x719   :  { %v16852_v62 = vadd.f32 %v15959_v56, %v21946_v59  ;;  %v8776_v23 = vpop.f32.mrb[31].mxu1  ;;  %v21959_v59 = vld [vmem:[#allocation40_spill] sm:$0xff] }
 0x71a   :  { %v9170_v8 = vmax.f32 %v9154_v1, 0.0  ;;  %v9132_v55 = vmax.f32 %v9101_v18, %v9102_v34  ;;  %v16853_v28 = vadd.f32 %v8776_v23, %v21947_v50  ;;  %v21958_v1 = vld [vmem:[#allocation5_spill] sm:$0xff]  ;;  %v21960_v50 = vld [vmem:[#allocation11_spill] sm:$0xff] }
 0x71b   :  { %v9104_v47 = vmax.f32 %v16844_v51, %v16852_v62 }
 0x71c   :  { %9214 = vst.msk [vmem:[#allocation3 + $0x38] sm:$0xff] %vm9186_vm5, %v9170_v8  ;;  %v9155_v46 = vadd.f32 %v20896_v15, %v9132_v55  ;;  %v9103_v3 = vmax.f32 %v16845_v60, %v16853_v28  ;;  %v15962_v5 = vpop.f32.mrb[32].mxu1 }
 0x71d   :  { %v16854_v2 = vadd.f32 %v15962_v5, %v21948_v37  ;;  %v8786_v17 = vpop.f32.mrb[33].mxu1 }
 0x71e   :  { %v9171_v42 = vmax.f32 %v9155_v46, 0.0  ;;  %v9133_v31 = vmax.f32 %v9103_v3, %v9104_v47  ;;  %v16855_v38 = vadd.f32 %v8786_v17, %v21949_v7  ;;  %v21961_v3 = vld [vmem:[#allocation14_spill] sm:$0xff] }
 0x71f   :  { %v9106_v29 = vmax.f32 %v16846_v10, %v16854_v2 }
 0x720   :  { %9215 = vst.msk [vmem:[#allocation3 + $0x40] sm:$0xff] %vm9186_vm5, %v9171_v42  ;;  %v9156_v43 = vadd.f32 %v20896_v15, %v9133_v31  ;;  %v9105_v32 = vmax.f32 %v16847_v44, %v16855_v38  ;;  %v15965_v61 = vpop.f32.mrb[34].mxu1  ;;  %v21962_v31 = vld [vmem:[#allocation17_spill] sm:$0xff] }
 0x721   :  { %v16856_v24 = vadd.f32 %v15965_v61, %v21950_v52  ;;  %v8796_v22 = vpop.f32.mrb[35].mxu1 }
 0x722   :  { %v9172_v27 = vmax.f32 %v9156_v43, 0.0  ;;  %v9134_v49 = vmax.f32 %v9105_v32, %v9106_v29  ;;  %v16857_v51 = vadd.f32 %v8796_v22, %v21951_v20  ;;  %v21963_v32 = vld [vmem:[#allocation20_spill] sm:$0xff] }
 0x723   :  { %v20911_v25 = vld [vmem:[#allocation3 + $0x38] sm:$0xff] }
 0x724   :  { %9216 = vst.msk [vmem:[#allocation3 + $0x48] sm:$0xff] %vm9186_vm5, %v9172_v27  ;;  %v9157_v9 = vadd.f32 %v20896_v15, %v9134_v49  ;;  %v15968_v60 = vpop.f32.mrb[36].mxu1  ;;  %16049 = vmatprep.mubr.msk.f32.mxu0 %vm9186_vm5, %v20911_v25  ;;  %v21964_v49 = vld [vmem:[#allocation23_spill] sm:$0xff] }
 0x725   :  { %v16858_v12 = vadd.f32 %v15968_v60, %v21952_v63  ;;  %v8806_v10 = vpop.f32.mrb[37].mxu1  ;;  %v21965_v63 = vld [vmem:[#allocation25_spill] sm:$0xff] }
 0x726   :  { %v9173_v53 = vmax.f32 %v9157_v9, 0.0  ;;  %v16859_v44 = vadd.f32 %v8806_v10, %v21953_v39 }
 0x727   :  { %v20919_v26 = vld [vmem:[#allocation3 + $0x40] sm:$0xff] }
 0x728   :  { %9217 = vst.msk [vmem:[#allocation3 + $0x50] sm:$0xff] %vm9186_vm5, %v9173_v53  ;;  %v15971_v6 = vpop.f32.mrb[38].mxu1  ;;  %16050 = vmatmul.mubr.msk.f32.gmra.mrb[50].mxu0 %vm9186_vm5, %v20919_v26 }
 0x729   :  { %v16860_v41 = vadd.f32 %v15971_v6, %v21954_v35  ;;  %v8816_v4 = vpop.f32.mrb[39].mxu1  ;;  %v21966_v6 = vld [vmem:[#allocation26_spill] sm:$0xff] }
 0x72a   :  { %v16861_v0 = vadd.f32 %v8816_v4, %v21955_v21 }
 0x72b   :  { %v20926_v19 = vld [vmem:[#allocation3 + $0x48] sm:$0xff] }
 0x72c   :  { %v15974_v14 = vpop.f32.mrb[40].mxu1  ;;  %16052 = vmatprep.mubr.msk.f32.mxu0 %vm9186_vm5, %v20926_v19 }
 0x72d   :  { %v16862_v30 = vadd.f32 %v15974_v14, %v21956_v57  ;;  %v8826_v54 = vpop.f32.mrb[41].mxu1 }
 0x72e   :  { %v16863_v16 = vadd.f32 %v8826_v54, %v21957_v33  ;;  %v21968_v33 = vld [vmem:[#allocation42_spill] sm:$0xff] }
 0x72f   :  { %v20932_v13 = vld [vmem:[#allocation3 + $0x50] sm:$0xff] }
 0x730   :  { %v15977_v34 = vpop.f32.mrb[42].mxu1  ;;  %16053 = vmatmul.mubr.msk.f32.gmra.mrb[52].mxu0 %vm9186_vm5, %v20932_v13 }
 0x731   :  { %v16864_v18 = vadd.f32 %v15977_v34, %v21958_v1  ;;  %v8836_v56 = vpop.f32.mrb[43].mxu1 }
 0x732   :  { %v16865_v62 = vadd.f32 %v8836_v56, %v21959_v59 }
 0x733   :  { %v9108_v23 = vmax.f32 %v16856_v24, %v16864_v18  ;;  %v21969_v18 = vld [vmem:[#allocation43_spill] sm:$0xff] }
 0x734   :  { %v9107_v8 = vmax.f32 %v16857_v51, %v16865_v62  ;;  %v15980_v55 = vpop.f32.mrb[44].mxu1 }
 0x735   :  { %v16866_v28 = vadd.f32 %v15980_v55, %v21960_v50  ;;  %v8846_v47 = vpop.f32.mrb[45].mxu1  ;;  %v21971_v50 = vld [vmem:[#allocation45_spill] sm:$0xff] }
 0x736   :  { %v9135_v46 = vmax.f32 %v9107_v8, %v9108_v23  ;;  %v16867_v5 = vadd.f32 %v8846_v47, %v21961_v3  ;;  %v21970_v23 = vld [vmem:[#allocation44_spill] sm:$0xff]  ;;  %v21972_v3 = vld [vmem:[#allocation46_spill] sm:$0xff] }
 0x737   :  { %v9110_v37 = vmax.f32 %v16858_v12, %v16866_v28 }
 0x738   :  { %v9158_v2 = vadd.f32 %v20896_v15, %v9135_v46  ;;  %v9109_v17 = vmax.f32 %v16859_v44, %v16867_v5  ;;  %v15983_v42 = vpop.f32.mrb[46].mxu1 }
 0x739   :  { %v16868_v7 = vadd.f32 %v15983_v42, %v21962_v31  ;;  %v8856_v38 = vpop.f32.mrb[47].mxu1 }
 0x73a   :  { %v9174_v29 = vmax.f32 %v9158_v2, 0.0  ;;  %v9136_v43 = vmax.f32 %v9109_v17, %v9110_v37  ;;  %v16869_v61 = vadd.f32 %v8856_v38, %v21963_v32  ;;  %v21973_v2 = vld [vmem:[#allocation47_spill] sm:$0xff] }
 0x73b   :  { %v9112_v52 = vmax.f32 %v16860_v41, %v16868_v7  ;;  %v21974_v7 = vld [vmem:[#allocation48_spill] sm:$0xff] }
 0x73c   :  { %9218 = vst.msk [vmem:[#allocation3 + $0x68] sm:$0xff] %vm9186_vm5, %v9174_v29  ;;  %v9159_v24 = vadd.f32 %v20896_v15, %v9136_v43  ;;  %v9111_v22 = vmax.f32 %v16861_v0, %v16869_v61  ;;  %v15986_v27 = vpop.f32.mrb[48].mxu1  ;;  %v21967_v0 = vld [vmem:[#allocation41_spill] sm:$0xff] }
 0x73d   :  { %v16870_v20 = vadd.f32 %v15986_v27, %v21964_v49  ;;  %v8866_v51 = vpop.f32.mrb[49].mxu1  ;;  %v21975_v43 = vld [vmem:[#allocation49_spill] sm:$0xff] }
 0x73e   :  { %v9175_v9 = vmax.f32 %v9159_v24, 0.0  ;;  %v9137_v60 = vmax.f32 %v9111_v22, %v9112_v52  ;;  %v16871_v12 = vadd.f32 %v8866_v51, %v21965_v63  ;;  %v21976_v22 = vld [vmem:[#allocation50_spill] sm:$0xff]  ;;  %v21977_v51 = vld [vmem:[#allocation51_spill] sm:$0xff] }
 0x73f   :  { %v9114_v10 = vmax.f32 %v16862_v30, %v16870_v20 }
 0x740   :  { %9219 = vst.msk [vmem:[#allocation3 + $0x70] sm:$0xff] %vm9186_vm5, %v9175_v9  ;;  %v9160_v53 = vadd.f32 %v20896_v15, %v9137_v60  ;;  %v9113_v39 = vmax.f32 %v16863_v16, %v16871_v12  ;;  %v15989_v44 = vpop.f32.mrb[50].mxu1 }
 0x741   :  { %v16872_v35 = vadd.f32 %v15989_v44, %v21966_v6  ;;  %v8876_v41 = vpop.f32.mrb[51].mxu1 }
 0x742   :  { %v9176_v4 = vmax.f32 %v9160_v53, 0.0  ;;  %v9138_v21 = vmax.f32 %v9113_v39, %v9114_v10  ;;  %v16873_v14 = vadd.f32 %v8876_v41, %v21967_v0  ;;  %v21978_v53 = vld [vmem:[#allocation52_spill] sm:$0xff] }
 0x743   :  { %v20951_v57 = vld [vmem:[#allocation3 + $0x68] sm:$0xff] }
 0x744   :  { %9220 = vst.msk [vmem:[#allocation3 + $0x78] sm:$0xff] %vm9186_vm5, %v9176_v4  ;;  %v9161_v54 = vadd.f32 %v20896_v15, %v9138_v21  ;;  %v15992_v30 = vpop.f32.mrb[52].mxu1  ;;  %16055 = vmatprep.mubr.msk.f32.mxu0 %vm9186_vm5, %v20951_v57  ;;  %v21979_v4 = vld [vmem:[#allocation53_spill] sm:$0xff] }
 0x745   :  { %v16874_v16 = vadd.f32 %v15992_v30, %v21968_v33  ;;  %v8886_v34 = vpop.f32.mrb[53].mxu1 }
 0x746   :  { %v9177_v1 = vmax.f32 %v9161_v54, 0.0  ;;  %v16875_v56 = vadd.f32 %v8886_v34, %v21969_v18 }
 0x747   :  { %v20959_v59 = vld [vmem:[#allocation3 + $0x70] sm:$0xff] }
 0x748   :  { %9221 = vst.msk [vmem:[#allocation3 + $0x80] sm:$0xff] %vm9186_vm5, %v9177_v1  ;;  %v15995_v62 = vpop.f32.mrb[54].mxu1  ;;  %16056 = vmatmul.mubr.msk.f32.gmra.mrb[54].mxu0 %vm9186_vm5, %v20959_v59 }
 0x749   :  { %v16876_v8 = vadd.f32 %v15995_v62, %v21970_v23  ;;  %v8896_v55 = vpop.f32.mrb[55].mxu1 }
 0x74a   :  { %v16877_v28 = vadd.f32 %v8896_v55, %v21971_v50 }
 0x74b   :  { %v20966_v47 = vld [vmem:[#allocation3 + $0x78] sm:$0xff] }
 0x74c   :  { %v15998_v46 = vpop.f32.mrb[56].mxu1  ;;  %16058 = vmatprep.mubr.msk.f32.mxu0 %vm9186_vm5, %v20966_v47 }
 0x74d   :  { %v16878_v5 = vadd.f32 %v15998_v46, %v21972_v3  ;;  %v8906_v37 = vpop.f32.mrb[57].mxu1 }
 0x74e   :  { %v16879_v17 = vadd.f32 %v8906_v37, %v21973_v2 }
 0x74f   :  { %v20972_v42 = vld [vmem:[#allocation3 + $0x80] sm:$0xff] }
 0x750   :  { %v16001_v31 = vpop.f32.mrb[58].mxu1  ;;  %16059 = vmatmul.mubr.msk.f32.gmra.mrb[56].mxu0 %vm9186_vm5, %v20972_v42 }
 0x751   :  { %v16880_v38 = vadd.f32 %v16001_v31, %v21974_v7  ;;  %v8916_v29 = vpop.f32.mrb[59].mxu1  ;;  %v9230_v7 = vld [vmem:[#allocation3] sm:$0xff] }
 0x752   :  { %v16881_v32 = vadd.f32 %v8916_v29, %v21975_v43  ;;  %v13349_v43 = vld [vmem:[%s21756_s5 + $0x50] sm:$0xff] }
 0x753   :  { %v9116_v61 = vmax.f32 %v16872_v35, %v16880_v38 }
 0x754   :  { %v9115_v52 = vmax.f32 %v16873_v14, %v16881_v32  ;;  %v16004_v24 = vpop.f32.mrb[60].mxu1  ;;  %v13350_v32 = vld [vmem:[%s21756_s5 + $0x58] sm:$0xff] }
 0x755   :  { %v16882_v27 = vadd.f32 %v16004_v24, %v21976_v22  ;;  %v8926_v49 = vpop.f32.mrb[61].mxu1 }
 0x756   :  { %v9139_v20 = vmax.f32 %v9115_v52, %v9116_v61  ;;  %v16883_v9 = vadd.f32 %v8926_v49, %v21977_v51  ;;  %v16618_v52 = vpack.c.bf16 %v13350_v32, %v13349_v43  ;;  %v13368_v49 = vld [vmem:[%s21756_s5 + $0x68] sm:$0xff] }
 0x757   :  { %v9118_v60 = vmax.f32 %v16874_v16, %v16882_v27  ;;  %v13367_v27 = vld [vmem:[%s21756_s5 + $0x60] sm:$0xff]  ;;  %v13408_v43 = vld [vmem:[%s21756_s5 + $0xa8] sm:$0xff] }
 0x758   :  { %v9162_v63 = vadd.f32 %v20896_v15, %v9139_v20  ;;  %v9117_v12 = vmax.f32 %v16875_v56, %v16883_v9  ;;  %v16007_v10 = vpop.f32.mrb[62].mxu1 }
 0x759   :  { %v16884_v39 = vadd.f32 %v16007_v10, %v21978_v53  ;;  %v8936_v44 = vpop.f32.mrb[63].mxu1 }
 0x75a   :  { %v9178_v6 = vmax.f32 %v9162_v63, 0.0  ;;  %v9140_v41 = vmax.f32 %v9117_v12, %v9118_v60  ;;  %v16885_v35 = vadd.f32 %v8936_v44, %v21979_v4  ;;  %v21024_v60 = vld [vmem:[#allocation3 + $0x30] sm:$0xff]  ;;  %v16622_v63 = vpack.c.bf16 %v13368_v49, %v13367_v27  ;;  %v13410_v49 = vld [vmem:[%s21756_s5 + $0xb8] sm:$0xff] }
 0x75b   :  { %v9120_v21 = vmax.f32 %v16876_v8, %v16884_v39  ;;  %v13409_v27 = vld [vmem:[%s21756_s5 + $0xb0] sm:$0xff] }
 0x75c   :  { %9222 = vst.msk [vmem:[#allocation3 + $0x98] sm:$0xff] %vm9186_vm5, %v9178_v6  ;;  %v9163_v0 = vadd.f32 %v20896_v15, %v9140_v41  ;;  %v9119_v14 = vmax.f32 %v16877_v28, %v16885_v35  ;;  %v16010_v54 = vpop.f32.mrb[0].mxu1 }
 0x75d   :  { %v9122_v30 = vmax.f32 %v16878_v5, %v16010_v54  ;;  %v8946_v33 = vpop.f32.mrb[1].mxu1  ;;  %v21037_v54 = vld [vmem:[#allocation3 + $0x60] sm:$0xff] }
 0x75e   :  { %v9179_v16 = vmax.f32 %v9163_v0, 0.0  ;;  %v9141_v34 = vmax.f32 %v9119_v14, %v9120_v21  ;;  %v9121_v1 = vmax.f32 %v16879_v17, %v8946_v33 }
 0x760   :  { %9223 = vst.msk [vmem:[#allocation3 + $0xa0] sm:$0xff] %vm9186_vm5, %v9179_v16  ;;  %v9164_v18 = vadd.f32 %v20896_v15, %v9141_v34  ;;  %v9142_v56 = vmax.f32 %v9121_v1, %v9122_v30  ;;  %v16013_v62 = vpop.f32.mrb[2].mxu1 }
 0x761   :  { %v8956_v23 = vpop.f32.mrb[3].mxu1 }
 0x762   :  { %v9180_v55 = vmax.f32 %v9164_v18, 0.0  ;;  %v9165_v8 = vadd.f32 %v20896_v15, %v9142_v56 }
 0x763   :  { %v20988_v50 = vld [vmem:[#allocation3 + $0x98] sm:$0xff] }
 0x764   :  { %9224 = vst.msk [vmem:[#allocation3 + $0xa8] sm:$0xff] %vm9186_vm5, %v9180_v55  ;;  %v9181_v28 = vmax.f32 %v9165_v8, 0.0  ;;  %v16016_v46 = vpop.f32.mrb[4].mxu1  ;;  %16061 = vmatprep.mubr.msk.f32.mxu0 %vm9186_vm5, %v20988_v50  ;;  %v13370_v55 = vld [vmem:[%s21756_s5 + $0x78] sm:$0xff] }
 0x765   :  { %v8966_v3 = vpop.f32.mrb[5].mxu1 }
 0x766   :  { %9225 = vst.msk [vmem:[#allocation3 + $0xb0] sm:$0xff] %vm9186_vm5, %v9181_v28  ;;  %v13387_v28 = vld [vmem:[%s21756_s5 + $0x80] sm:$0xff] }
 0x767   :  { %v20994_v5 = vld [vmem:[#allocation3 + $0xa0] sm:$0xff] }
 0x768   :  { %v16019_v37 = vpop.f32.mrb[6].mxu1  ;;  %16062 = vmatmul.mubr.msk.f32.gmra.mrb[58].mxu0 %vm9186_vm5, %v20994_v5 }
 0x769   :  { %v8976_v2 = vpop.f32.mrb[7].mxu1 }
 0x76b   :  { %v20998_v17 = vld [vmem:[#allocation3 + $0xa8] sm:$0xff] }
 0x76c   :  { %v16022_v31 = vpop.f32.mrb[8].mxu1  ;;  %16064 = vmatprep.mubr.msk.f32.mxu0 %vm9186_vm5, %v20998_v17 }
 0x76d   :  { %v8986_v38 = vpop.f32.mrb[9].mxu1  ;;  %v21002_v29 = vld [vmem:[#allocation3 + $0xb0] sm:$0xff] }
 0x76e   :  { %16065 = vmatmul.mubr.msk.f32.gmra.mrb[60].mxu0 %vm9186_vm5, %v21002_v29 }
 0x76f   :  { %16075 = vmatprep.mubr.msk.f32.mxu0 %vm9186_vm5, %v9230_v7 }
 0x770   :  { %v16025_v61 = vpop.f32.mrb[10].mxu1 }
 0x771   :  { %v9124_v24 = vmax.f32 %v16013_v62, %v16025_v61  ;;  %v8996_v22 = vpop.f32.mrb[11].mxu1  ;;  %v21147_v61 = vld [vmem:[#allocation3 + $0xc0] sm:$0xff] }
 0x772   :  { %v9123_v20 = vmax.f32 %v8956_v23, %v8996_v22  ;;  %16076 = vmatmul.mubr.msk.f32.vlgmr.msra.gmra.mrb[46].mxu0 %vm9186_vm5, %v20835_v40  ;;  %v21051_v23 = vld [vmem:[#allocation3 + $0x90] sm:$0xff] }
 0x773   :  { %16617 = vmatpush3.bf16.msra.mxu0 %v20880_v45  ;;  %16078 = vmatprep.mubr.msk.f32.mxu0 %vm9186_vm5, %v20841_v36 }
 0x774   :  { %v9143_v51 = vmax.f32 %v9123_v20, %v9124_v24  ;;  %v16028_v9 = vpop.f32.mrb[12].mxu1  ;;  %16619 = vmatprep.subr.bf16.mxu0 %v16618_v52  ;;  %v16642_v20 = vpack.c.bf16 %v13410_v49, %v13409_v27 }
 0x775   :  { %v9126_v12 = vmax.f32 %v16016_v46, %v16028_v9  ;;  %v9006_v10 = vpop.f32.mrb[13].mxu1  ;;  %v13388_v46 = vld [vmem:[%s21756_s5 + $0x88] sm:$0xff] }
 0x776   :  { %v9166_v53 = vadd.f32 %v20896_v15, %v9143_v51  ;;  %v9125_v39 = vmax.f32 %v8966_v3, %v9006_v10  ;;  %16079 = vmatmul.mubr.msk.f32.gmra.mrb[48].mxu0 %vm9186_vm5, %v20847_v11  ;;  %v9662_v3 = vld [vmem:[#allocation3 + $0x28] sm:$0xff]  ;;  %v13427_v51 = vld [vmem:[%s21756_s5 + $0xc0] sm:$0xff] }
 0x777   :  { %16081 = vmatprep.mubr.msk.f32.mxu0 %vm9186_vm5, %v21024_v60  ;;  %16621 = vmatpush3.bf16.msra.mxu0 %v16618_v52  ;;  %v13428_v9 = vld [vmem:[%s21756_s5 + $0xc8] sm:$0xff] }
 0x778   :  { %v9182_v40 = vmax.f32 %v9166_v53, 0.0  ;;  %v9144_v45 = vmax.f32 %v9125_v39, %v9126_v12  ;;  %v16031_v44 = vpop.f32.mrb[14].mxu1  ;;  %16623 = vmatprep.subr.bf16.mxu0 %v16622_v63  ;;  %v13430_v12 = vld [vmem:[%s21756_s5 + $0xd8] sm:$0xff]  ;;  %v13447_v53 = vld [vmem:[%s21756_s5 + $0xe0] sm:$0xff]  ;;  %v13448_v39 = vld [vmem:[%s21756_s5 + $0xe8] sm:$0xff] }
 0x779   :  { %v9128_v6 = vmax.f32 %v16019_v37, %v16031_v44  ;;  %v9016_v41 = vpop.f32.mrb[15].mxu1  ;;  %v16630_v37 = vpack.c.bf16 %v13388_v46, %v13387_v28  ;;  %v13467_v44 = vld [vmem:[%s21756_s5 + $0x100] sm:$0xff]  ;;  %v11331_v28 = vld [vmem:[%s21758_s7 + $0x10] sm:$0xff]  ;;  %v11332_v46 = vld [vmem:[%s21758_s7 + $0x18] sm:$0xff] }
 0x77a   :  { %9226 = vst.msk [vmem:[#allocation3 + $0xc8] sm:$0xff] %vm9186_vm5, %v9182_v40  ;;  %v9167_v4 = vadd.f32 %v20896_v15, %v9144_v45  ;;  %v9127_v35 = vmax.f32 %v8976_v2, %v9016_v41  ;;  %16082 = vmatmul.mubr.msk.f32.gmra.mrb[50].mxu0 %vm9186_vm5, %v20911_v25  ;;  %v13389_v2 = vld [vmem:[%s21756_s5 + $0x90] sm:$0xff]  ;;  %v16654_v40 = vpack.c.bf16 %v13448_v39, %v13447_v53 }
 0x77b   :  { %16084 = vmatprep.mubr.msk.f32.mxu0 %vm9186_vm5, %v20919_v26 }
 0x77c   :  { %v9183_v21 = vmax.f32 %v9167_v4, 0.0  ;;  %v9145_v0 = vmax.f32 %v9127_v35, %v9128_v6  ;;  %v16034_v14 = vpop.f32.mrb[16].mxu1  ;;  %v13468_v6 = vld [vmem:[%s21756_s5 + $0x108] sm:$0xff]  ;;  %v10594_v4 = vld [vmem:[#allocation3 + $0xf0] sm:$0xff]  ;;  %v10595_v35 = vld [vmem:[#allocation3 + $0xf8] sm:$0xff] }
 0x77d   :  { %v9130_v30 = vmax.f32 %v16022_v31, %v16034_v14  ;;  %v9026_v33 = vpop.f32.mrb[17].mxu1  ;;  %v13390_v31 = vld [vmem:[%s21756_s5 + $0x98] sm:$0xff]  ;;  %v16662_v41 = vpack.c.bf16 %v13468_v6, %v13467_v44  ;;  %v13469_v14 = vld [vmem:[%s21756_s5 + $0x110] sm:$0xff] }
 0x77e   :  { %9227 = vst.msk [vmem:[#allocation3 + $0xd0] sm:$0xff] %vm9186_vm5, %v9183_v21  ;;  %v9168_v16 = vadd.f32 %v20896_v15, %v9145_v0  ;;  %v9129_v34 = vmax.f32 %v8986_v38, %v9026_v33  ;;  %16085 = vmatmul.mubr.msk.f32.gmra.mrb[52].mxu0 %vm9186_vm5, %v20926_v19  ;;  %v16634_v7 = vpack.c.bf16 %v13390_v31, %v13389_v2  ;;  %v13407_v38 = vld [vmem:[%s21756_s5 + $0xa0] sm:$0xff]  ;;  %v10597_v0 = vld [vmem:[#allocation3 + $0x108] sm:$0xff]  ;;  %v11336_v2 = vld [vmem:[%s21758_s7 + $0x38] sm:$0xff] }
 0x77f   :  { %16087 = vmatprep.mubr.msk.f32.mxu0 %vm9186_vm5, %v21037_v54  ;;  %v16638_v32 = vpack.c.bf16 %v13408_v43, %v13407_v38  ;;  %v10596_v21 = vld [vmem:[#allocation3 + $0x100] sm:$0xff]  ;;  %v13505_v38 = vld [vmem:[%s21758_s7 + $0x88] sm:$0xff] }
 0x780   :  { %v9184_v1 = vmax.f32 %v9168_v16, 0.0  ;;  %v9146_v18 = vmax.f32 %v9129_v34, %v9130_v30  ;;  %v13488_v33 = vld [vmem:[%s21758_s7 + $0x40] sm:$0xff]  ;;  %v13489_v16 = vld [vmem:[%s21758_s7 + $0x48] sm:$0xff] }
 0x781   :  { %v21153_v52 = vld [vmem:[#allocation3 + $0xc8] sm:$0xff]  ;;  %v16670_v34 = vpack.c.bf16 %v13489_v16, %v13488_v33 }
 0x782   :  { %9228 = vst.msk [vmem:[#allocation3 + $0xd8] sm:$0xff] %vm9186_vm5, %v9184_v1  ;;  %v9169_v56 = vadd.f32 %v20896_v15, %v9146_v18  ;;  %16088 = vmatmul.mubr.msk.f32.gmra.mrb[54].mxu0 %vm9186_vm5, %v20951_v57  ;;  %v13369_v15 = vld [vmem:[%s21756_s5 + $0x70] sm:$0xff]  ;;  %v13491_v1 = vld [vmem:[%s21758_s7 + $0x58] sm:$0xff] }
 0x783   :  { %16090 = vmatprep.mubr.msk.f32.mxu0 %vm9186_vm5, %v20959_v59  ;;  %v16626_v8 = vpack.c.bf16 %v13370_v55, %v13369_v15  ;;  %v21421_v55 = vld [vmem:[#allocation4 + $0x8] sm:$0xff] }
 0x784   :  { %v9185_v62 = vmax.f32 %v9169_v56, 0.0 }
 0x785   :  { %v21157_v24 = vld [vmem:[#allocation3 + $0xd0] sm:$0xff] }
 0x786   :  { %9229 = vst.msk [vmem:[#allocation3 + $0xe0] sm:$0xff] %vm9186_vm5, %v9185_v62  ;;  %16091 = vmatmul.mubr.msk.f32.gmra.mrb[56].mxu0 %vm9186_vm5, %v20966_v47  ;;  %v11329_v62 = vld [vmem:[%s21758_s7] sm:$0xff] }
 0x787   :  { %16093 = vmatprep.mubr.msk.f32.mxu0 %vm9186_vm5, %v21051_v23 }
 0x789   :  { %v21161_v22 = vld [vmem:[#allocation3 + $0xd8] sm:$0xff] }
 0x78a   :  { %16094 = vmatmul.mubr.msk.f32.gmra.mrb[58].mxu0 %vm9186_vm5, %v20988_v50 }
 0x78b   :  { %16096 = vmatprep.mubr.msk.f32.mxu0 %vm9186_vm5, %v20994_v5 }
 0x78e   :  { %16097 = vmatmul.mubr.msk.f32.gmra.mrb[60].mxu0 %vm9186_vm5, %v20998_v17 }
 0x78f   :  { %16107 = vmatprep.mubr.msk.f32.mxu0 %vm9186_vm5, %v20841_v36  ;;  %v21089_v36 = vld [vmem:[#allocation3 + $0x58] sm:$0xff] }
 0x792   :  { %16108 = vmatmul.mubr.msk.f32.vlgmr.msra.gmra.mrb[46].mxu0 %vm9186_vm5, %v20847_v11  ;;  %v21099_v11 = vld [vmem:[#allocation3 + $0x88] sm:$0xff] }
 0x793   :  { %16625 = vmatpush3.bf16.msra.mxu0 %v16622_v63  ;;  %16110 = vmatprep.mubr.msk.f32.mxu0 %vm9186_vm5, %v20853_v58  ;;  %v21109_v58 = vld [vmem:[#allocation3 + $0xb8] sm:$0xff]  ;;  %v13429_v63 = vld [vmem:[%s21756_s5 + $0xd0] sm:$0xff] }
 0x794   :  { %16627 = vmatprep.subr.bf16.mxu0 %v16626_v8  ;;  %v16650_v10 = vpack.c.bf16 %v13430_v12, %v13429_v63 }
 0x796   :  { %16111 = vmatmul.mubr.msk.f32.gmra.mrb[48].mxu0 %vm9186_vm5, %v9662_v3  ;;  %v16690_v3 = vpack.c.bf16 %v11332_v46, %v11331_v28  ;;  %v13516_v28 = vld [vmem:[%s21758_s7 + $0xc0] sm:$0xff]  ;;  %v13517_v46 = vld [vmem:[%s21758_s7 + $0xc8] sm:$0xff] }
 0x797   :  { %16113 = vmatprep.mubr.msk.f32.mxu0 %vm9186_vm5, %v20919_v26  ;;  %16629 = vmatpush3.bf16.msra.mxu0 %v16626_v8  ;;  %v21425_v8 = vld [vmem:[#allocation4 + $0x10] sm:$0xff] }
 0x798   :  { %16631 = vmatprep.subr.bf16.mxu0 %v16630_v37 }
 0x79a   :  { %16114 = vmatmul.mubr.msk.f32.gmra.mrb[50].mxu0 %vm9186_vm5, %v20926_v19 }
 0x79b   :  { %16116 = vmatprep.mubr.msk.f32.mxu0 %vm9186_vm5, %v20932_v13 }
 0x79e   :  { %16117 = vmatmul.mubr.msk.f32.gmra.mrb[52].mxu0 %vm9186_vm5, %v21089_v36 }
 0x79f   :  { %16119 = vmatprep.mubr.msk.f32.mxu0 %vm9186_vm5, %v20959_v59 }
 0x7a2   :  { %16120 = vmatmul.mubr.msk.f32.gmra.mrb[54].mxu0 %vm9186_vm5, %v20966_v47 }
 0x7a3   :  { %16122 = vmatprep.mubr.msk.f32.mxu0 %vm9186_vm5, %v20972_v42 }
 0x7a6   :  { %16123 = vmatmul.mubr.msk.f32.gmra.mrb[56].mxu0 %vm9186_vm5, %v21099_v11 }
 0x7a7   :  { %16125 = vmatprep.mubr.msk.f32.mxu0 %vm9186_vm5, %v20994_v5 }
 0x7aa   :  { %16126 = vmatmul.mubr.msk.f32.gmra.mrb[58].mxu0 %vm9186_vm5, %v20998_v17 }
 0x7ab   :  { %16128 = vmatprep.mubr.msk.f32.mxu0 %vm9186_vm5, %v21002_v29 }
 0x7ae   :  { %16129 = vmatmul.mubr.msk.f32.gmra.mrb[60].mxu0 %vm9186_vm5, %v21109_v58 }
 0x7af   :  { %16139 = vmatprep.mubr.msk.f32.mxu0 %vm9186_vm5, %v21024_v60  ;;  %v16646_v60 = vpack.c.bf16 %v13428_v9, %v13427_v51  ;;  %v13487_v51 = vld [vmem:[%s21759_s6] ss:$0 sm:$0xff] }
 0x7b2   :  { %16140 = vmatmul.mubr.msk.f32.vlgmr.msra.gmra.mrb[46].mxu0 %vm9186_vm5, %v20911_v25 }
 0x7b3   :  { %16633 = vmatpush3.bf16.msra.mxu0 %v16630_v37  ;;  %16142 = vmatprep.mubr.msk.f32.mxu0 %vm9186_vm5, %v20919_v26  ;;  %v11333_v37 = vld [vmem:[%s21758_s7 + $0x20] sm:$0xff] }
 0x7b4   :  { %16635 = vmatprep.subr.bf16.mxu0 %v16634_v7 }
 0x7b6   :  { %16143 = vmatmul.mubr.msk.f32.gmra.mrb[48].mxu0 %vm9186_vm5, %v20926_v19 }
 0x7b7   :  { %16145 = vmatprep.mubr.msk.f32.mxu0 %vm9186_vm5, %v21037_v54  ;;  %16637 = vmatpush3.bf16.msra.mxu0 %v16634_v7  ;;  %v13504_v7 = vld [vmem:[%s21758_s7 + $0x80] sm:$0xff] }
 0x7b8   :  { %16639 = vmatprep.subr.bf16.mxu0 %v16638_v32  ;;  %v16702_v43 = vpack.c.bf16 %v13505_v38, %v13504_v7  ;;  %v13522_v38 = vld [vmem:[%s21758_s7 + $0xf0] sm:$0xff] }
 0x7ba   :  { %16146 = vmatmul.mubr.msk.f32.gmra.mrb[50].mxu0 %vm9186_vm5, %v20951_v57 }
 0x7bb   :  { %16148 = vmatprep.mubr.msk.f32.mxu0 %vm9186_vm5, %v20959_v59 }
 0x7be   :  { %16149 = vmatmul.mubr.msk.f32.gmra.mrb[52].mxu0 %vm9186_vm5, %v20966_v47 }
 0x7bf   :  { %16151 = vmatprep.mubr.msk.f32.mxu0 %vm9186_vm5, %v21051_v23 }
 0x7c2   :  { %16152 = vmatmul.mubr.msk.f32.gmra.mrb[54].mxu0 %vm9186_vm5, %v20988_v50 }
 0x7c3   :  { %16154 = vmatprep.mubr.msk.f32.mxu0 %vm9186_vm5, %v20994_v5 }
 0x7c6   :  { %16155 = vmatmul.mubr.msk.f32.gmra.mrb[56].mxu0 %vm9186_vm5, %v20998_v17 }
 0x7c7   :  { %16157 = vmatprep.mubr.msk.f32.mxu0 %vm9186_vm5, %v21147_v61 }
 0x7ca   :  { %16158 = vmatmul.mubr.msk.f32.gmra.mrb[58].mxu0 %vm9186_vm5, %v21153_v52 }
 0x7cb   :  { %16160 = vmatprep.mubr.msk.f32.mxu0 %vm9186_vm5, %v21157_v24 }
 0x7ce   :  { %16161 = vmatmul.mubr.msk.f32.gmra.mrb[60].mxu0 %vm9186_vm5, %v21161_v22 }
 0x7cf   :  { %16171 = vmatprep.mubr.msk.f32.mxu0 %vm9186_vm5, %v20911_v25  ;;  %v21207_v25 = vld [vmem:[#allocation3 + $0xe0] sm:$0xff] }
 0x7d2   :  { %16172 = vmatmul.mubr.msk.f32.vlgmr.msra.gmra.mrb[46].mxu0 %vm9186_vm5, %v20919_v26 }
 0x7d3   :  { %16641 = vmatpush3.bf16.msra.mxu0 %v16638_v32  ;;  %16174 = vmatprep.mubr.msk.f32.mxu0 %vm9186_vm5, %v20926_v19 }
 0x7d4   :  { %16643 = vmatprep.subr.bf16.mxu0 %v16642_v20 }
 0x7d6   :  { %16175 = vmatmul.mubr.msk.f32.gmra.mrb[48].mxu0 %vm9186_vm5, %v20932_v13 }
 0x7d7   :  { %16177 = vmatprep.mubr.msk.f32.mxu0 %vm9186_vm5, %v20951_v57  ;;  %16645 = vmatpush3.bf16.msra.mxu0 %v16642_v20 }
 0x7d8   :  { %16647 = vmatprep.subr.bf16.mxu0 %v16646_v60 }
 0x7da   :  { %16178 = vmatmul.mubr.msk.f32.gmra.mrb[50].mxu0 %vm9186_vm5, %v20959_v59 }
 0x7db   :  { %16180 = vmatprep.mubr.msk.f32.mxu0 %vm9186_vm5, %v20966_v47 }
 0x7de   :  { %16181 = vmatmul.mubr.msk.f32.gmra.mrb[52].mxu0 %vm9186_vm5, %v20972_v42 }
 0x7df   :  { %16183 = vmatprep.mubr.msk.f32.mxu0 %vm9186_vm5, %v20988_v50 }
 0x7e2   :  { %16184 = vmatmul.mubr.msk.f32.gmra.mrb[54].mxu0 %vm9186_vm5, %v20994_v5 }
 0x7e3   :  { %16186 = vmatprep.mubr.msk.f32.mxu0 %vm9186_vm5, %v20998_v17 }
 0x7e6   :  { %16187 = vmatmul.mubr.msk.f32.gmra.mrb[56].mxu0 %vm9186_vm5, %v21002_v29 }
 0x7e7   :  { %16189 = vmatprep.mubr.msk.f32.mxu0 %vm9186_vm5, %v21153_v52 }
 0x7ea   :  { %16190 = vmatmul.mubr.msk.f32.gmra.mrb[58].mxu0 %vm9186_vm5, %v21157_v24 }
 0x7eb   :  { %16192 = vmatprep.mubr.msk.f32.mxu0 %vm9186_vm5, %v21161_v22 }
 0x7ee   :  { %16193 = vmatmul.mubr.msk.f32.gmra.mrb[60].mxu0 %vm9186_vm5, %v21207_v25 }
 0x7ef   :  { %16203 = vmatprep.mubr.msk.f32.mxu0 %vm9186_vm5, %v20919_v26  ;;  %v21253_v26 = vld [vmem:[#allocation3 + $0xe8] sm:$0xff] }
 0x7f2   :  { %16204 = vmatmul.mubr.msk.f32.vlgmr.msra.gmra.mrb[46].mxu0 %vm9186_vm5, %v20926_v19  ;;  %v13449_v19 = vld [vmem:[%s21756_s5 + $0xf0] sm:$0xff] }
 0x7f3   :  { %16649 = vmatpush3.bf16.msra.mxu0 %v16646_v60  ;;  %16206 = vmatprep.mubr.msk.f32.mxu0 %vm9186_vm5, %v20932_v13  ;;  %v13450_v13 = vld [vmem:[%s21756_s5 + $0xf8] sm:$0xff] }
 0x7f4   :  { %16651 = vmatprep.subr.bf16.mxu0 %v16650_v10  ;;  %v16658_v45 = vpack.c.bf16 %v13450_v13, %v13449_v19 }
 0x7f6   :  { %16207 = vmatmul.mubr.msk.f32.gmra.mrb[48].mxu0 %vm9186_vm5, %v21089_v36  ;;  %v11334_v36 = vld [vmem:[%s21758_s7 + $0x28] sm:$0xff] }
 0x7f7   :  { %16209 = vmatprep.mubr.msk.f32.mxu0 %vm9186_vm5, %v20959_v59  ;;  %16653 = vmatpush3.bf16.msra.mxu0 %v16650_v10 }
 0x7f8   :  { %16655 = vmatprep.subr.bf16.mxu0 %v16654_v40 }
 0x7fa   :  { %16210 = vmatmul.mubr.msk.f32.gmra.mrb[50].mxu0 %vm9186_vm5, %v20966_v47 }
 0x7fb   :  { %16212 = vmatprep.mubr.msk.f32.mxu0 %vm9186_vm5, %v20972_v42 }
 0x7fe   :  { %16213 = vmatmul.mubr.msk.f32.gmra.mrb[52].mxu0 %vm9186_vm5, %v21099_v11 }
 0x7ff   :  { %16215 = vmatprep.mubr.msk.f32.mxu0 %vm9186_vm5, %v20994_v5 }
 0x802   :  { %16216 = vmatmul.mubr.msk.f32.gmra.mrb[54].mxu0 %vm9186_vm5, %v20998_v17 }
 0x803   :  { %16218 = vmatprep.mubr.msk.f32.mxu0 %vm9186_vm5, %v21002_v29 }
 0x806   :  { %16219 = vmatmul.mubr.msk.f32.gmra.mrb[56].mxu0 %vm9186_vm5, %v21109_v58 }
 0x807   :  { %16221 = vmatprep.mubr.msk.f32.mxu0 %vm9186_vm5, %v21157_v24 }
 0x80a   :  { %16222 = vmatmul.mubr.msk.f32.gmra.mrb[58].mxu0 %vm9186_vm5, %v21161_v22 }
 0x80b   :  { %16224 = vmatprep.mubr.msk.f32.mxu0 %vm9186_vm5, %v21207_v25 }
 0x80e   :  { %16225 = vmatmul.mubr.msk.f32.gmra.mrb[60].mxu0 %vm9186_vm5, %v21253_v26 }
 0x80f   :  { %16235 = vmatprep.mubr.msk.f32.mxu0 %vm9186_vm5, %v21037_v54  ;;  %v13470_v54 = vld [vmem:[%s21756_s5 + $0x118] sm:$0xff] }
 0x810   :  { %v16666_v30 = vpack.c.bf16 %v13470_v54, %v13469_v14  ;;  %v11325_v54 = vld [vmem:[#allocation4] sm:$0xff] }
 0x812   :  { %16236 = vmatmul.mubr.msk.f32.vlgmr.msra.gmra.mrb[46].mxu0 %vm9186_vm5, %v20951_v57 }
 0x813   :  { %16657 = vmatpush3.bf16.msra.mxu0 %v16654_v40  ;;  %16238 = vmatprep.mubr.msk.f32.mxu0 %vm9186_vm5, %v20959_v59 }
 0x814   :  { %16659 = vmatprep.subr.bf16.mxu0 %v16658_v45 }
 0x816   :  { %16239 = vmatmul.mubr.msk.f32.gmra.mrb[48].mxu0 %vm9186_vm5, %v20966_v47 }
 0x817   :  { %16241 = vmatprep.mubr.msk.f32.mxu0 %vm9186_vm5, %v21051_v23  ;;  %16661 = vmatpush3.bf16.msra.mxu0 %v16658_v45  ;;  %v11330_v23 = vld [vmem:[%s21758_s7 + $0x8] sm:$0xff] }
 0x818   :  { %16663 = vmatprep.subr.bf16.mxu0 %v16662_v41  ;;  %v16686_v15 = vpack.c.bf16 %v11330_v23, %v11329_v62  ;;  %v13510_v23 = vld [vmem:[%s21758_s7 + $0xb0] sm:$0xff] }
 0x81a   :  { %16242 = vmatmul.mubr.msk.f32.gmra.mrb[50].mxu0 %vm9186_vm5, %v20988_v50 }
 0x81b   :  { %16244 = vmatprep.mubr.msk.f32.mxu0 %vm9186_vm5, %v20994_v5 }
 0x81e   :  { %16245 = vmatmul.mubr.msk.f32.gmra.mrb[52].mxu0 %vm9186_vm5, %v20998_v17 }
 0x81f   :  { %16247 = vmatprep.mubr.msk.f32.mxu0 %vm9186_vm5, %v21147_v61 }
 0x822   :  { %16248 = vmatmul.mubr.msk.f32.gmra.mrb[54].mxu0 %vm9186_vm5, %v21153_v52 }
 0x823   :  { %16250 = vmatprep.mubr.msk.f32.mxu0 %vm9186_vm5, %v21157_v24 }
 0x826   :  { %16251 = vmatmul.mubr.msk.f32.gmra.mrb[56].mxu0 %vm9186_vm5, %v21161_v22 }
 0x827   :  { %16253 = vmatprep.mubr.msk.f32.mxu0 %vm9186_vm5, %v10594_v4 }
 0x82a   :  { %16254 = vmatmul.mubr.msk.f32.gmra.mrb[58].mxu0 %vm9186_vm5, %v10595_v35 }
 0x82b   :  { %16256 = vmatprep.mubr.msk.f32.mxu0 %vm9186_vm5, %v10596_v21 }
 0x82e   :  { %16257 = vmatmul.mubr.msk.f32.gmra.mrb[60].mxu0 %vm9186_vm5, %v10597_v0 }
 0x82f   :  { %16267 = vmatprep.mubr.msk.f32.mxu0 %vm9186_vm5, %v20951_v57  ;;  %v10828_v57 = vld [vmem:[#allocation3 + $0x110] sm:$0xff] }
 0x832   :  { %16268 = vmatmul.mubr.msk.f32.vlgmr.msra.gmra.mrb[46].mxu0 %vm9186_vm5, %v20959_v59 }
 0x833   :  { %16665 = vmatpush3.bf16.msra.mxu0 %v16662_v41  ;;  %16270 = vmatprep.mubr.msk.f32.mxu0 %vm9186_vm5, %v20966_v47 }
 0x834   :  { %16667 = vmatprep.subr.bf16.mxu0 %v16666_v30 }
 0x836   :  { %16271 = vmatmul.mubr.msk.f32.gmra.mrb[48].mxu0 %vm9186_vm5, %v20972_v42 }
 0x837   :  { %16273 = vmatprep.mubr.msk.f32.mxu0 %vm9186_vm5, %v20988_v50  ;;  %16669 = vmatpush3.bf16.msra.mxu0 %v16666_v30  ;;  %v13490_v50 = vld [vmem:[%s21758_s7 + $0x50] sm:$0xff] }
 0x838   :  { %16671 = vmatprep.subr.bf16.mxu0 %v16670_v34  ;;  %v16674_v18 = vpack.c.bf16 %v13491_v1, %v13490_v50 }
 0x83a   :  { %16274 = vmatmul.mubr.msk.f32.gmra.mrb[50].mxu0 %vm9186_vm5, %v20994_v5 }
 0x83b   :  { %16276 = vmatprep.mubr.msk.f32.mxu0 %vm9186_vm5, %v20998_v17 }
 0x83e   :  { %16277 = vmatmul.mubr.msk.f32.gmra.mrb[52].mxu0 %vm9186_vm5, %v21002_v29 }
 0x83f   :  { %16279 = vmatprep.mubr.msk.f32.mxu0 %vm9186_vm5, %v21153_v52 }
 0x842   :  { %16280 = vmatmul.mubr.msk.f32.gmra.mrb[54].mxu0 %vm9186_vm5, %v21157_v24 }
 0x843   :  { %16282 = vmatprep.mubr.msk.f32.mxu0 %vm9186_vm5, %v21161_v22 }
 0x846   :  { %16283 = vmatmul.mubr.msk.f32.gmra.mrb[56].mxu0 %vm9186_vm5, %v21207_v25 }
 0x847   :  { %16285 = vmatprep.mubr.msk.f32.mxu0 %vm9186_vm5, %v10595_v35 }
 0x84a   :  { %16286 = vmatmul.mubr.msk.f32.gmra.mrb[58].mxu0 %vm9186_vm5, %v10596_v21 }
 0x84b   :  { %16288 = vmatprep.mubr.msk.f32.mxu0 %vm9186_vm5, %v10597_v0 }
 0x84e   :  { %16289 = vmatmul.mubr.msk.f32.gmra.mrb[60].mxu0 %vm9186_vm5, %v10828_v57 }
 0x84f   :  { %16299 = vmatprep.mubr.msk.f32.mxu0 %vm9186_vm5, %v20959_v59  ;;  %v11059_v59 = vld [vmem:[#allocation3 + $0x118] sm:$0xff] }
 0x852   :  { %16300 = vmatmul.mubr.msk.f32.vlgmr.msra.gmra.mrb[46].mxu0 %vm9186_vm5, %v20966_v47  ;;  %v13492_v47 = vld [vmem:[%s21758_s7 + $0x60] sm:$0xff] }
 0x853   :  { %16302 = vmatprep.mubr.msk.f32.mxu0 %vm9186_vm5, %v20972_v42  ;;  %16673 = vmatpush3.bf16.msra.mxu0 %v16670_v34  ;;  %v13493_v42 = vld [vmem:[%s21758_s7 + $0x68] sm:$0xff]  ;;  %v13506_v34 = vld [vmem:[%s21758_s7 + $0x90] sm:$0xff] }
 0x854   :  { %16675 = vmatprep.subr.bf16.mxu0 %v16674_v18 }
 0x856   :  { %16303 = vmatmul.mubr.msk.f32.gmra.mrb[48].mxu0 %vm9186_vm5, %v21099_v11  ;;  %v16694_v11 = vpack.c.bf16 %v11334_v36, %v11333_v37  ;;  %v13518_v37 = vld [vmem:[%s21758_s7 + $0xd0] sm:$0xff]  ;;  %v11547_v36 = vld [vmem:[#allocation4 + $0x18] sm:$0xff] }
 0x857   :  { %16305 = vmatprep.mubr.msk.f32.mxu0 %vm9186_vm5, %v20994_v5  ;;  %16677 = vmatpush3.bf16.msra.mxu0 %v16674_v18  ;;  %v16678_v5 = vpack.c.bf16 %v13493_v42, %v13492_v47  ;;  %v11327_v47 = vld [vmem:[#allocation4 + $0x20] sm:$0xff] }
 0x859   :  { %16679 = vmatprep.subr.bf16.mxu0 %v16678_v5 }
 0x85a   :  { %16306 = vmatmul.mubr.msk.f32.gmra.mrb[50].mxu0 %vm9186_vm5, %v20998_v17  ;;  %v13494_v17 = vld [vmem:[%s21758_s7 + $0x70] sm:$0xff] }
 0x85b   :  { %16308 = vmatprep.mubr.msk.f32.mxu0 %vm9186_vm5, %v21002_v29  ;;  %16681 = vmatpush3.bf16.msra.mxu0 %v16678_v5  ;;  %v13495_v29 = vld [vmem:[%s21758_s7 + $0x78] sm:$0xff]  ;;  %v13508_v5 = vld [vmem:[%s21758_s7 + $0xa0] sm:$0xff] }
 0x85c   :  { %v16682_v56 = vpack.c.bf16 %v13495_v29, %v13494_v17  ;;  %v13509_v17 = vld [vmem:[%s21758_s7 + $0xa8] sm:$0xff] }
 0x85d   :  { %v16710_v62 = vpack.c.bf16 %v13509_v17, %v13508_v5  ;;  %v13565_v5 = vld [vmem:[%s21758_s7 + $0x1c8] sm:$0xff] }
 0x85e   :  { %16309 = vmatmul.mubr.msk.f32.gmra.mrb[52].mxu0 %vm9186_vm5, %v21109_v58  ;;  %16683 = vmatprep.subr.bf16.mxu0 %v16682_v56  ;;  %v11335_v58 = vld [vmem:[%s21758_s7 + $0x30] sm:$0xff] }
 0x85f   :  { %16311 = vmatprep.mubr.msk.f32.mxu0 %vm9186_vm5, %v21157_v24  ;;  %16685 = vmatpush3.bf16.msra.mxu0 %v16682_v56  ;;  %v16698_v31 = vpack.c.bf16 %v11336_v2, %v11335_v58  ;;  %v13520_v58 = vld [vmem:[%s21758_s7 + $0xe0] sm:$0xff]  ;;  %v13521_v2 = vld [vmem:[%s21758_s7 + $0xe8] sm:$0xff] }
 0x860   :  { %16687 = vmatprep.subr.bf16.mxu0 %v16686_v15  ;;  %v16726_v7 = vpack.c.bf16 %v13521_v2, %v13520_v58  ;;  %v13578_v2 = vld [vmem:[%s21758_s7 + $0x210] sm:$0xff] }
 0x862   :  { %16312 = vmatmul.mubr.msk.f32.gmra.mrb[54].mxu0 %vm9186_vm5, %v21161_v22 }
 0x863   :  { %16314 = vmatprep.mubr.msk.f32.mxu0 %vm9186_vm5, %v21207_v25 }
 0x866   :  { %16315 = vmatmul.mubr.msk.f32.gmra.mrb[56].mxu0 %vm9186_vm5, %v21253_v26 }
 0x867   :  { %16317 = vmatprep.mubr.msk.f32.mxu0 %vm9186_vm5, %v10596_v21 }
 0x86a   :  { %16318 = vmatmul.mubr.msk.f32.gmra.mrb[58].mxu0 %vm9186_vm5, %v10597_v0 }
 0x86b   :  { %16320 = vmatprep.mubr.msk.f32.mxu0 %vm9186_vm5, %v10828_v57  ;;  %v13507_v57 = vld [vmem:[%s21758_s7 + $0x98] sm:$0xff] }
 0x86c   :  { %v16706_v42 = vpack.c.bf16 %v13507_v57, %v13506_v34  ;;  %v13556_v34 = vld [vmem:[%s21758_s7 + $0x1a0] sm:$0xff]  ;;  %v13557_v57 = vld [vmem:[%s21758_s7 + $0x1a8] sm:$0xff] }
 0x86e   :  { %16321 = vmatmul.mubr.msk.f32.gmra.mrb[60].mxu0 %vm9186_vm5, %v11059_v59 }
 0x86f   :  { %16339 = vmatprep.mubr.msk.f32.mxu0 %vm11301_vm6, %v21421_v55 }
 0x872   :  { %16340 = vmatmul.mubr.msk.f32.vlgmr.msra.gmra.mrb[62].mxu0 %vm11301_vm6, %v21425_v8 }
 0x873   :  { %16689 = vmatpush3.bf16.msra.mxu0 %v16686_v15  ;;  %v13511_v15 = vld [vmem:[%s21758_s7 + $0xb8] sm:$0xff] }
 0x874   :  { %16691 = vmatprep.subr.bf16.mxu0 %v16690_v3 }
 0x877   :  { %16693 = vmatpush3.bf16.msra.mxu0 %v16690_v3  ;;  %v16718_v3 = vpack.c.bf16 %v13517_v46, %v13516_v28  ;;  %v12008_v28 = vld [vmem:[#allocation4 + $0x68] sm:$0xff] }
 0x878   :  { %16695 = vmatprep.subr.bf16.mxu0 %v16694_v11 }
 0x87b   :  { %16697 = vmatpush3.bf16.msra.mxu0 %v16694_v11 }
 0x87c   :  { %16699 = vmatprep.subr.bf16.mxu0 %v16698_v31 }
 0x87f   :  { %16701 = vmatpush3.bf16.msra.mxu0 %v16698_v31  ;;  %v21515_v31 = vld [vmem:[#allocation4 + $0x38] sm:$0xff] }
 0x880   :  { %16703 = vmatprep.subr.bf16.mxu0 %v16702_v43 }
 0x925   :  { %v16301_v32 = vpop.f32.mrb[46].mxu0 }
 0x926   :  { %v11179_v61 = vpop.f32.mrb[47].mxu0 }
 0x929   :  { %v16304_v52 = vpop.f32.mrb[48].mxu0 }
 0x92a   :  { %v11189_v24 = vpop.f32.mrb[49].mxu0 }
 0x92d   :  { %v16307_v22 = vpop.f32.mrb[50].mxu0 }
 0x92e   :  { %v11275_v27 = vmax.f32 %v16301_v32, %v16307_v22  ;;  %v11199_v49 = vpop.f32.mrb[51].mxu0  ;;  %v13530_v22 = vld [vmem:[%s21758_s7 + $0x110] sm:$0xff] }
 0x92f   :  { %v11274_v20 = vmax.f32 %v11179_v61, %v11199_v49  ;;  %v13528_v61 = vld [vmem:[%s21758_s7 + $0x100] sm:$0xff] }
 0x930   :  { %v21538_v49 = vld [vmem:[#allocation4 + $0x40] sm:$0xff] }
 0x931   :  { %v11282_v9 = vmax.f32 %v11274_v20, %v11275_v27  ;;  %v16310_v60 = vpop.f32.mrb[52].mxu0  ;;  %v13531_v27 = vld [vmem:[%s21758_s7 + $0x118] sm:$0xff] }
 0x932   :  { %v11277_v25 = vmax.f32 %v16304_v52, %v16310_v60  ;;  %v11209_v63 = vpop.f32.mrb[53].mxu0  ;;  %v13529_v52 = vld [vmem:[%s21758_s7 + $0x108] sm:$0xff]  ;;  %v16738_v20 = vpack.c.bf16 %v13531_v27, %v13530_v22  ;;  %v12361_v27 = vld [vmem:[%s21760_s9] sm:$0xff] }
 0x933   :  { %v11293_v12 = vadd.f32 %v13487_v51, %v11282_v9  ;;  %v11276_v10 = vmax.f32 %v11189_v24, %v11209_v63  ;;  %v16734_v24 = vpack.c.bf16 %v13529_v52, %v13528_v61  ;;  %v13533_v9 = vld [vmem:[%s21758_s7 + $0x128] sm:$0xff]  ;;  %v13534_v63 = vld [vmem:[%s21758_s7 + $0x130] sm:$0xff] }
 0x934   :  { %v13582_v52 = vld [vmem:[%s21758_s7 + $0x230] sm:$0xff] }
 0x935   :  { %v11297_v53 = vmax.f32 %v11293_v12, 0.0  ;;  %v11283_v39 = vmax.f32 %v11276_v10, %v11277_v25  ;;  %v16313_v40 = vpop.f32.mrb[54].mxu0  ;;  %v13535_v12 = vld [vmem:[%s21758_s7 + $0x138] sm:$0xff] }
 0x936   :  { %v11219_v26 = vpop.f32.mrb[55].mxu0  ;;  %v16746_v10 = vpack.c.bf16 %v13535_v12, %v13534_v63  ;;  %v12365_v12 = vld [vmem:[%s21760_s9 + $0x20] sm:$0xff] }
 0x937   :  { %11321 = vst.msk [vmem:[#allocation4 + $0x28] sm:$0xff] %vm11301_vm6, %v11297_v53  ;;  %v11294_v19 = vadd.f32 %v13487_v51, %v11283_v39  ;;  %v13540_v53 = vld [vmem:[%s21758_s7 + $0x140] sm:$0xff]  ;;  %v13541_v39 = vld [vmem:[%s21758_s7 + $0x148] sm:$0xff] }
 0x939   :  { %v11298_v13 = vmax.f32 %v11294_v19, 0.0  ;;  %v16316_v45 = vpop.f32.mrb[56].mxu0  ;;  %v13543_v19 = vld [vmem:[%s21758_s7 + $0x158] sm:$0xff] }
 0x93a   :  { %v11229_v44 = vpop.f32.mrb[57].mxu0 }
 0x93b   :  { %11322 = vst.msk [vmem:[#allocation4 + $0x30] sm:$0xff] %vm11301_vm6, %v11298_v13 }
 0x93d   :  { %v16319_v6 = vpop.f32.mrb[58].mxu0 }
 0x93e   :  { %v11279_v41 = vmax.f32 %v16313_v40, %v16319_v6  ;;  %v11239_v4 = vpop.f32.mrb[59].mxu0  ;;  %v21458_v35 = vld [vmem:[#allocation4 + $0x28] sm:$0xff]  ;;  %v16750_v40 = vpack.c.bf16 %v13541_v39, %v13540_v53  ;;  %v12367_v39 = vld [vmem:[%s21760_s9 + $0x30] sm:$0xff] }
 0x93f   :  { %v11278_v21 = vmax.f32 %v11219_v26, %v11239_v4  ;;  %16342 = vmatprep.mubr.msk.f32.mxu0 %vm11301_vm6, %v21458_v35  ;;  %v13542_v26 = vld [vmem:[%s21758_s7 + $0x150] sm:$0xff] }
 0x940   :  { %v16754_v13 = vpack.c.bf16 %v13543_v19, %v13542_v26  ;;  %v13546_v4 = vld [vmem:[%s21758_s7 + $0x170] sm:$0xff]  ;;  %v12369_v19 = vld [vmem:[%s21760_s9 + $0x40] sm:$0xff] }
 0x941   :  { %v11284_v0 = vmax.f32 %v11278_v21, %v11279_v41  ;;  %v16322_v14 = vpop.f32.mrb[60].mxu0 }
 0x942   :  { %v11281_v30 = vmax.f32 %v16316_v45, %v16322_v14  ;;  %v11249_v33 = vpop.f32.mrb[61].mxu0  ;;  %v21462_v16 = vld [vmem:[#allocation4 + $0x30] sm:$0xff]  ;;  %v13544_v45 = vld [vmem:[%s21758_s7 + $0x160] sm:$0xff]  ;;  %v13553_v14 = vld [vmem:[%s21758_s7 + $0x188] sm:$0xff] }
 0x943   :  { %v11295_v50 = vadd.f32 %v13487_v51, %v11284_v0  ;;  %v11280_v1 = vmax.f32 %v11229_v44, %v11249_v33  ;;  %16343 = vmatmul.mubr.msk.f32.gmra.mrb[64].mxu0 %vm11301_vm6, %v21462_v16  ;;  %v13545_v44 = vld [vmem:[%s21758_s7 + $0x168] sm:$0xff]  ;;  %v13552_v0 = vld [vmem:[%s21758_s7 + $0x180] sm:$0xff]  ;;  %v13555_v33 = vld [vmem:[%s21758_s7 + $0x198] sm:$0xff] }
 0x944   :  { %16361 = vmatprep.mubr.msk.f32.mxu0 %vm11301_vm6, %v11325_v54  ;;  %v16758_v6 = vpack.c.bf16 %v13545_v44, %v13544_v45  ;;  %v16766_v54 = vpack.c.bf16 %v13553_v14, %v13552_v0  ;;  %v12371_v44 = vld [vmem:[%s21760_s9 + $0x50] sm:$0xff]  ;;  %v12376_v14 = vld [vmem:[%s21760_s9 + $0x78] sm:$0xff] }
 0x945   :  { %v11299_v18 = vmax.f32 %v11295_v50, 0.0  ;;  %v11285_v59 = vmax.f32 %v11280_v1, %v11281_v30  ;;  %v13554_v30 = vld [vmem:[%s21758_s7 + $0x190] sm:$0xff]  ;;  %v21618_v50 = vld [vmem:[#allocation4 + $0x58] sm:$0xff]  ;;  %v16774_v1 = vpack.c.bf16 %v13557_v57, %v13556_v34 }
 0x946   :  { %v12375_v0 = vld [vmem:[%s21760_s9 + $0x70] sm:$0xff] }
 0x947   :  { %11323 = vst.msk [vmem:[#allocation4 + $0x48] sm:$0xff] %vm11301_vm6, %v11299_v18  ;;  %v11296_v29 = vadd.f32 %v13487_v51, %v11285_v59  ;;  %16362 = vmatmul.mubr.msk.f32.vlgmr.msra.gmra.mrb[62].mxu0 %vm11301_vm6, %v21421_v55  ;;  %v16714_v55 = vpack.c.bf16 %v13511_v15, %v13510_v23  ;;  %v13532_v51 = vld [vmem:[%s21758_s7 + $0x120] sm:$0xff]  ;;  %v13558_v18 = vld [vmem:[%s21758_s7 + $0x1b0] sm:$0xff]  ;;  %v13559_v59 = vld [vmem:[%s21758_s7 + $0x1b8] sm:$0xff] }
 0x948   :  { %16705 = vmatpush3.bf16.msra.mxu0 %v16702_v43  ;;  %16364 = vmatprep.mubr.msk.f32.mxu0 %vm11301_vm6, %v11327_v47  ;;  %v13523_v43 = vld [vmem:[%s21758_s7 + $0xf8] sm:$0xff]  ;;  %v16742_v60 = vpack.c.bf16 %v13533_v9, %v13532_v51  ;;  %v13568_v15 = vld [vmem:[%s21758_s7 + $0x1e0] sm:$0xff]  ;;  %v17520_v51 = vmov 0.0|0.0   ;;  %v12363_v9 = vld [vmem:[%s21760_s9 + $0x10] sm:$0xff] }
 0x949   :  { %v11300_v56 = vmax.f32 %v11296_v29, 0.0  ;;  %16707 = vmatprep.subr.bf16.mxu0 %v16706_v42  ;;  %v16730_v32 = vpack.c.bf16 %v13523_v43, %v13522_v38  ;;  %v13566_v29 = vld [vmem:[%s21758_s7 + $0x1d0] sm:$0xff]  ;;  %v13580_v38 = vld [vmem:[%s21758_s7 + $0x220] sm:$0xff]  ;;  %v13581_v43 = vld [vmem:[%s21758_s7 + $0x228] sm:$0xff] }
 0x94a   :  { %v16806_v61 = vpack.c.bf16 %v13581_v43, %v13580_v38 }
 0x94b   :  { %11324 = vst.msk [vmem:[#allocation4 + $0x50] sm:$0xff] %vm11301_vm6, %v11300_v56  ;;  %16365 = vmatmul.mubr.msk.f32.gmra.mrb[64].mxu0 %vm11301_vm6, %v21458_v35  ;;  %v13567_v56 = vld [vmem:[%s21758_s7 + $0x1d8] sm:$0xff] }
 0x94c   :  { %16709 = vmatpush3.bf16.msra.mxu0 %v16706_v42  ;;  %16383 = vmatprep.mubr.msk.f32.mxu0 %vm11301_vm6, %v21425_v8  ;;  %v13519_v8 = vld [vmem:[%s21758_s7 + $0xd8] sm:$0xff]  ;;  %v13564_v42 = vld [vmem:[%s21758_s7 + $0x1c0] sm:$0xff]  ;;  %v16786_v23 = vpack.c.bf16 %v13567_v56, %v13566_v29 }
 0x94d   :  { %16711 = vmatprep.subr.bf16.mxu0 %v16710_v62  ;;  %v16722_v11 = vpack.c.bf16 %v13519_v8, %v13518_v37  ;;  %v16782_v17 = vpack.c.bf16 %v13565_v5, %v13564_v42  ;;  %v13571_v37 = vld [vmem:[%s21758_s7 + $0x1f8] sm:$0xff]  ;;  %v13589_v42 = vld [vmem:[%s21762_s10] ss:$0 sm:$0xff] }
 0x94e   :  { %v21550_v25 = vld [vmem:[#allocation4 + $0x48] sm:$0xff] }
 0x950   :  { %16713 = vmatpush3.bf16.msra.mxu0 %v16710_v62  ;;  %v12007_v62 = vld [vmem:[#allocation4 + $0x60] sm:$0xff] }
 0x951   :  { %16715 = vmatprep.subr.bf16.mxu0 %v16714_v55 }
 0x952   :  { %v21584_v41 = vld [vmem:[#allocation4 + $0x50] sm:$0xff] }
 0x954   :  { %16717 = vmatpush3.bf16.msra.mxu0 %v16714_v55  ;;  %v13569_v55 = vld [vmem:[%s21758_s7 + $0x1e8] sm:$0xff] }
 0x955   :  { %16719 = vmatprep.subr.bf16.mxu0 %v16718_v3  ;;  %v16790_v46 = vpack.c.bf16 %v13569_v55, %v13568_v15 }
 0x957   :  { %16384 = vmatmul.mubr.msk.f32.vlgmr.msra.gmra.mrb[62].mxu0 %vm11301_vm6, %v11547_v36  ;;  %v13576_v36 = vld [vmem:[%s21758_s7 + $0x200] sm:$0xff] }
 0x958   :  { %16386 = vmatprep.mubr.msk.f32.mxu0 %vm11301_vm6, %v21462_v16  ;;  %16721 = vmatpush3.bf16.msra.mxu0 %v16718_v3  ;;  %v13570_v3 = vld [vmem:[%s21758_s7 + $0x1f0] sm:$0xff] }
 0x959   :  { %16723 = vmatprep.subr.bf16.mxu0 %v16722_v11  ;;  %v16794_v8 = vpack.c.bf16 %v13571_v37, %v13570_v3 }
 0x95b   :  { %16387 = vmatmul.mubr.msk.f32.gmra.mrb[64].mxu0 %vm11301_vm6, %v21515_v31 }
 0x95c   :  { %16725 = vmatpush3.bf16.msra.mxu0 %v16722_v11  ;;  %16405 = vmatprep.mubr.msk.f32.mxu0 %vm11301_vm6, %v11327_v47  ;;  %v16778_v47 = vpack.c.bf16 %v13559_v59, %v13558_v18  ;;  %v13577_v11 = vld [vmem:[%s21758_s7 + $0x208] sm:$0xff] }
 0x95d   :  { %16727 = vmatprep.subr.bf16.mxu0 %v16726_v7  ;;  %v16798_v58 = vpack.c.bf16 %v13577_v11, %v13576_v36 }
 0x960   :  { %16729 = vmatpush3.bf16.msra.mxu0 %v16726_v7 }
 0x961   :  { %16731 = vmatprep.subr.bf16.mxu0 %v16730_v32 }
 0x964   :  { %16733 = vmatpush3.bf16.msra.mxu0 %v16730_v32  ;;  %v12123_v32 = vld [vmem:[#allocation4 + $0x70] sm:$0xff] }
 0x965   :  { %16735 = vmatprep.subr.bf16.mxu0 %v16734_v24 }
 0x967   :  { %16406 = vmatmul.mubr.msk.f32.vlgmr.msra.gmra.mrb[62].mxu0 %vm11301_vm6, %v21458_v35 }
 0x968   :  { %16737 = vmatpush3.bf16.msra.mxu0 %v16734_v24  ;;  %16408 = vmatprep.mubr.msk.f32.mxu0 %vm11301_vm6, %v21538_v49  ;;  %v13583_v24 = vld [vmem:[%s21758_s7 + $0x238] sm:$0xff] }
 0x969   :  { %16739 = vmatprep.subr.bf16.mxu0 %v16738_v20  ;;  %v16810_v22 = vpack.c.bf16 %v13583_v24, %v13582_v52 }
 0x96b   :  { %16409 = vmatmul.mubr.msk.f32.gmra.mrb[64].mxu0 %vm11301_vm6, %v21550_v25 }
 0x96c   :  { %16741 = vmatpush3.bf16.msra.mxu0 %v16738_v20  ;;  %16427 = vmatprep.mubr.msk.f32.mxu0 %vm11301_vm6, %v21458_v35  ;;  %v13547_v35 = vld [vmem:[%s21758_s7 + $0x178] sm:$0xff] }
 0x96d   :  { %16743 = vmatprep.subr.bf16.mxu0 %v16742_v60  ;;  %v16762_v21 = vpack.c.bf16 %v13547_v35, %v13546_v4  ;;  %v12373_v4 = vld [vmem:[%s21760_s9 + $0x60] sm:$0xff]  ;;  %v12374_v35 = vld [vmem:[%s21760_s9 + $0x68] sm:$0xff] }
 0x970   :  { %16745 = vmatpush3.bf16.msra.mxu0 %v16742_v60  ;;  %v12364_v60 = vld [vmem:[%s21760_s9 + $0x18] sm:$0xff] }
 0x971   :  { %16747 = vmatprep.subr.bf16.mxu0 %v16746_v10  ;;  %v16818_v63 = vpack.c.bf16 %v12364_v60, %v12363_v9 }
 0x974   :  { %16749 = vmatpush3.bf16.msra.mxu0 %v16746_v10  ;;  %v12366_v10 = vld [vmem:[%s21760_s9 + $0x28] sm:$0xff] }
 0x975   :  { %16751 = vmatprep.subr.bf16.mxu0 %v16750_v40  ;;  %v16821_v53 = vpack.c.bf16 %v12366_v10, %v12365_v12 }
 0x977   :  { %16428 = vmatmul.mubr.msk.f32.vlgmr.msra.gmra.mrb[62].mxu0 %vm11301_vm6, %v21462_v16 }
 0x978   :  { %16430 = vmatprep.mubr.msk.f32.mxu0 %vm11301_vm6, %v21550_v25  ;;  %16753 = vmatpush3.bf16.msra.mxu0 %v16750_v40  ;;  %v12368_v40 = vld [vmem:[%s21760_s9 + $0x38] sm:$0xff] }
 0x979   :  { %16755 = vmatprep.subr.bf16.mxu0 %v16754_v13  ;;  %v16824_v26 = vpack.c.bf16 %v12368_v40, %v12367_v39 }
 0x97b   :  { %16431 = vmatmul.mubr.msk.f32.gmra.mrb[64].mxu0 %vm11301_vm6, %v21584_v41 }
 0x97c   :  { %16757 = vmatpush3.bf16.msra.mxu0 %v16754_v13  ;;  %16449 = vmatprep.mubr.msk.f32.mxu0 %vm11301_vm6, %v21462_v16  ;;  %v16770_v16 = vpack.c.bf16 %v13555_v33, %v13554_v30  ;;  %v12370_v13 = vld [vmem:[%s21760_s9 + $0x48] sm:$0xff] }
 0x97d   :  { %16759 = vmatprep.subr.bf16.mxu0 %v16758_v6  ;;  %v16827_v45 = vpack.c.bf16 %v12370_v13, %v12369_v19 }
 0x980   :  { %16761 = vmatpush3.bf16.msra.mxu0 %v16758_v6  ;;  %v12372_v6 = vld [vmem:[%s21760_s9 + $0x58] sm:$0xff] }
 0x981   :  { %16763 = vmatprep.subr.bf16.mxu0 %v16762_v21 }
 0x984   :  { %16765 = vmatpush3.bf16.msra.mxu0 %v16762_v21  ;;  %v16833_v21 = vpack.c.bf16 %v12374_v35, %v12373_v4 }
 0x985   :  { %16767 = vmatprep.subr.bf16.mxu0 %v16766_v54 }
 0x987   :  { %16450 = vmatmul.mubr.msk.f32.vlgmr.msra.gmra.mrb[62].mxu0 %vm11301_vm6, %v21515_v31  ;;  %v13579_v31 = vld [vmem:[%s21758_s7 + $0x218] sm:$0xff] }
 0x988   :  { %16452 = vmatprep.mubr.msk.f32.mxu0 %vm11301_vm6, %v21584_v41  ;;  %16769 = vmatpush3.bf16.msra.mxu0 %v16766_v54  ;;  %v16802_v7 = vpack.c.bf16 %v13579_v31, %v13578_v2  ;;  %v16836_v54 = vpack.c.bf16 %v12376_v14, %v12375_v0 }
 0x989   :  { %16771 = vmatprep.subr.bf16.mxu0 %v16770_v16 }
 0x98b   :  { %16453 = vmatmul.mubr.msk.f32.gmra.mrb[64].mxu0 %vm11301_vm6, %v21618_v50 }
 0x98c   :  { %16773 = vmatpush3.bf16.msra.mxu0 %v16770_v16  ;;  %16471 = vmatprep.mubr.msk.f32.mxu0 %vm11301_vm6, %v21538_v49  ;;  %v12362_v49 = vld [vmem:[%s21760_s9 + $0x8] sm:$0xff] }
 0x98d   :  { %16775 = vmatprep.subr.bf16.mxu0 %v16774_v1  ;;  %v16815_v20 = vpack.c.bf16 %v12362_v49, %v12361_v27 }
 0x990   :  { %16777 = vmatpush3.bf16.msra.mxu0 %v16774_v1  ;;  %v13588_v1 = vld [vmem:[%s21761_s8] ss:$0 sm:$0xff] }
 0x991   :  { %16779 = vmatprep.subr.bf16.mxu0 %v16778_v47 }
 0x994   :  { %16781 = vmatpush3.bf16.msra.mxu0 %v16778_v47 }
 0x995   :  { %16783 = vmatprep.subr.bf16.mxu0 %v16782_v17 }
 0x997   :  { %16472 = vmatmul.mubr.msk.f32.vlgmr.msra.gmra.mrb[62].mxu0 %vm11301_vm6, %v21550_v25 }
 0x998   :  { %16785 = vmatpush3.bf16.msra.mxu0 %v16782_v17  ;;  %16474 = vmatprep.mubr.msk.f32.mxu0 %vm11301_vm6, %v12007_v62 }
 0x999   :  { %16787 = vmatprep.subr.bf16.mxu0 %v16786_v23 }
 0x99b   :  { %16475 = vmatmul.mubr.msk.f32.gmra.mrb[64].mxu0 %vm11301_vm6, %v12008_v28 }
 0x99c   :  { %16789 = vmatpush3.bf16.msra.mxu0 %v16786_v23  ;;  %16493 = vmatprep.mubr.msk.f32.mxu0 %vm11301_vm6, %v21550_v25  ;;  %v12238_v25 = vld [vmem:[#allocation4 + $0x78] sm:$0xff] }
 0x99d   :  { %16791 = vmatprep.subr.bf16.mxu0 %v16790_v46 }
 0x9a0   :  { %16793 = vmatpush3.bf16.msra.mxu0 %v16790_v46 }
 0x9a1   :  { %16795 = vmatprep.subr.bf16.mxu0 %v16794_v8 }
 0x9a4   :  { %16797 = vmatpush3.bf16.msra.mxu0 %v16794_v8 }
 0x9a5   :  { %16799 = vmatprep.subr.bf16.mxu0 %v16798_v58 }
 0x9a7   :  { %16494 = vmatmul.mubr.msk.f32.vlgmr.msra.gmra.mrb[62].mxu0 %vm11301_vm6, %v21584_v41 }
 0x9a8   :  { %16801 = vmatpush3.bf16.msra.mxu0 %v16798_v58  ;;  %16496 = vmatprep.mubr.msk.f32.mxu0 %vm11301_vm6, %v12008_v28 }
 0x9a9   :  { %16803 = vmatprep.subr.bf16.mxu0 %v16802_v7 }
 0x9ab   :  { %16497 = vmatmul.mubr.msk.f32.gmra.mrb[64].mxu0 %vm11301_vm6, %v12123_v32 }
 0x9ac   :  { %16805 = vmatpush3.bf16.msra.mxu0 %v16802_v7  ;;  %16515 = vmatprep.mubr.msk.f32.mxu0 %vm11301_vm6, %v21584_v41  ;;  %v16830_v41 = vpack.c.bf16 %v12372_v6, %v12371_v44 }
 0x9ad   :  { %16807 = vmatprep.subr.bf16.mxu0 %v16806_v61 }
 0x9b0   :  { %16809 = vmatpush3.bf16.msra.mxu0 %v16806_v61 }
 0x9b1   :  { %16811 = vmatprep.subr.bf16.mxu0 %v16810_v22 }
 0x9b4   :  { %16813 = vmatpush3.bf16.msra.mxu0 %v16810_v22 }
 0x9b5   :  { %16814 = vmatprep.subr.bf16.mxu0 %v17520_v51 }
 0x9b7   :  { %16516 = vmatmul.mubr.msk.f32.vlgmr.msra.gmra.mrb[62].mxu0 %vm11301_vm6, %v21618_v50 }
 0x9b8   :  { %16518 = vmatprep.mubr.msk.f32.mxu0 %vm11301_vm6, %v12123_v32  ;;  %16816 = vmatpush3.bf16.msra.mxu0 %v16815_v20 }
 0x9b9   :  { %16817 = vmatprep.subr.bf16.mxu0 %v17520_v51 }
 0x9bb   :  { %16519 = vmatmul.mubr.msk.f32.gmra.mrb[64].mxu0 %vm11301_vm6, %v12238_v25 }
 0x9bc   :  { %16819 = vmatpush3.bf16.msra.mxu0 %v16818_v63  ;;  %16553 = vmatprep.mubr.msk.f32.mxu0 %vm17521_vm7, %v21933_v48 }
 0x9bd   :  { %16820 = vmatprep.subr.bf16.mxu0 %v17520_v51 }
 0x9c0   :  { %16822 = vmatpush3.bf16.msra.mxu0 %v16821_v53 }
 0x9c1   :  { %16823 = vmatprep.subr.bf16.mxu0 %v17520_v51 }
 0x9c4   :  { %16825 = vmatpush3.bf16.msra.mxu0 %v16824_v26 }
 0x9c5   :  { %16826 = vmatprep.subr.bf16.mxu0 %v17520_v51 }
 0x9c8   :  { %16828 = vmatpush3.bf16.msra.mxu0 %v16827_v45 }
 0x9c9   :  { %16829 = vmatprep.subr.bf16.mxu0 %v17520_v51 }
 0x9cc   :  { %16831 = vmatpush3.bf16.msra.mxu0 %v16830_v41 }
 0x9cd   :  { %16832 = vmatprep.subr.bf16.mxu0 %v17520_v51 }
 0x9d0   :  { %16834 = vmatpush3.bf16.msra.mxu0 %v16833_v21 }
 0x9d1   :  { %16835 = vmatprep.subr.bf16.mxu0 %v17520_v51 }
 0x9d4   :  { %16837 = vmatpush3.bf16.msra.mxu0 %v16836_v54 }
 0xa8a   :  { %v16517_v30 = vpop.f32.mrb[62].mxu0 }
 0xa8b   :  { %v12326_v33 = vpop.f32.mrb[63].mxu0 }
 0xa8e   :  { %v16520_v16 = vpop.f32.mrb[64].mxu0 }
 0xa8f   :  { %v12350_v34 = vmax.f32 %v16517_v30, %v16520_v16  ;;  %v12336_v57 = vpop.f32.mrb[65].mxu0 }
 0xa90   :  { %v12349_v50 = vmax.f32 %v12326_v33, %v12336_v57 }
 0xa92   :  { %v12351_v18 = vmax.f32 %v12349_v50, %v12350_v34 }
 0xa94   :  { %v12359_v59 = vadd.f32 %v13588_v1, %v12351_v18 }
 0xa96   :  { %v12360_v47 = vmax.f32 %v12359_v59, 0.0 }
 0xa98   :  { %16554 = vmatmul.mubr.f32.vlgmr.msra.gmra.mrb[66].mxu0 %v12360_v47 }
 0xb6b   :  { %v12450_v5 = vpop.f32.mrb[66].mxu0 }
 0xb6c   :  { %v12451_v48 = vadd.f32 %v13589_v42, %v12450_v5  ;;  %v16555_v17 = vpop.f32.mrb[67].mxu0 }
 0xb6e   :  { %12455 = vst.msk [vmem:[%s21763_s11] sm:$0xff] %vm12454_vm8, %v12451_v48 }

</bundles_post_ra>
